<compile_context>
chip_gen: v7x
topology: tpu7x:2x2x1
jax: 0.10.0
libtpu: 0.0.40
codegen_flags: <defaults>
</compile_context>

<pallas_src>
import functools
import math

import jax
import jax.numpy as jnp
from jax.experimental import pallas as pl
from jax.experimental.pallas import tpu as pltpu


# ----------------------- fused CNN stage (one kernel) -----------------------
def _cnn_fused_kernel(x_ref, w1_ref, b1_ref, w2_ref, b2_ref, w3_ref, b3_ref,
                      w4_ref, b4_ref, o_ref, s1, s2, s3, s4):
    # x_ref : (H, W, 3) f32   -- one image (batch dim squeezed by BlockSpec)
    # wN_ref: (9, Cin, Cout) bf16 (3x3 taps in row-major (dy, dx) order)
    # bN_ref: (1, Cout) f32
    # o_ref : (H//4, W//4, 128) f32
    # sN    : VMEM f32 scratch, (h+2, w+2, Cin) zero-padded conv inputs

    def fill_padded(s_ref, val):
        # write `val` into the interior of the zero-padded scratch buffer
        h, w = val.shape[0], val.shape[1]
        s_ref[...] = jnp.zeros_like(s_ref)
        s_ref[1:h + 1, 1:w + 1, :] = val.astype(s_ref.dtype)

    def conv3x3_relu(s_ref, w_ref, b_ref):
        hp, wp, cin = s_ref.shape
        h, w = hp - 2, wp - 2
        cout = w_ref.shape[-1]
        xp = s_ref[...]
        acc = jnp.zeros((h * w, cout), jnp.float32)
        for dy in range(3):                      # statically unrolled 9 taps
            for dx in range(3):
                patch = xp[dy:dy + h, dx:dx + w, :].reshape(h * w, cin)
                acc = acc + jnp.dot(patch.astype(jnp.bfloat16),
                                    w_ref[dy * 3 + dx],
                                    preferred_element_type=jnp.float32)
        y = jnp.maximum(acc + b_ref[...], 0.0)   # bias + fused ReLU (f32)
        return y.reshape(h, w, cout)

    def maxpool2(y):
        h, w, c = y.shape
        y = jnp.max(y.reshape(h // 2, 2, w, c), axis=1)
        y = jnp.max(y.reshape(h // 2, w // 2, 2, c), axis=2)
        return y

    fill_padded(s1, x_ref[...])
    y = conv3x3_relu(s1, w1_ref, b1_ref)         # (H,  W,  32)
    fill_padded(s2, y)
    y = conv3x3_relu(s2, w2_ref, b2_ref)         # (H,  W,  32)
    y = maxpool2(y)                              # (H/2,W/2,32)
    fill_padded(s3, y)
    y = conv3x3_relu(s3, w3_ref, b3_ref)         # (H/2,W/2,64)
    fill_padded(s4, y)
    y = conv3x3_relu(s4, w4_ref, b4_ref)         # (H/2,W/2,128)
    y = maxpool2(y)                              # (H/4,W/4,128)
    o_ref[...] = y.astype(o_ref.dtype)


def cnn(params, x_nchw):
    # x_nchw: (N, 3, H, W) f32  ->  (N, H//4, W//4, 128) f32
    x = jnp.transpose(x_nchw, (0, 2, 3, 1)).astype(jnp.float32)  # NHWC
    N, H, W, Cin = x.shape
    Ho, Wo = H // 4, W // 4
    (w1, b1) = params["c1"]
    (w2, b2) = params["c2"]
    (w3, b3) = params["c3"]
    (w4, b4) = params["c4"]
    return pl.pallas_call(
        _cnn_fused_kernel,
        out_shape=jax.ShapeDtypeStruct((N, Ho, Wo, 128), jnp.float32),
        grid=(N,),
        in_specs=[
            pl.BlockSpec((None, H, W, Cin), lambda n: (n, 0, 0, 0)),
            pl.BlockSpec(w1.shape, lambda n: (0, 0, 0)),
            pl.BlockSpec(b1.shape, lambda n: (0, 0)),
            pl.BlockSpec(w2.shape, lambda n: (0, 0, 0)),
            pl.BlockSpec(b2.shape, lambda n: (0, 0)),
            pl.BlockSpec(w3.shape, lambda n: (0, 0, 0)),
            pl.BlockSpec(b3.shape, lambda n: (0, 0)),
            pl.BlockSpec(w4.shape, lambda n: (0, 0, 0)),
            pl.BlockSpec(b4.shape, lambda n: (0, 0)),
        ],
        out_specs=pl.BlockSpec((None, Ho, Wo, 128), lambda n: (n, 0, 0, 0)),
        scratch_shapes=[
            pltpu.VMEM((H + 2, W + 2, Cin), jnp.float32),
            pltpu.VMEM((H + 2, W + 2, 32), jnp.float32),
            pltpu.VMEM((H // 2 + 2, W // 2 + 2, 32), jnp.float32),
            pltpu.VMEM((H // 2 + 2, W // 2 + 2, 64), jnp.float32),
        ],
        compiler_params=pltpu.CompilerParams(
            dimension_semantics=("parallel",)),
    )(x, w1, b1, w2, b2, w3, b3, w4, b4)


# -------------------------- Linear (+ optional ReLU) -------------------------
def _linear_kernel(x_ref, w_ref, b_ref, o_ref, acc_ref, *, relu):
    k = pl.program_id(1)

    @pl.when(k == 0)
    def _():
        acc_ref[...] = jnp.zeros_like(acc_ref)

    acc_ref[...] += jnp.dot(x_ref[...].astype(jnp.bfloat16), w_ref[...],
                            preferred_element_type=jnp.float32)

    @pl.when(k == pl.num_programs(1) - 1)
    def _():
        y = acc_ref[...] + b_ref[...]
        if relu:
            y = jnp.maximum(y, 0.0)
        o_ref[...] = y.astype(o_ref.dtype)


def linear(x, w, b, relu=False, tk=2048, tm=512):
    # x: (N, K) f32, w: (K, M) bf16, b: (1, M) f32 -> (N, M) f32
    N, K = x.shape
    M = w.shape[1]
    tk = min(tk, K)
    tm = min(tm, M)
    assert K % tk == 0 and M % tm == 0
    nk, nm = K // tk, M // tm
    return pl.pallas_call(
        functools.partial(_linear_kernel, relu=relu),
        out_shape=jax.ShapeDtypeStruct((N, M), jnp.float32),
        grid=(nm, nk),
        in_specs=[
            pl.BlockSpec((N, tk), lambda m, k: (0, k)),
            pl.BlockSpec((tk, tm), lambda m, k: (k, m)),
            pl.BlockSpec((1, tm), lambda m, k: (0, m)),
        ],
        out_specs=pl.BlockSpec((N, tm), lambda m, k: (0, m)),
        scratch_shapes=[pltpu.VMEM((N, tm), jnp.float32)],
        compiler_params=pltpu.CompilerParams(
            dimension_semantics=("parallel", "arbitrary"),
            vmem_limit_bytes=32 * 1024 * 1024,
        ),
    )(x, w, b)


# ------------------------------- parameters ---------------------------------
def init_params(key, h=16, w=16):
    ks = jax.random.split(key, 8)

    def conv_p(k, cin, cout):
        std = 1.0 / math.sqrt(9 * cin)
        wgt = jax.random.normal(k, (9, cin, cout), jnp.float32) * std
        return wgt.astype(jnp.bfloat16), jnp.zeros((1, cout), jnp.float32)

    def lin_p(k, kin, mout):
        std = 1.0 / math.sqrt(kin)
        wgt = jax.random.normal(k, (kin, mout), jnp.float32) * std
        return wgt.astype(jnp.bfloat16), jnp.zeros((1, mout), jnp.float32)

    feat = 128 * (h // 4) * (w // 4)   # == 73728 for the original 96x96 input
    return {
        "c1": conv_p(ks[0], 3, 32),
        "c2": conv_p(ks[1], 32, 32),
        "c3": conv_p(ks[2], 32, 64),
        "c4": conv_p(ks[3], 64, 128),
        "cls1": lin_p(ks[4], feat, 1024),
        "cls2": lin_p(ks[5], 1024, 10),
        "prx1": lin_p(ks[6], 4 * feat, 1024),
        "prx2": lin_p(ks[7], 1024, 12),
    }


# --------------------------------- forward ----------------------------------
def flatten_like_torch(y_nhwc):
    # Match PyTorch's NCHW flatten element ordering.
    n = y_nhwc.shape[0]
    return jnp.transpose(y_nhwc, (0, 3, 1, 2)).reshape(n, -1)


def model_forward(params, x1, x2=None, x3=None, x4=None, proxy=False):
    if proxy is False:
        f = flatten_like_torch(cnn(params, x1))
        h = linear(f, *params["cls1"], relu=True)
        return linear(h, *params["cls2"], relu=False)
    elif x2 is not None:
        n = x1.shape[0]
        # One batched CNN call for x1 and x2 (fills the parallel grid axis).
        y = cnn(params, jnp.concatenate([x1, x2], axis=0))
        f12 = flatten_like_torch(y)
        o1, o2 = f12[:n], f12[n:]
        # In the PyTorch module output3/output4 are views of output2, so the
        # cnn(x3)/cnn(x4) results are dead; XLA would DCE them, so skip them.
        f = jnp.concatenate((o1, o2, o2, o2), axis=1)
        h = linear(f, *params["prx1"], relu=True)
        return linear(h, *params["prx2"], relu=False)
    else:
        return flatten_like_torch(cnn(params, x1))


if __name__ == "__main__":
    key = jax.random.PRNGKey(0)
    kp, k1, k2, k3, k4 = jax.random.split(key, 5)
    H = W = 16
    params = init_params(kp, H, W)
    x1 = jax.random.normal(k1, (2, 3, H, W), jnp.float32)
    x2 = jax.random.normal(k2, (2, 3, H, W), jnp.float32)
    x3 = jax.random.normal(k3, (2, 3, H, W), jnp.float32)
    x4 = jax.random.normal(k4, (2, 3, H, W), jnp.float32)

    cls_fn = jax.jit(lambda p, a: model_forward(p, a, proxy=False))
    prx_fn = jax.jit(lambda p, a, b, c, d: model_forward(p, a, b, c, d, proxy=True))

    out_cls = jax.block_until_ready(cls_fn(params, x1))
    out_prx = jax.block_until_ready(prx_fn(params, x1, x2, x3, x4))
    assert out_cls.shape == (2, 10) and out_cls.dtype == jnp.float32
    assert out_prx.shape == (2, 12) and out_prx.dtype == jnp.float32
    assert bool(jnp.all(jnp.isfinite(out_cls))) and bool(jnp.all(jnp.isfinite(out_prx)))
    print("KERNEL_OK")
</pallas_src>

<mosaic_0001>
module attributes {stable_mosaic.version = 11 : i64} {
  func.func @_cnn_fused_kernel(%arg0: i32, %arg1: memref<1x16x16x3xf32, #tpu.memory_space<vmem>>, %arg2: memref<9x3x32xbf16, #tpu.memory_space<vmem>>, %arg3: memref<1x32xf32, #tpu.memory_space<vmem>>, %arg4: memref<9x32x32xbf16, #tpu.memory_space<vmem>>, %arg5: memref<1x32xf32, #tpu.memory_space<vmem>>, %arg6: memref<9x32x64xbf16, #tpu.memory_space<vmem>>, %arg7: memref<1x64xf32, #tpu.memory_space<vmem>>, %arg8: memref<9x64x128xbf16, #tpu.memory_space<vmem>>, %arg9: memref<1x128xf32, #tpu.memory_space<vmem>>, %arg10: memref<1x4x4x128xf32, #tpu.memory_space<vmem>>, %arg11: memref<18x18x3xf32, #tpu.memory_space<vmem>>, %arg12: memref<18x18x32xf32, #tpu.memory_space<vmem>>, %arg13: memref<10x10x32xf32, #tpu.memory_space<vmem>>, %arg14: memref<10x10x64xf32, #tpu.memory_space<vmem>>) attributes {dimension_semantics = [#tpu.dimension_semantics<parallel>], iteration_bounds = array<i64: 2>, scalar_prefetch = 0 : i64, scratch_operands = 4 : i64, tpu.core_type = #tpu.core_type<tc>, window_params = [{transform_indices = @transform_0, window_bounds = array<i64: 1, 16, 16, 3>}, {pipeline_mode = #tpu.pipeline_mode<synchronous>, transform_indices = @transform_1, window_bounds = array<i64: 9, 3, 32>}, {pipeline_mode = #tpu.pipeline_mode<synchronous>, transform_indices = @transform_2, window_bounds = array<i64: 1, 32>}, {pipeline_mode = #tpu.pipeline_mode<synchronous>, transform_indices = @transform_3, window_bounds = array<i64: 9, 32, 32>}, {pipeline_mode = #tpu.pipeline_mode<synchronous>, transform_indices = @transform_4, window_bounds = array<i64: 1, 32>}, {pipeline_mode = #tpu.pipeline_mode<synchronous>, transform_indices = @transform_5, window_bounds = array<i64: 9, 32, 64>}, {pipeline_mode = #tpu.pipeline_mode<synchronous>, transform_indices = @transform_6, window_bounds = array<i64: 1, 64>}, {pipeline_mode = #tpu.pipeline_mode<synchronous>, transform_indices = @transform_7, window_bounds = array<i64: 9, 64, 128>}, {pipeline_mode = #tpu.pipeline_mode<synchronous>, transform_indices = @transform_8, window_bounds = array<i64: 1, 128>}, {transform_indices = @transform_9, window_bounds = array<i64: 1, 4, 4, 128>}]} {
    %c0 = arith.constant 0 : index
    %c0_0 = arith.constant 0 : index
    %c0_1 = arith.constant 0 : index
    %c0_2 = arith.constant 0 : index
    %0 = vector.load %arg1[%c0, %c0_0, %c0_1, %c0_2] : memref<1x16x16x3xf32, #tpu.memory_space<vmem>>, vector<1x16x16x3xf32>
    %1 = vector.shape_cast %0 : vector<1x16x16x3xf32> to vector<16x16x3xf32>
    %cst = arith.constant 0.000000e+00 : f32
    %2 = vector.broadcast %cst : f32 to vector<18x18x3xf32>
    %c0_3 = arith.constant 0 : index
    %c0_4 = arith.constant 0 : index
    %c0_5 = arith.constant 0 : index
    %3 = vector.load %arg11[%c0_3, %c0_4, %c0_5] : memref<18x18x3xf32, #tpu.memory_space<vmem>>, vector<18x18x3xf32>
    tpu.vector_store %arg11[%c0_3, %c0_4, %c0_5], %2 {strides = array<i32>} : memref<18x18x3xf32, #tpu.memory_space<vmem>>, vector<18x18x3xf32>,
    %c1 = arith.constant 1 : index
    %c1_6 = arith.constant 1 : index
    %c0_7 = arith.constant 0 : index
    %4 = vector.load %arg11[%c1, %c1_6, %c0_7] : memref<18x18x3xf32, #tpu.memory_space<vmem>>, vector<16x16x3xf32>
    tpu.vector_store %arg11[%c1, %c1_6, %c0_7], %1 {strides = array<i32>} : memref<18x18x3xf32, #tpu.memory_space<vmem>>, vector<16x16x3xf32>,
    %c0_8 = arith.constant 0 : index
    %c0_9 = arith.constant 0 : index
    %c0_10 = arith.constant 0 : index
    %5 = vector.load %arg11[%c0_8, %c0_9, %c0_10] : memref<18x18x3xf32, #tpu.memory_space<vmem>>, vector<18x18x3xf32>
    %cst_11 = arith.constant 0.000000e+00 : f32
    %6 = vector.broadcast %cst_11 : f32 to vector<256x32xf32>
    %7 = vector.extract_strided_slice %5 {offsets = [0, 0, 0], sizes = [16, 16, 3], strides = [1, 1, 1]} : vector<18x18x3xf32> to vector<16x16x3xf32>
    %8 = vector.shape_cast %7 : vector<16x16x3xf32> to vector<256x3xf32>
    %9 = arith.truncf %8 : vector<256x3xf32> to vector<256x3xbf16>
    %c0_12 = arith.constant 0 : index
    %c0_13 = arith.constant 0 : index
    %c0_14 = arith.constant 0 : index
    %10 = vector.load %arg2[%c0_12, %c0_13, %c0_14] : memref<9x3x32xbf16, #tpu.memory_space<vmem>>, vector<1x3x32xbf16>
    %11 = vector.shape_cast %10 : vector<1x3x32xbf16> to vector<3x32xbf16>
    %cst_15 = arith.constant dense<0.000000e+00> : vector<256x32xf32>
    %12 = tpu.matmul %9, %11, %cst_15 {dimension_numbers = #tpu.dot_dimension_numbers<[1], [0], [0], [1], [0, 0, 1, 1], [], []>} : vector<256x3xbf16>, vector<3x32xbf16>, vector<256x32xf32> -> vector<256x32xf32>
    %13 = arith.addf %6, %12 : vector<256x32xf32>
    %14 = vector.extract_strided_slice %5 {offsets = [0, 1, 0], sizes = [16, 16, 3], strides = [1, 1, 1]} : vector<18x18x3xf32> to vector<16x16x3xf32>
    %15 = vector.shape_cast %14 : vector<16x16x3xf32> to vector<256x3xf32>
    %16 = arith.truncf %15 : vector<256x3xf32> to vector<256x3xbf16>
    %c1_16 = arith.constant 1 : index
    %c0_17 = arith.constant 0 : index
    %c0_18 = arith.constant 0 : index
    %17 = vector.load %arg2[%c1_16, %c0_17, %c0_18] : memref<9x3x32xbf16, #tpu.memory_space<vmem>>, vector<1x3x32xbf16>
    %18 = vector.shape_cast %17 : vector<1x3x32xbf16> to vector<3x32xbf16>
    %cst_19 = arith.constant dense<0.000000e+00> : vector<256x32xf32>
    %19 = tpu.matmul %16, %18, %cst_19 {dimension_numbers = #tpu.dot_dimension_numbers<[1], [0], [0], [1], [0, 0, 1, 1], [], []>} : vector<256x3xbf16>, vector<3x32xbf16>, vector<256x32xf32> -> vector<256x32xf32>
    %20 = arith.addf %13, %19 : vector<256x32xf32>
    %21 = vector.extract_strided_slice %5 {offsets = [0, 2, 0], sizes = [16, 16, 3], strides = [1, 1, 1]} : vector<18x18x3xf32> to vector<16x16x3xf32>
    %22 = vector.shape_cast %21 : vector<16x16x3xf32> to vector<256x3xf32>
    %23 = arith.truncf %22 : vector<256x3xf32> to vector<256x3xbf16>
    %c2 = arith.constant 2 : index
    %c0_20 = arith.constant 0 : index
    %c0_21 = arith.constant 0 : index
    %24 = vector.load %arg2[%c2, %c0_20, %c0_21] : memref<9x3x32xbf16, #tpu.memory_space<vmem>>, vector<1x3x32xbf16>
    %25 = vector.shape_cast %24 : vector<1x3x32xbf16> to vector<3x32xbf16>
    %cst_22 = arith.constant dense<0.000000e+00> : vector<256x32xf32>
    %26 = tpu.matmul %23, %25, %cst_22 {dimension_numbers = #tpu.dot_dimension_numbers<[1], [0], [0], [1], [0, 0, 1, 1], [], []>} : vector<256x3xbf16>, vector<3x32xbf16>, vector<256x32xf32> -> vector<256x32xf32>
    %27 = arith.addf %20, %26 : vector<256x32xf32>
    %28 = vector.extract_strided_slice %5 {offsets = [1, 0, 0], sizes = [16, 16, 3], strides = [1, 1, 1]} : vector<18x18x3xf32> to vector<16x16x3xf32>
    %29 = vector.shape_cast %28 : vector<16x16x3xf32> to vector<256x3xf32>
    %30 = arith.truncf %29 : vector<256x3xf32> to vector<256x3xbf16>
    %c3 = arith.constant 3 : index
    %c0_23 = arith.constant 0 : index
    %c0_24 = arith.constant 0 : index
    %31 = vector.load %arg2[%c3, %c0_23, %c0_24] : memref<9x3x32xbf16, #tpu.memory_space<vmem>>, vector<1x3x32xbf16>
    %32 = vector.shape_cast %31 : vector<1x3x32xbf16> to vector<3x32xbf16>
    %cst_25 = arith.constant dense<0.000000e+00> : vector<256x32xf32>
    %33 = tpu.matmul %30, %32, %cst_25 {dimension_numbers = #tpu.dot_dimension_numbers<[1], [0], [0], [1], [0, 0, 1, 1], [], []>} : vector<256x3xbf16>, vector<3x32xbf16>, vector<256x32xf32> -> vector<256x32xf32>
    %34 = arith.addf %27, %33 : vector<256x32xf32>
    %35 = vector.extract_strided_slice %5 {offsets = [1, 1, 0], sizes = [16, 16, 3], strides = [1, 1, 1]} : vector<18x18x3xf32> to vector<16x16x3xf32>
    %36 = vector.shape_cast %35 : vector<16x16x3xf32> to vector<256x3xf32>
    %37 = arith.truncf %36 : vector<256x3xf32> to vector<256x3xbf16>
    %c4 = arith.constant 4 : index
    %c0_26 = arith.constant 0 : index
    %c0_27 = arith.constant 0 : index
    %38 = vector.load %arg2[%c4, %c0_26, %c0_27] : memref<9x3x32xbf16, #tpu.memory_space<vmem>>, vector<1x3x32xbf16>
    %39 = vector.shape_cast %38 : vector<1x3x32xbf16> to vector<3x32xbf16>
    %cst_28 = arith.constant dense<0.000000e+00> : vector<256x32xf32>
    %40 = tpu.matmul %37, %39, %cst_28 {dimension_numbers = #tpu.dot_dimension_numbers<[1], [0], [0], [1], [0, 0, 1, 1], [], []>} : vector<256x3xbf16>, vector<3x32xbf16>, vector<256x32xf32> -> vector<256x32xf32>
    %41 = arith.addf %34, %40 : vector<256x32xf32>
    %42 = vector.extract_strided_slice %5 {offsets = [1, 2, 0], sizes = [16, 16, 3], strides = [1, 1, 1]} : vector<18x18x3xf32> to vector<16x16x3xf32>
    %43 = vector.shape_cast %42 : vector<16x16x3xf32> to vector<256x3xf32>
    %44 = arith.truncf %43 : vector<256x3xf32> to vector<256x3xbf16>
    %c5 = arith.constant 5 : index
    %c0_29 = arith.constant 0 : index
    %c0_30 = arith.constant 0 : index
    %45 = vector.load %arg2[%c5, %c0_29, %c0_30] : memref<9x3x32xbf16, #tpu.memory_space<vmem>>, vector<1x3x32xbf16>
    %46 = vector.shape_cast %45 : vector<1x3x32xbf16> to vector<3x32xbf16>
    %cst_31 = arith.constant dense<0.000000e+00> : vector<256x32xf32>
    %47 = tpu.matmul %44, %46, %cst_31 {dimension_numbers = #tpu.dot_dimension_numbers<[1], [0], [0], [1], [0, 0, 1, 1], [], []>} : vector<256x3xbf16>, vector<3x32xbf16>, vector<256x32xf32> -> vector<256x32xf32>
    %48 = arith.addf %41, %47 : vector<256x32xf32>
    %49 = vector.extract_strided_slice %5 {offsets = [2, 0, 0], sizes = [16, 16, 3], strides = [1, 1, 1]} : vector<18x18x3xf32> to vector<16x16x3xf32>
    %50 = vector.shape_cast %49 : vector<16x16x3xf32> to vector<256x3xf32>
    %51 = arith.truncf %50 : vector<256x3xf32> to vector<256x3xbf16>
    %c6 = arith.constant 6 : index
    %c0_32 = arith.constant 0 : index
    %c0_33 = arith.constant 0 : index
    %52 = vector.load %arg2[%c6, %c0_32, %c0_33] : memref<9x3x32xbf16, #tpu.memory_space<vmem>>, vector<1x3x32xbf16>
    %53 = vector.shape_cast %52 : vector<1x3x32xbf16> to vector<3x32xbf16>
    %cst_34 = arith.constant dense<0.000000e+00> : vector<256x32xf32>
    %54 = tpu.matmul %51, %53, %cst_34 {dimension_numbers = #tpu.dot_dimension_numbers<[1], [0], [0], [1], [0, 0, 1, 1], [], []>} : vector<256x3xbf16>, vector<3x32xbf16>, vector<256x32xf32> -> vector<256x32xf32>
    %55 = arith.addf %48, %54 : vector<256x32xf32>
    %56 = vector.extract_strided_slice %5 {offsets = [2, 1, 0], sizes = [16, 16, 3], strides = [1, 1, 1]} : vector<18x18x3xf32> to vector<16x16x3xf32>
    %57 = vector.shape_cast %56 : vector<16x16x3xf32> to vector<256x3xf32>
    %58 = arith.truncf %57 : vector<256x3xf32> to vector<256x3xbf16>
    %c7 = arith.constant 7 : index
    %c0_35 = arith.constant 0 : index
    %c0_36 = arith.constant 0 : index
    %59 = vector.load %arg2[%c7, %c0_35, %c0_36] : memref<9x3x32xbf16, #tpu.memory_space<vmem>>, vector<1x3x32xbf16>
    %60 = vector.shape_cast %59 : vector<1x3x32xbf16> to vector<3x32xbf16>
    %cst_37 = arith.constant dense<0.000000e+00> : vector<256x32xf32>
    %61 = tpu.matmul %58, %60, %cst_37 {dimension_numbers = #tpu.dot_dimension_numbers<[1], [0], [0], [1], [0, 0, 1, 1], [], []>} : vector<256x3xbf16>, vector<3x32xbf16>, vector<256x32xf32> -> vector<256x32xf32>
    %62 = arith.addf %55, %61 : vector<256x32xf32>
    %63 = vector.extract_strided_slice %5 {offsets = [2, 2, 0], sizes = [16, 16, 3], strides = [1, 1, 1]} : vector<18x18x3xf32> to vector<16x16x3xf32>
    %64 = vector.shape_cast %63 : vector<16x16x3xf32> to vector<256x3xf32>
    %65 = arith.truncf %64 : vector<256x3xf32> to vector<256x3xbf16>
    %c8 = arith.constant 8 : index
    %c0_38 = arith.constant 0 : index
    %c0_39 = arith.constant 0 : index
    %66 = vector.load %arg2[%c8, %c0_38, %c0_39] : memref<9x3x32xbf16, #tpu.memory_space<vmem>>, vector<1x3x32xbf16>
    %67 = vector.shape_cast %66 : vector<1x3x32xbf16> to vector<3x32xbf16>
    %cst_40 = arith.constant dense<0.000000e+00> : vector<256x32xf32>
    %68 = tpu.matmul %65, %67, %cst_40 {dimension_numbers = #tpu.dot_dimension_numbers<[1], [0], [0], [1], [0, 0, 1, 1], [], []>} : vector<256x3xbf16>, vector<3x32xbf16>, vector<256x32xf32> -> vector<256x32xf32>
    %69 = arith.addf %62, %68 : vector<256x32xf32>
    %c0_41 = arith.constant 0 : index
    %c0_42 = arith.constant 0 : index
    %70 = vector.load %arg3[%c0_41, %c0_42] : memref<1x32xf32, #tpu.memory_space<vmem>>, vector<1x32xf32>
    %71 = vector.broadcast %70 : vector<1x32xf32> to vector<256x32xf32>
    %72 = arith.addf %69, %71 : vector<256x32xf32>
    %cst_43 = arith.constant 0.000000e+00 : f32
    %73 = vector.broadcast %cst_43 : f32 to vector<256x32xf32>
    %74 = arith.maximumf %72, %73 : vector<256x32xf32>
    %75 = vector.shape_cast %74 : vector<256x32xf32> to vector<16x16x32xf32>
    %cst_44 = arith.constant 0.000000e+00 : f32
    %76 = vector.broadcast %cst_44 : f32 to vector<18x18x32xf32>
    %c0_45 = arith.constant 0 : index
    %c0_46 = arith.constant 0 : index
    %c0_47 = arith.constant 0 : index
    %77 = vector.load %arg12[%c0_45, %c0_46, %c0_47] : memref<18x18x32xf32, #tpu.memory_space<vmem>>, vector<18x18x32xf32>
    tpu.vector_store %arg12[%c0_45, %c0_46, %c0_47], %76 {strides = array<i32>} : memref<18x18x32xf32, #tpu.memory_space<vmem>>, vector<18x18x32xf32>,
    %c1_48 = arith.constant 1 : index
    %c1_49 = arith.constant 1 : index
    %c0_50 = arith.constant 0 : index
    %78 = vector.load %arg12[%c1_48, %c1_49, %c0_50] : memref<18x18x32xf32, #tpu.memory_space<vmem>>, vector<16x16x32xf32>
    tpu.vector_store %arg12[%c1_48, %c1_49, %c0_50], %75 {strides = array<i32>} : memref<18x18x32xf32, #tpu.memory_space<vmem>>, vector<16x16x32xf32>,
    %c0_51 = arith.constant 0 : index
    %c0_52 = arith.constant 0 : index
    %c0_53 = arith.constant 0 : index
    %79 = vector.load %arg12[%c0_51, %c0_52, %c0_53] : memref<18x18x32xf32, #tpu.memory_space<vmem>>, vector<18x18x32xf32>
    %cst_54 = arith.constant 0.000000e+00 : f32
    %80 = vector.broadcast %cst_54 : f32 to vector<256x32xf32>
    %81 = vector.extract_strided_slice %79 {offsets = [0, 0, 0], sizes = [16, 16, 32], strides = [1, 1, 1]} : vector<18x18x32xf32> to vector<16x16x32xf32>
    %82 = vector.shape_cast %81 : vector<16x16x32xf32> to vector<256x32xf32>
    %83 = arith.truncf %82 : vector<256x32xf32> to vector<256x32xbf16>
    %c0_55 = arith.constant 0 : index
    %c0_56 = arith.constant 0 : index
    %c0_57 = arith.constant 0 : index
    %84 = vector.load %arg4[%c0_55, %c0_56, %c0_57] : memref<9x32x32xbf16, #tpu.memory_space<vmem>>, vector<1x32x32xbf16>
    %85 = vector.shape_cast %84 : vector<1x32x32xbf16> to vector<32x32xbf16>
    %cst_58 = arith.constant dense<0.000000e+00> : vector<256x32xf32>
    %86 = tpu.matmul %83, %85, %cst_58 {dimension_numbers = #tpu.dot_dimension_numbers<[1], [0], [0], [1], [0, 0, 1, 1], [], []>} : vector<256x32xbf16>, vector<32x32xbf16>, vector<256x32xf32> -> vector<256x32xf32>
    %87 = arith.addf %80, %86 : vector<256x32xf32>
    %88 = vector.extract_strided_slice %79 {offsets = [0, 1, 0], sizes = [16, 16, 32], strides = [1, 1, 1]} : vector<18x18x32xf32> to vector<16x16x32xf32>
    %89 = vector.shape_cast %88 : vector<16x16x32xf32> to vector<256x32xf32>
    %90 = arith.truncf %89 : vector<256x32xf32> to vector<256x32xbf16>
    %c1_59 = arith.constant 1 : index
    %c0_60 = arith.constant 0 : index
    %c0_61 = arith.constant 0 : index
    %91 = vector.load %arg4[%c1_59, %c0_60, %c0_61] : memref<9x32x32xbf16, #tpu.memory_space<vmem>>, vector<1x32x32xbf16>
    %92 = vector.shape_cast %91 : vector<1x32x32xbf16> to vector<32x32xbf16>
    %cst_62 = arith.constant dense<0.000000e+00> : vector<256x32xf32>
    %93 = tpu.matmul %90, %92, %cst_62 {dimension_numbers = #tpu.dot_dimension_numbers<[1], [0], [0], [1], [0, 0, 1, 1], [], []>} : vector<256x32xbf16>, vector<32x32xbf16>, vector<256x32xf32> -> vector<256x32xf32>
    %94 = arith.addf %87, %93 : vector<256x32xf32>
    %95 = vector.extract_strided_slice %79 {offsets = [0, 2, 0], sizes = [16, 16, 32], strides = [1, 1, 1]} : vector<18x18x32xf32> to vector<16x16x32xf32>
    %96 = vector.shape_cast %95 : vector<16x16x32xf32> to vector<256x32xf32>
    %97 = arith.truncf %96 : vector<256x32xf32> to vector<256x32xbf16>
    %c2_63 = arith.constant 2 : index
    %c0_64 = arith.constant 0 : index
    %c0_65 = arith.constant 0 : index
    %98 = vector.load %arg4[%c2_63, %c0_64, %c0_65] : memref<9x32x32xbf16, #tpu.memory_space<vmem>>, vector<1x32x32xbf16>
    %99 = vector.shape_cast %98 : vector<1x32x32xbf16> to vector<32x32xbf16>
    %cst_66 = arith.constant dense<0.000000e+00> : vector<256x32xf32>
    %100 = tpu.matmul %97, %99, %cst_66 {dimension_numbers = #tpu.dot_dimension_numbers<[1], [0], [0], [1], [0, 0, 1, 1], [], []>} : vector<256x32xbf16>, vector<32x32xbf16>, vector<256x32xf32> -> vector<256x32xf32>
    %101 = arith.addf %94, %100 : vector<256x32xf32>
    %102 = vector.extract_strided_slice %79 {offsets = [1, 0, 0], sizes = [16, 16, 32], strides = [1, 1, 1]} : vector<18x18x32xf32> to vector<16x16x32xf32>
    %103 = vector.shape_cast %102 : vector<16x16x32xf32> to vector<256x32xf32>
    %104 = arith.truncf %103 : vector<256x32xf32> to vector<256x32xbf16>
    %c3_67 = arith.constant 3 : index
    %c0_68 = arith.constant 0 : index
    %c0_69 = arith.constant 0 : index
    %105 = vector.load %arg4[%c3_67, %c0_68, %c0_69] : memref<9x32x32xbf16, #tpu.memory_space<vmem>>, vector<1x32x32xbf16>
    %106 = vector.shape_cast %105 : vector<1x32x32xbf16> to vector<32x32xbf16>
    %cst_70 = arith.constant dense<0.000000e+00> : vector<256x32xf32>
    %107 = tpu.matmul %104, %106, %cst_70 {dimension_numbers = #tpu.dot_dimension_numbers<[1], [0], [0], [1], [0, 0, 1, 1], [], []>} : vector<256x32xbf16>, vector<32x32xbf16>, vector<256x32xf32> -> vector<256x32xf32>
    %108 = arith.addf %101, %107 : vector<256x32xf32>
    %109 = vector.extract_strided_slice %79 {offsets = [1, 1, 0], sizes = [16, 16, 32], strides = [1, 1, 1]} : vector<18x18x32xf32> to vector<16x16x32xf32>
    %110 = vector.shape_cast %109 : vector<16x16x32xf32> to vector<256x32xf32>
    %111 = arith.truncf %110 : vector<256x32xf32> to vector<256x32xbf16>
    %c4_71 = arith.constant 4 : index
    %c0_72 = arith.constant 0 : index
    %c0_73 = arith.constant 0 : index
    %112 = vector.load %arg4[%c4_71, %c0_72, %c0_73] : memref<9x32x32xbf16, #tpu.memory_space<vmem>>, vector<1x32x32xbf16>
    %113 = vector.shape_cast %112 : vector<1x32x32xbf16> to vector<32x32xbf16>
    %cst_74 = arith.constant dense<0.000000e+00> : vector<256x32xf32>
    %114 = tpu.matmul %111, %113, %cst_74 {dimension_numbers = #tpu.dot_dimension_numbers<[1], [0], [0], [1], [0, 0, 1, 1], [], []>} : vector<256x32xbf16>, vector<32x32xbf16>, vector<256x32xf32> -> vector<256x32xf32>
    %115 = arith.addf %108, %114 : vector<256x32xf32>
    %116 = vector.extract_strided_slice %79 {offsets = [1, 2, 0], sizes = [16, 16, 32], strides = [1, 1, 1]} : vector<18x18x32xf32> to vector<16x16x32xf32>
    %117 = vector.shape_cast %116 : vector<16x16x32xf32> to vector<256x32xf32>
    %118 = arith.truncf %117 : vector<256x32xf32> to vector<256x32xbf16>
    %c5_75 = arith.constant 5 : index
    %c0_76 = arith.constant 0 : index
    %c0_77 = arith.constant 0 : index
    %119 = vector.load %arg4[%c5_75, %c0_76, %c0_77] : memref<9x32x32xbf16, #tpu.memory_space<vmem>>, vector<1x32x32xbf16>
    %120 = vector.shape_cast %119 : vector<1x32x32xbf16> to vector<32x32xbf16>
    %cst_78 = arith.constant dense<0.000000e+00> : vector<256x32xf32>
    %121 = tpu.matmul %118, %120, %cst_78 {dimension_numbers = #tpu.dot_dimension_numbers<[1], [0], [0], [1], [0, 0, 1, 1], [], []>} : vector<256x32xbf16>, vector<32x32xbf16>, vector<256x32xf32> -> vector<256x32xf32>
    %122 = arith.addf %115, %121 : vector<256x32xf32>
    %123 = vector.extract_strided_slice %79 {offsets = [2, 0, 0], sizes = [16, 16, 32], strides = [1, 1, 1]} : vector<18x18x32xf32> to vector<16x16x32xf32>
    %124 = vector.shape_cast %123 : vector<16x16x32xf32> to vector<256x32xf32>
    %125 = arith.truncf %124 : vector<256x32xf32> to vector<256x32xbf16>
    %c6_79 = arith.constant 6 : index
    %c0_80 = arith.constant 0 : index
    %c0_81 = arith.constant 0 : index
    %126 = vector.load %arg4[%c6_79, %c0_80, %c0_81] : memref<9x32x32xbf16, #tpu.memory_space<vmem>>, vector<1x32x32xbf16>
    %127 = vector.shape_cast %126 : vector<1x32x32xbf16> to vector<32x32xbf16>
    %cst_82 = arith.constant dense<0.000000e+00> : vector<256x32xf32>
    %128 = tpu.matmul %125, %127, %cst_82 {dimension_numbers = #tpu.dot_dimension_numbers<[1], [0], [0], [1], [0, 0, 1, 1], [], []>} : vector<256x32xbf16>, vector<32x32xbf16>, vector<256x32xf32> -> vector<256x32xf32>
    %129 = arith.addf %122, %128 : vector<256x32xf32>
    %130 = vector.extract_strided_slice %79 {offsets = [2, 1, 0], sizes = [16, 16, 32], strides = [1, 1, 1]} : vector<18x18x32xf32> to vector<16x16x32xf32>
    %131 = vector.shape_cast %130 : vector<16x16x32xf32> to vector<256x32xf32>
    %132 = arith.truncf %131 : vector<256x32xf32> to vector<256x32xbf16>
    %c7_83 = arith.constant 7 : index
    %c0_84 = arith.constant 0 : index
    %c0_85 = arith.constant 0 : index
    %133 = vector.load %arg4[%c7_83, %c0_84, %c0_85] : memref<9x32x32xbf16, #tpu.memory_space<vmem>>, vector<1x32x32xbf16>
    %134 = vector.shape_cast %133 : vector<1x32x32xbf16> to vector<32x32xbf16>
    %cst_86 = arith.constant dense<0.000000e+00> : vector<256x32xf32>
    %135 = tpu.matmul %132, %134, %cst_86 {dimension_numbers = #tpu.dot_dimension_numbers<[1], [0], [0], [1], [0, 0, 1, 1], [], []>} : vector<256x32xbf16>, vector<32x32xbf16>, vector<256x32xf32> -> vector<256x32xf32>
    %136 = arith.addf %129, %135 : vector<256x32xf32>
    %137 = vector.extract_strided_slice %79 {offsets = [2, 2, 0], sizes = [16, 16, 32], strides = [1, 1, 1]} : vector<18x18x32xf32> to vector<16x16x32xf32>
    %138 = vector.shape_cast %137 : vector<16x16x32xf32> to vector<256x32xf32>
    %139 = arith.truncf %138 : vector<256x32xf32> to vector<256x32xbf16>
    %c8_87 = arith.constant 8 : index
    %c0_88 = arith.constant 0 : index
    %c0_89 = arith.constant 0 : index
    %140 = vector.load %arg4[%c8_87, %c0_88, %c0_89] : memref<9x32x32xbf16, #tpu.memory_space<vmem>>, vector<1x32x32xbf16>
    %141 = vector.shape_cast %140 : vector<1x32x32xbf16> to vector<32x32xbf16>
    %cst_90 = arith.constant dense<0.000000e+00> : vector<256x32xf32>
    %142 = tpu.matmul %139, %141, %cst_90 {dimension_numbers = #tpu.dot_dimension_numbers<[1], [0], [0], [1], [0, 0, 1, 1], [], []>} : vector<256x32xbf16>, vector<32x32xbf16>, vector<256x32xf32> -> vector<256x32xf32>
    %143 = arith.addf %136, %142 : vector<256x32xf32>
    %c0_91 = arith.constant 0 : index
    %c0_92 = arith.constant 0 : index
    %144 = vector.load %arg5[%c0_91, %c0_92] : memref<1x32xf32, #tpu.memory_space<vmem>>, vector<1x32xf32>
    %145 = vector.broadcast %144 : vector<1x32xf32> to vector<256x32xf32>
    %146 = arith.addf %143, %145 : vector<256x32xf32>
    %cst_93 = arith.constant 0.000000e+00 : f32
    %147 = vector.broadcast %cst_93 : f32 to vector<256x32xf32>
    %148 = arith.maximumf %146, %147 : vector<256x32xf32>
    %149 = vector.shape_cast %148 : vector<256x32xf32> to vector<16x16x32xf32>
    %150 = vector.shape_cast %149 : vector<16x16x32xf32> to vector<8x2x16x32xf32>
    %cst_94 = arith.constant dense<0xFF800000> : vector<8x16x32xf32>
    %151 = vector.multi_reduction <maximumf>, %150, %cst_94 [1] : vector<8x2x16x32xf32> to vector<8x16x32xf32>
    %152 = vector.shape_cast %151 : vector<8x16x32xf32> to vector<8x8x2x32xf32>
    %cst_95 = arith.constant dense<0xFF800000> : vector<8x8x32xf32>
    %153 = vector.multi_reduction <maximumf>, %152, %cst_95 [2] : vector<8x8x2x32xf32> to vector<8x8x32xf32>
    %cst_96 = arith.constant 0.000000e+00 : f32
    %154 = vector.broadcast %cst_96 : f32 to vector<10x10x32xf32>
    %c0_97 = arith.constant 0 : index
    %c0_98 = arith.constant 0 : index
    %c0_99 = arith.constant 0 : index
    %155 = vector.load %arg13[%c0_97, %c0_98, %c0_99] : memref<10x10x32xf32, #tpu.memory_space<vmem>>, vector<10x10x32xf32>
    tpu.vector_store %arg13[%c0_97, %c0_98, %c0_99], %154 {strides = array<i32>} : memref<10x10x32xf32, #tpu.memory_space<vmem>>, vector<10x10x32xf32>,
    %c1_100 = arith.constant 1 : index
    %c1_101 = arith.constant 1 : index
    %c0_102 = arith.constant 0 : index
    %156 = vector.load %arg13[%c1_100, %c1_101, %c0_102] : memref<10x10x32xf32, #tpu.memory_space<vmem>>, vector<8x8x32xf32>
    tpu.vector_store %arg13[%c1_100, %c1_101, %c0_102], %153 {strides = array<i32>} : memref<10x10x32xf32, #tpu.memory_space<vmem>>, vector<8x8x32xf32>,
    %c0_103 = arith.constant 0 : index
    %c0_104 = arith.constant 0 : index
    %c0_105 = arith.constant 0 : index
    %157 = vector.load %arg13[%c0_103, %c0_104, %c0_105] : memref<10x10x32xf32, #tpu.memory_space<vmem>>, vector<10x10x32xf32>
    %cst_106 = arith.constant 0.000000e+00 : f32
    %158 = vector.broadcast %cst_106 : f32 to vector<64x64xf32>
    %159 = vector.extract_strided_slice %157 {offsets = [0, 0, 0], sizes = [8, 8, 32], strides = [1, 1, 1]} : vector<10x10x32xf32> to vector<8x8x32xf32>
    %160 = vector.shape_cast %159 : vector<8x8x32xf32> to vector<64x32xf32>
    %161 = arith.truncf %160 : vector<64x32xf32> to vector<64x32xbf16>
    %c0_107 = arith.constant 0 : index
    %c0_108 = arith.constant 0 : index
    %c0_109 = arith.constant 0 : index
    %162 = vector.load %arg6[%c0_107, %c0_108, %c0_109] : memref<9x32x64xbf16, #tpu.memory_space<vmem>>, vector<1x32x64xbf16>
    %163 = vector.shape_cast %162 : vector<1x32x64xbf16> to vector<32x64xbf16>
    %cst_110 = arith.constant dense<0.000000e+00> : vector<64x64xf32>
    %164 = tpu.matmul %161, %163, %cst_110 {dimension_numbers = #tpu.dot_dimension_numbers<[1], [0], [0], [1], [0, 0, 1, 1], [], []>} : vector<64x32xbf16>, vector<32x64xbf16>, vector<64x64xf32> -> vector<64x64xf32>
    %165 = arith.addf %158, %164 : vector<64x64xf32>
    %166 = vector.extract_strided_slice %157 {offsets = [0, 1, 0], sizes = [8, 8, 32], strides = [1, 1, 1]} : vector<10x10x32xf32> to vector<8x8x32xf32>
    %167 = vector.shape_cast %166 : vector<8x8x32xf32> to vector<64x32xf32>
    %168 = arith.truncf %167 : vector<64x32xf32> to vector<64x32xbf16>
    %c1_111 = arith.constant 1 : index
    %c0_112 = arith.constant 0 : index
    %c0_113 = arith.constant 0 : index
    %169 = vector.load %arg6[%c1_111, %c0_112, %c0_113] : memref<9x32x64xbf16, #tpu.memory_space<vmem>>, vector<1x32x64xbf16>
    %170 = vector.shape_cast %169 : vector<1x32x64xbf16> to vector<32x64xbf16>
    %cst_114 = arith.constant dense<0.000000e+00> : vector<64x64xf32>
    %171 = tpu.matmul %168, %170, %cst_114 {dimension_numbers = #tpu.dot_dimension_numbers<[1], [0], [0], [1], [0, 0, 1, 1], [], []>} : vector<64x32xbf16>, vector<32x64xbf16>, vector<64x64xf32> -> vector<64x64xf32>
    %172 = arith.addf %165, %171 : vector<64x64xf32>
    %173 = vector.extract_strided_slice %157 {offsets = [0, 2, 0], sizes = [8, 8, 32], strides = [1, 1, 1]} : vector<10x10x32xf32> to vector<8x8x32xf32>
    %174 = vector.shape_cast %173 : vector<8x8x32xf32> to vector<64x32xf32>
    %175 = arith.truncf %174 : vector<64x32xf32> to vector<64x32xbf16>
    %c2_115 = arith.constant 2 : index
    %c0_116 = arith.constant 0 : index
    %c0_117 = arith.constant 0 : index
    %176 = vector.load %arg6[%c2_115, %c0_116, %c0_117] : memref<9x32x64xbf16, #tpu.memory_space<vmem>>, vector<1x32x64xbf16>
    %177 = vector.shape_cast %176 : vector<1x32x64xbf16> to vector<32x64xbf16>
    %cst_118 = arith.constant dense<0.000000e+00> : vector<64x64xf32>
    %178 = tpu.matmul %175, %177, %cst_118 {dimension_numbers = #tpu.dot_dimension_numbers<[1], [0], [0], [1], [0, 0, 1, 1], [], []>} : vector<64x32xbf16>, vector<32x64xbf16>, vector<64x64xf32> -> vector<64x64xf32>
    %179 = arith.addf %172, %178 : vector<64x64xf32>
    %180 = vector.extract_strided_slice %157 {offsets = [1, 0, 0], sizes = [8, 8, 32], strides = [1, 1, 1]} : vector<10x10x32xf32> to vector<8x8x32xf32>
    %181 = vector.shape_cast %180 : vector<8x8x32xf32> to vector<64x32xf32>
    %182 = arith.truncf %181 : vector<64x32xf32> to vector<64x32xbf16>
    %c3_119 = arith.constant 3 : index
    %c0_120 = arith.constant 0 : index
    %c0_121 = arith.constant 0 : index
    %183 = vector.load %arg6[%c3_119, %c0_120, %c0_121] : memref<9x32x64xbf16, #tpu.memory_space<vmem>>, vector<1x32x64xbf16>
    %184 = vector.shape_cast %183 : vector<1x32x64xbf16> to vector<32x64xbf16>
    %cst_122 = arith.constant dense<0.000000e+00> : vector<64x64xf32>
    %185 = tpu.matmul %182, %184, %cst_122 {dimension_numbers = #tpu.dot_dimension_numbers<[1], [0], [0], [1], [0, 0, 1, 1], [], []>} : vector<64x32xbf16>, vector<32x64xbf16>, vector<64x64xf32> -> vector<64x64xf32>
    %186 = arith.addf %179, %185 : vector<64x64xf32>
    %187 = vector.extract_strided_slice %157 {offsets = [1, 1, 0], sizes = [8, 8, 32], strides = [1, 1, 1]} : vector<10x10x32xf32> to vector<8x8x32xf32>
    %188 = vector.shape_cast %187 : vector<8x8x32xf32> to vector<64x32xf32>
    %189 = arith.truncf %188 : vector<64x32xf32> to vector<64x32xbf16>
    %c4_123 = arith.constant 4 : index
    %c0_124 = arith.constant 0 : index
    %c0_125 = arith.constant 0 : index
    %190 = vector.load %arg6[%c4_123, %c0_124, %c0_125] : memref<9x32x64xbf16, #tpu.memory_space<vmem>>, vector<1x32x64xbf16>
    %191 = vector.shape_cast %190 : vector<1x32x64xbf16> to vector<32x64xbf16>
    %cst_126 = arith.constant dense<0.000000e+00> : vector<64x64xf32>
    %192 = tpu.matmul %189, %191, %cst_126 {dimension_numbers = #tpu.dot_dimension_numbers<[1], [0], [0], [1], [0, 0, 1, 1], [], []>} : vector<64x32xbf16>, vector<32x64xbf16>, vector<64x64xf32> -> vector<64x64xf32>
    %193 = arith.addf %186, %192 : vector<64x64xf32>
    %194 = vector.extract_strided_slice %157 {offsets = [1, 2, 0], sizes = [8, 8, 32], strides = [1, 1, 1]} : vector<10x10x32xf32> to vector<8x8x32xf32>
    %195 = vector.shape_cast %194 : vector<8x8x32xf32> to vector<64x32xf32>
    %196 = arith.truncf %195 : vector<64x32xf32> to vector<64x32xbf16>
    %c5_127 = arith.constant 5 : index
    %c0_128 = arith.constant 0 : index
    %c0_129 = arith.constant 0 : index
    %197 = vector.load %arg6[%c5_127, %c0_128, %c0_129] : memref<9x32x64xbf16, #tpu.memory_space<vmem>>, vector<1x32x64xbf16>
    %198 = vector.shape_cast %197 : vector<1x32x64xbf16> to vector<32x64xbf16>
    %cst_130 = arith.constant dense<0.000000e+00> : vector<64x64xf32>
    %199 = tpu.matmul %196, %198, %cst_130 {dimension_numbers = #tpu.dot_dimension_numbers<[1], [0], [0], [1], [0, 0, 1, 1], [], []>} : vector<64x32xbf16>, vector<32x64xbf16>, vector<64x64xf32> -> vector<64x64xf32>
    %200 = arith.addf %193, %199 : vector<64x64xf32>
    %201 = vector.extract_strided_slice %157 {offsets = [2, 0, 0], sizes = [8, 8, 32], strides = [1, 1, 1]} : vector<10x10x32xf32> to vector<8x8x32xf32>
    %202 = vector.shape_cast %201 : vector<8x8x32xf32> to vector<64x32xf32>
    %203 = arith.truncf %202 : vector<64x32xf32> to vector<64x32xbf16>
    %c6_131 = arith.constant 6 : index
    %c0_132 = arith.constant 0 : index
    %c0_133 = arith.constant 0 : index
    %204 = vector.load %arg6[%c6_131, %c0_132, %c0_133] : memref<9x32x64xbf16, #tpu.memory_space<vmem>>, vector<1x32x64xbf16>
    %205 = vector.shape_cast %204 : vector<1x32x64xbf16> to vector<32x64xbf16>
    %cst_134 = arith.constant dense<0.000000e+00> : vector<64x64xf32>
    %206 = tpu.matmul %203, %205, %cst_134 {dimension_numbers = #tpu.dot_dimension_numbers<[1], [0], [0], [1], [0, 0, 1, 1], [], []>} : vector<64x32xbf16>, vector<32x64xbf16>, vector<64x64xf32> -> vector<64x64xf32>
    %207 = arith.addf %200, %206 : vector<64x64xf32>
    %208 = vector.extract_strided_slice %157 {offsets = [2, 1, 0], sizes = [8, 8, 32], strides = [1, 1, 1]} : vector<10x10x32xf32> to vector<8x8x32xf32>
    %209 = vector.shape_cast %208 : vector<8x8x32xf32> to vector<64x32xf32>
    %210 = arith.truncf %209 : vector<64x32xf32> to vector<64x32xbf16>
    %c7_135 = arith.constant 7 : index
    %c0_136 = arith.constant 0 : index
    %c0_137 = arith.constant 0 : index
    %211 = vector.load %arg6[%c7_135, %c0_136, %c0_137] : memref<9x32x64xbf16, #tpu.memory_space<vmem>>, vector<1x32x64xbf16>
    %212 = vector.shape_cast %211 : vector<1x32x64xbf16> to vector<32x64xbf16>
    %cst_138 = arith.constant dense<0.000000e+00> : vector<64x64xf32>
    %213 = tpu.matmul %210, %212, %cst_138 {dimension_numbers = #tpu.dot_dimension_numbers<[1], [0], [0], [1], [0, 0, 1, 1], [], []>} : vector<64x32xbf16>, vector<32x64xbf16>, vector<64x64xf32> -> vector<64x64xf32>
    %214 = arith.addf %207, %213 : vector<64x64xf32>
    %215 = vector.extract_strided_slice %157 {offsets = [2, 2, 0], sizes = [8, 8, 32], strides = [1, 1, 1]} : vector<10x10x32xf32> to vector<8x8x32xf32>
    %216 = vector.shape_cast %215 : vector<8x8x32xf32> to vector<64x32xf32>
    %217 = arith.truncf %216 : vector<64x32xf32> to vector<64x32xbf16>
    %c8_139 = arith.constant 8 : index
    %c0_140 = arith.constant 0 : index
    %c0_141 = arith.constant 0 : index
    %218 = vector.load %arg6[%c8_139, %c0_140, %c0_141] : memref<9x32x64xbf16, #tpu.memory_space<vmem>>, vector<1x32x64xbf16>
    %219 = vector.shape_cast %218 : vector<1x32x64xbf16> to vector<32x64xbf16>
    %cst_142 = arith.constant dense<0.000000e+00> : vector<64x64xf32>
    %220 = tpu.matmul %217, %219, %cst_142 {dimension_numbers = #tpu.dot_dimension_numbers<[1], [0], [0], [1], [0, 0, 1, 1], [], []>} : vector<64x32xbf16>, vector<32x64xbf16>, vector<64x64xf32> -> vector<64x64xf32>
    %221 = arith.addf %214, %220 : vector<64x64xf32>
    %c0_143 = arith.constant 0 : index
    %c0_144 = arith.constant 0 : index
    %222 = vector.load %arg7[%c0_143, %c0_144] : memref<1x64xf32, #tpu.memory_space<vmem>>, vector<1x64xf32>
    %223 = vector.broadcast %222 : vector<1x64xf32> to vector<64x64xf32>
    %224 = arith.addf %221, %223 : vector<64x64xf32>
    %cst_145 = arith.constant 0.000000e+00 : f32
    %225 = vector.broadcast %cst_145 : f32 to vector<64x64xf32>
    %226 = arith.maximumf %224, %225 : vector<64x64xf32>
    %227 = vector.shape_cast %226 : vector<64x64xf32> to vector<8x8x64xf32>
    %cst_146 = arith.constant 0.000000e+00 : f32
    %228 = vector.broadcast %cst_146 : f32 to vector<10x10x64xf32>
    %c0_147 = arith.constant 0 : index
    %c0_148 = arith.constant 0 : index
    %c0_149 = arith.constant 0 : index
    %229 = vector.load %arg14[%c0_147, %c0_148, %c0_149] : memref<10x10x64xf32, #tpu.memory_space<vmem>>, vector<10x10x64xf32>
    tpu.vector_store %arg14[%c0_147, %c0_148, %c0_149], %228 {strides = array<i32>} : memref<10x10x64xf32, #tpu.memory_space<vmem>>, vector<10x10x64xf32>,
    %c1_150 = arith.constant 1 : index
    %c1_151 = arith.constant 1 : index
    %c0_152 = arith.constant 0 : index
    %230 = vector.load %arg14[%c1_150, %c1_151, %c0_152] : memref<10x10x64xf32, #tpu.memory_space<vmem>>, vector<8x8x64xf32>
    tpu.vector_store %arg14[%c1_150, %c1_151, %c0_152], %227 {strides = array<i32>} : memref<10x10x64xf32, #tpu.memory_space<vmem>>, vector<8x8x64xf32>,
    %c0_153 = arith.constant 0 : index
    %c0_154 = arith.constant 0 : index
    %c0_155 = arith.constant 0 : index
    %231 = vector.load %arg14[%c0_153, %c0_154, %c0_155] : memref<10x10x64xf32, #tpu.memory_space<vmem>>, vector<10x10x64xf32>
    %cst_156 = arith.constant 0.000000e+00 : f32
    %232 = vector.broadcast %cst_156 : f32 to vector<64x128xf32>
    %233 = vector.extract_strided_slice %231 {offsets = [0, 0, 0], sizes = [8, 8, 64], strides = [1, 1, 1]} : vector<10x10x64xf32> to vector<8x8x64xf32>
    %234 = vector.shape_cast %233 : vector<8x8x64xf32> to vector<64x64xf32>
    %235 = arith.truncf %234 : vector<64x64xf32> to vector<64x64xbf16>
    %c0_157 = arith.constant 0 : index
    %c0_158 = arith.constant 0 : index
    %c0_159 = arith.constant 0 : index
    %236 = vector.load %arg8[%c0_157, %c0_158, %c0_159] : memref<9x64x128xbf16, #tpu.memory_space<vmem>>, vector<1x64x128xbf16>
    %237 = vector.shape_cast %236 : vector<1x64x128xbf16> to vector<64x128xbf16>
    %cst_160 = arith.constant dense<0.000000e+00> : vector<64x128xf32>
    %238 = tpu.matmul %235, %237, %cst_160 {dimension_numbers = #tpu.dot_dimension_numbers<[1], [0], [0], [1], [0, 0, 1, 1], [], []>} : vector<64x64xbf16>, vector<64x128xbf16>, vector<64x128xf32> -> vector<64x128xf32>
    %239 = arith.addf %232, %238 : vector<64x128xf32>
    %240 = vector.extract_strided_slice %231 {offsets = [0, 1, 0], sizes = [8, 8, 64], strides = [1, 1, 1]} : vector<10x10x64xf32> to vector<8x8x64xf32>
    %241 = vector.shape_cast %240 : vector<8x8x64xf32> to vector<64x64xf32>
    %242 = arith.truncf %241 : vector<64x64xf32> to vector<64x64xbf16>
    %c1_161 = arith.constant 1 : index
    %c0_162 = arith.constant 0 : index
    %c0_163 = arith.constant 0 : index
    %243 = vector.load %arg8[%c1_161, %c0_162, %c0_163] : memref<9x64x128xbf16, #tpu.memory_space<vmem>>, vector<1x64x128xbf16>
    %244 = vector.shape_cast %243 : vector<1x64x128xbf16> to vector<64x128xbf16>
    %cst_164 = arith.constant dense<0.000000e+00> : vector<64x128xf32>
    %245 = tpu.matmul %242, %244, %cst_164 {dimension_numbers = #tpu.dot_dimension_numbers<[1], [0], [0], [1], [0, 0, 1, 1], [], []>} : vector<64x64xbf16>, vector<64x128xbf16>, vector<64x128xf32> -> vector<64x128xf32>
    %246 = arith.addf %239, %245 : vector<64x128xf32>
    %247 = vector.extract_strided_slice %231 {offsets = [0, 2, 0], sizes = [8, 8, 64], strides = [1, 1, 1]} : vector<10x10x64xf32> to vector<8x8x64xf32>
    %248 = vector.shape_cast %247 : vector<8x8x64xf32> to vector<64x64xf32>
    %249 = arith.truncf %248 : vector<64x64xf32> to vector<64x64xbf16>
    %c2_165 = arith.constant 2 : index
    %c0_166 = arith.constant 0 : index
    %c0_167 = arith.constant 0 : index
    %250 = vector.load %arg8[%c2_165, %c0_166, %c0_167] : memref<9x64x128xbf16, #tpu.memory_space<vmem>>, vector<1x64x128xbf16>
    %251 = vector.shape_cast %250 : vector<1x64x128xbf16> to vector<64x128xbf16>
    %cst_168 = arith.constant dense<0.000000e+00> : vector<64x128xf32>
    %252 = tpu.matmul %249, %251, %cst_168 {dimension_numbers = #tpu.dot_dimension_numbers<[1], [0], [0], [1], [0, 0, 1, 1], [], []>} : vector<64x64xbf16>, vector<64x128xbf16>, vector<64x128xf32> -> vector<64x128xf32>
    %253 = arith.addf %246, %252 : vector<64x128xf32>
    %254 = vector.extract_strided_slice %231 {offsets = [1, 0, 0], sizes = [8, 8, 64], strides = [1, 1, 1]} : vector<10x10x64xf32> to vector<8x8x64xf32>
    %255 = vector.shape_cast %254 : vector<8x8x64xf32> to vector<64x64xf32>
    %256 = arith.truncf %255 : vector<64x64xf32> to vector<64x64xbf16>
    %c3_169 = arith.constant 3 : index
    %c0_170 = arith.constant 0 : index
    %c0_171 = arith.constant 0 : index
    %257 = vector.load %arg8[%c3_169, %c0_170, %c0_171] : memref<9x64x128xbf16, #tpu.memory_space<vmem>>, vector<1x64x128xbf16>
    %258 = vector.shape_cast %257 : vector<1x64x128xbf16> to vector<64x128xbf16>
    %cst_172 = arith.constant dense<0.000000e+00> : vector<64x128xf32>
    %259 = tpu.matmul %256, %258, %cst_172 {dimension_numbers = #tpu.dot_dimension_numbers<[1], [0], [0], [1], [0, 0, 1, 1], [], []>} : vector<64x64xbf16>, vector<64x128xbf16>, vector<64x128xf32> -> vector<64x128xf32>
    %260 = arith.addf %253, %259 : vector<64x128xf32>
    %261 = vector.extract_strided_slice %231 {offsets = [1, 1, 0], sizes = [8, 8, 64], strides = [1, 1, 1]} : vector<10x10x64xf32> to vector<8x8x64xf32>
    %262 = vector.shape_cast %261 : vector<8x8x64xf32> to vector<64x64xf32>
    %263 = arith.truncf %262 : vector<64x64xf32> to vector<64x64xbf16>
    %c4_173 = arith.constant 4 : index
    %c0_174 = arith.constant 0 : index
    %c0_175 = arith.constant 0 : index
    %264 = vector.load %arg8[%c4_173, %c0_174, %c0_175] : memref<9x64x128xbf16, #tpu.memory_space<vmem>>, vector<1x64x128xbf16>
    %265 = vector.shape_cast %264 : vector<1x64x128xbf16> to vector<64x128xbf16>
    %cst_176 = arith.constant dense<0.000000e+00> : vector<64x128xf32>
    %266 = tpu.matmul %263, %265, %cst_176 {dimension_numbers = #tpu.dot_dimension_numbers<[1], [0], [0], [1], [0, 0, 1, 1], [], []>} : vector<64x64xbf16>, vector<64x128xbf16>, vector<64x128xf32> -> vector<64x128xf32>
    %267 = arith.addf %260, %266 : vector<64x128xf32>
    %268 = vector.extract_strided_slice %231 {offsets = [1, 2, 0], sizes = [8, 8, 64], strides = [1, 1, 1]} : vector<10x10x64xf32> to vector<8x8x64xf32>
    %269 = vector.shape_cast %268 : vector<8x8x64xf32> to vector<64x64xf32>
    %270 = arith.truncf %269 : vector<64x64xf32> to vector<64x64xbf16>
    %c5_177 = arith.constant 5 : index
    %c0_178 = arith.constant 0 : index
    %c0_179 = arith.constant 0 : index
    %271 = vector.load %arg8[%c5_177, %c0_178, %c0_179] : memref<9x64x128xbf16, #tpu.memory_space<vmem>>, vector<1x64x128xbf16>
    %272 = vector.shape_cast %271 : vector<1x64x128xbf16> to vector<64x128xbf16>
    %cst_180 = arith.constant dense<0.000000e+00> : vector<64x128xf32>
    %273 = tpu.matmul %270, %272, %cst_180 {dimension_numbers = #tpu.dot_dimension_numbers<[1], [0], [0], [1], [0, 0, 1, 1], [], []>} : vector<64x64xbf16>, vector<64x128xbf16>, vector<64x128xf32> -> vector<64x128xf32>
    %274 = arith.addf %267, %273 : vector<64x128xf32>
    %275 = vector.extract_strided_slice %231 {offsets = [2, 0, 0], sizes = [8, 8, 64], strides = [1, 1, 1]} : vector<10x10x64xf32> to vector<8x8x64xf32>
    %276 = vector.shape_cast %275 : vector<8x8x64xf32> to vector<64x64xf32>
    %277 = arith.truncf %276 : vector<64x64xf32> to vector<64x64xbf16>
    %c6_181 = arith.constant 6 : index
    %c0_182 = arith.constant 0 : index
    %c0_183 = arith.constant 0 : index
    %278 = vector.load %arg8[%c6_181, %c0_182, %c0_183] : memref<9x64x128xbf16, #tpu.memory_space<vmem>>, vector<1x64x128xbf16>
    %279 = vector.shape_cast %278 : vector<1x64x128xbf16> to vector<64x128xbf16>
    %cst_184 = arith.constant dense<0.000000e+00> : vector<64x128xf32>
    %280 = tpu.matmul %277, %279, %cst_184 {dimension_numbers = #tpu.dot_dimension_numbers<[1], [0], [0], [1], [0, 0, 1, 1], [], []>} : vector<64x64xbf16>, vector<64x128xbf16>, vector<64x128xf32> -> vector<64x128xf32>
    %281 = arith.addf %274, %280 : vector<64x128xf32>
    %282 = vector.extract_strided_slice %231 {offsets = [2, 1, 0], sizes = [8, 8, 64], strides = [1, 1, 1]} : vector<10x10x64xf32> to vector<8x8x64xf32>
    %283 = vector.shape_cast %282 : vector<8x8x64xf32> to vector<64x64xf32>
    %284 = arith.truncf %283 : vector<64x64xf32> to vector<64x64xbf16>
    %c7_185 = arith.constant 7 : index
    %c0_186 = arith.constant 0 : index
    %c0_187 = arith.constant 0 : index
    %285 = vector.load %arg8[%c7_185, %c0_186, %c0_187] : memref<9x64x128xbf16, #tpu.memory_space<vmem>>, vector<1x64x128xbf16>
    %286 = vector.shape_cast %285 : vector<1x64x128xbf16> to vector<64x128xbf16>
    %cst_188 = arith.constant dense<0.000000e+00> : vector<64x128xf32>
    %287 = tpu.matmul %284, %286, %cst_188 {dimension_numbers = #tpu.dot_dimension_numbers<[1], [0], [0], [1], [0, 0, 1, 1], [], []>} : vector<64x64xbf16>, vector<64x128xbf16>, vector<64x128xf32> -> vector<64x128xf32>
    %288 = arith.addf %281, %287 : vector<64x128xf32>
    %289 = vector.extract_strided_slice %231 {offsets = [2, 2, 0], sizes = [8, 8, 64], strides = [1, 1, 1]} : vector<10x10x64xf32> to vector<8x8x64xf32>
    %290 = vector.shape_cast %289 : vector<8x8x64xf32> to vector<64x64xf32>
    %291 = arith.truncf %290 : vector<64x64xf32> to vector<64x64xbf16>
    %c8_189 = arith.constant 8 : index
    %c0_190 = arith.constant 0 : index
    %c0_191 = arith.constant 0 : index
    %292 = vector.load %arg8[%c8_189, %c0_190, %c0_191] : memref<9x64x128xbf16, #tpu.memory_space<vmem>>, vector<1x64x128xbf16>
    %293 = vector.shape_cast %292 : vector<1x64x128xbf16> to vector<64x128xbf16>
    %cst_192 = arith.constant dense<0.000000e+00> : vector<64x128xf32>
    %294 = tpu.matmul %291, %293, %cst_192 {dimension_numbers = #tpu.dot_dimension_numbers<[1], [0], [0], [1], [0, 0, 1, 1], [], []>} : vector<64x64xbf16>, vector<64x128xbf16>, vector<64x128xf32> -> vector<64x128xf32>
    %295 = arith.addf %288, %294 : vector<64x128xf32>
    %c0_193 = arith.constant 0 : index
    %c0_194 = arith.constant 0 : index
    %296 = vector.load %arg9[%c0_193, %c0_194] : memref<1x128xf32, #tpu.memory_space<vmem>>, vector<1x128xf32>
    %297 = vector.broadcast %296 : vector<1x128xf32> to vector<64x128xf32>
    %298 = arith.addf %295, %297 : vector<64x128xf32>
    %cst_195 = arith.constant 0.000000e+00 : f32
    %299 = vector.broadcast %cst_195 : f32 to vector<64x128xf32>
    %300 = arith.maximumf %298, %299 : vector<64x128xf32>
    %301 = vector.shape_cast %300 : vector<64x128xf32> to vector<8x8x128xf32>
    %302 = vector.shape_cast %301 : vector<8x8x128xf32> to vector<4x2x8x128xf32>
    %cst_196 = arith.constant dense<0xFF800000> : vector<4x8x128xf32>
    %303 = vector.multi_reduction <maximumf>, %302, %cst_196 [1] : vector<4x2x8x128xf32> to vector<4x8x128xf32>
    %304 = vector.shape_cast %303 : vector<4x8x128xf32> to vector<4x4x2x128xf32>
    %cst_197 = arith.constant dense<0xFF800000> : vector<4x4x128xf32>
    %305 = vector.multi_reduction <maximumf>, %304, %cst_197 [2] : vector<4x4x2x128xf32> to vector<4x4x128xf32>
    %c0_198 = arith.constant 0 : index
    %c0_199 = arith.constant 0 : index
    %c0_200 = arith.constant 0 : index
    %c0_201 = arith.constant 0 : index
    %306 = vector.load %arg10[%c0_198, %c0_199, %c0_200, %c0_201] : memref<1x4x4x128xf32, #tpu.memory_space<vmem>>, vector<1x4x4x128xf32>
    %307 = vector.shape_cast %306 : vector<1x4x4x128xf32> to vector<4x4x128xf32>
    %308 = vector.shape_cast %305 : vector<4x4x128xf32> to vector<1x4x4x128xf32>
    tpu.vector_store %arg10[%c0_198, %c0_199, %c0_200, %c0_201], %308 {strides = array<i32>} : memref<1x4x4x128xf32, #tpu.memory_space<vmem>>, vector<1x4x4x128xf32>,
    return
  }
  func.func @transform_0(%arg0: i32) -> (i32, i32, i32, i32) {
    %c0_i32 = arith.constant 0 : i32
    %c0_i32_0 = arith.constant 0 : i32
    %c0_i32_1 = arith.constant 0 : i32
    %c0_i32_2 = arith.constant 0 : i32
    return %arg0, %c0_i32, %c0_i32_0, %c0_i32_1 : i32, i32, i32, i32
  }
  func.func @transform_1(%arg0: i32) -> (i32, i32, i32) {
    %c0_i32 = arith.constant 0 : i32
    %c0_i32_0 = arith.constant 0 : i32
    %c0_i32_1 = arith.constant 0 : i32
    %c0_i32_2 = arith.constant 0 : i32
    return %c0_i32, %c0_i32_0, %c0_i32_1 : i32, i32, i32
  }
  func.func @transform_2(%arg0: i32) -> (i32, i32) {
    %c0_i32 = arith.constant 0 : i32
    %c0_i32_0 = arith.constant 0 : i32
    %c0_i32_1 = arith.constant 0 : i32
    return %c0_i32, %c0_i32_0 : i32, i32
  }
  func.func @transform_3(%arg0: i32) -> (i32, i32, i32) {
    %c0_i32 = arith.constant 0 : i32
    %c0_i32_0 = arith.constant 0 : i32
    %c0_i32_1 = arith.constant 0 : i32
    %c0_i32_2 = arith.constant 0 : i32
    return %c0_i32, %c0_i32_0, %c0_i32_1 : i32, i32, i32
  }
  func.func @transform_4(%arg0: i32) -> (i32, i32) {
    %c0_i32 = arith.constant 0 : i32
    %c0_i32_0 = arith.constant 0 : i32
    %c0_i32_1 = arith.constant 0 : i32
    return %c0_i32, %c0_i32_0 : i32, i32
  }
  func.func @transform_5(%arg0: i32) -> (i32, i32, i32) {
    %c0_i32 = arith.constant 0 : i32
    %c0_i32_0 = arith.constant 0 : i32
    %c0_i32_1 = arith.constant 0 : i32
    %c0_i32_2 = arith.constant 0 : i32
    return %c0_i32, %c0_i32_0, %c0_i32_1 : i32, i32, i32
  }
  func.func @transform_6(%arg0: i32) -> (i32, i32) {
    %c0_i32 = arith.constant 0 : i32
    %c0_i32_0 = arith.constant 0 : i32
    %c0_i32_1 = arith.constant 0 : i32
    return %c0_i32, %c0_i32_0 : i32, i32
  }
  func.func @transform_7(%arg0: i32) -> (i32, i32, i32) {
    %c0_i32 = arith.constant 0 : i32
    %c0_i32_0 = arith.constant 0 : i32
    %c0_i32_1 = arith.constant 0 : i32
    %c0_i32_2 = arith.constant 0 : i32
    return %c0_i32, %c0_i32_0, %c0_i32_1 : i32, i32, i32
  }
  func.func @transform_8(%arg0: i32) -> (i32, i32) {
    %c0_i32 = arith.constant 0 : i32
    %c0_i32_0 = arith.constant 0 : i32
    %c0_i32_1 = arith.constant 0 : i32
    return %c0_i32, %c0_i32_0 : i32, i32
  }
  func.func @transform_9(%arg0: i32) -> (i32, i32, i32, i32) {
    %c0_i32 = arith.constant 0 : i32
    %c0_i32_0 = arith.constant 0 : i32
    %c0_i32_1 = arith.constant 0 : i32
    %c0_i32_2 = arith.constant 0 : i32
    return %arg0, %c0_i32, %c0_i32_0, %c0_i32_1 : i32, i32, i32, i32
  }
}

module attributes {stable_mosaic.version = 11 : i64} {
  func.func @_linear_kernel(%arg0: i32, %arg1: i32, %arg2: memref<2x2048xf32, #tpu.memory_space<vmem>>, %arg3: memref<2048x512xbf16, #tpu.memory_space<vmem>>, %arg4: memref<1x512xf32, #tpu.memory_space<vmem>>, %arg5: memref<2x512xf32, #tpu.memory_space<vmem>>, %arg6: memref<2x512xf32, #tpu.memory_space<vmem>>) attributes {dimension_semantics = [#tpu.dimension_semantics<parallel>, #tpu.dimension_semantics<arbitrary>], iteration_bounds = array<i64: 2, 1>, scalar_prefetch = 0 : i64, scratch_operands = 1 : i64, tpu.core_type = #tpu.core_type<tc>, window_params = [{transform_indices = @transform_0, window_bounds = array<i64: 2, 2048>}, {transform_indices = @transform_1, window_bounds = array<i64: 2048, 512>}, {transform_indices = @transform_2, window_bounds = array<i64: 1, 512>}, {transform_indices = @transform_3, window_bounds = array<i64: 2, 512>}]} {
    %c0_i32 = arith.constant 0 : i32
    %0 = arith.cmpi eq, %arg1, %c0_i32 : i32
    %1 = arith.extui %0 : i1 to i32
    %c0_i32_0 = arith.constant 0 : i32
    %2 = arith.cmpi ne, %1, %c0_i32_0 : i32
    scf.if %2 {
      %cst_10 = arith.constant 0.000000e+00 : f32
      %13 = vector.broadcast %cst_10 : f32 to vector<2x512xf32>
      %c0_11 = arith.constant 0 : index
      %c0_12 = arith.constant 0 : index
      %14 = vector.load %arg6[%c0_11, %c0_12] : memref<2x512xf32, #tpu.memory_space<vmem>>, vector<2x512xf32>
      tpu.vector_store %arg6[%c0_11, %c0_12], %13 {strides = array<i32>} : memref<2x512xf32, #tpu.memory_space<vmem>>, vector<2x512xf32>,
    } else {
    }
    %c0 = arith.constant 0 : index
    %c0_1 = arith.constant 0 : index
    %3 = vector.load %arg6[%c0, %c0_1] : memref<2x512xf32, #tpu.memory_space<vmem>>, vector<2x512xf32>
    %c0_2 = arith.constant 0 : index
    %c0_3 = arith.constant 0 : index
    %4 = vector.load %arg2[%c0_2, %c0_3] : memref<2x2048xf32, #tpu.memory_space<vmem>>, vector<2x2048xf32>
    %5 = arith.truncf %4 : vector<2x2048xf32> to vector<2x2048xbf16>
    %c0_4 = arith.constant 0 : index
    %c0_5 = arith.constant 0 : index
    %6 = vector.load %arg3[%c0_4, %c0_5] : memref<2048x512xbf16, #tpu.memory_space<vmem>>, vector<2048x512xbf16>
    %cst = arith.constant dense<0.000000e+00> : vector<2x512xf32>
    %7 = tpu.matmul %5, %6, %cst {dimension_numbers = #tpu.dot_dimension_numbers<[1], [0], [0], [1], [0, 0, 1, 1], [], []>} : vector<2x2048xbf16>, vector<2048x512xbf16>, vector<2x512xf32> -> vector<2x512xf32>
    %8 = arith.addf %3, %7 : vector<2x512xf32>
    %c0_6 = arith.constant 0 : index
    %c0_7 = arith.constant 0 : index
    %9 = vector.load %arg6[%c0_6, %c0_7] : memref<2x512xf32, #tpu.memory_space<vmem>>, vector<2x512xf32>
    tpu.vector_store %arg6[%c0_6, %c0_7], %8 {strides = array<i32>} : memref<2x512xf32, #tpu.memory_space<vmem>>, vector<2x512xf32>,
    %c0_i32_8 = arith.constant 0 : i32
    %10 = arith.cmpi eq, %arg1, %c0_i32_8 : i32
    %11 = arith.extui %10 : i1 to i32
    %c0_i32_9 = arith.constant 0 : i32
    %12 = arith.cmpi ne, %11, %c0_i32_9 : i32
    scf.if %12 {
      %c0_10 = arith.constant 0 : index
      %c0_11 = arith.constant 0 : index
      %13 = vector.load %arg6[%c0_10, %c0_11] : memref<2x512xf32, #tpu.memory_space<vmem>>, vector<2x512xf32>
      %c0_12 = arith.constant 0 : index
      %c0_13 = arith.constant 0 : index
      %14 = vector.load %arg4[%c0_12, %c0_13] : memref<1x512xf32, #tpu.memory_space<vmem>>, vector<1x512xf32>
      %15 = vector.broadcast %14 : vector<1x512xf32> to vector<2x512xf32>
      %16 = arith.addf %13, %15 : vector<2x512xf32>
      %cst_14 = arith.constant 0.000000e+00 : f32
      %17 = vector.broadcast %cst_14 : f32 to vector<2x512xf32>
      %18 = arith.maximumf %16, %17 : vector<2x512xf32>
      %c0_15 = arith.constant 0 : index
      %c0_16 = arith.constant 0 : index
      %19 = vector.load %arg5[%c0_15, %c0_16] : memref<2x512xf32, #tpu.memory_space<vmem>>, vector<2x512xf32>
      tpu.vector_store %arg5[%c0_15, %c0_16], %18 {strides = array<i32>} : memref<2x512xf32, #tpu.memory_space<vmem>>, vector<2x512xf32>,
    } else {
    }
    return
  }
  func.func @transform_0(%arg0: i32, %arg1: i32) -> (i32, i32) {
    %c0_i32 = arith.constant 0 : i32
    %c0_i32_0 = arith.constant 0 : i32
    return %c0_i32, %arg1 : i32, i32
  }
  func.func @transform_1(%arg0: i32, %arg1: i32) -> (i32, i32) {
    %c0_i32 = arith.constant 0 : i32
    return %arg1, %arg0 : i32, i32
  }
  func.func @transform_2(%arg0: i32, %arg1: i32) -> (i32, i32) {
    %c0_i32 = arith.constant 0 : i32
    %c0_i32_0 = arith.constant 0 : i32
    return %c0_i32, %arg0 : i32, i32
  }
  func.func @transform_3(%arg0: i32, %arg1: i32) -> (i32, i32) {
    %c0_i32 = arith.constant 0 : i32
    %c0_i32_0 = arith.constant 0 : i32
    return %c0_i32, %arg0 : i32, i32
  }
}

module attributes {stable_mosaic.version = 11 : i64} {
  func.func @_linear_kernel(%arg0: i32, %arg1: i32, %arg2: memref<2x1024xf32, #tpu.memory_space<vmem>>, %arg3: memref<1024x10xbf16, #tpu.memory_space<vmem>>, %arg4: memref<1x10xf32, #tpu.memory_space<vmem>>, %arg5: memref<2x10xf32, #tpu.memory_space<vmem>>, %arg6: memref<2x10xf32, #tpu.memory_space<vmem>>) attributes {dimension_semantics = [#tpu.dimension_semantics<parallel>, #tpu.dimension_semantics<arbitrary>], iteration_bounds = array<i64: 1, 1>, scalar_prefetch = 0 : i64, scratch_operands = 1 : i64, tpu.core_type = #tpu.core_type<tc>, window_params = [{transform_indices = @transform_0, window_bounds = array<i64: 2, 1024>}, {transform_indices = @transform_1, window_bounds = array<i64: 1024, 10>}, {transform_indices = @transform_2, window_bounds = array<i64: 1, 10>}, {transform_indices = @transform_3, window_bounds = array<i64: 2, 10>}]} {
    %c0_i32 = arith.constant 0 : i32
    %0 = arith.cmpi eq, %arg1, %c0_i32 : i32
    %1 = arith.extui %0 : i1 to i32
    %c0_i32_0 = arith.constant 0 : i32
    %2 = arith.cmpi ne, %1, %c0_i32_0 : i32
    scf.if %2 {
      %cst_10 = arith.constant 0.000000e+00 : f32
      %13 = vector.broadcast %cst_10 : f32 to vector<2x10xf32>
      %c0_11 = arith.constant 0 : index
      %c0_12 = arith.constant 0 : index
      %14 = vector.load %arg6[%c0_11, %c0_12] : memref<2x10xf32, #tpu.memory_space<vmem>>, vector<2x10xf32>
      tpu.vector_store %arg6[%c0_11, %c0_12], %13 {strides = array<i32>} : memref<2x10xf32, #tpu.memory_space<vmem>>, vector<2x10xf32>,
    } else {
    }
    %c0 = arith.constant 0 : index
    %c0_1 = arith.constant 0 : index
    %3 = vector.load %arg6[%c0, %c0_1] : memref<2x10xf32, #tpu.memory_space<vmem>>, vector<2x10xf32>
    %c0_2 = arith.constant 0 : index
    %c0_3 = arith.constant 0 : index
    %4 = vector.load %arg2[%c0_2, %c0_3] : memref<2x1024xf32, #tpu.memory_space<vmem>>, vector<2x1024xf32>
    %5 = arith.truncf %4 : vector<2x1024xf32> to vector<2x1024xbf16>
    %c0_4 = arith.constant 0 : index
    %c0_5 = arith.constant 0 : index
    %6 = vector.load %arg3[%c0_4, %c0_5] : memref<1024x10xbf16, #tpu.memory_space<vmem>>, vector<1024x10xbf16>
    %cst = arith.constant dense<0.000000e+00> : vector<2x10xf32>
    %7 = tpu.matmul %5, %6, %cst {dimension_numbers = #tpu.dot_dimension_numbers<[1], [0], [0], [1], [0, 0, 1, 1], [], []>} : vector<2x1024xbf16>, vector<1024x10xbf16>, vector<2x10xf32> -> vector<2x10xf32>
    %8 = arith.addf %3, %7 : vector<2x10xf32>
    %c0_6 = arith.constant 0 : index
    %c0_7 = arith.constant 0 : index
    %9 = vector.load %arg6[%c0_6, %c0_7] : memref<2x10xf32, #tpu.memory_space<vmem>>, vector<2x10xf32>
    tpu.vector_store %arg6[%c0_6, %c0_7], %8 {strides = array<i32>} : memref<2x10xf32, #tpu.memory_space<vmem>>, vector<2x10xf32>,
    %c0_i32_8 = arith.constant 0 : i32
    %10 = arith.cmpi eq, %arg1, %c0_i32_8 : i32
    %11 = arith.extui %10 : i1 to i32
    %c0_i32_9 = arith.constant 0 : i32
    %12 = arith.cmpi ne, %11, %c0_i32_9 : i32
    scf.if %12 {
      %c0_10 = arith.constant 0 : index
      %c0_11 = arith.constant 0 : index
      %13 = vector.load %arg6[%c0_10, %c0_11] : memref<2x10xf32, #tpu.memory_space<vmem>>, vector<2x10xf32>
      %c0_12 = arith.constant 0 : index
      %c0_13 = arith.constant 0 : index
      %14 = vector.load %arg4[%c0_12, %c0_13] : memref<1x10xf32, #tpu.memory_space<vmem>>, vector<1x10xf32>
      %15 = vector.broadcast %14 : vector<1x10xf32> to vector<2x10xf32>
      %16 = arith.addf %13, %15 : vector<2x10xf32>
      %c0_14 = arith.constant 0 : index
      %c0_15 = arith.constant 0 : index
      %17 = vector.load %arg5[%c0_14, %c0_15] : memref<2x10xf32, #tpu.memory_space<vmem>>, vector<2x10xf32>
      tpu.vector_store %arg5[%c0_14, %c0_15], %16 {strides = array<i32>} : memref<2x10xf32, #tpu.memory_space<vmem>>, vector<2x10xf32>,
    } else {
    }
    return
  }
  func.func @transform_0(%arg0: i32, %arg1: i32) -> (i32, i32) {
    %c0_i32 = arith.constant 0 : i32
    %c0_i32_0 = arith.constant 0 : i32
    return %c0_i32, %arg1 : i32, i32
  }
  func.func @transform_1(%arg0: i32, %arg1: i32) -> (i32, i32) {
    %c0_i32 = arith.constant 0 : i32
    return %arg1, %arg0 : i32, i32
  }
  func.func @transform_2(%arg0: i32, %arg1: i32) -> (i32, i32) {
    %c0_i32 = arith.constant 0 : i32
    %c0_i32_0 = arith.constant 0 : i32
    return %c0_i32, %arg0 : i32, i32
  }
  func.func @transform_3(%arg0: i32, %arg1: i32) -> (i32, i32) {
    %c0_i32 = arith.constant 0 : i32
    %c0_i32_0 = arith.constant 0 : i32
    return %c0_i32, %arg0 : i32, i32
  }
}

</mosaic_0001>

<bundles_post_ra>
// kernel: _lambda_.4
= control target key start
LH: loop header
LB: loop body
LE: loop exit
PB: predicated region body
PF: predicated region fallthrough
CT: control target
= control target key end

     0   :  { %8 = vsyncpa [#allocation4], 0  ;;  %s6636_s0 = inlined_call_operand.vmem [shape: f32[2,2048], index: 0, kind: input, shape index: {}]   ;;  %s6637_s1 = inlined_call_operand.hbm [shape: bf16[2048,1024], index: 1, kind: input, shape index: {}]   ;;  %s6638_s2 = inlined_call_operand.hbm [shape: f32[1,1024], index: 2, kind: input, shape index: {}]   ;;  %s6639_s3 = inlined_call_operand.vmem [shape: f32[2,1024], index: 3, kind: output, shape index: {}]  }
   0x1   :  { %10 = vsyncpa [#allocation4 + $0x1], 0 }
   0x2   :  { %11 = vsyncpa [#allocation6], 0 }
   0x3   :  { %13 = vsyncpa [#allocation6 + $0x1], 0  ;;  %s5864_s12 = smov 0   ;;  %s5866_s13 = smov 0  }
   0x4   :  { %s5868_s14 = smov 0   ;;  %s5870_s15 = smov 0  }
   0x5   :  { %s5872_s16 = smov 0   ;;  %s5874_s17 = smov 0  }
   0x6 LB: > { %s4298_s18 = sadd.s32 4294967295, %s5836_s17   ;;  %s31_s19 = sadd.s32 1, %s5832_s16  ;;  %s5836_s17 = sphi %s5874_s17, %s19_s17   ;;  %s5832_s16 = sphi %s5872_s16, %s6652_s16   ;;  %s5828_s15 = sphi %s5870_s15, %s6651_s15   ;;  %s5824_s14 = sphi %s5868_s14, %s6650_s14   ;;  %s5820_s13 = sphi %s5866_s13, %s6649_s13   ;;  %s5816_s12 = sphi %s5864_s12, %s6648_s12  }
   0x7   : > { %p33_p0 = scmp.ge.s32.totalorder %s31_s19, 2  ;;  %s66_s20 = sadd.s32 1, %s5824_s14 }
   0x8   : > { %p73_p1 = scmp.ne.s32.totalorder %s5824_s14, %s5820_s13  ;;  %p74_p2 = scmp.eq.s32.totalorder %s5836_s17, 0 }
   0x9   : > { %s6654_s19 = smov (%p33_p0, %s31_s19), 0  ;;  %p79_p4 = scmp.ne.s32.totalorder %s5820_s13, %s5816_s12 }
   0xa   : > { %p5900_p3 = por %p74_p2, %p73_p1  ;;  %s62_s22 = ssub.s32 %s5832_s16, %s6654_s19 }
   0xb   : > { %p80_p5 = scmp.eq.s32.totalorder %s4298_s18, 0  ;;  %p64_p6 = scmp.eq.s32.totalorder %s62_s22, 0 }
   0xc   : > { %p4897_p8 = scmp.lt.s32.totalorder %s5836_s17, 2  ;;  %s5916_s25 = sand.u32 1, %s5824_s14  }
   0xd   : > { %p5907_p7 = por %p80_p5, %p79_p4  ;;  %s4828_s26 = sshll.u32 %s5832_s16, 8 }
   0xe   : > { %s5913_s24 = scalar_select %p64_p6, %s5824_s14, %s66_s20  }
   0xf   : > { %s6642_s23 = scalar_select %p5907_p7, 1, 0 }
  0x10   : > { %s4303_s27 = sshll.u32 %s5916_s25, 12  ;;  %s5923_s30 = scalar_lea.hbm %s6637_s1, %s4828_s26 }
  0x11   : > { %s168_s4 = scalar_lea.vmem [#allocation3], %s4303_s27  ;;  %p5927_p9 = pnand %p4897_p8, %p5900_p3 }
  0x12   : > { %s178_s5 = sshll.u32 %s168_s4, 4  ;;  %s165_s7 = scalar_lea.sflag [#allocation4], %s5916_s25  ;;  %s5931_s5 = int_to_ptr.vmem [resolvable:$true] %s178_s5 }
  0x13   : > { %s5722_s8 = scalar_lea.hbm %s5923_s30, 65536  ;;  %p5724_p12 = pneg %p5927_p9 }
  0x14   : > { %p5723_p11 = scmp.ne.s32.totalorder %s5923_s30, %s5722_s8  ;;  %s5727_s11 = scalar_lea.hbm %s6637_s1, 131072 }
  0x15   : > { %p5728_p1 = scmp.lt.u32.totalorder %s5923_s30, %s6637_s1  ;;  %p5729_p2 = scmp.lt.u32.totalorder %s5727_s11, %s5722_s8 }
  0x16   : > { %p5725_p13 = pnand %p5724_p12, %p5723_p11  ;;  %p5731_p4 = scmp.lt.u32.totalorder %s5722_s8, %s5923_s30 }
  0x17   : > { %p5730_p3 = por %p5729_p2, %p5728_p1 }
  0x18   : > { %p5726_p0 = pneg %p5725_p13 }
  0x19   : > { %p5732_p5 = por %p5731_p4, %p5730_p3 }
  0x1b   : > { %p5733_p6 = pnand %p5732_p5, %p5726_p0 }
  0x1d   : > { %5736 = shalt.err (!%p5733_p6)
}
  0x1e   : > { %s5737_s20 = scalar_lea.vmem %s5931_s5, 65536  ;;  %s5838_s21 = smov [#allocation3]  }
  0x1f   : > { %p5738_p8 = scmp.ne.s32.totalorder %s5931_s5, %s5737_s20  ;;  %s5742_s22 = sshll.u32 %s5838_s21, 4  ;;  %s5743_s22 = int_to_ptr.vmem [resolvable:$false] %s5742_s22 }
  0x20   : > { %s5744_s26 = scalar_lea.vmem %s5743_s22, 131072  ;;  %p5745_p10 = scmp.lt.s32.totalorder %s5931_s5, %s5743_s22 }
  0x21   : > { %p5740_p11 = pnand %p5738_p8, %p5724_p12  ;;  %p5746_p1 = scmp.lt.s32.totalorder %s5744_s26, %s5737_s20 }
  0x23   : > { %p5741_p13 = pneg %p5740_p11  ;;  %p5747_p2 = por %p5746_p1, %p5745_p10 }
  0x25   : > { %p5748_p3 = pnand %p5747_p2, %p5741_p13 }
  0x27   : > { %5751 = shalt.err (!%p5748_p3)
}
  0x28   : > { %s5839_s27 = smov 512   ;;  %s5840_s28 = smov 256  }
  0x29   : > { %s5841_s29 = smov 16   ;;  %p205_p0 = scmp.lt.s32.totalorder %s5836_s17, 3 }
  0x2a   : > { %4893 = dma.hbm_to_vmem [thread:$0]  (!%p5927_p9), %s5923_s30, 65536, %s5931_s5, %s165_s7, %s5839_s27, %s5840_s28, %s5841_s29  }
  0x2b   : > { %s4306_s4 = sshll.u32 %s5916_s25, 2  ;;  %s4829_s8 = sshll.u32 %s5832_s16, 6 }
  0x2c   : > { %p6644_p10 = scmp.ge.s32.totalorder %s5836_s17, 1  ;;  %s5974_s12 = scalar_lea.hbm %s6638_s2, %s4829_s8 }
  0x2d   : > { %s192_s18 = scalar_lea.vmem [#allocation5], %s4306_s4  ;;  %s189_s30 = scalar_lea.sflag [#allocation6], %s5916_s25 }
  0x2e   : > { %p5967_p4 = pnand %p6644_p10, %p205_p0  ;;  %s200_s20 = sshll.u32 %s192_s18, 4  ;;  %s201_s20 = int_to_ptr.vmem [resolvable:$true] %s200_s20 }
  0x2f   : > { %s5752_s5 = scalar_lea.hbm %s5974_s12, 64  ;;  %s5757_s22 = scalar_lea.hbm %s6638_s2, 128 }
  0x30   : > { %s6645_s9 = scalar_select %p5967_p4, 1, 0 }
  0x31   : > { %p5753_p5 = scmp.ne.s32.totalorder %s5974_s12, %s5752_s5  ;;  %p5758_p11 = scmp.lt.u32.totalorder %s5974_s12, %s6638_s2 }
  0x32   : > { %p5759_p13 = scmp.lt.u32.totalorder %s5757_s22, %s5752_s5  ;;  %p5761_p2 = scmp.lt.u32.totalorder %s5752_s5, %s5974_s12 }
  0x33   : > { %p5755_p6 = pnand %p5753_p5, %p5724_p12 }
  0x34   : > { %p5760_p1 = por %p5759_p13, %p5758_p11 }
  0x35   : > { %p5756_p8 = pneg %p5755_p6 }
  0x36   : > { %p5762_p3 = por %p5761_p2, %p5760_p1 }
  0x38   : > { %p5763_p0 = pnand %p5762_p3, %p5756_p8 }
  0x3a   : > { %5766 = shalt.err (!%p5763_p0)
}
  0x3b   : > { %s5767_s25 = scalar_lea.vmem %s201_s20, 64  ;;  %s5842_s28 = smov [#allocation5]  }
  0x3c   : > { %p5768_p10 = scmp.ne.s32.totalorder %s201_s20, %s5767_s25  ;;  %s5772_s29 = sshll.u32 %s5842_s28, 4  ;;  %s5773_s29 = int_to_ptr.vmem [resolvable:$false] %s5772_s29 }
  0x3d   : > { %s5774_s4 = scalar_lea.vmem %s5773_s29, 128  ;;  %p5775_p7 = scmp.lt.s32.totalorder %s201_s20, %s5773_s29 }
  0x3e   : > { %p5770_p5 = pnand %p5768_p10, %p5724_p12  ;;  %p5776_p4 = scmp.lt.s32.totalorder %s5774_s4, %s5767_s25 }
  0x40   : > { %p5771_p6 = pneg %p5770_p5  ;;  %p5777_p11 = por %p5776_p4, %p5775_p7 }
  0x42   : > { %p5778_p13 = pnand %p5777_p11, %p5771_p6 }
  0x44   : > { %5781 = shalt.err (!%p5778_p13)
}
  0x45   : > { %4896 = dma.hbm_to_vmem [thread:$0]  (!%p5927_p9), %s5974_s12, 64, %s201_s20, %s189_s30  }
  0x46   : > { %p6646_p8 = scmp.ne.s32.totalorder %s6645_s9, 0 }
  0x47   : > { %s211_s8 = sand.u32 (!%p6646_p8), 1, %s5820_s13   ;;  %p6647_p12 = scmp.ne.s32.totalorder (!%p6646_p8), %s6642_s23, 0 }
  0x48   : > { %209 = sbr.rel (%p6646_p8) target bundleno = 820 (0x334), region = 32  ;;  %s4310_s10 = sshll.u32 (!%p6646_p8), %s211_s8, 12 }
  0x49   : > { %s212_s11 = scalar_lea.sflag (!%p6646_p8), [#allocation4], %s211_s8  ;;  %s5999_s18 = scalar_lea.vmem (!%p6646_p8), [#allocation3], %s4310_s10 }
  0x4f   : > { %5807 = dma.done.wait (%p6647_p12), %s212_s11, 65536  }
  0x50   : > { %5809 = vsyncadd (%p6647_p12), %s212_s11, 4294901760  ;;  %s4311_s5 = sshll.u32 %s211_s8, 2  ;;  %s221_s6 = scalar_lea.sflag [#allocation6], %s211_s8 }
  0x51   : > { %s6005_s7 = scalar_lea.vmem [#allocation5], %s4311_s5 }
  0x52   : > { %5811 = dma.done.wait (%p6647_p12), %s221_s6, 64  }
  0x53   : > { %5813 = vsyncadd (%p6647_p12), %s221_s6, 4294967232  ;;  %v4950_v0 = vld [vmem:[%s5999_s18 + $0x4] ss:$16 sps:$4 sm:$0xff]   ;;  %v4952_v1 = vld [vmem:[%s5999_s18 + $0xc] ss:$16 sps:$4 sm:$0xff]   ;;  %v290_v38 = vlaneseq  ;;  %s4312_s27 = sshll.u32 %s5828_s15, 2 }
  0x54   : > { %3458 = vmatprep.subr.bf16.mxu0 %v4950_v0  ;;  %v4954_v2 = vld [vmem:[%s5999_s18] ss:$16 sps:$4 sm:$0xff]   ;;  %v4955_v3 = vld [vmem:[%s5999_s18 + $0x8] ss:$16 sps:$4 sm:$0xff]   ;;  %3786 = vmatprep.subr.bf16.mxu1 %v4952_v1  ;;  %v4956_v4 = vld [vmem:[%s5999_s18 + $0x24] ss:$16 sps:$4 sm:$0xff]  }
  0x55   : > { %3459 = vmatpush1.bf16.msra.mxu0 %v4954_v2  ;;  %3787 = vmatpush1.bf16.msra.mxu1 %v4955_v3  ;;  %v4958_v5 = vld [vmem:[%s5999_s18 + $0x2c] ss:$16 sps:$4 sm:$0xff]   ;;  %v4960_v6 = vld [vmem:[%s5999_s18 + $0x20] ss:$16 sps:$4 sm:$0xff]   ;;  %v4961_v7 = vld [vmem:[%s5999_s18 + $0x28] ss:$16 sps:$4 sm:$0xff]  }
  0x56   : > { %3460 = vmatprep.subr.bf16.mxu0 %v4956_v4  ;;  %3788 = vmatprep.subr.bf16.mxu1 %v4958_v5  ;;  %v4962_v8 = vld [vmem:[%s5999_s18 + $0x44] ss:$16 sps:$4 sm:$0xff]   ;;  %v4964_v9 = vld [vmem:[%s5999_s18 + $0x4c] ss:$16 sps:$4 sm:$0xff]   ;;  %v4966_v10 = vld [vmem:[%s5999_s18 + $0x40] ss:$16 sps:$4 sm:$0xff]  }
  0x57   : > { %v4967_v11 = vld [vmem:[%s5999_s18 + $0x48] ss:$16 sps:$4 sm:$0xff]   ;;  %v4968_v12 = vld [vmem:[%s5999_s18 + $0x64] ss:$16 sps:$4 sm:$0xff]   ;;  %v4970_v13 = vld [vmem:[%s5999_s18 + $0x6c] ss:$16 sps:$4 sm:$0xff]  }
  0x58   : > { %v4972_v14 = vld [vmem:[%s5999_s18 + $0x60] ss:$16 sps:$4 sm:$0xff]   ;;  %v4973_v15 = vld [vmem:[%s5999_s18 + $0x68] ss:$16 sps:$4 sm:$0xff]   ;;  %v4974_v16 = vld [vmem:[%s5999_s18 + $0x84] ss:$16 sps:$4 sm:$0xff]  }
  0x59   : > { %3461 = vmatpush1.bf16.msra.mxu0 %v4960_v6  ;;  %3789 = vmatpush1.bf16.msra.mxu1 %v4961_v7  ;;  %v4976_v17 = vld [vmem:[%s5999_s18 + $0x8c] ss:$16 sps:$4 sm:$0xff]   ;;  %v4978_v18 = vld [vmem:[%s5999_s18 + $0x80] ss:$16 sps:$4 sm:$0xff]   ;;  %v4979_v19 = vld [vmem:[%s5999_s18 + $0x88] ss:$16 sps:$4 sm:$0xff]  }
  0x5a   : > { %3462 = vmatprep.subr.bf16.mxu0 %v4962_v8  ;;  %3790 = vmatprep.subr.bf16.mxu1 %v4964_v9  ;;  %v4980_v20 = vld [vmem:[%s5999_s18 + $0xa4] ss:$16 sps:$4 sm:$0xff]   ;;  %v4982_v21 = vld [vmem:[%s5999_s18 + $0xac] ss:$16 sps:$4 sm:$0xff]   ;;  %v4984_v22 = vld [vmem:[%s5999_s18 + $0xa0] ss:$16 sps:$4 sm:$0xff]  }
  0x5b   : > { %v4985_v23 = vld [vmem:[%s5999_s18 + $0xa8] ss:$16 sps:$4 sm:$0xff]   ;;  %v4986_v24 = vld [vmem:[%s5999_s18 + $0xc4] ss:$16 sps:$4 sm:$0xff]   ;;  %v4988_v25 = vld [vmem:[%s5999_s18 + $0xcc] ss:$16 sps:$4 sm:$0xff]  }
  0x5c   : > { %v4990_v26 = vld [vmem:[%s5999_s18 + $0xc0] ss:$16 sps:$4 sm:$0xff]   ;;  %v4991_v27 = vld [vmem:[%s5999_s18 + $0xc8] ss:$16 sps:$4 sm:$0xff]   ;;  %v4992_v28 = vld [vmem:[%s5999_s18 + $0xe4] ss:$16 sps:$4 sm:$0xff]  }
  0x5d   : > { %3463 = vmatpush1.bf16.msra.mxu0 %v4966_v10  ;;  %3791 = vmatpush1.bf16.msra.mxu1 %v4967_v11  ;;  %v4994_v29 = vld [vmem:[%s5999_s18 + $0xec] ss:$16 sps:$4 sm:$0xff]   ;;  %v4996_v30 = vld [vmem:[%s5999_s18 + $0xe0] ss:$16 sps:$4 sm:$0xff]   ;;  %v4997_v31 = vld [vmem:[%s5999_s18 + $0xe8] ss:$16 sps:$4 sm:$0xff]  }
  0x5e   : > { %3464 = vmatprep.subr.bf16.mxu0 %v4968_v12  ;;  %3792 = vmatprep.subr.bf16.mxu1 %v4970_v13  ;;  %v4998_v32 = vld [vmem:[%s5999_s18 + $0x104] ss:$16 sps:$4 sm:$0xff]   ;;  %v5000_v33 = vld [vmem:[%s5999_s18 + $0x10c] ss:$16 sps:$4 sm:$0xff]   ;;  %v5002_v34 = vld [vmem:[%s5999_s18 + $0x100] ss:$16 sps:$4 sm:$0xff]  }
  0x5f   : > { %v5003_v35 = vld [vmem:[%s5999_s18 + $0x108] ss:$16 sps:$4 sm:$0xff]   ;;  %v5843_v36 = vmov 1983009808   ;;  %v5004_v39 = vld [vmem:[%s5999_s18 + $0x124] ss:$16 sps:$4 sm:$0xff]  }
  0x60   : > { %v288_v37 = vunpack.c.l.s4 %v5843_v36  ;;  %v5006_v40 = vld [vmem:[%s5999_s18 + $0x12c] ss:$16 sps:$4 sm:$0xff]   ;;  %v5008_v41 = vld [vmem:[%s5999_s18 + $0x120] ss:$16 sps:$4 sm:$0xff]   ;;  %v6050_v43 = vshrl.u32 %v290_v38, 7  ;;  %p267_p7 = scmp.lt.s32.totalorder %s4312_s27, 7 }
  0x61   : > { %3465 = vmatpush1.bf16.msra.mxu0 %v4972_v14  ;;  %3793 = vmatpush1.bf16.msra.mxu1 %v4973_v15  ;;  %v5009_v44 = vld [vmem:[%s5999_s18 + $0x128] ss:$16 sps:$4 sm:$0xff]   ;;  %v5010_v45 = vld [vmem:[%s5999_s18 + $0x144] ss:$16 sps:$4 sm:$0xff]   ;;  %v5012_v46 = vld [vmem:[%s5999_s18 + $0x14c] ss:$16 sps:$4 sm:$0xff]  }
  0x62   : > { %3466 = vmatprep.subr.bf16.mxu0 %v4974_v16  ;;  %3794 = vmatprep.subr.bf16.mxu1 %v4976_v17  ;;  %v289_v42 = vunpack.c.0.s8 %v288_v37  ;;  %v5014_v47 = vld [vmem:[%s5999_s18 + $0x140] ss:$16 sps:$4 sm:$0xff]   ;;  %v5015_v48 = vld [vmem:[%s5999_s18 + $0x148] ss:$16 sps:$4 sm:$0xff]   ;;  %v5016_v50 = vld [vmem:[%s5999_s18 + $0x164] ss:$16 sps:$4 sm:$0xff]  }
  0x63   : > { %v5018_v51 = vld [vmem:[%s5999_s18 + $0x16c] ss:$16 sps:$4 sm:$0xff]   ;;  %v278_v52 = vld [vmem:[%s6636_s0] sm:$0xff]  ;;  %v5021_v55 = vld [vmem:[%s5999_s18 + $0x168] ss:$16 sps:$4 sm:$0xff]   ;;  %s6656_s27 = smov (!%p267_p7, %s4312_s27), 7 }
  0x64   : > { %v6058_v49 = vsub.s32 %v289_v42, %v6050_v43  ;;  %v5020_v53 = vld [vmem:[%s5999_s18 + $0x160] ss:$16 sps:$4 sm:$0xff]   ;;  %v5022_v56 = vld [vmem:[%s5999_s18 + $0x184] ss:$16 sps:$4 sm:$0xff]   ;;  %v5024_v57 = vld [vmem:[%s5999_s18 + $0x18c] ss:$16 sps:$4 sm:$0xff]   ;;  %v286_v4 = vcombine.high %v278_v52, %v278_v52 }
  0x65   : > { %3467 = vmatpush1.bf16.msra.mxu0 %v4978_v18  ;;  %3795 = vmatpush1.bf16.msra.mxu1 %v4979_v19  ;;  %v5026_v59 = vld [vmem:[%s5999_s18 + $0x180] ss:$16 sps:$4 sm:$0xff]   ;;  %v5027_v61 = vld [vmem:[%s5999_s18 + $0x188] ss:$16 sps:$4 sm:$0xff]   ;;  %v5028_v62 = vld [vmem:[%s5999_s18 + $0x1a4] ss:$16 sps:$4 sm:$0xff]  }
  0x66   : > { %3468 = vmatprep.subr.bf16.mxu0 %v4980_v20  ;;  %3796 = vmatprep.subr.bf16.mxu1 %v4982_v21  ;;  %v293_v54 = vrot.slane %v278_v52, %v6058_v49  ;;  %v5030_v63 = vld [vmem:[%s5999_s18 + $0x1ac] ss:$16 sps:$4 sm:$0xff]   ;;  %v5032_v0 = vld [vmem:[%s5999_s18 + $0x1a0] ss:$16 sps:$4 sm:$0xff]   ;;  %v5033_v1 = vld [vmem:[%s5999_s18 + $0x1a8] ss:$16 sps:$4 sm:$0xff]   ;;  %v6083_v9 = vrot.slane %v286_v4, %v6058_v49 }
  0x67   : > { %v5034_v2 = vld [vmem:[%s5999_s18 + $0x1c4] ss:$16 sps:$4 sm:$0xff]   ;;  %v5036_v3 = vld [vmem:[%s5999_s18 + $0x1cc] ss:$16 sps:$4 sm:$0xff]   ;;  %v5038_v5 = vld [vmem:[%s5999_s18 + $0x1c0] ss:$16 sps:$4 sm:$0xff]  }
  0x68   : > { %v301_v58 = vcombine.high %v293_v54, %v293_v54  ;;  %v5039_v6 = vld [vmem:[%s5999_s18 + $0x1c8] ss:$16 sps:$4 sm:$0xff]   ;;  %v5040_v7 = vld [vmem:[%s5999_s18 + $0x1e4] ss:$16 sps:$4 sm:$0xff]   ;;  %v5042_v8 = vld [vmem:[%s5999_s18 + $0x1ec] ss:$16 sps:$4 sm:$0xff]   ;;  %v302_v14 = vcombine.high %v6083_v9, %v6083_v9  ;;  %v370_v16 = vpack.c.bf16 %v293_v54, %v293_v54 }
  0x69   : > { %3469 = vmatpush1.bf16.msra.mxu0 %v4984_v22  ;;  %3797 = vmatpush1.bf16.msra.mxu1 %v4985_v23  ;;  %v5044_v10 = vld [vmem:[%s5999_s18 + $0x1e0] ss:$16 sps:$4 sm:$0xff]   ;;  %v5045_v11 = vld [vmem:[%s5999_s18 + $0x1e8] ss:$16 sps:$4 sm:$0xff]   ;;  %v5049_v12 = vld [vmem:[%s5999_s18 + $0x204] ss:$16 sps:$4 sm:$0xff]  }
  0x6a   : > { %3470 = vmatprep.subr.bf16.mxu0 %v4986_v24  ;;  %3798 = vmatprep.subr.bf16.mxu1 %v4988_v25  ;;  %v371_v60 = vpack.c.bf16 %v301_v58, %v301_v58  ;;  %v5052_v13 = vld [vmem:[%s5999_s18 + $0x20c] ss:$16 sps:$4 sm:$0xff]   ;;  %v5047_v15 = vld [vmem:[%s5999_s18 + $0x200] ss:$16 sps:$4 sm:$0xff]   ;;  %v5050_v17 = vld [vmem:[%s5999_s18 + $0x208] ss:$16 sps:$4 sm:$0xff]   ;;  %v373_v20 = vpack.c.bf16 %v302_v14, %v302_v14 }
  0x6b   : > { %v5055_v18 = vld [vmem:[%s5999_s18 + $0x224] ss:$16 sps:$4 sm:$0xff]   ;;  %v5058_v19 = vld [vmem:[%s5999_s18 + $0x22c] ss:$16 sps:$4 sm:$0xff]   ;;  %v5053_v21 = vld [vmem:[%s5999_s18 + $0x220] ss:$16 sps:$4 sm:$0xff]  }
  0x6c   : > { %3490 = vmatprep.mubr.bf16.mxu0 %v371_v60  ;;  %3818 = vmatprep.mubr.bf16.mxu1 %v371_v60  ;;  %v5056_v22 = vld [vmem:[%s5999_s18 + $0x228] ss:$16 sps:$4 sm:$0xff]   ;;  %v5061_v23 = vld [vmem:[%s5999_s18 + $0x244] ss:$16 sps:$4 sm:$0xff]   ;;  %v5064_v24 = vld [vmem:[%s5999_s18 + $0x24c] ss:$16 sps:$4 sm:$0xff]  }
  0x6d   : > { %3471 = vmatpush1.bf16.msra.mxu0 %v4990_v26  ;;  %3799 = vmatpush1.bf16.msra.mxu1 %v4991_v27  ;;  %v5059_v25 = vld [vmem:[%s5999_s18 + $0x240] ss:$16 sps:$4 sm:$0xff]   ;;  %v5062_v26 = vld [vmem:[%s5999_s18 + $0x248] ss:$16 sps:$4 sm:$0xff]   ;;  %v5067_v27 = vld [vmem:[%s5999_s18 + $0x264] ss:$16 sps:$4 sm:$0xff]  }
  0x6e   : > { %3472 = vmatprep.subr.bf16.mxu0 %v4992_v28  ;;  %3800 = vmatprep.subr.bf16.mxu1 %v4994_v29  ;;  %v5070_v28 = vld [vmem:[%s5999_s18 + $0x26c] ss:$16 sps:$4 sm:$0xff]   ;;  %v5065_v29 = vld [vmem:[%s5999_s18 + $0x260] ss:$16 sps:$4 sm:$0xff]   ;;  %v5080_v38 = vld [vmem:[%s5999_s18 + $0x2a8] ss:$16 sps:$4 sm:$0xff]  }
  0x6f   : > { %v5082_v36 = vld [vmem:[%s5999_s18 + $0x2ac] ss:$16 sps:$4 sm:$0xff]   ;;  %v5077_v37 = vld [vmem:[%s5999_s18 + $0x2a0] ss:$16 sps:$4 sm:$0xff]   ;;  %v5086_v42 = vld [vmem:[%s5999_s18 + $0x2c8] ss:$16 sps:$4 sm:$0xff]  }
  0x70   : > { %v5098_v52 = vld [vmem:[%s5999_s18 + $0x308] ss:$16 sps:$4 sm:$0xff]   ;;  %v5106_v54 = vld [vmem:[%s5999_s18 + $0x32c] ss:$16 sps:$4 sm:$0xff]   ;;  %v5139_v14 = vld [vmem:[%s5999_s18 + $0x3e4] ss:$16 sps:$4 sm:$0xff]  }
  0x71   : > { %3473 = vmatpush1.bf16.msra.mxu0 %v4996_v30  ;;  %3801 = vmatpush1.bf16.msra.mxu1 %v4997_v31  ;;  %v5068_v30 = vld [vmem:[%s5999_s18 + $0x268] ss:$16 sps:$4 sm:$0xff]   ;;  %v5073_v31 = vld [vmem:[%s5999_s18 + $0x284] ss:$16 sps:$4 sm:$0xff]   ;;  %v5112_v58 = vld [vmem:[%s5999_s18 + $0x34c] ss:$16 sps:$4 sm:$0xff]  }
  0x72   : > { %3474 = vmatprep.subr.bf16.mxu0 %v4998_v32  ;;  %3802 = vmatprep.subr.bf16.mxu1 %v5000_v33  ;;  %v5076_v32 = vld [vmem:[%s5999_s18 + $0x28c] ss:$16 sps:$4 sm:$0xff]   ;;  %v5071_v33 = vld [vmem:[%s5999_s18 + $0x280] ss:$16 sps:$4 sm:$0xff]   ;;  %v5110_v60 = vld [vmem:[%s5999_s18 + $0x348] ss:$16 sps:$4 sm:$0xff]  }
  0x73   : > { %v5122_v4 = vld [vmem:[%s5999_s18 + $0x388] ss:$16 sps:$4 sm:$0xff]   ;;  %s4313_s15 = sshll.u32 %s6656_s27, 1 }
  0x74   : > { %s270_s29 = scalar_lea.vmem %s6639_s3, %s4313_s15 }
  0x75   : > { %3475 = vmatpush1.bf16.msra.mxu0 %v5002_v34  ;;  %3803 = vmatpush1.bf16.msra.mxu1 %v5003_v35  ;;  %v5074_v34 = vld [vmem:[%s5999_s18 + $0x288] ss:$16 sps:$4 sm:$0xff]   ;;  %v5079_v35 = vld [vmem:[%s5999_s18 + $0x2a4] ss:$16 sps:$4 sm:$0xff]  }
  0x76   : > { %3476 = vmatprep.subr.bf16.mxu0 %v5004_v39  ;;  %3804 = vmatprep.subr.bf16.mxu1 %v5006_v40  ;;  %v5085_v39 = vld [vmem:[%s5999_s18 + $0x2c4] ss:$16 sps:$4 sm:$0xff]   ;;  %v5088_v40 = vld [vmem:[%s5999_s18 + $0x2cc] ss:$16 sps:$4 sm:$0xff]  }
  0x79   : > { %3477 = vmatpush1.bf16.msra.mxu0 %v5008_v41  ;;  %3805 = vmatpush1.bf16.msra.mxu1 %v5009_v44  ;;  %v5083_v41 = vld [vmem:[%s5999_s18 + $0x2c0] ss:$16 sps:$4 sm:$0xff]   ;;  %v5091_v44 = vld [vmem:[%s5999_s18 + $0x2e4] ss:$16 sps:$4 sm:$0xff]  }
  0x7a   : > { %3478 = vmatprep.subr.bf16.mxu0 %v5010_v45  ;;  %3806 = vmatprep.subr.bf16.mxu1 %v5012_v46  ;;  %v5094_v45 = vld [vmem:[%s5999_s18 + $0x2ec] ss:$16 sps:$4 sm:$0xff]   ;;  %v5089_v46 = vld [vmem:[%s5999_s18 + $0x2e0] ss:$16 sps:$4 sm:$0xff]  }
  0x7d   : > { %3479 = vmatpush1.bf16.msra.mxu0 %v5014_v47  ;;  %3807 = vmatpush1.bf16.msra.mxu1 %v5015_v48  ;;  %v5092_v47 = vld [vmem:[%s5999_s18 + $0x2e8] ss:$16 sps:$4 sm:$0xff]   ;;  %v5097_v48 = vld [vmem:[%s5999_s18 + $0x304] ss:$16 sps:$4 sm:$0xff]  }
  0x7e   : > { %3480 = vmatprep.subr.bf16.mxu0 %v5016_v50  ;;  %3808 = vmatprep.subr.bf16.mxu1 %v5018_v51  ;;  %v5100_v50 = vld [vmem:[%s5999_s18 + $0x30c] ss:$16 sps:$4 sm:$0xff]   ;;  %v5095_v51 = vld [vmem:[%s5999_s18 + $0x300] ss:$16 sps:$4 sm:$0xff]  }
  0x81   : > { %3481 = vmatpush1.bf16.msra.mxu0 %v5020_v53  ;;  %3809 = vmatpush1.bf16.msra.mxu1 %v5021_v55  ;;  %v5103_v53 = vld [vmem:[%s5999_s18 + $0x324] ss:$16 sps:$4 sm:$0xff]   ;;  %v5101_v55 = vld [vmem:[%s5999_s18 + $0x320] ss:$16 sps:$4 sm:$0xff]  }
  0x82   : > { %3482 = vmatprep.subr.bf16.mxu0 %v5022_v56  ;;  %3810 = vmatprep.subr.bf16.mxu1 %v5024_v57  ;;  %v5104_v56 = vld [vmem:[%s5999_s18 + $0x328] ss:$16 sps:$4 sm:$0xff]   ;;  %v5109_v57 = vld [vmem:[%s5999_s18 + $0x344] ss:$16 sps:$4 sm:$0xff]  }
  0x85   : > { %3483 = vmatpush1.bf16.msra.mxu0 %v5026_v59  ;;  %3811 = vmatpush1.bf16.msra.mxu1 %v5027_v61  ;;  %v5107_v59 = vld [vmem:[%s5999_s18 + $0x340] ss:$16 sps:$4 sm:$0xff]   ;;  %v5115_v61 = vld [vmem:[%s5999_s18 + $0x364] ss:$16 sps:$4 sm:$0xff]  }
  0x86   : > { %3484 = vmatprep.subr.bf16.mxu0 %v5028_v62  ;;  %3812 = vmatprep.subr.bf16.mxu1 %v5030_v63  ;;  %v5118_v62 = vld [vmem:[%s5999_s18 + $0x36c] ss:$16 sps:$4 sm:$0xff]   ;;  %v5113_v63 = vld [vmem:[%s5999_s18 + $0x360] ss:$16 sps:$4 sm:$0xff]  }
  0x89   : > { %3485 = vmatpush1.bf16.msra.mxu0 %v5032_v0  ;;  %3813 = vmatpush1.bf16.msra.mxu1 %v5033_v1  ;;  %v5116_v0 = vld [vmem:[%s5999_s18 + $0x368] ss:$16 sps:$4 sm:$0xff]   ;;  %v5121_v1 = vld [vmem:[%s5999_s18 + $0x384] ss:$16 sps:$4 sm:$0xff]  }
  0x8a   : > { %3486 = vmatprep.subr.bf16.mxu0 %v5034_v2  ;;  %3814 = vmatprep.subr.bf16.mxu1 %v5036_v3  ;;  %v5124_v2 = vld [vmem:[%s5999_s18 + $0x38c] ss:$16 sps:$4 sm:$0xff]   ;;  %v5119_v3 = vld [vmem:[%s5999_s18 + $0x380] ss:$16 sps:$4 sm:$0xff]  }
  0x8d   : > { %3487 = vmatpush1.bf16.msra.mxu0 %v5038_v5  ;;  %3815 = vmatpush1.bf16.msra.mxu1 %v5039_v6  ;;  %v5127_v5 = vld [vmem:[%s5999_s18 + $0x3a4] ss:$16 sps:$4 sm:$0xff]   ;;  %v5130_v6 = vld [vmem:[%s5999_s18 + $0x3ac] ss:$16 sps:$4 sm:$0xff]  }
  0x8e   : > { %3488 = vmatprep.subr.bf16.mxu0 %v5040_v7  ;;  %3816 = vmatprep.subr.bf16.mxu1 %v5042_v8  ;;  %v5125_v7 = vld [vmem:[%s5999_s18 + $0x3a0] ss:$16 sps:$4 sm:$0xff]   ;;  %v5128_v8 = vld [vmem:[%s5999_s18 + $0x3a8] ss:$16 sps:$4 sm:$0xff]  }
  0x91   : > { %3489 = vmatpush1.bf16.msra.mxu0 %v5044_v10  ;;  %3817 = vmatpush1.bf16.msra.mxu1 %v5045_v11  ;;  %v5133_v10 = vld [vmem:[%s5999_s18 + $0x3c4] ss:$16 sps:$4 sm:$0xff]   ;;  %v5136_v11 = vld [vmem:[%s5999_s18 + $0x3cc] ss:$16 sps:$4 sm:$0xff]  }
  0x92   : > { %3499 = vmatprep.subr.bf16.mxu0 %v5049_v12  ;;  %3827 = vmatprep.subr.bf16.mxu1 %v5052_v13  ;;  %v5131_v12 = vld [vmem:[%s5999_s18 + $0x3c0] ss:$16 sps:$4 sm:$0xff]   ;;  %v5134_v13 = vld [vmem:[%s5999_s18 + $0x3c8] ss:$16 sps:$4 sm:$0xff]  }
  0x94   : > { %3491 = vmatmul.mubr.bf16.vlgmr.msra.gmra.mrb[0].mxu0 %v370_v16  ;;  %3819 = vmatmul.mubr.bf16.vlgmr.msra.gmra.mrb[0].mxu1 %v370_v16  ;;  %v5137_v16 = vld [vmem:[%s5999_s18 + $0x3e0] ss:$16 sps:$4 sm:$0xff]  }
  0x95   : > { %3500 = vmatpush1.bf16.msra.mxu0 %v5047_v15  ;;  %3828 = vmatpush1.bf16.msra.mxu1 %v5050_v17  ;;  %v5142_v15 = vld [vmem:[%s5999_s18 + $0x3ec] ss:$16 sps:$4 sm:$0xff]   ;;  %v5140_v17 = vld [vmem:[%s5999_s18 + $0x3e8] ss:$16 sps:$4 sm:$0xff]  }
  0x96   : > { %3501 = vmatprep.subr.bf16.mxu0 %v5055_v18  ;;  %3829 = vmatprep.subr.bf16.mxu1 %v5058_v19  ;;  %v5145_v18 = vld [vmem:[%s5999_s18 + $0x404] ss:$16 sps:$4 sm:$0xff]   ;;  %v5148_v19 = vld [vmem:[%s5999_s18 + $0x40c] ss:$16 sps:$4 sm:$0xff]  }
  0x97   : > { %3531 = vmatprep.mubr.bf16.mxu0 %v373_v20  ;;  %3859 = vmatprep.mubr.bf16.mxu1 %v373_v20  ;;  %v5143_v20 = vld [vmem:[%s5999_s18 + $0x400] ss:$16 sps:$4 sm:$0xff]  }
  0x99   : > { %3502 = vmatpush1.bf16.msra.mxu0 %v5053_v21  ;;  %3830 = vmatpush1.bf16.msra.mxu1 %v5056_v22  ;;  %v372_v21 = vpack.c.bf16 %v6083_v9, %v6083_v9  ;;  %v5146_v22 = vld [vmem:[%s5999_s18 + $0x408] ss:$16 sps:$4 sm:$0xff]  }
  0x9a   : > { %3503 = vmatprep.subr.bf16.mxu0 %v5061_v23  ;;  %3831 = vmatprep.subr.bf16.mxu1 %v5064_v24  ;;  %v6162_v23 = vld [vmem:[%s6636_s0 + $0x8] sm:$0xff]  ;;  %v5151_v24 = vld [vmem:[%s5999_s18 + $0x424] ss:$16 sps:$4 sm:$0xff]  }
  0x9d   : > { %3504 = vmatpush1.bf16.msra.mxu0 %v5059_v25  ;;  %3832 = vmatpush1.bf16.msra.mxu1 %v5062_v26  ;;  %v5154_v25 = vld [vmem:[%s5999_s18 + $0x42c] ss:$16 sps:$4 sm:$0xff]   ;;  %v6168_v26 = vrot.slane %v6162_v23, %v6058_v49 }
  0x9e   : > { %3505 = vmatprep.subr.bf16.mxu0 %v5067_v27  ;;  %3833 = vmatprep.subr.bf16.mxu1 %v5070_v28  ;;  %v5149_v27 = vld [vmem:[%s5999_s18 + $0x420] ss:$16 sps:$4 sm:$0xff]   ;;  %v5152_v28 = vld [vmem:[%s5999_s18 + $0x428] ss:$16 sps:$4 sm:$0xff]  }
  0x9f   : > { %v318_v9 = vcombine.high %v6168_v26, %v6168_v26 }
  0xa1   : > { %3506 = vmatpush1.bf16.msra.mxu0 %v5065_v29  ;;  %3834 = vmatpush1.bf16.msra.mxu1 %v5068_v30  ;;  %v5157_v29 = vld [vmem:[%s5999_s18 + $0x444] ss:$16 sps:$4 sm:$0xff]   ;;  %v5160_v30 = vld [vmem:[%s5999_s18 + $0x44c] ss:$16 sps:$4 sm:$0xff]  }
  0xa2   : > { %3507 = vmatprep.subr.bf16.mxu0 %v5073_v31  ;;  %3835 = vmatprep.subr.bf16.mxu1 %v5076_v32  ;;  %v375_v31 = vpack.c.bf16 %v318_v9, %v318_v9  ;;  %v5155_v32 = vld [vmem:[%s5999_s18 + $0x440] ss:$16 sps:$4 sm:$0xff]   ;;  %v5236_v9 = vld [vmem:[%s5999_s18 + $0x5e8] ss:$16 sps:$4 sm:$0xff]  }
  0xa5   : > { %3508 = vmatpush1.bf16.msra.mxu0 %v5071_v33  ;;  %3836 = vmatpush1.bf16.msra.mxu1 %v5074_v34  ;;  %v5158_v33 = vld [vmem:[%s5999_s18 + $0x448] ss:$16 sps:$4 sm:$0xff]   ;;  %v5163_v34 = vld [vmem:[%s5999_s18 + $0x464] ss:$16 sps:$4 sm:$0xff]  }
  0xa6   : > { %3509 = vmatprep.subr.bf16.mxu0 %v5079_v35  ;;  %3837 = vmatprep.subr.bf16.mxu1 %v5082_v36  ;;  %v5166_v35 = vld [vmem:[%s5999_s18 + $0x46c] ss:$16 sps:$4 sm:$0xff]   ;;  %v5161_v36 = vld [vmem:[%s5999_s18 + $0x460] ss:$16 sps:$4 sm:$0xff]  }
  0xa9   : > { %3510 = vmatpush1.bf16.msra.mxu0 %v5077_v37  ;;  %3838 = vmatpush1.bf16.msra.mxu1 %v5080_v38  ;;  %v5164_v37 = vld [vmem:[%s5999_s18 + $0x468] ss:$16 sps:$4 sm:$0xff]   ;;  %v5169_v38 = vld [vmem:[%s5999_s18 + $0x484] ss:$16 sps:$4 sm:$0xff]  }
  0xaa   : > { %3511 = vmatprep.subr.bf16.mxu0 %v5085_v39  ;;  %3839 = vmatprep.subr.bf16.mxu1 %v5088_v40  ;;  %v5172_v39 = vld [vmem:[%s5999_s18 + $0x48c] ss:$16 sps:$4 sm:$0xff]   ;;  %v5167_v40 = vld [vmem:[%s5999_s18 + $0x480] ss:$16 sps:$4 sm:$0xff]  }
  0xad   : > { %3512 = vmatpush1.bf16.msra.mxu0 %v5083_v41  ;;  %3840 = vmatpush1.bf16.msra.mxu1 %v5086_v42  ;;  %v5170_v41 = vld [vmem:[%s5999_s18 + $0x488] ss:$16 sps:$4 sm:$0xff]   ;;  %v5175_v42 = vld [vmem:[%s5999_s18 + $0x4a4] ss:$16 sps:$4 sm:$0xff]  }
  0xae   : > { %3513 = vmatprep.subr.bf16.mxu0 %v5091_v44  ;;  %3841 = vmatprep.subr.bf16.mxu1 %v5094_v45  ;;  %v5178_v44 = vld [vmem:[%s5999_s18 + $0x4ac] ss:$16 sps:$4 sm:$0xff]   ;;  %v5173_v45 = vld [vmem:[%s5999_s18 + $0x4a0] ss:$16 sps:$4 sm:$0xff]  }
  0xb1   : > { %3514 = vmatpush1.bf16.msra.mxu0 %v5089_v46  ;;  %3842 = vmatpush1.bf16.msra.mxu1 %v5092_v47  ;;  %v5176_v46 = vld [vmem:[%s5999_s18 + $0x4a8] ss:$16 sps:$4 sm:$0xff]   ;;  %v5181_v47 = vld [vmem:[%s5999_s18 + $0x4c4] ss:$16 sps:$4 sm:$0xff]  }
  0xb2   : > { %3515 = vmatprep.subr.bf16.mxu0 %v5097_v48  ;;  %3843 = vmatprep.subr.bf16.mxu1 %v5100_v50  ;;  %v5184_v48 = vld [vmem:[%s5999_s18 + $0x4cc] ss:$16 sps:$4 sm:$0xff]   ;;  %v5179_v50 = vld [vmem:[%s5999_s18 + $0x4c0] ss:$16 sps:$4 sm:$0xff]  }
  0xb5   : > { %3516 = vmatpush1.bf16.msra.mxu0 %v5095_v51  ;;  %3844 = vmatpush1.bf16.msra.mxu1 %v5098_v52  ;;  %v5182_v51 = vld [vmem:[%s5999_s18 + $0x4c8] ss:$16 sps:$4 sm:$0xff]   ;;  %v5187_v52 = vld [vmem:[%s5999_s18 + $0x4e4] ss:$16 sps:$4 sm:$0xff]  }
  0xb6   : > { %3517 = vmatprep.subr.bf16.mxu0 %v5103_v53  ;;  %3845 = vmatprep.subr.bf16.mxu1 %v5106_v54  ;;  %v5190_v53 = vld [vmem:[%s5999_s18 + $0x4ec] ss:$16 sps:$4 sm:$0xff]   ;;  %v5185_v54 = vld [vmem:[%s5999_s18 + $0x4e0] ss:$16 sps:$4 sm:$0xff]  }
  0xb9   : > { %3518 = vmatpush1.bf16.msra.mxu0 %v5101_v55  ;;  %3846 = vmatpush1.bf16.msra.mxu1 %v5104_v56  ;;  %v5188_v55 = vld [vmem:[%s5999_s18 + $0x4e8] ss:$16 sps:$4 sm:$0xff]   ;;  %v5193_v56 = vld [vmem:[%s5999_s18 + $0x504] ss:$16 sps:$4 sm:$0xff]  }
  0xba   : > { %3519 = vmatprep.subr.bf16.mxu0 %v5109_v57  ;;  %3847 = vmatprep.subr.bf16.mxu1 %v5112_v58  ;;  %v5196_v57 = vld [vmem:[%s5999_s18 + $0x50c] ss:$16 sps:$4 sm:$0xff]   ;;  %v5191_v58 = vld [vmem:[%s5999_s18 + $0x500] ss:$16 sps:$4 sm:$0xff]  }
  0xbd   : > { %3520 = vmatpush1.bf16.msra.mxu0 %v5107_v59  ;;  %3848 = vmatpush1.bf16.msra.mxu1 %v5110_v60  ;;  %v5194_v59 = vld [vmem:[%s5999_s18 + $0x508] ss:$16 sps:$4 sm:$0xff]   ;;  %v5199_v60 = vld [vmem:[%s5999_s18 + $0x524] ss:$16 sps:$4 sm:$0xff]  }
  0xbe   : > { %3521 = vmatprep.subr.bf16.mxu0 %v5115_v61  ;;  %3849 = vmatprep.subr.bf16.mxu1 %v5118_v62  ;;  %v5202_v61 = vld [vmem:[%s5999_s18 + $0x52c] ss:$16 sps:$4 sm:$0xff]   ;;  %v5197_v62 = vld [vmem:[%s5999_s18 + $0x520] ss:$16 sps:$4 sm:$0xff]  }
  0xc1   : > { %3522 = vmatpush1.bf16.msra.mxu0 %v5113_v63  ;;  %3850 = vmatpush1.bf16.msra.mxu1 %v5116_v0  ;;  %v5200_v63 = vld [vmem:[%s5999_s18 + $0x528] ss:$16 sps:$4 sm:$0xff]   ;;  %v5205_v0 = vld [vmem:[%s5999_s18 + $0x544] ss:$16 sps:$4 sm:$0xff]  }
  0xc2   : > { %3523 = vmatprep.subr.bf16.mxu0 %v5121_v1  ;;  %3851 = vmatprep.subr.bf16.mxu1 %v5124_v2  ;;  %v5208_v1 = vld [vmem:[%s5999_s18 + $0x54c] ss:$16 sps:$4 sm:$0xff]   ;;  %v5203_v2 = vld [vmem:[%s5999_s18 + $0x540] ss:$16 sps:$4 sm:$0xff]  }
  0xc5   : > { %3524 = vmatpush1.bf16.msra.mxu0 %v5119_v3  ;;  %3852 = vmatpush1.bf16.msra.mxu1 %v5122_v4  ;;  %v5206_v3 = vld [vmem:[%s5999_s18 + $0x548] ss:$16 sps:$4 sm:$0xff]   ;;  %v5211_v4 = vld [vmem:[%s5999_s18 + $0x564] ss:$16 sps:$4 sm:$0xff]  }
  0xc6   : > { %3525 = vmatprep.subr.bf16.mxu0 %v5127_v5  ;;  %3853 = vmatprep.subr.bf16.mxu1 %v5130_v6  ;;  %v5214_v5 = vld [vmem:[%s5999_s18 + $0x56c] ss:$16 sps:$4 sm:$0xff]   ;;  %v5209_v6 = vld [vmem:[%s5999_s18 + $0x560] ss:$16 sps:$4 sm:$0xff]  }
  0xc9   : > { %3526 = vmatpush1.bf16.msra.mxu0 %v5125_v7  ;;  %3854 = vmatpush1.bf16.msra.mxu1 %v5128_v8  ;;  %v5212_v7 = vld [vmem:[%s5999_s18 + $0x568] ss:$16 sps:$4 sm:$0xff]   ;;  %v5217_v8 = vld [vmem:[%s5999_s18 + $0x584] ss:$16 sps:$4 sm:$0xff]  }
  0xca   : > { %3527 = vmatprep.subr.bf16.mxu0 %v5133_v10  ;;  %3855 = vmatprep.subr.bf16.mxu1 %v5136_v11  ;;  %v5220_v10 = vld [vmem:[%s5999_s18 + $0x58c] ss:$16 sps:$4 sm:$0xff]   ;;  %v5215_v11 = vld [vmem:[%s5999_s18 + $0x580] ss:$16 sps:$4 sm:$0xff]  }
  0xcd   : > { %3528 = vmatpush1.bf16.msra.mxu0 %v5131_v12  ;;  %3856 = vmatpush1.bf16.msra.mxu1 %v5134_v13  ;;  %v5218_v12 = vld [vmem:[%s5999_s18 + $0x588] ss:$16 sps:$4 sm:$0xff]   ;;  %v5223_v13 = vld [vmem:[%s5999_s18 + $0x5a4] ss:$16 sps:$4 sm:$0xff]  }
  0xce   : > { %3529 = vmatprep.subr.bf16.mxu0 %v5139_v14  ;;  %3857 = vmatprep.subr.bf16.mxu1 %v5142_v15  ;;  %v5226_v14 = vld [vmem:[%s5999_s18 + $0x5ac] ss:$16 sps:$4 sm:$0xff]   ;;  %v5221_v15 = vld [vmem:[%s5999_s18 + $0x5a0] ss:$16 sps:$4 sm:$0xff]  }
  0xd1   : > { %3530 = vmatpush1.bf16.msra.mxu0 %v5137_v16  ;;  %3858 = vmatpush1.bf16.msra.mxu1 %v5140_v17  ;;  %v5224_v16 = vld [vmem:[%s5999_s18 + $0x5a8] ss:$16 sps:$4 sm:$0xff]   ;;  %v5229_v17 = vld [vmem:[%s5999_s18 + $0x5c4] ss:$16 sps:$4 sm:$0xff]  }
  0xd2   : > { %3540 = vmatprep.subr.bf16.mxu0 %v5145_v18  ;;  %3868 = vmatprep.subr.bf16.mxu1 %v5148_v19  ;;  %v5232_v18 = vld [vmem:[%s5999_s18 + $0x5cc] ss:$16 sps:$4 sm:$0xff]   ;;  %v303_v19 = vcombine.high %v6162_v23, %v6162_v23  ;;  %v5233_v23 = vld [vmem:[%s5999_s18 + $0x5e0] ss:$16 sps:$4 sm:$0xff]  }
  0xd4   : > { %3532 = vmatmul.mubr.bf16.vlgmr.msra.gmra.mrb[0].mxu0 %v372_v21  ;;  %3860 = vmatmul.mubr.bf16.vlgmr.msra.gmra.mrb[0].mxu1 %v372_v21  ;;  %v5230_v21 = vld [vmem:[%s5999_s18 + $0x5c8] ss:$16 sps:$4 sm:$0xff]  }
  0xd5   : > { %3541 = vmatpush1.bf16.msra.mxu0 %v5143_v20  ;;  %3869 = vmatpush1.bf16.msra.mxu1 %v5146_v22  ;;  %v5227_v20 = vld [vmem:[%s5999_s18 + $0x5c0] ss:$16 sps:$4 sm:$0xff]   ;;  %v5235_v22 = vld [vmem:[%s5999_s18 + $0x5e4] ss:$16 sps:$4 sm:$0xff]  }
  0xd6   : > { %3542 = vmatprep.subr.bf16.mxu0 %v5151_v24  ;;  %3870 = vmatprep.subr.bf16.mxu1 %v5154_v25  ;;  %v5238_v24 = vld [vmem:[%s5999_s18 + $0x5ec] ss:$16 sps:$4 sm:$0xff]   ;;  %v6231_v25 = vrot.slane %v303_v19, %v6058_v49  ;;  %v5314_v19 = vld [vmem:[%s5999_s18 + $0x788] ss:$16 sps:$4 sm:$0xff]  }
  0xd7   : > { %3572 = vmatprep.mubr.bf16.mxu0 %v375_v31  ;;  %3900 = vmatprep.mubr.bf16.mxu1 %v375_v31  ;;  %v5239_v31 = vld [vmem:[%s5999_s18 + $0x600] ss:$16 sps:$4 sm:$0xff]  }
  0xd9   : > { %3543 = vmatpush1.bf16.msra.mxu0 %v5149_v27  ;;  %3871 = vmatpush1.bf16.msra.mxu1 %v5152_v28  ;;  %v5241_v27 = vld [vmem:[%s5999_s18 + $0x604] ss:$16 sps:$4 sm:$0xff]   ;;  %v5244_v28 = vld [vmem:[%s5999_s18 + $0x60c] ss:$16 sps:$4 sm:$0xff]  }
  0xda   : > { %3544 = vmatprep.subr.bf16.mxu0 %v5157_v29  ;;  %3872 = vmatprep.subr.bf16.mxu1 %v5160_v30  ;;  %v319_v29 = vcombine.high %v6231_v25, %v6231_v25  ;;  %v374_v30 = vpack.c.bf16 %v6168_v26, %v6168_v26  ;;  %v5245_v26 = vld [vmem:[%s5999_s18 + $0x620] ss:$16 sps:$4 sm:$0xff]  }
  0xdd   : > { %3545 = vmatpush1.bf16.msra.mxu0 %v5155_v32  ;;  %3873 = vmatpush1.bf16.msra.mxu1 %v5158_v33  ;;  %v5242_v32 = vld [vmem:[%s5999_s18 + $0x608] ss:$16 sps:$4 sm:$0xff]   ;;  %v5247_v33 = vld [vmem:[%s5999_s18 + $0x624] ss:$16 sps:$4 sm:$0xff]  }
  0xde   : > { %3546 = vmatprep.subr.bf16.mxu0 %v5163_v34  ;;  %3874 = vmatprep.subr.bf16.mxu1 %v5166_v35  ;;  %v5250_v34 = vld [vmem:[%s5999_s18 + $0x62c] ss:$16 sps:$4 sm:$0xff]   ;;  %v377_v35 = vpack.c.bf16 %v319_v29, %v319_v29  ;;  %v5326_v29 = vld [vmem:[%s5999_s18 + $0x7c8] ss:$16 sps:$4 sm:$0xff]  }
  0xe1   : > { %3547 = vmatpush1.bf16.msra.mxu0 %v5161_v36  ;;  %3875 = vmatpush1.bf16.msra.mxu1 %v5164_v37  ;;  %v5248_v36 = vld [vmem:[%s5999_s18 + $0x628] ss:$16 sps:$4 sm:$0xff]   ;;  %v5253_v37 = vld [vmem:[%s5999_s18 + $0x644] ss:$16 sps:$4 sm:$0xff]  }
  0xe2   : > { %3548 = vmatprep.subr.bf16.mxu0 %v5169_v38  ;;  %3876 = vmatprep.subr.bf16.mxu1 %v5172_v39  ;;  %v5256_v38 = vld [vmem:[%s5999_s18 + $0x64c] ss:$16 sps:$4 sm:$0xff]   ;;  %v5251_v39 = vld [vmem:[%s5999_s18 + $0x640] ss:$16 sps:$4 sm:$0xff]  }
  0xe5   : > { %3549 = vmatpush1.bf16.msra.mxu0 %v5167_v40  ;;  %3877 = vmatpush1.bf16.msra.mxu1 %v5170_v41  ;;  %v5254_v40 = vld [vmem:[%s5999_s18 + $0x648] ss:$16 sps:$4 sm:$0xff]   ;;  %v5259_v41 = vld [vmem:[%s5999_s18 + $0x664] ss:$16 sps:$4 sm:$0xff]  }
  0xe6   : > { %3550 = vmatprep.subr.bf16.mxu0 %v5175_v42  ;;  %3878 = vmatprep.subr.bf16.mxu1 %v5178_v44  ;;  %v5262_v42 = vld [vmem:[%s5999_s18 + $0x66c] ss:$16 sps:$4 sm:$0xff]   ;;  %v5257_v44 = vld [vmem:[%s5999_s18 + $0x660] ss:$16 sps:$4 sm:$0xff]  }
  0xe9   : > { %3551 = vmatpush1.bf16.msra.mxu0 %v5173_v45  ;;  %3879 = vmatpush1.bf16.msra.mxu1 %v5176_v46  ;;  %v5260_v45 = vld [vmem:[%s5999_s18 + $0x668] ss:$16 sps:$4 sm:$0xff]   ;;  %v5265_v46 = vld [vmem:[%s5999_s18 + $0x684] ss:$16 sps:$4 sm:$0xff]  }
  0xea   : > { %3552 = vmatprep.subr.bf16.mxu0 %v5181_v47  ;;  %3880 = vmatprep.subr.bf16.mxu1 %v5184_v48  ;;  %v5268_v47 = vld [vmem:[%s5999_s18 + $0x68c] ss:$16 sps:$4 sm:$0xff]   ;;  %v5263_v48 = vld [vmem:[%s5999_s18 + $0x680] ss:$16 sps:$4 sm:$0xff]  }
  0xed   : > { %3553 = vmatpush1.bf16.msra.mxu0 %v5179_v50  ;;  %3881 = vmatpush1.bf16.msra.mxu1 %v5182_v51  ;;  %v5266_v50 = vld [vmem:[%s5999_s18 + $0x688] ss:$16 sps:$4 sm:$0xff]   ;;  %v5271_v51 = vld [vmem:[%s5999_s18 + $0x6a4] ss:$16 sps:$4 sm:$0xff]  }
  0xee   : > { %3554 = vmatprep.subr.bf16.mxu0 %v5187_v52  ;;  %3882 = vmatprep.subr.bf16.mxu1 %v5190_v53  ;;  %v5274_v52 = vld [vmem:[%s5999_s18 + $0x6ac] ss:$16 sps:$4 sm:$0xff]   ;;  %v5269_v53 = vld [vmem:[%s5999_s18 + $0x6a0] ss:$16 sps:$4 sm:$0xff]  }
  0xf1   : > { %3555 = vmatpush1.bf16.msra.mxu0 %v5185_v54  ;;  %3883 = vmatpush1.bf16.msra.mxu1 %v5188_v55  ;;  %v5272_v54 = vld [vmem:[%s5999_s18 + $0x6a8] ss:$16 sps:$4 sm:$0xff]   ;;  %v5277_v55 = vld [vmem:[%s5999_s18 + $0x6c4] ss:$16 sps:$4 sm:$0xff]  }
  0xf2   : > { %3556 = vmatprep.subr.bf16.mxu0 %v5193_v56  ;;  %3884 = vmatprep.subr.bf16.mxu1 %v5196_v57  ;;  %v5280_v56 = vld [vmem:[%s5999_s18 + $0x6cc] ss:$16 sps:$4 sm:$0xff]   ;;  %v5275_v57 = vld [vmem:[%s5999_s18 + $0x6c0] ss:$16 sps:$4 sm:$0xff]  }
  0xf5   : > { %3557 = vmatpush1.bf16.msra.mxu0 %v5191_v58  ;;  %3885 = vmatpush1.bf16.msra.mxu1 %v5194_v59  ;;  %v5278_v58 = vld [vmem:[%s5999_s18 + $0x6c8] ss:$16 sps:$4 sm:$0xff]   ;;  %v5283_v59 = vld [vmem:[%s5999_s18 + $0x6e4] ss:$16 sps:$4 sm:$0xff]  }
  0xf6   : > { %3558 = vmatprep.subr.bf16.mxu0 %v5199_v60  ;;  %3886 = vmatprep.subr.bf16.mxu1 %v5202_v61  ;;  %v5286_v60 = vld [vmem:[%s5999_s18 + $0x6ec] ss:$16 sps:$4 sm:$0xff]   ;;  %v5281_v61 = vld [vmem:[%s5999_s18 + $0x6e0] ss:$16 sps:$4 sm:$0xff]  }
  0xf9   : > { %3559 = vmatpush1.bf16.msra.mxu0 %v5197_v62  ;;  %3887 = vmatpush1.bf16.msra.mxu1 %v5200_v63  ;;  %v5284_v62 = vld [vmem:[%s5999_s18 + $0x6e8] ss:$16 sps:$4 sm:$0xff]   ;;  %v5289_v63 = vld [vmem:[%s5999_s18 + $0x704] ss:$16 sps:$4 sm:$0xff]  }
  0xfa   : > { %3560 = vmatprep.subr.bf16.mxu0 %v5205_v0  ;;  %3888 = vmatprep.subr.bf16.mxu1 %v5208_v1  ;;  %v5292_v0 = vld [vmem:[%s5999_s18 + $0x70c] ss:$16 sps:$4 sm:$0xff]   ;;  %v5287_v1 = vld [vmem:[%s5999_s18 + $0x700] ss:$16 sps:$4 sm:$0xff]  }
  0xfd   : > { %3561 = vmatpush1.bf16.msra.mxu0 %v5203_v2  ;;  %3889 = vmatpush1.bf16.msra.mxu1 %v5206_v3  ;;  %v5290_v2 = vld [vmem:[%s5999_s18 + $0x708] ss:$16 sps:$4 sm:$0xff]   ;;  %v5295_v3 = vld [vmem:[%s5999_s18 + $0x724] ss:$16 sps:$4 sm:$0xff]  }
  0xfe   : > { %3562 = vmatprep.subr.bf16.mxu0 %v5211_v4  ;;  %3890 = vmatprep.subr.bf16.mxu1 %v5214_v5  ;;  %v5298_v4 = vld [vmem:[%s5999_s18 + $0x72c] ss:$16 sps:$4 sm:$0xff]   ;;  %v5293_v5 = vld [vmem:[%s5999_s18 + $0x720] ss:$16 sps:$4 sm:$0xff]  }
 0x101   : > { %3563 = vmatpush1.bf16.msra.mxu0 %v5209_v6  ;;  %3891 = vmatpush1.bf16.msra.mxu1 %v5212_v7  ;;  %v5296_v6 = vld [vmem:[%s5999_s18 + $0x728] ss:$16 sps:$4 sm:$0xff]   ;;  %v5301_v7 = vld [vmem:[%s5999_s18 + $0x744] ss:$16 sps:$4 sm:$0xff]  }
 0x102   : > { %3564 = vmatprep.subr.bf16.mxu0 %v5217_v8  ;;  %3892 = vmatprep.subr.bf16.mxu1 %v5220_v10  ;;  %v5304_v8 = vld [vmem:[%s5999_s18 + $0x74c] ss:$16 sps:$4 sm:$0xff]   ;;  %v5299_v10 = vld [vmem:[%s5999_s18 + $0x740] ss:$16 sps:$4 sm:$0xff]  }
 0x105   : > { %3565 = vmatpush1.bf16.msra.mxu0 %v5215_v11  ;;  %3893 = vmatpush1.bf16.msra.mxu1 %v5218_v12  ;;  %v5302_v11 = vld [vmem:[%s5999_s18 + $0x748] ss:$16 sps:$4 sm:$0xff]   ;;  %v5307_v12 = vld [vmem:[%s5999_s18 + $0x764] ss:$16 sps:$4 sm:$0xff]  }
 0x106   : > { %3566 = vmatprep.subr.bf16.mxu0 %v5223_v13  ;;  %3894 = vmatprep.subr.bf16.mxu1 %v5226_v14  ;;  %v5310_v13 = vld [vmem:[%s5999_s18 + $0x76c] ss:$16 sps:$4 sm:$0xff]   ;;  %v5305_v14 = vld [vmem:[%s5999_s18 + $0x760] ss:$16 sps:$4 sm:$0xff]  }
 0x109   : > { %3567 = vmatpush1.bf16.msra.mxu0 %v5221_v15  ;;  %3895 = vmatpush1.bf16.msra.mxu1 %v5224_v16  ;;  %v5308_v15 = vld [vmem:[%s5999_s18 + $0x768] ss:$16 sps:$4 sm:$0xff]   ;;  %v5313_v16 = vld [vmem:[%s5999_s18 + $0x784] ss:$16 sps:$4 sm:$0xff]  }
 0x10a   : > { %3568 = vmatprep.subr.bf16.mxu0 %v5229_v17  ;;  %3896 = vmatprep.subr.bf16.mxu1 %v5232_v18  ;;  %v5316_v17 = vld [vmem:[%s5999_s18 + $0x78c] ss:$16 sps:$4 sm:$0xff]   ;;  %v5311_v18 = vld [vmem:[%s5999_s18 + $0x780] ss:$16 sps:$4 sm:$0xff]  }
 0x10d   : > { %3569 = vmatpush1.bf16.msra.mxu0 %v5227_v20  ;;  %3897 = vmatpush1.bf16.msra.mxu1 %v5230_v21  ;;  %v5319_v20 = vld [vmem:[%s5999_s18 + $0x7a4] ss:$16 sps:$4 sm:$0xff]   ;;  %v5322_v21 = vld [vmem:[%s5999_s18 + $0x7ac] ss:$16 sps:$4 sm:$0xff]  }
 0x10e   : > { %3570 = vmatprep.subr.bf16.mxu0 %v5235_v22  ;;  %3898 = vmatprep.subr.bf16.mxu1 %v5238_v24  ;;  %v5317_v22 = vld [vmem:[%s5999_s18 + $0x7a0] ss:$16 sps:$4 sm:$0xff]   ;;  %v5320_v24 = vld [vmem:[%s5999_s18 + $0x7a8] ss:$16 sps:$4 sm:$0xff]  }
 0x111   : > { %3571 = vmatpush1.bf16.msra.mxu0 %v5233_v23  ;;  %3899 = vmatpush1.bf16.msra.mxu1 %v5236_v9  ;;  %v5325_v23 = vld [vmem:[%s5999_s18 + $0x7c4] ss:$16 sps:$4 sm:$0xff]   ;;  %v5328_v9 = vld [vmem:[%s5999_s18 + $0x7cc] ss:$16 sps:$4 sm:$0xff]  }
 0x112   : > { %3581 = vmatprep.subr.bf16.mxu0 %v5241_v27  ;;  %3909 = vmatprep.subr.bf16.mxu1 %v5244_v28  ;;  %v5323_v27 = vld [vmem:[%s5999_s18 + $0x7c0] ss:$16 sps:$4 sm:$0xff]  }
 0x113   : > { %v6301_v28 = vld [vmem:[%s6636_s0 + $0x10] sm:$0xff] }
 0x114   : > { %3573 = vmatmul.mubr.bf16.vlgmr.msra.gmra.mrb[0].mxu0 %v374_v30  ;;  %3901 = vmatmul.mubr.bf16.vlgmr.msra.gmra.mrb[0].mxu1 %v374_v30  ;;  %v5331_v30 = vld [vmem:[%s5999_s18 + $0x7e4] ss:$16 sps:$4 sm:$0xff]  }
 0x115   : > { %3582 = vmatpush1.bf16.msra.mxu0 %v5239_v31  ;;  %3910 = vmatpush1.bf16.msra.mxu1 %v5242_v32  ;;  %v5334_v31 = vld [vmem:[%s5999_s18 + $0x7ec] ss:$16 sps:$4 sm:$0xff]   ;;  %v6308_v32 = vrot.slane %v6301_v28, %v6058_v49 }
 0x116   : > { %3583 = vmatprep.subr.bf16.mxu0 %v5247_v33  ;;  %3911 = vmatprep.subr.bf16.mxu1 %v5250_v34  ;;  %v5329_v33 = vld [vmem:[%s5999_s18 + $0x7e0] ss:$16 sps:$4 sm:$0xff]   ;;  %v5332_v34 = vld [vmem:[%s5999_s18 + $0x7e8] ss:$16 sps:$4 sm:$0xff]  }
 0x117   : > { %3613 = vmatprep.mubr.bf16.mxu0 %v377_v35  ;;  %3941 = vmatprep.mubr.bf16.mxu1 %v377_v35  ;;  %v5338_v35 = vld [vmem:[%s5999_s18 + $0x804] ss:$16 sps:$4 sm:$0xff]  }
 0x119   : > { %3584 = vmatpush1.bf16.msra.mxu0 %v5245_v26  ;;  %3912 = vmatpush1.bf16.msra.mxu1 %v5248_v36  ;;  %v5341_v26 = vld [vmem:[%s5999_s18 + $0x80c] ss:$16 sps:$4 sm:$0xff]   ;;  %v335_v36 = vcombine.high %v6308_v32, %v6308_v32 }
 0x11a   : > { %3585 = vmatprep.subr.bf16.mxu0 %v5253_v37  ;;  %3913 = vmatprep.subr.bf16.mxu1 %v5256_v38  ;;  %v5336_v37 = vld [vmem:[%s5999_s18 + $0x800] ss:$16 sps:$4 sm:$0xff]   ;;  %v376_v38 = vpack.c.bf16 %v6231_v25, %v6231_v25  ;;  %v5350_v25 = vld [vmem:[%s5999_s18 + $0x844] ss:$16 sps:$4 sm:$0xff]  }
 0x11d   : > { %3586 = vmatpush1.bf16.msra.mxu0 %v5251_v39  ;;  %3914 = vmatpush1.bf16.msra.mxu1 %v5254_v40  ;;  %v5339_v39 = vld [vmem:[%s5999_s18 + $0x808] ss:$16 sps:$4 sm:$0xff]   ;;  %v5344_v40 = vld [vmem:[%s5999_s18 + $0x824] ss:$16 sps:$4 sm:$0xff]  }
 0x11e   : > { %3587 = vmatprep.subr.bf16.mxu0 %v5259_v41  ;;  %3915 = vmatprep.subr.bf16.mxu1 %v5262_v42  ;;  %v5347_v41 = vld [vmem:[%s5999_s18 + $0x82c] ss:$16 sps:$4 sm:$0xff]   ;;  %v379_v42 = vpack.c.bf16 %v335_v36, %v335_v36  ;;  %v5420_v36 = vld [vmem:[%s5999_s18 + $0x9c0] ss:$16 sps:$4 sm:$0xff]  }
 0x121   : > { %3588 = vmatpush1.bf16.msra.mxu0 %v5257_v44  ;;  %3916 = vmatpush1.bf16.msra.mxu1 %v5260_v45  ;;  %v5342_v44 = vld [vmem:[%s5999_s18 + $0x820] ss:$16 sps:$4 sm:$0xff]   ;;  %v5345_v45 = vld [vmem:[%s5999_s18 + $0x828] ss:$16 sps:$4 sm:$0xff]  }
 0x122   : > { %3589 = vmatprep.subr.bf16.mxu0 %v5265_v46  ;;  %3917 = vmatprep.subr.bf16.mxu1 %v5268_v47  ;;  %v5353_v46 = vld [vmem:[%s5999_s18 + $0x84c] ss:$16 sps:$4 sm:$0xff]   ;;  %v5348_v47 = vld [vmem:[%s5999_s18 + $0x840] ss:$16 sps:$4 sm:$0xff]  }
 0x125   : > { %3590 = vmatpush1.bf16.msra.mxu0 %v5263_v48  ;;  %3918 = vmatpush1.bf16.msra.mxu1 %v5266_v50  ;;  %v5351_v48 = vld [vmem:[%s5999_s18 + $0x848] ss:$16 sps:$4 sm:$0xff]   ;;  %v5356_v50 = vld [vmem:[%s5999_s18 + $0x864] ss:$16 sps:$4 sm:$0xff]  }
 0x126   : > { %3591 = vmatprep.subr.bf16.mxu0 %v5271_v51  ;;  %3919 = vmatprep.subr.bf16.mxu1 %v5274_v52  ;;  %v5359_v51 = vld [vmem:[%s5999_s18 + $0x86c] ss:$16 sps:$4 sm:$0xff]   ;;  %v5354_v52 = vld [vmem:[%s5999_s18 + $0x860] ss:$16 sps:$4 sm:$0xff]  }
 0x129   : > { %3592 = vmatpush1.bf16.msra.mxu0 %v5269_v53  ;;  %3920 = vmatpush1.bf16.msra.mxu1 %v5272_v54  ;;  %v5357_v53 = vld [vmem:[%s5999_s18 + $0x868] ss:$16 sps:$4 sm:$0xff]   ;;  %v5362_v54 = vld [vmem:[%s5999_s18 + $0x884] ss:$16 sps:$4 sm:$0xff]  }
 0x12a   : > { %3593 = vmatprep.subr.bf16.mxu0 %v5277_v55  ;;  %3921 = vmatprep.subr.bf16.mxu1 %v5280_v56  ;;  %v5365_v55 = vld [vmem:[%s5999_s18 + $0x88c] ss:$16 sps:$4 sm:$0xff]   ;;  %v5360_v56 = vld [vmem:[%s5999_s18 + $0x880] ss:$16 sps:$4 sm:$0xff]  }
 0x12d   : > { %3594 = vmatpush1.bf16.msra.mxu0 %v5275_v57  ;;  %3922 = vmatpush1.bf16.msra.mxu1 %v5278_v58  ;;  %v5363_v57 = vld [vmem:[%s5999_s18 + $0x888] ss:$16 sps:$4 sm:$0xff]   ;;  %v5368_v58 = vld [vmem:[%s5999_s18 + $0x8a4] ss:$16 sps:$4 sm:$0xff]  }
 0x12e   : > { %3595 = vmatprep.subr.bf16.mxu0 %v5283_v59  ;;  %3923 = vmatprep.subr.bf16.mxu1 %v5286_v60  ;;  %v5371_v59 = vld [vmem:[%s5999_s18 + $0x8ac] ss:$16 sps:$4 sm:$0xff]   ;;  %v5366_v60 = vld [vmem:[%s5999_s18 + $0x8a0] ss:$16 sps:$4 sm:$0xff]  }
 0x131   : > { %3596 = vmatpush1.bf16.msra.mxu0 %v5281_v61  ;;  %3924 = vmatpush1.bf16.msra.mxu1 %v5284_v62  ;;  %v5369_v61 = vld [vmem:[%s5999_s18 + $0x8a8] ss:$16 sps:$4 sm:$0xff]   ;;  %v5374_v62 = vld [vmem:[%s5999_s18 + $0x8c4] ss:$16 sps:$4 sm:$0xff]  }
 0x132   : > { %3597 = vmatprep.subr.bf16.mxu0 %v5289_v63  ;;  %3925 = vmatprep.subr.bf16.mxu1 %v5292_v0  ;;  %v5377_v63 = vld [vmem:[%s5999_s18 + $0x8cc] ss:$16 sps:$4 sm:$0xff]   ;;  %v5372_v0 = vld [vmem:[%s5999_s18 + $0x8c0] ss:$16 sps:$4 sm:$0xff]  }
 0x135   : > { %3598 = vmatpush1.bf16.msra.mxu0 %v5287_v1  ;;  %3926 = vmatpush1.bf16.msra.mxu1 %v5290_v2  ;;  %v5375_v1 = vld [vmem:[%s5999_s18 + $0x8c8] ss:$16 sps:$4 sm:$0xff]   ;;  %v5380_v2 = vld [vmem:[%s5999_s18 + $0x8e4] ss:$16 sps:$4 sm:$0xff]  }
 0x136   : > { %3599 = vmatprep.subr.bf16.mxu0 %v5295_v3  ;;  %3927 = vmatprep.subr.bf16.mxu1 %v5298_v4  ;;  %v5383_v3 = vld [vmem:[%s5999_s18 + $0x8ec] ss:$16 sps:$4 sm:$0xff]   ;;  %v5378_v4 = vld [vmem:[%s5999_s18 + $0x8e0] ss:$16 sps:$4 sm:$0xff]  }
 0x139   : > { %3600 = vmatpush1.bf16.msra.mxu0 %v5293_v5  ;;  %3928 = vmatpush1.bf16.msra.mxu1 %v5296_v6  ;;  %v5381_v5 = vld [vmem:[%s5999_s18 + $0x8e8] ss:$16 sps:$4 sm:$0xff]   ;;  %v5386_v6 = vld [vmem:[%s5999_s18 + $0x904] ss:$16 sps:$4 sm:$0xff]  }
 0x13a   : > { %3601 = vmatprep.subr.bf16.mxu0 %v5301_v7  ;;  %3929 = vmatprep.subr.bf16.mxu1 %v5304_v8  ;;  %v5389_v7 = vld [vmem:[%s5999_s18 + $0x90c] ss:$16 sps:$4 sm:$0xff]   ;;  %v5384_v8 = vld [vmem:[%s5999_s18 + $0x900] ss:$16 sps:$4 sm:$0xff]  }
 0x13d   : > { %3602 = vmatpush1.bf16.msra.mxu0 %v5299_v10  ;;  %3930 = vmatpush1.bf16.msra.mxu1 %v5302_v11  ;;  %v5387_v10 = vld [vmem:[%s5999_s18 + $0x908] ss:$16 sps:$4 sm:$0xff]   ;;  %v5392_v11 = vld [vmem:[%s5999_s18 + $0x924] ss:$16 sps:$4 sm:$0xff]  }
 0x13e   : > { %3603 = vmatprep.subr.bf16.mxu0 %v5307_v12  ;;  %3931 = vmatprep.subr.bf16.mxu1 %v5310_v13  ;;  %v5395_v12 = vld [vmem:[%s5999_s18 + $0x92c] ss:$16 sps:$4 sm:$0xff]   ;;  %v5390_v13 = vld [vmem:[%s5999_s18 + $0x920] ss:$16 sps:$4 sm:$0xff]  }
 0x141   : > { %3604 = vmatpush1.bf16.msra.mxu0 %v5305_v14  ;;  %3932 = vmatpush1.bf16.msra.mxu1 %v5308_v15  ;;  %v5393_v14 = vld [vmem:[%s5999_s18 + $0x928] ss:$16 sps:$4 sm:$0xff]   ;;  %v5398_v15 = vld [vmem:[%s5999_s18 + $0x944] ss:$16 sps:$4 sm:$0xff]  }
 0x142   : > { %3605 = vmatprep.subr.bf16.mxu0 %v5313_v16  ;;  %3933 = vmatprep.subr.bf16.mxu1 %v5316_v17  ;;  %v5401_v16 = vld [vmem:[%s5999_s18 + $0x94c] ss:$16 sps:$4 sm:$0xff]   ;;  %v5396_v17 = vld [vmem:[%s5999_s18 + $0x940] ss:$16 sps:$4 sm:$0xff]  }
 0x145   : > { %3606 = vmatpush1.bf16.msra.mxu0 %v5311_v18  ;;  %3934 = vmatpush1.bf16.msra.mxu1 %v5314_v19  ;;  %v5399_v18 = vld [vmem:[%s5999_s18 + $0x948] ss:$16 sps:$4 sm:$0xff]   ;;  %v5404_v19 = vld [vmem:[%s5999_s18 + $0x964] ss:$16 sps:$4 sm:$0xff]  }
 0x146   : > { %3607 = vmatprep.subr.bf16.mxu0 %v5319_v20  ;;  %3935 = vmatprep.subr.bf16.mxu1 %v5322_v21  ;;  %v5407_v20 = vld [vmem:[%s5999_s18 + $0x96c] ss:$16 sps:$4 sm:$0xff]   ;;  %v5402_v21 = vld [vmem:[%s5999_s18 + $0x960] ss:$16 sps:$4 sm:$0xff]  }
 0x149   : > { %3608 = vmatpush1.bf16.msra.mxu0 %v5317_v22  ;;  %3936 = vmatpush1.bf16.msra.mxu1 %v5320_v24  ;;  %v5405_v22 = vld [vmem:[%s5999_s18 + $0x968] ss:$16 sps:$4 sm:$0xff]   ;;  %v5410_v24 = vld [vmem:[%s5999_s18 + $0x984] ss:$16 sps:$4 sm:$0xff]  }
 0x14a   : > { %3609 = vmatprep.subr.bf16.mxu0 %v5325_v23  ;;  %3937 = vmatprep.subr.bf16.mxu1 %v5328_v9  ;;  %v5413_v23 = vld [vmem:[%s5999_s18 + $0x98c] ss:$16 sps:$4 sm:$0xff]   ;;  %v5408_v9 = vld [vmem:[%s5999_s18 + $0x980] ss:$16 sps:$4 sm:$0xff]  }
 0x14d   : > { %3610 = vmatpush1.bf16.msra.mxu0 %v5323_v27  ;;  %3938 = vmatpush1.bf16.msra.mxu1 %v5326_v29  ;;  %v5411_v27 = vld [vmem:[%s5999_s18 + $0x988] ss:$16 sps:$4 sm:$0xff]   ;;  %v5416_v29 = vld [vmem:[%s5999_s18 + $0x9a4] ss:$16 sps:$4 sm:$0xff]  }
 0x14e   : > { %3611 = vmatprep.subr.bf16.mxu0 %v5331_v30  ;;  %3939 = vmatprep.subr.bf16.mxu1 %v5334_v31  ;;  %v5419_v30 = vld [vmem:[%s5999_s18 + $0x9ac] ss:$16 sps:$4 sm:$0xff]   ;;  %v5414_v31 = vld [vmem:[%s5999_s18 + $0x9a0] ss:$16 sps:$4 sm:$0xff]  }
 0x151   : > { %3612 = vmatpush1.bf16.msra.mxu0 %v5329_v33  ;;  %3940 = vmatpush1.bf16.msra.mxu1 %v5332_v34  ;;  %v5417_v33 = vld [vmem:[%s5999_s18 + $0x9a8] ss:$16 sps:$4 sm:$0xff]   ;;  %v5422_v34 = vld [vmem:[%s5999_s18 + $0x9c4] ss:$16 sps:$4 sm:$0xff]  }
 0x152   : > { %3622 = vmatprep.subr.bf16.mxu0 %v5338_v35  ;;  %3950 = vmatprep.subr.bf16.mxu1 %v5341_v26  ;;  %v5425_v35 = vld [vmem:[%s5999_s18 + $0x9cc] ss:$16 sps:$4 sm:$0xff]   ;;  %v320_v26 = vcombine.high %v6301_v28, %v6301_v28  ;;  %v5426_v28 = vld [vmem:[%s5999_s18 + $0x9e0] ss:$16 sps:$4 sm:$0xff]  }
 0x154   : > { %3614 = vmatmul.mubr.bf16.vlgmr.msra.gmra.mrb[0].mxu0 %v376_v38  ;;  %3942 = vmatmul.mubr.bf16.vlgmr.msra.gmra.mrb[0].mxu1 %v376_v38  ;;  %v5428_v38 = vld [vmem:[%s5999_s18 + $0x9e4] ss:$16 sps:$4 sm:$0xff]  }
 0x155   : > { %3623 = vmatpush1.bf16.msra.mxu0 %v5336_v37  ;;  %3951 = vmatpush1.bf16.msra.mxu1 %v5339_v39  ;;  %v5423_v37 = vld [vmem:[%s5999_s18 + $0x9c8] ss:$16 sps:$4 sm:$0xff]   ;;  %v5431_v39 = vld [vmem:[%s5999_s18 + $0x9ec] ss:$16 sps:$4 sm:$0xff]  }
 0x156   : > { %3624 = vmatprep.subr.bf16.mxu0 %v5344_v40  ;;  %3952 = vmatprep.subr.bf16.mxu1 %v5347_v41  ;;  %v6381_v40 = vrot.slane %v320_v26, %v6058_v49  ;;  %v5429_v41 = vld [vmem:[%s5999_s18 + $0x9e8] ss:$16 sps:$4 sm:$0xff]  }
 0x157   : > { %3654 = vmatprep.mubr.bf16.mxu0 %v379_v42  ;;  %3982 = vmatprep.mubr.bf16.mxu1 %v379_v42  ;;  %v5434_v42 = vld [vmem:[%s5999_s18 + $0xa04] ss:$16 sps:$4 sm:$0xff]   ;;  %v5507_v26 = vld [vmem:[%s5999_s18 + $0xb88] ss:$16 sps:$4 sm:$0xff]  }
 0x159   : > { %3625 = vmatpush1.bf16.msra.mxu0 %v5342_v44  ;;  %3953 = vmatpush1.bf16.msra.mxu1 %v5345_v45  ;;  %v5437_v44 = vld [vmem:[%s5999_s18 + $0xa0c] ss:$16 sps:$4 sm:$0xff]   ;;  %v336_v45 = vcombine.high %v6381_v40, %v6381_v40 }
 0x15a   : > { %3626 = vmatprep.subr.bf16.mxu0 %v5350_v25  ;;  %3954 = vmatprep.subr.bf16.mxu1 %v5353_v46  ;;  %v378_v25 = vpack.c.bf16 %v6308_v32, %v6308_v32  ;;  %v5432_v46 = vld [vmem:[%s5999_s18 + $0xa00] ss:$16 sps:$4 sm:$0xff]  }
 0x15b   : > { %v5438_v32 = vld [vmem:[%s5999_s18 + $0xa20] ss:$16 sps:$4 sm:$0xff]  }
 0x15d   : > { %3627 = vmatpush1.bf16.msra.mxu0 %v5348_v47  ;;  %3955 = vmatpush1.bf16.msra.mxu1 %v5351_v48  ;;  %v5435_v47 = vld [vmem:[%s5999_s18 + $0xa08] ss:$16 sps:$4 sm:$0xff]   ;;  %v5440_v48 = vld [vmem:[%s5999_s18 + $0xa24] ss:$16 sps:$4 sm:$0xff]  }
 0x15e   : > { %3628 = vmatprep.subr.bf16.mxu0 %v5356_v50  ;;  %3956 = vmatprep.subr.bf16.mxu1 %v5359_v51  ;;  %v5443_v50 = vld [vmem:[%s5999_s18 + $0xa2c] ss:$16 sps:$4 sm:$0xff]   ;;  %v381_v51 = vpack.c.bf16 %v336_v45, %v336_v45  ;;  %v5519_v45 = vld [vmem:[%s5999_s18 + $0xbc8] ss:$16 sps:$4 sm:$0xff]  }
 0x161   : > { %3629 = vmatpush1.bf16.msra.mxu0 %v5354_v52  ;;  %3957 = vmatpush1.bf16.msra.mxu1 %v5357_v53  ;;  %v5441_v52 = vld [vmem:[%s5999_s18 + $0xa28] ss:$16 sps:$4 sm:$0xff]   ;;  %v5446_v53 = vld [vmem:[%s5999_s18 + $0xa44] ss:$16 sps:$4 sm:$0xff]  }
 0x162   : > { %3630 = vmatprep.subr.bf16.mxu0 %v5362_v54  ;;  %3958 = vmatprep.subr.bf16.mxu1 %v5365_v55  ;;  %v5449_v54 = vld [vmem:[%s5999_s18 + $0xa4c] ss:$16 sps:$4 sm:$0xff]   ;;  %v5444_v55 = vld [vmem:[%s5999_s18 + $0xa40] ss:$16 sps:$4 sm:$0xff]  }
 0x165   : > { %3631 = vmatpush1.bf16.msra.mxu0 %v5360_v56  ;;  %3959 = vmatpush1.bf16.msra.mxu1 %v5363_v57  ;;  %v5447_v56 = vld [vmem:[%s5999_s18 + $0xa48] ss:$16 sps:$4 sm:$0xff]   ;;  %v5452_v57 = vld [vmem:[%s5999_s18 + $0xa64] ss:$16 sps:$4 sm:$0xff]  }
 0x166   : > { %3632 = vmatprep.subr.bf16.mxu0 %v5368_v58  ;;  %3960 = vmatprep.subr.bf16.mxu1 %v5371_v59  ;;  %v5455_v58 = vld [vmem:[%s5999_s18 + $0xa6c] ss:$16 sps:$4 sm:$0xff]   ;;  %v5450_v59 = vld [vmem:[%s5999_s18 + $0xa60] ss:$16 sps:$4 sm:$0xff]  }
 0x169   : > { %3633 = vmatpush1.bf16.msra.mxu0 %v5366_v60  ;;  %3961 = vmatpush1.bf16.msra.mxu1 %v5369_v61  ;;  %v5453_v60 = vld [vmem:[%s5999_s18 + $0xa68] ss:$16 sps:$4 sm:$0xff]   ;;  %v5458_v61 = vld [vmem:[%s5999_s18 + $0xa84] ss:$16 sps:$4 sm:$0xff]  }
 0x16a   : > { %3634 = vmatprep.subr.bf16.mxu0 %v5374_v62  ;;  %3962 = vmatprep.subr.bf16.mxu1 %v5377_v63  ;;  %v5461_v62 = vld [vmem:[%s5999_s18 + $0xa8c] ss:$16 sps:$4 sm:$0xff]   ;;  %v5456_v63 = vld [vmem:[%s5999_s18 + $0xa80] ss:$16 sps:$4 sm:$0xff]  }
 0x16d   : > { %3635 = vmatpush1.bf16.msra.mxu0 %v5372_v0  ;;  %3963 = vmatpush1.bf16.msra.mxu1 %v5375_v1  ;;  %v5459_v0 = vld [vmem:[%s5999_s18 + $0xa88] ss:$16 sps:$4 sm:$0xff]   ;;  %v5464_v1 = vld [vmem:[%s5999_s18 + $0xaa4] ss:$16 sps:$4 sm:$0xff]  }
 0x16e   : > { %3636 = vmatprep.subr.bf16.mxu0 %v5380_v2  ;;  %3964 = vmatprep.subr.bf16.mxu1 %v5383_v3  ;;  %v5467_v2 = vld [vmem:[%s5999_s18 + $0xaac] ss:$16 sps:$4 sm:$0xff]   ;;  %v5462_v3 = vld [vmem:[%s5999_s18 + $0xaa0] ss:$16 sps:$4 sm:$0xff]  }
 0x171   : > { %3637 = vmatpush1.bf16.msra.mxu0 %v5378_v4  ;;  %3965 = vmatpush1.bf16.msra.mxu1 %v5381_v5  ;;  %v5465_v4 = vld [vmem:[%s5999_s18 + $0xaa8] ss:$16 sps:$4 sm:$0xff]   ;;  %v5470_v5 = vld [vmem:[%s5999_s18 + $0xac4] ss:$16 sps:$4 sm:$0xff]  }
 0x172   : > { %3638 = vmatprep.subr.bf16.mxu0 %v5386_v6  ;;  %3966 = vmatprep.subr.bf16.mxu1 %v5389_v7  ;;  %v5473_v6 = vld [vmem:[%s5999_s18 + $0xacc] ss:$16 sps:$4 sm:$0xff]   ;;  %v5468_v7 = vld [vmem:[%s5999_s18 + $0xac0] ss:$16 sps:$4 sm:$0xff]  }
 0x175   : > { %3639 = vmatpush1.bf16.msra.mxu0 %v5384_v8  ;;  %3967 = vmatpush1.bf16.msra.mxu1 %v5387_v10  ;;  %v5471_v8 = vld [vmem:[%s5999_s18 + $0xac8] ss:$16 sps:$4 sm:$0xff]   ;;  %v5476_v10 = vld [vmem:[%s5999_s18 + $0xae4] ss:$16 sps:$4 sm:$0xff]  }
 0x176   : > { %3640 = vmatprep.subr.bf16.mxu0 %v5392_v11  ;;  %3968 = vmatprep.subr.bf16.mxu1 %v5395_v12  ;;  %v5479_v11 = vld [vmem:[%s5999_s18 + $0xaec] ss:$16 sps:$4 sm:$0xff]   ;;  %v5474_v12 = vld [vmem:[%s5999_s18 + $0xae0] ss:$16 sps:$4 sm:$0xff]  }
 0x179   : > { %3641 = vmatpush1.bf16.msra.mxu0 %v5390_v13  ;;  %3969 = vmatpush1.bf16.msra.mxu1 %v5393_v14  ;;  %v5477_v13 = vld [vmem:[%s5999_s18 + $0xae8] ss:$16 sps:$4 sm:$0xff]   ;;  %v5482_v14 = vld [vmem:[%s5999_s18 + $0xb04] ss:$16 sps:$4 sm:$0xff]  }
 0x17a   : > { %3642 = vmatprep.subr.bf16.mxu0 %v5398_v15  ;;  %3970 = vmatprep.subr.bf16.mxu1 %v5401_v16  ;;  %v5485_v15 = vld [vmem:[%s5999_s18 + $0xb0c] ss:$16 sps:$4 sm:$0xff]   ;;  %v5480_v16 = vld [vmem:[%s5999_s18 + $0xb00] ss:$16 sps:$4 sm:$0xff]  }
 0x17d   : > { %3643 = vmatpush1.bf16.msra.mxu0 %v5396_v17  ;;  %3971 = vmatpush1.bf16.msra.mxu1 %v5399_v18  ;;  %v5483_v17 = vld [vmem:[%s5999_s18 + $0xb08] ss:$16 sps:$4 sm:$0xff]   ;;  %v5488_v18 = vld [vmem:[%s5999_s18 + $0xb24] ss:$16 sps:$4 sm:$0xff]  }
 0x17e   : > { %3644 = vmatprep.subr.bf16.mxu0 %v5404_v19  ;;  %3972 = vmatprep.subr.bf16.mxu1 %v5407_v20  ;;  %v5491_v19 = vld [vmem:[%s5999_s18 + $0xb2c] ss:$16 sps:$4 sm:$0xff]   ;;  %v5486_v20 = vld [vmem:[%s5999_s18 + $0xb20] ss:$16 sps:$4 sm:$0xff]  }
 0x181   : > { %3645 = vmatpush1.bf16.msra.mxu0 %v5402_v21  ;;  %3973 = vmatpush1.bf16.msra.mxu1 %v5405_v22  ;;  %v5489_v21 = vld [vmem:[%s5999_s18 + $0xb28] ss:$16 sps:$4 sm:$0xff]   ;;  %v5494_v22 = vld [vmem:[%s5999_s18 + $0xb44] ss:$16 sps:$4 sm:$0xff]  }
 0x182   : > { %3646 = vmatprep.subr.bf16.mxu0 %v5410_v24  ;;  %3974 = vmatprep.subr.bf16.mxu1 %v5413_v23  ;;  %v5497_v24 = vld [vmem:[%s5999_s18 + $0xb4c] ss:$16 sps:$4 sm:$0xff]   ;;  %v5492_v23 = vld [vmem:[%s5999_s18 + $0xb40] ss:$16 sps:$4 sm:$0xff]  }
 0x185   : > { %3647 = vmatpush1.bf16.msra.mxu0 %v5408_v9  ;;  %3975 = vmatpush1.bf16.msra.mxu1 %v5411_v27  ;;  %v5495_v9 = vld [vmem:[%s5999_s18 + $0xb48] ss:$16 sps:$4 sm:$0xff]   ;;  %v5500_v27 = vld [vmem:[%s5999_s18 + $0xb64] ss:$16 sps:$4 sm:$0xff]  }
 0x186   : > { %3648 = vmatprep.subr.bf16.mxu0 %v5416_v29  ;;  %3976 = vmatprep.subr.bf16.mxu1 %v5419_v30  ;;  %v5503_v29 = vld [vmem:[%s5999_s18 + $0xb6c] ss:$16 sps:$4 sm:$0xff]   ;;  %v5498_v30 = vld [vmem:[%s5999_s18 + $0xb60] ss:$16 sps:$4 sm:$0xff]  }
 0x189   : > { %3649 = vmatpush1.bf16.msra.mxu0 %v5414_v31  ;;  %3977 = vmatpush1.bf16.msra.mxu1 %v5417_v33  ;;  %v5501_v31 = vld [vmem:[%s5999_s18 + $0xb68] ss:$16 sps:$4 sm:$0xff]   ;;  %v5506_v33 = vld [vmem:[%s5999_s18 + $0xb84] ss:$16 sps:$4 sm:$0xff]  }
 0x18a   : > { %3650 = vmatprep.subr.bf16.mxu0 %v5422_v34  ;;  %3978 = vmatprep.subr.bf16.mxu1 %v5425_v35  ;;  %v5509_v34 = vld [vmem:[%s5999_s18 + $0xb8c] ss:$16 sps:$4 sm:$0xff]   ;;  %v5504_v35 = vld [vmem:[%s5999_s18 + $0xb80] ss:$16 sps:$4 sm:$0xff]  }
 0x18d   : > { %3651 = vmatpush1.bf16.msra.mxu0 %v5420_v36  ;;  %3979 = vmatpush1.bf16.msra.mxu1 %v5423_v37  ;;  %v5512_v36 = vld [vmem:[%s5999_s18 + $0xba4] ss:$16 sps:$4 sm:$0xff]   ;;  %v5515_v37 = vld [vmem:[%s5999_s18 + $0xbac] ss:$16 sps:$4 sm:$0xff]  }
 0x18e   : > { %3652 = vmatprep.subr.bf16.mxu0 %v5428_v38  ;;  %3980 = vmatprep.subr.bf16.mxu1 %v5431_v39  ;;  %v5510_v38 = vld [vmem:[%s5999_s18 + $0xba0] ss:$16 sps:$4 sm:$0xff]   ;;  %v5513_v39 = vld [vmem:[%s5999_s18 + $0xba8] ss:$16 sps:$4 sm:$0xff]  }
 0x191   : > { %3653 = vmatpush1.bf16.msra.mxu0 %v5426_v28  ;;  %3981 = vmatpush1.bf16.msra.mxu1 %v5429_v41  ;;  %v5518_v28 = vld [vmem:[%s5999_s18 + $0xbc4] ss:$16 sps:$4 sm:$0xff]   ;;  %v5521_v41 = vld [vmem:[%s5999_s18 + $0xbcc] ss:$16 sps:$4 sm:$0xff]  }
 0x192   : > { %3663 = vmatprep.subr.bf16.mxu0 %v5434_v42  ;;  %3991 = vmatprep.subr.bf16.mxu1 %v5437_v44  ;;  %v6450_v42 = vld [vmem:[%s6636_s0 + $0x18] sm:$0xff]  ;;  %v5516_v44 = vld [vmem:[%s5999_s18 + $0xbc0] ss:$16 sps:$4 sm:$0xff]  }
 0x194   : > { %3655 = vmatmul.mubr.bf16.vlgmr.msra.gmra.mrb[0].mxu0 %v378_v25  ;;  %3983 = vmatmul.mubr.bf16.vlgmr.msra.gmra.mrb[0].mxu1 %v378_v25  ;;  %v5524_v25 = vld [vmem:[%s5999_s18 + $0xbe4] ss:$16 sps:$4 sm:$0xff]  }
 0x195   : > { %3664 = vmatpush1.bf16.msra.mxu0 %v5432_v46  ;;  %3992 = vmatpush1.bf16.msra.mxu1 %v5435_v47  ;;  %v5527_v46 = vld [vmem:[%s5999_s18 + $0xbec] ss:$16 sps:$4 sm:$0xff]   ;;  %v6458_v47 = vrot.slane %v6450_v42, %v6058_v49 }
 0x196   : > { %3665 = vmatprep.subr.bf16.mxu0 %v5440_v48  ;;  %3993 = vmatprep.subr.bf16.mxu1 %v5443_v50  ;;  %v5522_v48 = vld [vmem:[%s5999_s18 + $0xbe0] ss:$16 sps:$4 sm:$0xff]   ;;  %v5525_v50 = vld [vmem:[%s5999_s18 + $0xbe8] ss:$16 sps:$4 sm:$0xff]  }
 0x197   : > { %3695 = vmatprep.mubr.bf16.mxu0 %v381_v51  ;;  %4023 = vmatprep.mubr.bf16.mxu1 %v381_v51  ;;  %v5531_v51 = vld [vmem:[%s5999_s18 + $0xc04] ss:$16 sps:$4 sm:$0xff]  }
 0x199   : > { %3666 = vmatpush1.bf16.msra.mxu0 %v5438_v32  ;;  %3994 = vmatpush1.bf16.msra.mxu1 %v5441_v52  ;;  %v5534_v32 = vld [vmem:[%s5999_s18 + $0xc0c] ss:$16 sps:$4 sm:$0xff]   ;;  %v352_v52 = vcombine.high %v6458_v47, %v6458_v47 }
 0x19a   : > { %3667 = vmatprep.subr.bf16.mxu0 %v5446_v53  ;;  %3995 = vmatprep.subr.bf16.mxu1 %v5449_v54  ;;  %v380_v53 = vpack.c.bf16 %v6381_v40, %v6381_v40  ;;  %v5529_v54 = vld [vmem:[%s5999_s18 + $0xc00] ss:$16 sps:$4 sm:$0xff]  }
 0x19b   : > { %v5535_v40 = vld [vmem:[%s5999_s18 + $0xc20] ss:$16 sps:$4 sm:$0xff]  }
 0x19d   : > { %3668 = vmatpush1.bf16.msra.mxu0 %v5444_v55  ;;  %3996 = vmatpush1.bf16.msra.mxu1 %v5447_v56  ;;  %v5532_v55 = vld [vmem:[%s5999_s18 + $0xc08] ss:$16 sps:$4 sm:$0xff]   ;;  %v5537_v56 = vld [vmem:[%s5999_s18 + $0xc24] ss:$16 sps:$4 sm:$0xff]  }
 0x19e   : > { %3669 = vmatprep.subr.bf16.mxu0 %v5452_v57  ;;  %3997 = vmatprep.subr.bf16.mxu1 %v5455_v58  ;;  %v5540_v57 = vld [vmem:[%s5999_s18 + $0xc2c] ss:$16 sps:$4 sm:$0xff]   ;;  %v383_v58 = vpack.c.bf16 %v352_v52, %v352_v52  ;;  %v5613_v52 = vld [vmem:[%s5999_s18 + $0xdc0] ss:$16 sps:$4 sm:$0xff]  }
 0x1a1   : > { %3670 = vmatpush1.bf16.msra.mxu0 %v5450_v59  ;;  %3998 = vmatpush1.bf16.msra.mxu1 %v5453_v60  ;;  %v5538_v59 = vld [vmem:[%s5999_s18 + $0xc28] ss:$16 sps:$4 sm:$0xff]   ;;  %v5543_v60 = vld [vmem:[%s5999_s18 + $0xc44] ss:$16 sps:$4 sm:$0xff]  }
 0x1a2   : > { %3671 = vmatprep.subr.bf16.mxu0 %v5458_v61  ;;  %3999 = vmatprep.subr.bf16.mxu1 %v5461_v62  ;;  %v5546_v61 = vld [vmem:[%s5999_s18 + $0xc4c] ss:$16 sps:$4 sm:$0xff]   ;;  %v5541_v62 = vld [vmem:[%s5999_s18 + $0xc40] ss:$16 sps:$4 sm:$0xff]  }
 0x1a5   : > { %3672 = vmatpush1.bf16.msra.mxu0 %v5456_v63  ;;  %4000 = vmatpush1.bf16.msra.mxu1 %v5459_v0  ;;  %v5544_v63 = vld [vmem:[%s5999_s18 + $0xc48] ss:$16 sps:$4 sm:$0xff]   ;;  %v5549_v0 = vld [vmem:[%s5999_s18 + $0xc64] ss:$16 sps:$4 sm:$0xff]  }
 0x1a6   : > { %3673 = vmatprep.subr.bf16.mxu0 %v5464_v1  ;;  %4001 = vmatprep.subr.bf16.mxu1 %v5467_v2  ;;  %v5552_v1 = vld [vmem:[%s5999_s18 + $0xc6c] ss:$16 sps:$4 sm:$0xff]   ;;  %v5547_v2 = vld [vmem:[%s5999_s18 + $0xc60] ss:$16 sps:$4 sm:$0xff]  }
 0x1a9   : > { %3674 = vmatpush1.bf16.msra.mxu0 %v5462_v3  ;;  %4002 = vmatpush1.bf16.msra.mxu1 %v5465_v4  ;;  %v5550_v3 = vld [vmem:[%s5999_s18 + $0xc68] ss:$16 sps:$4 sm:$0xff]   ;;  %v5555_v4 = vld [vmem:[%s5999_s18 + $0xc84] ss:$16 sps:$4 sm:$0xff]  }
 0x1aa   : > { %3675 = vmatprep.subr.bf16.mxu0 %v5470_v5  ;;  %4003 = vmatprep.subr.bf16.mxu1 %v5473_v6  ;;  %v5558_v5 = vld [vmem:[%s5999_s18 + $0xc8c] ss:$16 sps:$4 sm:$0xff]   ;;  %v5553_v6 = vld [vmem:[%s5999_s18 + $0xc80] ss:$16 sps:$4 sm:$0xff]  }
 0x1ad   : > { %3676 = vmatpush1.bf16.msra.mxu0 %v5468_v7  ;;  %4004 = vmatpush1.bf16.msra.mxu1 %v5471_v8  ;;  %v5556_v7 = vld [vmem:[%s5999_s18 + $0xc88] ss:$16 sps:$4 sm:$0xff]   ;;  %v5561_v8 = vld [vmem:[%s5999_s18 + $0xca4] ss:$16 sps:$4 sm:$0xff]  }
 0x1ae   : > { %3677 = vmatprep.subr.bf16.mxu0 %v5476_v10  ;;  %4005 = vmatprep.subr.bf16.mxu1 %v5479_v11  ;;  %v5564_v10 = vld [vmem:[%s5999_s18 + $0xcac] ss:$16 sps:$4 sm:$0xff]   ;;  %v5559_v11 = vld [vmem:[%s5999_s18 + $0xca0] ss:$16 sps:$4 sm:$0xff]  }
 0x1b1   : > { %3678 = vmatpush1.bf16.msra.mxu0 %v5474_v12  ;;  %4006 = vmatpush1.bf16.msra.mxu1 %v5477_v13  ;;  %v5562_v12 = vld [vmem:[%s5999_s18 + $0xca8] ss:$16 sps:$4 sm:$0xff]   ;;  %v5567_v13 = vld [vmem:[%s5999_s18 + $0xcc4] ss:$16 sps:$4 sm:$0xff]  }
 0x1b2   : > { %3679 = vmatprep.subr.bf16.mxu0 %v5482_v14  ;;  %4007 = vmatprep.subr.bf16.mxu1 %v5485_v15  ;;  %v5570_v14 = vld [vmem:[%s5999_s18 + $0xccc] ss:$16 sps:$4 sm:$0xff]   ;;  %v5565_v15 = vld [vmem:[%s5999_s18 + $0xcc0] ss:$16 sps:$4 sm:$0xff]  }
 0x1b5   : > { %3680 = vmatpush1.bf16.msra.mxu0 %v5480_v16  ;;  %4008 = vmatpush1.bf16.msra.mxu1 %v5483_v17  ;;  %v5568_v16 = vld [vmem:[%s5999_s18 + $0xcc8] ss:$16 sps:$4 sm:$0xff]   ;;  %v5573_v17 = vld [vmem:[%s5999_s18 + $0xce4] ss:$16 sps:$4 sm:$0xff]  }
 0x1b6   : > { %3681 = vmatprep.subr.bf16.mxu0 %v5488_v18  ;;  %4009 = vmatprep.subr.bf16.mxu1 %v5491_v19  ;;  %v5576_v18 = vld [vmem:[%s5999_s18 + $0xcec] ss:$16 sps:$4 sm:$0xff]   ;;  %v5571_v19 = vld [vmem:[%s5999_s18 + $0xce0] ss:$16 sps:$4 sm:$0xff]  }
 0x1b9   : > { %3682 = vmatpush1.bf16.msra.mxu0 %v5486_v20  ;;  %4010 = vmatpush1.bf16.msra.mxu1 %v5489_v21  ;;  %v5574_v20 = vld [vmem:[%s5999_s18 + $0xce8] ss:$16 sps:$4 sm:$0xff]   ;;  %v5579_v21 = vld [vmem:[%s5999_s18 + $0xd04] ss:$16 sps:$4 sm:$0xff]  }
 0x1ba   : > { %3683 = vmatprep.subr.bf16.mxu0 %v5494_v22  ;;  %4011 = vmatprep.subr.bf16.mxu1 %v5497_v24  ;;  %v5582_v22 = vld [vmem:[%s5999_s18 + $0xd0c] ss:$16 sps:$4 sm:$0xff]   ;;  %v5577_v24 = vld [vmem:[%s5999_s18 + $0xd00] ss:$16 sps:$4 sm:$0xff]  }
 0x1bd   : > { %3684 = vmatpush1.bf16.msra.mxu0 %v5492_v23  ;;  %4012 = vmatpush1.bf16.msra.mxu1 %v5495_v9  ;;  %v5580_v23 = vld [vmem:[%s5999_s18 + $0xd08] ss:$16 sps:$4 sm:$0xff]   ;;  %v5585_v9 = vld [vmem:[%s5999_s18 + $0xd24] ss:$16 sps:$4 sm:$0xff]  }
 0x1be   : > { %3685 = vmatprep.subr.bf16.mxu0 %v5500_v27  ;;  %4013 = vmatprep.subr.bf16.mxu1 %v5503_v29  ;;  %v5588_v27 = vld [vmem:[%s5999_s18 + $0xd2c] ss:$16 sps:$4 sm:$0xff]   ;;  %v5583_v29 = vld [vmem:[%s5999_s18 + $0xd20] ss:$16 sps:$4 sm:$0xff]  }
 0x1c1   : > { %3686 = vmatpush1.bf16.msra.mxu0 %v5498_v30  ;;  %4014 = vmatpush1.bf16.msra.mxu1 %v5501_v31  ;;  %v5586_v30 = vld [vmem:[%s5999_s18 + $0xd28] ss:$16 sps:$4 sm:$0xff]   ;;  %v5591_v31 = vld [vmem:[%s5999_s18 + $0xd44] ss:$16 sps:$4 sm:$0xff]  }
 0x1c2   : > { %3687 = vmatprep.subr.bf16.mxu0 %v5506_v33  ;;  %4015 = vmatprep.subr.bf16.mxu1 %v5509_v34  ;;  %v5594_v33 = vld [vmem:[%s5999_s18 + $0xd4c] ss:$16 sps:$4 sm:$0xff]   ;;  %v5589_v34 = vld [vmem:[%s5999_s18 + $0xd40] ss:$16 sps:$4 sm:$0xff]  }
 0x1c5   : > { %3688 = vmatpush1.bf16.msra.mxu0 %v5504_v35  ;;  %4016 = vmatpush1.bf16.msra.mxu1 %v5507_v26  ;;  %v5592_v35 = vld [vmem:[%s5999_s18 + $0xd48] ss:$16 sps:$4 sm:$0xff]   ;;  %v5597_v26 = vld [vmem:[%s5999_s18 + $0xd64] ss:$16 sps:$4 sm:$0xff]  }
 0x1c6   : > { %3689 = vmatprep.subr.bf16.mxu0 %v5512_v36  ;;  %4017 = vmatprep.subr.bf16.mxu1 %v5515_v37  ;;  %v5600_v36 = vld [vmem:[%s5999_s18 + $0xd6c] ss:$16 sps:$4 sm:$0xff]   ;;  %v5595_v37 = vld [vmem:[%s5999_s18 + $0xd60] ss:$16 sps:$4 sm:$0xff]  }
 0x1c9   : > { %3690 = vmatpush1.bf16.msra.mxu0 %v5510_v38  ;;  %4018 = vmatpush1.bf16.msra.mxu1 %v5513_v39  ;;  %v5598_v38 = vld [vmem:[%s5999_s18 + $0xd68] ss:$16 sps:$4 sm:$0xff]   ;;  %v5603_v39 = vld [vmem:[%s5999_s18 + $0xd84] ss:$16 sps:$4 sm:$0xff]  }
 0x1ca   : > { %3691 = vmatprep.subr.bf16.mxu0 %v5518_v28  ;;  %4019 = vmatprep.subr.bf16.mxu1 %v5521_v41  ;;  %v5606_v28 = vld [vmem:[%s5999_s18 + $0xd8c] ss:$16 sps:$4 sm:$0xff]   ;;  %v5601_v41 = vld [vmem:[%s5999_s18 + $0xd80] ss:$16 sps:$4 sm:$0xff]  }
 0x1cd   : > { %3692 = vmatpush1.bf16.msra.mxu0 %v5516_v44  ;;  %4020 = vmatpush1.bf16.msra.mxu1 %v5519_v45  ;;  %v5604_v44 = vld [vmem:[%s5999_s18 + $0xd88] ss:$16 sps:$4 sm:$0xff]   ;;  %v5609_v45 = vld [vmem:[%s5999_s18 + $0xda4] ss:$16 sps:$4 sm:$0xff]  }
 0x1ce   : > { %3693 = vmatprep.subr.bf16.mxu0 %v5524_v25  ;;  %4021 = vmatprep.subr.bf16.mxu1 %v5527_v46  ;;  %v5612_v25 = vld [vmem:[%s5999_s18 + $0xdac] ss:$16 sps:$4 sm:$0xff]   ;;  %v5607_v46 = vld [vmem:[%s5999_s18 + $0xda0] ss:$16 sps:$4 sm:$0xff]  }
 0x1d1   : > { %3694 = vmatpush1.bf16.msra.mxu0 %v5522_v48  ;;  %4022 = vmatpush1.bf16.msra.mxu1 %v5525_v50  ;;  %v5610_v48 = vld [vmem:[%s5999_s18 + $0xda8] ss:$16 sps:$4 sm:$0xff]   ;;  %v5615_v50 = vld [vmem:[%s5999_s18 + $0xdc4] ss:$16 sps:$4 sm:$0xff]  }
 0x1d2   : > { %3704 = vmatprep.subr.bf16.mxu0 %v5531_v51  ;;  %4032 = vmatprep.subr.bf16.mxu1 %v5534_v32  ;;  %v5618_v51 = vld [vmem:[%s5999_s18 + $0xdcc] ss:$16 sps:$4 sm:$0xff]   ;;  %v337_v32 = vcombine.high %v6450_v42, %v6450_v42  ;;  %v5619_v42 = vld [vmem:[%s5999_s18 + $0xde0] ss:$16 sps:$4 sm:$0xff]  }
 0x1d4   : > { %3696 = vmatmul.mubr.bf16.vlgmr.msra.gmra.mrb[0].mxu0 %v380_v53  ;;  %4024 = vmatmul.mubr.bf16.vlgmr.msra.gmra.mrb[0].mxu1 %v380_v53  ;;  %v5616_v53 = vld [vmem:[%s5999_s18 + $0xdc8] ss:$16 sps:$4 sm:$0xff]  }
 0x1d5   : > { %3705 = vmatpush1.bf16.msra.mxu0 %v5529_v54  ;;  %4033 = vmatpush1.bf16.msra.mxu1 %v5532_v55  ;;  %v5621_v54 = vld [vmem:[%s5999_s18 + $0xde4] ss:$16 sps:$4 sm:$0xff]   ;;  %v5624_v55 = vld [vmem:[%s5999_s18 + $0xdec] ss:$16 sps:$4 sm:$0xff]  }
 0x1d6   : > { %3706 = vmatprep.subr.bf16.mxu0 %v5537_v56  ;;  %4034 = vmatprep.subr.bf16.mxu1 %v5540_v57  ;;  %v6531_v56 = vrot.slane %v337_v32, %v6058_v49  ;;  %v5622_v57 = vld [vmem:[%s5999_s18 + $0xde8] ss:$16 sps:$4 sm:$0xff]  }
 0x1d7   : > { %3736 = vmatprep.mubr.bf16.mxu0 %v383_v58  ;;  %4064 = vmatprep.mubr.bf16.mxu1 %v383_v58  ;;  %v5627_v58 = vld [vmem:[%s5999_s18 + $0xe04] ss:$16 sps:$4 sm:$0xff]   ;;  %v5700_v32 = vld [vmem:[%s5999_s18 + $0xf88] ss:$16 sps:$4 sm:$0xff]  }
 0x1d9   : > { %3707 = vmatpush1.bf16.msra.mxu0 %v5535_v40  ;;  %4035 = vmatpush1.bf16.msra.mxu1 %v5538_v59  ;;  %v5630_v40 = vld [vmem:[%s5999_s18 + $0xe0c] ss:$16 sps:$4 sm:$0xff]   ;;  %v353_v59 = vcombine.high %v6531_v56, %v6531_v56 }
 0x1da   : > { %3708 = vmatprep.subr.bf16.mxu0 %v5543_v60  ;;  %4036 = vmatprep.subr.bf16.mxu1 %v5546_v61  ;;  %v382_v60 = vpack.c.bf16 %v6458_v47, %v6458_v47  ;;  %v5625_v61 = vld [vmem:[%s5999_s18 + $0xe00] ss:$16 sps:$4 sm:$0xff]  }
 0x1db   : > { %v5631_v47 = vld [vmem:[%s5999_s18 + $0xe20] ss:$16 sps:$4 sm:$0xff]  }
 0x1dd   : > { %3709 = vmatpush1.bf16.msra.mxu0 %v5541_v62  ;;  %4037 = vmatpush1.bf16.msra.mxu1 %v5544_v63  ;;  %v5628_v62 = vld [vmem:[%s5999_s18 + $0xe08] ss:$16 sps:$4 sm:$0xff]   ;;  %v5633_v63 = vld [vmem:[%s5999_s18 + $0xe24] ss:$16 sps:$4 sm:$0xff]  }
 0x1de   : > { %3710 = vmatprep.subr.bf16.mxu0 %v5549_v0  ;;  %4038 = vmatprep.subr.bf16.mxu1 %v5552_v1  ;;  %v5636_v0 = vld [vmem:[%s5999_s18 + $0xe2c] ss:$16 sps:$4 sm:$0xff]   ;;  %v385_v1 = vpack.c.bf16 %v353_v59, %v353_v59  ;;  %v5717_v59 = vld [vmem:[%s5999_s18 + $0xfe4] ss:$16 sps:$4 sm:$0xff]  }
 0x1e1   : > { %3711 = vmatpush1.bf16.msra.mxu0 %v5547_v2  ;;  %4039 = vmatpush1.bf16.msra.mxu1 %v5550_v3  ;;  %v5634_v2 = vld [vmem:[%s5999_s18 + $0xe28] ss:$16 sps:$4 sm:$0xff]   ;;  %v5639_v3 = vld [vmem:[%s5999_s18 + $0xe44] ss:$16 sps:$4 sm:$0xff]  }
 0x1e2   : > { %3712 = vmatprep.subr.bf16.mxu0 %v5555_v4  ;;  %4040 = vmatprep.subr.bf16.mxu1 %v5558_v5  ;;  %v5642_v4 = vld [vmem:[%s5999_s18 + $0xe4c] ss:$16 sps:$4 sm:$0xff]   ;;  %v5637_v5 = vld [vmem:[%s5999_s18 + $0xe40] ss:$16 sps:$4 sm:$0xff]  }
 0x1e5   : > { %3713 = vmatpush1.bf16.msra.mxu0 %v5553_v6  ;;  %4041 = vmatpush1.bf16.msra.mxu1 %v5556_v7  ;;  %v5640_v6 = vld [vmem:[%s5999_s18 + $0xe48] ss:$16 sps:$4 sm:$0xff]   ;;  %v5645_v7 = vld [vmem:[%s5999_s18 + $0xe64] ss:$16 sps:$4 sm:$0xff]  }
 0x1e6   : > { %3714 = vmatprep.subr.bf16.mxu0 %v5561_v8  ;;  %4042 = vmatprep.subr.bf16.mxu1 %v5564_v10  ;;  %v5648_v8 = vld [vmem:[%s5999_s18 + $0xe6c] ss:$16 sps:$4 sm:$0xff]   ;;  %v5643_v10 = vld [vmem:[%s5999_s18 + $0xe60] ss:$16 sps:$4 sm:$0xff]  }
 0x1e9   : > { %3715 = vmatpush1.bf16.msra.mxu0 %v5559_v11  ;;  %4043 = vmatpush1.bf16.msra.mxu1 %v5562_v12  ;;  %v5646_v11 = vld [vmem:[%s5999_s18 + $0xe68] ss:$16 sps:$4 sm:$0xff]   ;;  %v5651_v12 = vld [vmem:[%s5999_s18 + $0xe84] ss:$16 sps:$4 sm:$0xff]  }
 0x1ea   : > { %3716 = vmatprep.subr.bf16.mxu0 %v5567_v13  ;;  %4044 = vmatprep.subr.bf16.mxu1 %v5570_v14  ;;  %v5654_v13 = vld [vmem:[%s5999_s18 + $0xe8c] ss:$16 sps:$4 sm:$0xff]   ;;  %v5649_v14 = vld [vmem:[%s5999_s18 + $0xe80] ss:$16 sps:$4 sm:$0xff]  }
 0x1ed   : > { %3717 = vmatpush1.bf16.msra.mxu0 %v5565_v15  ;;  %4045 = vmatpush1.bf16.msra.mxu1 %v5568_v16  ;;  %v5652_v15 = vld [vmem:[%s5999_s18 + $0xe88] ss:$16 sps:$4 sm:$0xff]   ;;  %v5657_v16 = vld [vmem:[%s5999_s18 + $0xea4] ss:$16 sps:$4 sm:$0xff]  }
 0x1ee   : > { %3718 = vmatprep.subr.bf16.mxu0 %v5573_v17  ;;  %4046 = vmatprep.subr.bf16.mxu1 %v5576_v18  ;;  %v5660_v17 = vld [vmem:[%s5999_s18 + $0xeac] ss:$16 sps:$4 sm:$0xff]   ;;  %v5655_v18 = vld [vmem:[%s5999_s18 + $0xea0] ss:$16 sps:$4 sm:$0xff]  }
 0x1f1   : > { %3719 = vmatpush1.bf16.msra.mxu0 %v5571_v19  ;;  %4047 = vmatpush1.bf16.msra.mxu1 %v5574_v20  ;;  %v5658_v19 = vld [vmem:[%s5999_s18 + $0xea8] ss:$16 sps:$4 sm:$0xff]   ;;  %v5663_v20 = vld [vmem:[%s5999_s18 + $0xec4] ss:$16 sps:$4 sm:$0xff]  }
 0x1f2   : > { %3720 = vmatprep.subr.bf16.mxu0 %v5579_v21  ;;  %4048 = vmatprep.subr.bf16.mxu1 %v5582_v22  ;;  %v5666_v21 = vld [vmem:[%s5999_s18 + $0xecc] ss:$16 sps:$4 sm:$0xff]   ;;  %v5661_v22 = vld [vmem:[%s5999_s18 + $0xec0] ss:$16 sps:$4 sm:$0xff]  }
 0x1f5   : > { %3721 = vmatpush1.bf16.msra.mxu0 %v5577_v24  ;;  %4049 = vmatpush1.bf16.msra.mxu1 %v5580_v23  ;;  %v5664_v24 = vld [vmem:[%s5999_s18 + $0xec8] ss:$16 sps:$4 sm:$0xff]   ;;  %v5669_v23 = vld [vmem:[%s5999_s18 + $0xee4] ss:$16 sps:$4 sm:$0xff]  }
 0x1f6   : > { %3722 = vmatprep.subr.bf16.mxu0 %v5585_v9  ;;  %4050 = vmatprep.subr.bf16.mxu1 %v5588_v27  ;;  %v5672_v9 = vld [vmem:[%s5999_s18 + $0xeec] ss:$16 sps:$4 sm:$0xff]   ;;  %v5667_v27 = vld [vmem:[%s5999_s18 + $0xee0] ss:$16 sps:$4 sm:$0xff]  }
 0x1f9   : > { %3723 = vmatpush1.bf16.msra.mxu0 %v5583_v29  ;;  %4051 = vmatpush1.bf16.msra.mxu1 %v5586_v30  ;;  %v5670_v29 = vld [vmem:[%s5999_s18 + $0xee8] ss:$16 sps:$4 sm:$0xff]   ;;  %v5675_v30 = vld [vmem:[%s5999_s18 + $0xf04] ss:$16 sps:$4 sm:$0xff]  }
 0x1fa   : > { %3724 = vmatprep.subr.bf16.mxu0 %v5591_v31  ;;  %4052 = vmatprep.subr.bf16.mxu1 %v5594_v33  ;;  %v5678_v31 = vld [vmem:[%s5999_s18 + $0xf0c] ss:$16 sps:$4 sm:$0xff]   ;;  %v5673_v33 = vld [vmem:[%s5999_s18 + $0xf00] ss:$16 sps:$4 sm:$0xff]  }
 0x1fd   : > { %3725 = vmatpush1.bf16.msra.mxu0 %v5589_v34  ;;  %4053 = vmatpush1.bf16.msra.mxu1 %v5592_v35  ;;  %v5676_v34 = vld [vmem:[%s5999_s18 + $0xf08] ss:$16 sps:$4 sm:$0xff]   ;;  %v5681_v35 = vld [vmem:[%s5999_s18 + $0xf24] ss:$16 sps:$4 sm:$0xff]  }
 0x1fe   : > { %3726 = vmatprep.subr.bf16.mxu0 %v5597_v26  ;;  %4054 = vmatprep.subr.bf16.mxu1 %v5600_v36  ;;  %v5684_v26 = vld [vmem:[%s5999_s18 + $0xf2c] ss:$16 sps:$4 sm:$0xff]   ;;  %v5679_v36 = vld [vmem:[%s5999_s18 + $0xf20] ss:$16 sps:$4 sm:$0xff]  }
 0x201   : > { %3727 = vmatpush1.bf16.msra.mxu0 %v5595_v37  ;;  %4055 = vmatpush1.bf16.msra.mxu1 %v5598_v38  ;;  %v5682_v37 = vld [vmem:[%s5999_s18 + $0xf28] ss:$16 sps:$4 sm:$0xff]   ;;  %v5687_v38 = vld [vmem:[%s5999_s18 + $0xf44] ss:$16 sps:$4 sm:$0xff]  }
 0x202   : > { %3728 = vmatprep.subr.bf16.mxu0 %v5603_v39  ;;  %4056 = vmatprep.subr.bf16.mxu1 %v5606_v28  ;;  %v5690_v39 = vld [vmem:[%s5999_s18 + $0xf4c] ss:$16 sps:$4 sm:$0xff]   ;;  %v5685_v28 = vld [vmem:[%s5999_s18 + $0xf40] ss:$16 sps:$4 sm:$0xff]  }
 0x205   : > { %3729 = vmatpush1.bf16.msra.mxu0 %v5601_v41  ;;  %4057 = vmatpush1.bf16.msra.mxu1 %v5604_v44  ;;  %v5688_v41 = vld [vmem:[%s5999_s18 + $0xf48] ss:$16 sps:$4 sm:$0xff]   ;;  %v5693_v44 = vld [vmem:[%s5999_s18 + $0xf64] ss:$16 sps:$4 sm:$0xff]  }
 0x206   : > { %3730 = vmatprep.subr.bf16.mxu0 %v5609_v45  ;;  %4058 = vmatprep.subr.bf16.mxu1 %v5612_v25  ;;  %v5696_v45 = vld [vmem:[%s5999_s18 + $0xf6c] ss:$16 sps:$4 sm:$0xff]   ;;  %v5691_v25 = vld [vmem:[%s5999_s18 + $0xf60] ss:$16 sps:$4 sm:$0xff]  }
 0x209   : > { %3731 = vmatpush1.bf16.msra.mxu0 %v5607_v46  ;;  %4059 = vmatpush1.bf16.msra.mxu1 %v5610_v48  ;;  %v5694_v46 = vld [vmem:[%s5999_s18 + $0xf68] ss:$16 sps:$4 sm:$0xff]   ;;  %v5699_v48 = vld [vmem:[%s5999_s18 + $0xf84] ss:$16 sps:$4 sm:$0xff]  }
 0x20a   : > { %3732 = vmatprep.subr.bf16.mxu0 %v5615_v50  ;;  %4060 = vmatprep.subr.bf16.mxu1 %v5618_v51  ;;  %v5702_v50 = vld [vmem:[%s5999_s18 + $0xf8c] ss:$16 sps:$4 sm:$0xff]   ;;  %v5697_v51 = vld [vmem:[%s5999_s18 + $0xf80] ss:$16 sps:$4 sm:$0xff]  }
 0x20d   : > { %3733 = vmatpush1.bf16.msra.mxu0 %v5613_v52  ;;  %4061 = vmatpush1.bf16.msra.mxu1 %v5616_v53  ;;  %v5705_v52 = vld [vmem:[%s5999_s18 + $0xfa4] ss:$16 sps:$4 sm:$0xff]   ;;  %v5708_v53 = vld [vmem:[%s5999_s18 + $0xfac] ss:$16 sps:$4 sm:$0xff]  }
 0x20e   : > { %3734 = vmatprep.subr.bf16.mxu0 %v5621_v54  ;;  %4062 = vmatprep.subr.bf16.mxu1 %v5624_v55  ;;  %v5703_v54 = vld [vmem:[%s5999_s18 + $0xfa0] ss:$16 sps:$4 sm:$0xff]   ;;  %v5706_v55 = vld [vmem:[%s5999_s18 + $0xfa8] ss:$16 sps:$4 sm:$0xff]  }
 0x211   : > { %3735 = vmatpush1.bf16.msra.mxu0 %v5619_v42  ;;  %4063 = vmatpush1.bf16.msra.mxu1 %v5622_v57  ;;  %v5711_v42 = vld [vmem:[%s5999_s18 + $0xfc4] ss:$16 sps:$4 sm:$0xff]   ;;  %v5714_v57 = vld [vmem:[%s5999_s18 + $0xfcc] ss:$16 sps:$4 sm:$0xff]  }
 0x212   : > { %3745 = vmatprep.subr.bf16.mxu0 %v5627_v58  ;;  %4073 = vmatprep.subr.bf16.mxu1 %v5630_v40  ;;  %v5709_v58 = vld [vmem:[%s5999_s18 + $0xfc0] ss:$16 sps:$4 sm:$0xff]   ;;  %v5712_v40 = vld [vmem:[%s5999_s18 + $0xfc8] ss:$16 sps:$4 sm:$0xff]  }
 0x214   : > { %3737 = vmatmul.mubr.bf16.vlgmr.msra.gmra.mrb[0].mxu0 %v382_v60  ;;  %4065 = vmatmul.mubr.bf16.vlgmr.msra.gmra.mrb[0].mxu1 %v382_v60  ;;  %v5720_v60 = vld [vmem:[%s5999_s18 + $0xfec] ss:$16 sps:$4 sm:$0xff]  }
 0x215   : > { %3746 = vmatpush1.bf16.msra.mxu0 %v5625_v61  ;;  %4074 = vmatpush1.bf16.msra.mxu1 %v5628_v62  ;;  %v5715_v61 = vld [vmem:[%s5999_s18 + $0xfe0] ss:$16 sps:$4 sm:$0xff]   ;;  %v5718_v62 = vld [vmem:[%s5999_s18 + $0xfe8] ss:$16 sps:$4 sm:$0xff]  }
 0x216   : > { %3747 = vmatprep.subr.bf16.mxu0 %v5633_v63  ;;  %4075 = vmatprep.subr.bf16.mxu1 %v5636_v0  ;;  %v384_v63 = vpack.c.bf16 %v6531_v56, %v6531_v56  ;;  %v4146_v0 = vsub.s32 0, %v6050_v43 }
 0x217   : > { %3777 = vmatprep.mubr.bf16.mxu0 %v385_v1  ;;  %4105 = vmatprep.mubr.bf16.mxu1 %v385_v1  ;;  %v4150_v1 = vsub.s32 1, %v6050_v43 }
 0x219   : > { %3748 = vmatpush1.bf16.msra.mxu0 %v5631_v47  ;;  %4076 = vmatpush1.bf16.msra.mxu1 %v5634_v2  ;;  %v4154_v47 = vsub.s32 2, %v6050_v43  ;;  %v4158_v2 = vsub.s32 3, %v6050_v43 }
 0x21a   : > { %3749 = vmatprep.subr.bf16.mxu0 %v5639_v3  ;;  %4077 = vmatprep.subr.bf16.mxu1 %v5642_v4  ;;  %v4142_v3 = vld [vmem:[%s6005_s7] sm:$0xf] }
 0x21b   : > { %v4147_v4 = vrot.slane %v4142_v3, %v4146_v0 }
 0x21d   : > { %3750 = vmatpush1.bf16.msra.mxu0 %v5637_v5  ;;  %4078 = vmatpush1.bf16.msra.mxu1 %v5640_v6  ;;  %v4151_v5 = vrot.slane %v4142_v3, %v4150_v1  ;;  %v4155_v6 = vrot.slane %v4142_v3, %v4154_v47 }
 0x21e   : > { %3751 = vmatprep.subr.bf16.mxu0 %v5645_v7  ;;  %4079 = vmatprep.subr.bf16.mxu1 %v5648_v8  ;;  %v4159_v7 = vrot.slane %v4142_v3, %v4158_v2 }
 0x21f   : > { %v4160_v8 = vcombine.low %v4147_v4, %v4151_v5 }
 0x220   : > { %v4161_v56 = vcombine.low %v4155_v6, %v4159_v7 }
 0x221   : > { %3752 = vmatpush1.bf16.msra.mxu0 %v5643_v10  ;;  %4080 = vmatpush1.bf16.msra.mxu1 %v5646_v11 }
 0x222   : > { %3753 = vmatprep.subr.bf16.mxu0 %v5651_v12  ;;  %4081 = vmatprep.subr.bf16.mxu1 %v5654_v13  ;;  %v4168_v12 = vrot.slane %v4160_v8, %v6058_v49  ;;  %v4175_v13 = vrot.slane %v4161_v56, %v6058_v49 }
 0x225   : > { %3754 = vmatpush1.bf16.msra.mxu0 %v5649_v14  ;;  %4082 = vmatpush1.bf16.msra.mxu1 %v5652_v15 }
 0x226   : > { %3755 = vmatprep.subr.bf16.mxu0 %v5657_v16  ;;  %4083 = vmatprep.subr.bf16.mxu1 %v5660_v17 }
 0x229   : > { %3756 = vmatpush1.bf16.msra.mxu0 %v5655_v18  ;;  %4084 = vmatpush1.bf16.msra.mxu1 %v5658_v19 }
 0x22a   : > { %3757 = vmatprep.subr.bf16.mxu0 %v5663_v20  ;;  %4085 = vmatprep.subr.bf16.mxu1 %v5666_v21 }
 0x22d   : > { %3758 = vmatpush1.bf16.msra.mxu0 %v5661_v22  ;;  %4086 = vmatpush1.bf16.msra.mxu1 %v5664_v24  ;;  %v4176_v24 = vcombine.low %v4168_v12, %v4175_v13 }
 0x22e   : > { %3759 = vmatprep.subr.bf16.mxu0 %v5669_v23  ;;  %4087 = vmatprep.subr.bf16.mxu1 %v5672_v9 }
 0x231   : > { %3760 = vmatpush1.bf16.msra.mxu0 %v5667_v27  ;;  %4088 = vmatpush1.bf16.msra.mxu1 %v5670_v29 }
 0x232   : > { %3761 = vmatprep.subr.bf16.mxu0 %v5675_v30  ;;  %4089 = vmatprep.subr.bf16.mxu1 %v5678_v31 }
 0x235   : > { %3762 = vmatpush1.bf16.msra.mxu0 %v5673_v33  ;;  %4090 = vmatpush1.bf16.msra.mxu1 %v5676_v34 }
 0x236   : > { %3763 = vmatprep.subr.bf16.mxu0 %v5681_v35  ;;  %4091 = vmatprep.subr.bf16.mxu1 %v5684_v26 }
 0x239   : > { %3764 = vmatpush1.bf16.msra.mxu0 %v5679_v36  ;;  %4092 = vmatpush1.bf16.msra.mxu1 %v5682_v37 }
 0x23a   : > { %3765 = vmatprep.subr.bf16.mxu0 %v5687_v38  ;;  %4093 = vmatprep.subr.bf16.mxu1 %v5690_v39 }
 0x23d   : > { %3766 = vmatpush1.bf16.msra.mxu0 %v5685_v28  ;;  %4094 = vmatpush1.bf16.msra.mxu1 %v5688_v41 }
 0x23e   : > { %3767 = vmatprep.subr.bf16.mxu0 %v5693_v44  ;;  %4095 = vmatprep.subr.bf16.mxu1 %v5696_v45 }
 0x241   : > { %3768 = vmatpush1.bf16.msra.mxu0 %v5691_v25  ;;  %4096 = vmatpush1.bf16.msra.mxu1 %v5694_v46 }
 0x242   : > { %3769 = vmatprep.subr.bf16.mxu0 %v5699_v48  ;;  %4097 = vmatprep.subr.bf16.mxu1 %v5702_v50 }
 0x245   : > { %3770 = vmatpush1.bf16.msra.mxu0 %v5697_v51  ;;  %4098 = vmatpush1.bf16.msra.mxu1 %v5700_v32 }
 0x246   : > { %3771 = vmatprep.subr.bf16.mxu0 %v5705_v52  ;;  %4099 = vmatprep.subr.bf16.mxu1 %v5708_v53 }
 0x249   : > { %3772 = vmatpush1.bf16.msra.mxu0 %v5703_v54  ;;  %4100 = vmatpush1.bf16.msra.mxu1 %v5706_v55 }
 0x24a   : > { %3773 = vmatprep.subr.bf16.mxu0 %v5711_v42  ;;  %4101 = vmatprep.subr.bf16.mxu1 %v5714_v57 }
 0x24d   : > { %3774 = vmatpush1.bf16.msra.mxu0 %v5709_v58  ;;  %4102 = vmatpush1.bf16.msra.mxu1 %v5712_v40 }
 0x24e   : > { %3775 = vmatprep.subr.bf16.mxu0 %v5717_v59  ;;  %4103 = vmatprep.subr.bf16.mxu1 %v5720_v60 }
 0x251   : > { %3776 = vmatpush1.bf16.msra.mxu0 %v5715_v61  ;;  %4104 = vmatpush1.bf16.msra.mxu1 %v5718_v62 }
 0x254   : > { %3778 = vmatmul.mubr.bf16.vlgmr.msra.gmra.mrb[0].mxu0 %v384_v63  ;;  %4106 = vmatmul.mubr.bf16.vlgmr.msra.gmra.mrb[0].mxu1 %v384_v63 }
 0x327   : > { %v3779_v10 = vpop.f32.mrb[0].mxu0  ;;  %v4107_v11 = vpop.f32.mrb[0].mxu1 }
 0x328   : > { %v3781_v14 = vpop.f32.mrb[1].mxu0  ;;  %v4109_v15 = vpop.f32.mrb[1].mxu1 }
 0x329   : > { %v4118_v16 = vcombine.low %v3779_v10, %v3781_v14  ;;  %v4119_v43 = vcombine.low %v4107_v11, %v4109_v15  ;;  %v3783_v17 = vpop.f32.mrb[2].mxu0  ;;  %v4111_v18 = vpop.f32.mrb[2].mxu1 }
 0x32a   : > { %v3784_v19 = vpop.f32.mrb[3].mxu0  ;;  %v4112_v20 = vpop.f32.mrb[3].mxu1 }
 0x32b   : > { %v4126_v21 = vrot.slane %v4118_v16, %v6058_v49  ;;  %v4133_v22 = vrot.slane %v4119_v43, %v6058_v49 }
 0x32d   : > { %v4134_v23 = vcombine.low %v4126_v21, %v4133_v22 }
 0x32f   : > { %v4178_v9 = vadd.f32 %v4176_v24, %v4134_v23 }
 0x331   : > { %v4179_v27 = vmax.f32 %v4178_v9, 0.0 }
 0x333   : > { %4180 = vst [vmem:[%s270_s29] sm:$0xff] %v4179_v27 }
 0x334 PF: > { %s19_s17 = sadd.s32 1, %s5836_s17   ;;  %s6648_s12 = smov %s5820_s13 }
 0x335   : > { %p16_p9 = scmp.ge.s32.totalorder %s19_s17, 4   ;;  %s6649_s13 = smov %s5824_s14 }
 0x336   : > { %s6650_s14 = smov %s5913_s24  ;;  %s6651_s15 = smov %s5832_s16 }
 0x337   : > { %s6652_s16 = smov %s6654_s19  ;;  %18 = sbr.rel (!%p16_p9) target bundleno = 6 (0x6), region = 96 }
 0x33e   :  { %4203 = vsyncpa [#allocation4], 1 }
 0x33f   :  { %4205 = vsyncpa [#allocation4 + $0x1], 1 }
 0x340   :  { %4206 = vsyncpa [#allocation6], 1 }
 0x341   :  { %4208 = vsyncpa [#allocation6 + $0x1], 1 }

// kernel: _lambda_.5
= control target key start
LH: loop header
LB: loop body
LE: loop exit
PB: predicated region body
PF: predicated region fallthrough
CT: control target
= control target key end

     0   :  { %v31_v28 = vlaneseq  ;;  %v1025_v36 = vmov 1983009808   ;;  %s1270_s0 = inlined_call_operand.vmem [shape: f32[2,1024], index: 0, kind: input, shape index: {}]   ;;  %s1271_s1 = inlined_call_operand.vmem [shape: bf16[1024,10], index: 1, kind: input, shape index: {}]   ;;  %s1272_s2 = inlined_call_operand.vmem [shape: f32[1,10], index: 2, kind: input, shape index: {}]   ;;  %s1273_s3 = inlined_call_operand.hbm [shape: f32[2,10], index: 3, kind: output, shape index: {}]  }
   0x1   :  { %v935_v0 = vld [vmem:[%s1271_s1 + $0x40] sm:$0xff]   ;;  %v939_v4 = vld [vmem:[%s1271_s1 + $0x48] sm:$0xff]   ;;  %v943_v8 = vld [vmem:[%s1271_s1 + $0x50] sm:$0xff]   ;;  %v29_v37 = vunpack.c.l.s4 %v1025_v36 }
   0x2   :  { %v936_v1 = vld [vmem:[%s1271_s1 + $0xc0] sm:$0xff]   ;;  %844 = vmatprep.subr.bf16.mxu0 %v935_v0  ;;  %v940_v5 = vld [vmem:[%s1271_s1 + $0xc8] sm:$0xff]   ;;  %v944_v9 = vld [vmem:[%s1271_s1 + $0xd0] sm:$0xff]   ;;  %v32_v33 = vshrl.u32 %v31_v28, 7 }
   0x3   :  { %v937_v2 = vld [vmem:[%s1271_s1] sm:$0xff]   ;;  %866 = vmatprep.subr.bf16.mxu1 %v936_v1  ;;  %v941_v6 = vld [vmem:[%s1271_s1 + $0x8] sm:$0xff]   ;;  %v945_v10 = vld [vmem:[%s1271_s1 + $0x10] sm:$0xff]   ;;  %v30_v39 = vunpack.c.0.s8 %v29_v37 }
   0x4   :  { %v938_v3 = vld [vmem:[%s1271_s1 + $0x80] sm:$0xff]   ;;  %845 = vmatpush3.bf16.msra.mxu0 %v937_v2  ;;  %v942_v7 = vld [vmem:[%s1271_s1 + $0x88] sm:$0xff]   ;;  %v946_v11 = vld [vmem:[%s1271_s1 + $0x90] sm:$0xff]  }
   0x5   :  { %867 = vmatpush3.bf16.msra.mxu1 %v938_v3  ;;  %846 = vmatprep.subr.bf16.mxu0 %v939_v4  ;;  %v947_v12 = vld [vmem:[%s1271_s1 + $0x58] sm:$0xff]   ;;  %v951_v16 = vld [vmem:[%s1271_s1 + $0x60] sm:$0xff]   ;;  %v955_v20 = vld [vmem:[%s1271_s1 + $0x68] sm:$0xff]   ;;  %v1153_v41 = vsub.s32 %v30_v39, %v32_v33 }
   0x6   :  { %868 = vmatprep.subr.bf16.mxu1 %v940_v5  ;;  %v948_v13 = vld [vmem:[%s1271_s1 + $0xd8] sm:$0xff]   ;;  %v952_v17 = vld [vmem:[%s1271_s1 + $0xe0] sm:$0xff]   ;;  %v956_v21 = vld [vmem:[%s1271_s1 + $0xe8] sm:$0xff]  }
   0x7   :  { %v949_v14 = vld [vmem:[%s1271_s1 + $0x18] sm:$0xff]   ;;  %v953_v18 = vld [vmem:[%s1271_s1 + $0x20] sm:$0xff]   ;;  %v957_v22 = vld [vmem:[%s1271_s1 + $0x28] sm:$0xff]  }
   0x8   :  { %847 = vmatpush3.bf16.msra.mxu0 %v941_v6  ;;  %v950_v15 = vld [vmem:[%s1271_s1 + $0x98] sm:$0xff]   ;;  %v954_v19 = vld [vmem:[%s1271_s1 + $0xa0] sm:$0xff]   ;;  %v958_v23 = vld [vmem:[%s1271_s1 + $0xa8] sm:$0xff]  }
   0x9   :  { %869 = vmatpush3.bf16.msra.mxu1 %v942_v7  ;;  %848 = vmatprep.subr.bf16.mxu0 %v943_v8  ;;  %v959_v24 = vld [vmem:[%s1271_s1 + $0x70] sm:$0xff]   ;;  %v963_v29 = vld [vmem:[%s1271_s1 + $0x78] sm:$0xff]   ;;  %v23_v34 = vld [vmem:[%s1270_s0] sm:$0xff] }
   0xa   :  { %870 = vmatprep.subr.bf16.mxu1 %v944_v9  ;;  %v960_v25 = vld [vmem:[%s1271_s1 + $0xf0] sm:$0xff]   ;;  %v964_v30 = vld [vmem:[%s1271_s1 + $0xf8] sm:$0xff]   ;;  %v968_v35 = vld [vmem:[%s1271_s1 + $0x140] sm:$0xff]   ;;  %v27_v40 = vcombine.high %v23_v34, %v23_v34  ;;  %v34_v42 = vrot.slane %v23_v34, %v1153_v41 }
   0xb   :  { %v961_v26 = vld [vmem:[%s1271_s1 + $0x30] sm:$0xff]   ;;  %v965_v31 = vld [vmem:[%s1271_s1 + $0x38] sm:$0xff]   ;;  %v969_v38 = vld [vmem:[%s1271_s1 + $0x1c0] sm:$0xff]  }
   0xc   :  { %849 = vmatpush3.bf16.msra.mxu0 %v945_v10  ;;  %v962_v27 = vld [vmem:[%s1271_s1 + $0xb0] sm:$0xff]   ;;  %v966_v32 = vld [vmem:[%s1271_s1 + $0xb8] sm:$0xff]   ;;  %v41_v43 = vrot.slane %v27_v40, %v1153_v41  ;;  %v42_v44 = vcombine.high %v34_v42, %v34_v42  ;;  %v970_v46 = vld [vmem:[%s1271_s1 + $0x100] sm:$0xff]   ;;  %v69_v47 = vpack.c.bf16 %v34_v42, %v34_v42 }
   0xd   :  { %871 = vmatpush3.bf16.msra.mxu1 %v946_v11  ;;  %850 = vmatprep.subr.bf16.mxu0 %v947_v12  ;;  %v971_v49 = vld [vmem:[%s1271_s1 + $0x180] sm:$0xff]   ;;  %v972_v52 = vld [vmem:[%s1271_s1 + $0x148] sm:$0xff]   ;;  %v976_v56 = vld [vmem:[%s1271_s1 + $0x150] sm:$0xff]  }
   0xe   :  { %872 = vmatprep.subr.bf16.mxu1 %v948_v13  ;;  %v43_v45 = vcombine.high %v41_v43, %v41_v43  ;;  %v71_v48 = vpack.c.bf16 %v41_v43, %v41_v43  ;;  %v70_v50 = vpack.c.bf16 %v42_v44, %v42_v44  ;;  %v973_v53 = vld [vmem:[%s1271_s1 + $0x1c8] sm:$0xff]   ;;  %v977_v57 = vld [vmem:[%s1271_s1 + $0x1d0] sm:$0xff]   ;;  %v980_v60 = vld [vmem:[%s1271_s1 + $0x158] sm:$0xff]  }
   0xf   :  { %v974_v54 = vld [vmem:[%s1271_s1 + $0x108] sm:$0xff]   ;;  %v978_v58 = vld [vmem:[%s1271_s1 + $0x110] sm:$0xff]   ;;  %v981_v61 = vld [vmem:[%s1271_s1 + $0x1d8] sm:$0xff]  }
  0x10   :  { %851 = vmatpush3.bf16.msra.mxu0 %v949_v14  ;;  %v72_v51 = vpack.c.bf16 %v43_v45, %v43_v45  ;;  %621 = vmatprep.mubr.bf16.mxu0 %v70_v50  ;;  %v975_v55 = vld [vmem:[%s1271_s1 + $0x188] sm:$0xff]   ;;  %v979_v59 = vld [vmem:[%s1271_s1 + $0x190] sm:$0xff]   ;;  %v982_v62 = vld [vmem:[%s1271_s1 + $0x118] sm:$0xff]  }
  0x11   :  { %873 = vmatpush3.bf16.msra.mxu1 %v950_v15  ;;  %852 = vmatprep.subr.bf16.mxu0 %v951_v16  ;;  %v983_v63 = vld [vmem:[%s1271_s1 + $0x198] sm:$0xff]   ;;  %v984_v0 = vld [vmem:[%s1271_s1 + $0x160] sm:$0xff]   ;;  %v988_v4 = vld [vmem:[%s1271_s1 + $0x168] sm:$0xff]  }
  0x12   :  { %874 = vmatprep.subr.bf16.mxu1 %v952_v17  ;;  %661 = vmatprep.mubr.bf16.mxu1 %v72_v51  ;;  %v985_v1 = vld [vmem:[%s1271_s1 + $0x1e0] sm:$0xff]   ;;  %v989_v5 = vld [vmem:[%s1271_s1 + $0x1e8] sm:$0xff]   ;;  %v992_v8 = vld [vmem:[%s1271_s1 + $0x170] sm:$0xff]  }
  0x13   :  { %v986_v2 = vld [vmem:[%s1271_s1 + $0x120] sm:$0xff]   ;;  %v990_v6 = vld [vmem:[%s1271_s1 + $0x128] sm:$0xff]   ;;  %v993_v9 = vld [vmem:[%s1271_s1 + $0x1f0] sm:$0xff]  }
  0x14   :  { %853 = vmatpush3.bf16.msra.mxu0 %v953_v18  ;;  %v987_v3 = vld [vmem:[%s1271_s1 + $0x1a0] sm:$0xff]   ;;  %v991_v7 = vld [vmem:[%s1271_s1 + $0x1a8] sm:$0xff]  }
  0x15   :  { %875 = vmatpush3.bf16.msra.mxu1 %v954_v19  ;;  %854 = vmatprep.subr.bf16.mxu0 %v955_v20  ;;  %v24_v10 = vld [vmem:[%s1270_s0 + $0x8] sm:$0xff] }
  0x16   :  { %876 = vmatprep.subr.bf16.mxu1 %v956_v21 }
  0x18   :  { %855 = vmatpush3.bf16.msra.mxu0 %v957_v22 }
  0x19   :  { %877 = vmatpush3.bf16.msra.mxu1 %v958_v23  ;;  %856 = vmatprep.subr.bf16.mxu0 %v959_v24 }
  0x1a   :  { %878 = vmatprep.subr.bf16.mxu1 %v960_v25 }
  0x1c   :  { %857 = vmatpush3.bf16.msra.mxu0 %v961_v26 }
  0x1d   :  { %879 = vmatpush3.bf16.msra.mxu1 %v962_v27  ;;  %858 = vmatprep.subr.bf16.mxu0 %v963_v29 }
  0x1e   :  { %880 = vmatprep.subr.bf16.mxu1 %v964_v30 }
  0x20   :  { %859 = vmatpush3.bf16.msra.mxu0 %v965_v31 }
  0x21   :  { %881 = vmatpush3.bf16.msra.mxu1 %v966_v32  ;;  %888 = vmatprep.subr.bf16.mxu0 %v968_v35 }
  0x22   :  { %910 = vmatprep.subr.bf16.mxu1 %v969_v38 }
  0x23   :  { %622 = vmatmul.mubr.bf16.vlgmr.msra.gmra.mrb[0].mxu0 %v69_v47 }
  0x24   :  { %662 = vmatmul.mubr.bf16.vlgmr.msra.gmra.mrb[0].mxu1 %v71_v48  ;;  %889 = vmatpush3.bf16.msra.mxu0 %v970_v46 }
  0x25   :  { %911 = vmatpush3.bf16.msra.mxu1 %v971_v49  ;;  %890 = vmatprep.subr.bf16.mxu0 %v972_v52 }
  0x26   :  { %912 = vmatprep.subr.bf16.mxu1 %v973_v53 }
  0x28   :  { %891 = vmatpush3.bf16.msra.mxu0 %v974_v54 }
  0x29   :  { %913 = vmatpush3.bf16.msra.mxu1 %v975_v55  ;;  %892 = vmatprep.subr.bf16.mxu0 %v976_v56 }
  0x2a   :  { %914 = vmatprep.subr.bf16.mxu1 %v977_v57 }
  0x2c   :  { %893 = vmatpush3.bf16.msra.mxu0 %v978_v58 }
  0x2d   :  { %915 = vmatpush3.bf16.msra.mxu1 %v979_v59  ;;  %894 = vmatprep.subr.bf16.mxu0 %v980_v60 }
  0x2e   :  { %916 = vmatprep.subr.bf16.mxu1 %v981_v61 }
  0x30   :  { %895 = vmatpush3.bf16.msra.mxu0 %v982_v62 }
  0x31   :  { %917 = vmatpush3.bf16.msra.mxu1 %v983_v63  ;;  %896 = vmatprep.subr.bf16.mxu0 %v984_v0 }
  0x32   :  { %918 = vmatprep.subr.bf16.mxu1 %v985_v1 }
  0x34   :  { %897 = vmatpush3.bf16.msra.mxu0 %v986_v2 }
  0x35   :  { %919 = vmatpush3.bf16.msra.mxu1 %v987_v3  ;;  %898 = vmatprep.subr.bf16.mxu0 %v988_v4 }
  0x36   :  { %920 = vmatprep.subr.bf16.mxu1 %v989_v5 }
  0x37   :  { %8 = vsyncpa [#allocation4], 0  ;;  %v51_v11 = vrot.slane %v24_v10, %v1153_v41  ;;  %v44_v12 = vcombine.high %v24_v10, %v24_v10  ;;  %v994_v13 = vld [vmem:[%s1271_s1 + $0x130] sm:$0xff]   ;;  %v996_v17 = vld [vmem:[%s1271_s1 + $0x178] sm:$0xff]   ;;  %vm20_vm0 = vcmask 74752   ;;  %v1026_v26 = vmov 0.0  }
  0x38   :  { %899 = vmatpush3.bf16.msra.mxu0 %v990_v6  ;;  %v995_v14 = vld [vmem:[%s1271_s1 + $0x1b0] sm:$0xff]   ;;  %v997_v18 = vld [vmem:[%s1271_s1 + $0x1f8] sm:$0xff]   ;;  %21 = vst.msk [vmem:[#allocation2] sm:$0x3] %vm20_vm0, %v1026_v26  ;;  %v843_v52 = vld [vmem:[%s1272_s2] ss:$0 sm:$0xff] }
  0x39   :  { %921 = vmatpush3.bf16.msra.mxu1 %v991_v7  ;;  %v59_v15 = vcombine.high %v51_v11, %v51_v11  ;;  %v58_v16 = vrot.slane %v44_v12, %v1153_v41  ;;  %900 = vmatprep.subr.bf16.mxu0 %v992_v8  ;;  %v998_v21 = vld [vmem:[%s1271_s1 + $0x138] sm:$0xff]   ;;  %v73_v24 = vpack.c.bf16 %v51_v11, %v51_v11  ;;  %s1027_s9 = smov [#allocation3]  }
  0x3a   :  { %922 = vmatprep.subr.bf16.mxu1 %v993_v9  ;;  %v999_v22 = vld [vmem:[%s1271_s1 + $0x1b8] sm:$0xff]   ;;  %s771_s10 = sshll.u32 %s1027_s9, 4  ;;  %s772_s10 = int_to_ptr.vmem [resolvable:$true] %s771_s10 }
  0x3b   :  { %v74_v19 = vpack.c.bf16 %v59_v15, %v59_v15  ;;  %v60_v20 = vcombine.high %v58_v16, %v58_v16  ;;  %v75_v25 = vpack.c.bf16 %v58_v16, %v58_v16  ;;  %s1001_s11 = scalar_lea.vmem %s772_s10, 32  ;;  %p1006_p1 = scmp.lt.s32.totalorder %s772_s10, %s772_s10 }
  0x3c   :  { %901 = vmatpush3.bf16.msra.mxu0 %v994_v13  ;;  %p1002_p0 = scmp.ne.s32.totalorder %s772_s10, %s1001_s11  ;;  %p1007_p2 = scmp.lt.s32.totalorder %s1001_s11, %s1001_s11 }
  0x3d   :  { %923 = vmatpush3.bf16.msra.mxu1 %v995_v14  ;;  %v76_v23 = vpack.c.bf16 %v60_v20, %v60_v20  ;;  %902 = vmatprep.subr.bf16.mxu0 %v996_v17 }
  0x3e   :  { %924 = vmatprep.subr.bf16.mxu1 %v997_v18  ;;  %701 = vmatprep.mubr.bf16.mxu0 %v74_v19  ;;  %p1008_p3 = por %p1007_p2, %p1006_p1 }
  0x3f   :  { %741 = vmatprep.mubr.bf16.mxu1 %v76_v23  ;;  %v22_v49 = vld [vmem:[#allocation2] sm:$0x3] }
  0x40   :  { %903 = vmatpush3.bf16.msra.mxu0 %v998_v21  ;;  %p1009_p4 = pnand %p1008_p3, %p1002_p0 }
  0x41   :  { %925 = vmatpush3.bf16.msra.mxu1 %v999_v22 }
  0x43   :  { %702 = vmatmul.mubr.bf16.vlgmr.msra.gmra.mrb[4].mxu0 %v73_v24 }
  0x44   :  { %742 = vmatmul.mubr.bf16.vlgmr.msra.gmra.mrb[4].mxu1 %v75_v25 }
  0xf6   :  { %v860_v27 = vpop.f32.mrb[0].mxu0 }
  0xf7   :  { %v882_v28 = vpop.f32.mrb[0].mxu1  ;;  %v861_v29 = vpop.f32.mrb[1].mxu0 }
  0xf8   :  { %v883_v30 = vpop.f32.mrb[1].mxu1  ;;  %v862_v31 = vadd.f32 %v861_v29, %v860_v27  ;;  %v863_v33 = vpop.f32.mrb[2].mxu0 }
  0xf9   :  { %v884_v32 = vadd.f32 %v883_v30, %v882_v28  ;;  %v885_v34 = vpop.f32.mrb[2].mxu1  ;;  %v864_v35 = vpop.f32.mrb[3].mxu0 }
  0xfa   :  { %v886_v36 = vpop.f32.mrb[3].mxu1 }
  0xfb   :  { %v664_v37 = vadd.f32 %v884_v32, %v862_v31 }
 0x116   :  { %v904_v38 = vpop.f32.mrb[4].mxu0 }
 0x117   :  { %v926_v39 = vpop.f32.mrb[4].mxu1  ;;  %v905_v40 = vpop.f32.mrb[5].mxu0 }
 0x118   :  { %v927_v41 = vpop.f32.mrb[5].mxu1  ;;  %v906_v42 = vadd.f32 %v905_v40, %v904_v38  ;;  %v907_v44 = vpop.f32.mrb[6].mxu0 }
 0x119   :  { %v928_v43 = vadd.f32 %v927_v41, %v926_v39  ;;  %v929_v45 = vpop.f32.mrb[6].mxu1  ;;  %v908_v46 = vpop.f32.mrb[7].mxu0 }
 0x11a   :  { %v930_v47 = vpop.f32.mrb[7].mxu1  ;;  %v704_v48 = vadd.f32 %v906_v42, %v664_v37 }
 0x11c   :  { %v744_v50 = vadd.f32 %v928_v43, %v704_v48 }
 0x11e   :  { %v749_v51 = vadd.f32 %v744_v50, %v22_v49 }
 0x120   :  { %751 = vst.msk [vmem:[#allocation2] sm:$0x3] %vm20_vm0, %v749_v51 }
 0x127   :  { %v755_v53 = vld [vmem:[#allocation2] sm:$0x3] }
 0x128   :  { %v763_v54 = vadd.f32 %v843_v52, %v755_v53 }
 0x12a   :  { %764 = vst.msk [vmem:[#allocation3] sm:$0x3] %vm20_vm0, %v763_v54 }
 0x12b   :  { %1012 = shalt.err (!%p1009_p4)
}
 0x12c   :  { %s1013_s14 = scalar_lea.hbm %s1273_s3, 32 }
 0x12d   :  { %p1014_p5 = scmp.ne.s32.totalorder %s1273_s3, %s1013_s14  ;;  %p1017_p6 = scmp.lt.u32.totalorder %s1013_s14, %s1273_s3 }
 0x12f   :  { %p1019_p7 = pnand %p1017_p6, %p1014_p5 }
 0x131   :  { %1022 = shalt.err (!%p1019_p7)
}
 0x132   :  { %774 = dma.vmem_to_hbm [thread:$0]  %s772_s10, 32, %s1273_s3, [#allocation4]  }
 0x133   :  { %1023 = dma.done.wait [#allocation4], 32  }
 0x134   :  { %1024 = vsyncadd [#allocation4], 4294967264 }
 0x135   :  { %778 = vsyncpa [#allocation4], 1 }

// kernel: _lambda_.3
= control target key start
LH: loop header
LB: loop body
LE: loop exit
PB: predicated region body
PF: predicated region fallthrough
CT: control target
= control target key end

     0   :  { %14 = vsyncpa [#allocation7], 0  ;;  %s14959_s0 = inlined_call_operand.vmem [shape: f32[2,16,16,3], index: 0, kind: input, shape index: {}]   ;;  %s14960_s1 = inlined_call_operand.hbm [shape: bf16[9,3,32], index: 1, kind: input, shape index: {}]   ;;  %s14961_s2 = inlined_call_operand.hbm [shape: f32[1,32], index: 2, kind: input, shape index: {}]   ;;  %s14962_s3 = inlined_call_operand.hbm [shape: bf16[9,32,32], index: 3, kind: input, shape index: {}]   ;;  %s14963_s4 = inlined_call_operand.hbm [shape: f32[1,32], index: 4, kind: input, shape index: {}]   ;;  %s14964_s5 = inlined_call_operand.hbm [shape: bf16[9,32,64], index: 5, kind: input, shape index: {}]   ;;  %s14965_s6 = inlined_call_operand.hbm [shape: f32[1,64], index: 6, kind: input, shape index: {}]   ;;  %s14966_s7 = inlined_call_operand.hbm [shape: bf16[9,64,128], index: 7, kind: input, shape index: {}]   ;;  %s14967_s8 = inlined_call_operand.hbm [shape: f32[1,128], index: 8, kind: input, shape index: {}]   ;;  %s14968_s9 = inlined_call_operand.vmem [shape: f32[2,4,4,128], index: 9, kind: output, shape index: {}]  }
   0x1   :  { %15 = vsyncpa [#allocation9], 0 }
   0x2   :  { %16 = vsyncpa [#allocation12], 0 }
   0x3   :  { %17 = vsyncpa [#allocation15], 0 }
   0x4   :  { %18 = vsyncpa [#allocation18], 0  ;;  %s12060_s30 = smov 0  }
   0x5 LB: > { %s11995_s10 = smov [#allocation8]   ;;  %s12066_s12 = sadd.s32 4294967295, %s11993_s30   ;;  %s11993_s30 = sphi %s12060_s30, %s24_s30  }
   0x6   : > { %s275_s11 = sshll.u32 %s11995_s10, 4  ;;  %p9146_p0 = scmp.ge.s32.totalorder %s11993_s30, 1  ;;  %s12071_s11 = int_to_ptr.vmem [resolvable:$true] %s275_s11 }
   0x7   : > { %p249_p1 = scmp.lt.s32.totalorder %s11993_s30, 3  ;;  %p14969_p2 = scmp.eq.s32.totalorder %s12066_s12, 0 }
   0x8   : > { %s11996_s14 = smov [#allocation11]   ;;  %s11997_s16 = smov [#allocation14]  }
   0x9   : > { %p12073_p3 = pnand %p9146_p0, %p249_p1  ;;  %s299_s15 = sshll.u32 %s11996_s14, 4  ;;  %s12079_s15 = int_to_ptr.vmem [resolvable:$true] %s299_s15 }
   0xa   : > { %s323_s17 = sshll.u32 %s11997_s16, 4  ;;  %s11998_s19 = smov [#allocation6]   ;;  %s12087_s17 = int_to_ptr.vmem [resolvable:$true] %s323_s17 }
   0xb   : > { %s15016_s13 = scalar_select %p12073_p3, 1, 0 }
   0xc   : > { %p11604_p4 = pneg %p12073_p3  ;;  %s261_s20 = sshll.u32 %s11998_s19, 4  ;;  %s12089_s20 = int_to_ptr.vmem [resolvable:$true] %s261_s20 }
   0xd   : > { %s11743_s23 = scalar_lea.hbm %s14961_s2, 16 }
   0xe   : > { %p12083_p5 = pnand %p14969_p2, %p11604_p4  ;;  %p11744_p6 = scmp.ne.s32.totalorder %s14961_s2, %s11743_s23 }
   0xf   : > { %p11750_p10 = scmp.lt.u32.totalorder %s11743_s23, %s14961_s2 }
  0x10   : > { %p12099_p7 = pneg %p12083_p5 }
  0x12   : > { %p11746_p8 = pnand %p12099_p7, %p11744_p6 }
  0x14   : > { %p11747_p9 = pneg %p11746_p8 }
  0x16   : > { %p11752_p11 = pnand %p11750_p10, %p11747_p9 }
  0x18   : > { %11755 = shalt.err (!%p11752_p11)
}
  0x19   : > { %s11756_s29 = scalar_lea.vmem %s12071_s11, 16  ;;  %s11763_s10 = scalar_lea.vmem %s12071_s11, 32 }
  0x1a   : > { %p11757_p12 = scmp.ne.s32.totalorder %s12071_s11, %s11756_s29  ;;  %p11764_p1 = scmp.lt.s32.totalorder %s12071_s11, %s12071_s11 }
  0x1b   : > { %p11765_p4 = scmp.lt.s32.totalorder %s11763_s10, %s11756_s29 }
  0x1c   : > { %p11759_p13 = pnand %p11757_p12, %p12099_p7 }
  0x1d   : > { %p11766_p6 = por %p11765_p4, %p11764_p1 }
  0x1e   : > { %p11760_p0 = pneg %p11759_p13 }
  0x20   : > { %p11767_p8 = pnand %p11766_p6, %p11760_p0 }
  0x22   : > { %11770 = shalt.err (!%p11767_p8)
}
  0x23   : > { %11610 = dma.hbm_to_vmem [thread:$0]  (!%p12083_p5), %s14961_s2, 16, %s12071_s11, [#allocation9]  }
  0x24   : > { %s11771_s22 = scalar_lea.hbm %s14963_s4, 16 }
  0x25   : > { %p11772_p9 = scmp.ne.s32.totalorder %s14963_s4, %s11771_s22  ;;  %p11778_p12 = scmp.lt.u32.totalorder %s11771_s22, %s14963_s4 }
  0x27   : > { %p11774_p10 = pnand %p11772_p9, %p12099_p7 }
  0x29   : > { %p11775_p11 = pneg %p11774_p10 }
  0x2b   : > { %p11780_p13 = pnand %p11778_p12, %p11775_p11 }
  0x2d   : > { %11783 = shalt.err (!%p11780_p13)
}
  0x2e   : > { %s11784_s11 = scalar_lea.vmem %s12079_s15, 16  ;;  %s11791_s28 = scalar_lea.vmem %s12079_s15, 32 }
  0x2f   : > { %p11785_p0 = scmp.ne.s32.totalorder %s12079_s15, %s11784_s11  ;;  %p11792_p6 = scmp.lt.s32.totalorder %s12079_s15, %s12079_s15 }
  0x30   : > { %p11793_p8 = scmp.lt.s32.totalorder %s11791_s28, %s11784_s11 }
  0x31   : > { %p11787_p1 = pnand %p11785_p0, %p12099_p7 }
  0x32   : > { %p11794_p9 = por %p11793_p8, %p11792_p6 }
  0x33   : > { %p11788_p4 = pneg %p11787_p1 }
  0x35   : > { %p11795_p10 = pnand %p11794_p9, %p11788_p4 }
  0x37   : > { %11798 = shalt.err (!%p11795_p10)
}
  0x38   : > { %11616 = dma.hbm_to_vmem [thread:$0]  (!%p12083_p5), %s14963_s4, 16, %s12079_s15, [#allocation12]  }
  0x39   : > { %s11799_s19 = scalar_lea.hbm %s14965_s6, 16 }
  0x3a   : > { %p11800_p11 = scmp.ne.s32.totalorder %s14965_s6, %s11799_s19  ;;  %p11806_p0 = scmp.lt.u32.totalorder %s11799_s19, %s14965_s6 }
  0x3c   : > { %p11802_p12 = pnand %p11800_p11, %p12099_p7 }
  0x3e   : > { %p11803_p13 = pneg %p11802_p12 }
  0x40   : > { %p11808_p1 = pnand %p11806_p0, %p11803_p13 }
  0x42   : > { %11811 = shalt.err (!%p11808_p1)
}
  0x43   : > { %s11812_s15 = scalar_lea.vmem %s12087_s17, 16  ;;  %s11819_s25 = scalar_lea.vmem %s12087_s17, 32 }
  0x44   : > { %p11813_p4 = scmp.ne.s32.totalorder %s12087_s17, %s11812_s15  ;;  %p11820_p9 = scmp.lt.s32.totalorder %s12087_s17, %s12087_s17 }
  0x45   : > { %p11821_p10 = scmp.lt.s32.totalorder %s11819_s25, %s11812_s15 }
  0x46   : > { %p11815_p6 = pnand %p11813_p4, %p12099_p7 }
  0x47   : > { %p11822_p11 = por %p11821_p10, %p11820_p9 }
  0x48   : > { %p11816_p8 = pneg %p11815_p6 }
  0x4a   : > { %p11823_p12 = pnand %p11822_p11, %p11816_p8 }
  0x4c   : > { %11826 = shalt.err (!%p11823_p12)
}
  0x4d   : > { %11622 = dma.hbm_to_vmem [thread:$0]  (!%p12083_p5), %s14965_s6, 16, %s12087_s17, [#allocation15]  }
  0x4e   : > { %s11827_s10 = scalar_lea.hbm %s14960_s1, 288 }
  0x4f   : > { %p11828_p13 = scmp.ne.s32.totalorder %s14960_s1, %s11827_s10  ;;  %p11834_p4 = scmp.lt.u32.totalorder %s11827_s10, %s14960_s1 }
  0x51   : > { %p11830_p0 = pnand %p11828_p13, %p12099_p7 }
  0x53   : > { %p11831_p1 = pneg %p11830_p0 }
  0x55   : > { %p11836_p6 = pnand %p11834_p4, %p11831_p1 }
  0x57   : > { %11839 = shalt.err (!%p11836_p6)
}
  0x58   : > { %s11840_s17 = scalar_lea.vmem %s12089_s20, 288  ;;  %p11848_p11 = scmp.lt.s32.totalorder %s12089_s20, %s12089_s20 }
  0x59   : > { %p11841_p8 = scmp.ne.s32.totalorder %s12089_s20, %s11840_s17  ;;  %p11849_p12 = scmp.lt.s32.totalorder %s11840_s17, %s11840_s17 }
  0x5b   : > { %p11843_p9 = pnand %p11841_p8, %p12099_p7  ;;  %p11850_p13 = por %p11849_p12, %p11848_p11 }
  0x5d   : > { %p11844_p10 = pneg %p11843_p9 }
  0x5f   : > { %p11851_p0 = pnand %p11850_p13, %p11844_p10 }
  0x61   : > { %11854 = shalt.err (!%p11851_p0)
}
  0x62   : > { %s11999_s22 = smov 32   ;;  %s12000_s23 = smov 2  }
  0x63   : > { %11607 = dma.hbm_to_vmem [thread:$0]  (!%p12083_p5), %s14960_s1, 288, %s12089_s20, [#allocation7], %s11999_s22, %s11999_s22, %s12000_s23  }
  0x64   : > { %s12001_s25 = smov [#allocation10]   ;;  %s11855_s29 = scalar_lea.hbm %s14962_s3, 2304 }
  0x65   : > { %s285_s27 = sshll.u32 %s12001_s25, 4  ;;  %p11856_p1 = scmp.ne.s32.totalorder %s14962_s3, %s11855_s29  ;;  %s286_s27 = int_to_ptr.vmem [resolvable:$true] %s285_s27 }
  0x66   : > { %p11862_p8 = scmp.lt.u32.totalorder %s11855_s29, %s14962_s3 }
  0x67   : > { %p11858_p4 = pnand %p11856_p1, %p12099_p7 }
  0x69   : > { %p11859_p6 = pneg %p11858_p4 }
  0x6b   : > { %p11864_p9 = pnand %p11862_p8, %p11859_p6 }
  0x6d   : > { %11867 = shalt.err (!%p11864_p9)
}
  0x6e   : > { %s11868_s20 = scalar_lea.vmem %s286_s27, 2304  ;;  %p11876_p13 = scmp.lt.s32.totalorder %s286_s27, %s286_s27 }
  0x6f   : > { %p11869_p10 = scmp.ne.s32.totalorder %s286_s27, %s11868_s20  ;;  %p11877_p0 = scmp.lt.s32.totalorder %s11868_s20, %s11868_s20 }
  0x71   : > { %p11871_p11 = pnand %p11869_p10, %p12099_p7  ;;  %p11878_p2 = por %p11877_p0, %p11876_p13 }
  0x73   : > { %p11872_p12 = pneg %p11871_p11 }
  0x75   : > { %p11879_p3 = pnand %p11878_p2, %p11872_p12 }
  0x77   : > { %11882 = shalt.err (!%p11879_p3)
}
  0x78   : > { %s12002_s21 = smov 64   ;;  %s12003_s17 = smov 4  }
  0x79   : > { %11613 = dma.hbm_to_vmem [thread:$0]  (!%p12083_p5), %s14962_s3, 2304, %s286_s27, [#allocation9], %s12002_s21, %s12002_s21, %s12003_s17  }
  0x7a   : > { %s12004_s24 = smov [#allocation13]   ;;  %s12005_s25 = smov [#allocation16]  }
  0x7b   : > { %s309_s15 = sshll.u32 %s12004_s24, 4  ;;  %s333_s11 = sshll.u32 %s12005_s25, 4  ;;  %s310_s15 = int_to_ptr.vmem [resolvable:$true] %s309_s15  ;;  %s12213_s11 = int_to_ptr.vmem [resolvable:$true] %s333_s11 }
  0x7c   : > { %s11883_s10 = scalar_lea.hbm %s14964_s5, 2304 }
  0x7d   : > { %p11884_p2 = scmp.ne.s32.totalorder %s14964_s5, %s11883_s10  ;;  %p11890_p4 = scmp.lt.u32.totalorder %s11883_s10, %s14964_s5 }
  0x7f   : > { %p11886_p3 = pnand %p11884_p2, %p12099_p7 }
  0x81   : > { %p11887_p1 = pneg %p11886_p3 }
  0x83   : > { %p11892_p6 = pnand %p11890_p4, %p11887_p1 }
  0x85   : > { %11895 = shalt.err (!%p11892_p6)
}
  0x86   : > { %s11896_s20 = scalar_lea.vmem %s310_s15, 2304  ;;  %p11904_p11 = scmp.lt.s32.totalorder %s310_s15, %s310_s15 }
  0x87   : > { %p11897_p8 = scmp.ne.s32.totalorder %s310_s15, %s11896_s20  ;;  %p11905_p12 = scmp.lt.s32.totalorder %s11896_s20, %s11896_s20 }
  0x89   : > { %p11899_p9 = pnand %p11897_p8, %p12099_p7  ;;  %p11906_p13 = por %p11905_p12, %p11904_p11 }
  0x8b   : > { %p11900_p10 = pneg %p11899_p9 }
  0x8d   : > { %p11907_p0 = pnand %p11906_p13, %p11900_p10 }
  0x8f   : > { %11910 = shalt.err (!%p11907_p0)
}
  0x90   : > { %11619 = dma.hbm_to_vmem [thread:$0]  (!%p12083_p5), %s14964_s5, 2304, %s310_s15, [#allocation12], %s12002_s21, %s12002_s21, %s12003_s17  }
  0x91   : > { %s11911_s28 = scalar_lea.hbm %s14966_s7, 4608 }
  0x92   : > { %p11912_p2 = scmp.ne.s32.totalorder %s14966_s7, %s11911_s28  ;;  %p11918_p4 = scmp.lt.u32.totalorder %s11911_s28, %s14966_s7 }
  0x94   : > { %p11914_p3 = pnand %p11912_p2, %p12099_p7 }
  0x96   : > { %p11915_p1 = pneg %p11914_p3 }
  0x98   : > { %p11920_p6 = pnand %p11918_p4, %p11915_p1 }
  0x9a   : > { %11923 = shalt.err (!%p11920_p6)
}
  0x9b   : > { %s11924_s15 = scalar_lea.vmem %s12213_s11, 4608  ;;  %p11932_p11 = scmp.lt.s32.totalorder %s12213_s11, %s12213_s11 }
  0x9c   : > { %p11925_p8 = scmp.ne.s32.totalorder %s12213_s11, %s11924_s15  ;;  %p11933_p12 = scmp.lt.s32.totalorder %s11924_s15, %s11924_s15 }
  0x9e   : > { %p11927_p9 = pnand %p11925_p8, %p12099_p7  ;;  %p11934_p13 = por %p11933_p12, %p11932_p11 }
  0xa0   : > { %p11928_p10 = pneg %p11927_p9 }
  0xa2   : > { %p11935_p0 = pnand %p11934_p13, %p11928_p10 }
  0xa4   : > { %11938 = shalt.err (!%p11935_p0)
}
  0xa5   : > { %11625 = dma.hbm_to_vmem [thread:$0]  (!%p12083_p5), %s14966_s7, 4608, %s12213_s11, [#allocation15], %s12002_s21, %s12002_s21, %s12003_s17  }
  0xa6   : > { %s12006_s20 = smov [#allocation17]   ;;  %s11939_s25 = scalar_lea.hbm %s14967_s8, 16 }
  0xa7   : > { %s347_s22 = sshll.u32 %s12006_s20, 4  ;;  %p11940_p2 = scmp.ne.s32.totalorder %s14967_s8, %s11939_s25  ;;  %s348_s22 = int_to_ptr.vmem [resolvable:$true] %s347_s22 }
  0xa8   : > { %p11946_p4 = scmp.lt.u32.totalorder %s11939_s25, %s14967_s8 }
  0xa9   : > { %p11942_p3 = pnand %p11940_p2, %p12099_p7 }
  0xab   : > { %p11943_p1 = pneg %p11942_p3 }
  0xad   : > { %p11948_p6 = pnand %p11946_p4, %p11943_p1 }
  0xaf   : > { %11951 = shalt.err (!%p11948_p6)
}
  0xb0   : > { %s11952_s21 = scalar_lea.vmem %s348_s22, 16  ;;  %s11959_s17 = scalar_lea.vmem %s348_s22, 32 }
  0xb1   : > { %p11953_p8 = scmp.ne.s32.totalorder %s348_s22, %s11952_s21  ;;  %p11960_p11 = scmp.lt.s32.totalorder %s348_s22, %s348_s22 }
  0xb2   : > { %p11961_p12 = scmp.lt.s32.totalorder %s11959_s17, %s11952_s21 }
  0xb3   : > { %p11955_p9 = pnand %p11953_p8, %p12099_p7 }
  0xb4   : > { %p11962_p13 = por %p11961_p12, %p11960_p11 }
  0xb5   : > { %p11956_p10 = pneg %p11955_p9 }
  0xb7   : > { %p11963_p0 = pnand %p11962_p13, %p11956_p10 }
  0xb9   : > { %11966 = shalt.err (!%p11963_p0)
}
  0xba   : > { %11628 = dma.hbm_to_vmem [thread:$0]  (!%p12083_p5), %s14967_s8, 16, %s348_s22, [#allocation18]  }
  0xbb   : > { %p15019_p2 = scmp.ne.s32.totalorder %s15016_s13, 0 }
  0xbd   : > { %368 = sbr.rel (%p15019_p2) target bundleno = 2656 (0xa60), region = 56 }
  0xc4   : > { %p15020_p3 = scmp.eq.s32.totalorder %s12066_s12, 0 }
  0xc6   : > { %11972 = dma.done.wait (%p15020_p3), [#allocation7], 288   ;;  %p15021_p7 = pmov %p15020_p3 }
  0xc7   : > { %p15022_p1 = pmov %p15020_p3 }
  0xc8   : > { %11974 = vsyncadd (%p15021_p7), [#allocation7], 4294967008 }
  0xc9   : > { %11976 = dma.done.wait (%p15022_p1), [#allocation9], 2320   ;;  %p15023_p4 = pmov %p15022_p1 }
  0xca   : > { %p15024_p6 = pmov %p15022_p1 }
  0xcb   : > { %11978 = vsyncadd (%p15023_p4), [#allocation9], 4294964976 }
  0xcc   : > { %11980 = dma.done.wait (%p15024_p6), [#allocation12], 2320   ;;  %p15025_p5 = pmov %p15022_p1 }
  0xcd   : > { %p15026_p8 = pmov %p15022_p1 }
  0xce   : > { %11982 = vsyncadd (%p15025_p5), [#allocation12], 4294964976 }
  0xcf   : > { %11984 = dma.done.wait (%p15026_p8), [#allocation15], 4624   ;;  %p15027_p9 = pmov %p15022_p1 }
  0xd0   : > { %p15028_p10 = pmov %p15022_p1 }
  0xd1   : > { %11986 = vsyncadd (%p15027_p9), [#allocation15], 4294962672 }
  0xd2   : > { %11988 = dma.done.wait (%p15028_p10), [#allocation18], 16   ;;  %p15029_p11 = pmov %p15022_p1 }
  0xd3   : > { %vm862_vm0 = vcmask 1040384   ;;  %vm475_vm1 = vcmask 23552   ;;  %vm478_vm2 = vcmask 17408   ;;  %p432_p12 = scmp.lt.s32.totalorder %s12066_s12, 1  ;;  %vm863_vm3 = vcmask 1041408  }
  0xd4   : > { %11990 = vsyncadd (%p15029_p11), [#allocation18], 4294967280  ;;  %v12007_v0 = vmov 65535   ;;  %v14971_v2 = vmov 0.0   ;;  %v813_v4 = vld [vmem:[#allocation6 + $0x2] sm:$0x3] }
  0xd5   : > { %v864_v1 = vsel %vm862_vm0, 4294967295, %v12007_v0  ;;  %476 = vst.msk [vmem:[#allocation2] sm:$0xff] %vm475_vm1, %v14971_v2  ;;  %477 = vst.msk [vmem:[#allocation2 + $0x8] sm:$0xff] %vm475_vm1, %v14971_v2  ;;  %s15106_s12 = smov (!%p432_p12, %s12066_s12), 1  ;;  %v634_v5 = vld [vmem:[#allocation6] sm:$0x3] }
  0xd6   : > { %479 = vst.msk [vmem:[#allocation2 + $0x10] sm:$0x3] %vm478_vm2, %v14971_v2  ;;  %482 = vst.msk [vmem:[#allocation2 + $0x28] sm:$0x3] %vm478_vm2, %v14971_v2  ;;  %v12417_v3 = vsel %vm863_vm3, %v864_v1, 0  ;;  %s9607_s13 = sshll.u32 %s15106_s12, 8 }
  0xd7   : > { %480 = vst.msk [vmem:[#allocation2 + $0x18] sm:$0xff] %vm475_vm1, %v14971_v2  ;;  %481 = vst.msk [vmem:[#allocation2 + $0x20] sm:$0xff] %vm475_vm1, %v14971_v2  ;;  %s12423_s15 = scalar_lea.vmem %s14959_s0, %s9607_s13  ;;  %v867_v7 = vand.u32 %v12417_v3, %v813_v4  ;;  %v12428_v8 = vand.u32 %v12417_v3, %v634_v5  ;;  %vm683_vm4 = vcmask 1046528   ;;  %vm1242_vm5 = vcmask 1045504   ;;  %s9608_s19 = sshll.u32 %s15106_s12, 4 }
  0xd8   : > { %483 = vst.msk [vmem:[#allocation2 + $0x30] sm:$0xff] %vm475_vm1, %v14971_v2  ;;  %484 = vst.msk [vmem:[#allocation2 + $0x38] sm:$0xff] %vm475_vm1, %v14971_v2  ;;  %v443_v6 = vld [vmem:[%s12423_s15] sm:$0xff]  ;;  %v444_v9 = vld [vmem:[%s12423_s15 + $0x8] sm:$0xff]  ;;  %vm2934_vm6 = vcmask 261120   ;;  %vm2937_vm7 = vcmask 254976   ;;  %s14925_s22 = scalar_lea.vmem %s14968_s9, %s9608_s19 }
  0xd9   : > { %485 = vst.msk [vmem:[#allocation2 + $0x40] sm:$0x3] %vm478_vm2, %v14971_v2  ;;  %488 = vst.msk [vmem:[#allocation2 + $0x58] sm:$0x3] %vm478_vm2, %v14971_v2  ;;  %v445_v10 = vld [vmem:[%s12423_s15 + $0x10] sm:$0xff]  ;;  %v446_v11 = vld [vmem:[%s12423_s15 + $0x18] sm:$0xff]  ;;  %10050 = vmatprep.subr.bf16.mxu0 %v867_v7 }
  0xda   : > { %486 = vst.msk [vmem:[#allocation2 + $0x48] sm:$0xff] %vm475_vm1, %v14971_v2  ;;  %487 = vst.msk [vmem:[#allocation2 + $0x50] sm:$0xff] %vm475_vm1, %v14971_v2  ;;  %v447_v18 = vld [vmem:[%s12423_s15 + $0x20] sm:$0xff]  ;;  %v448_v19 = vld [vmem:[%s12423_s15 + $0x28] sm:$0xff]  ;;  %10051 = vmatpush3.bf16.msra.mxu0 %v867_v7  ;;  %vm6427_vm8 = vcmask 1041409   ;;  %vm6429_vm9 = vcmask 1042434  }
  0xdb   : > { %489 = vst.msk [vmem:[#allocation2 + $0x60] sm:$0xff] %vm475_vm1, %v14971_v2  ;;  %490 = vst.msk [vmem:[#allocation2 + $0x68] sm:$0xff] %vm475_vm1, %v14971_v2  ;;  %v449_v23 = vld [vmem:[%s12423_s15 + $0x30] sm:$0xff]  ;;  %v450_v24 = vld [vmem:[%s12423_s15 + $0x38] sm:$0xff]  ;;  %10084 = vmatprep.subr.bf16.mxu0 %v12428_v8  ;;  %vm6431_vm10 = vcmask 1043459   ;;  %vm6433_vm11 = vcmask 1044484  }
  0xdc   : > { %491 = vst.msk [vmem:[#allocation2 + $0x70] sm:$0x3] %vm478_vm2, %v14971_v2  ;;  %494 = vst.msk [vmem:[#allocation2 + $0x88] sm:$0x3] %vm478_vm2, %v14971_v2  ;;  %v12434_v12 = vld [vmem:[#allocation2] sm:$0xff]  ;;  %v12436_v13 = vld [vmem:[#allocation2 + $0x8] sm:$0xff] }
  0xdd   : > { %492 = vst.msk [vmem:[#allocation2 + $0x78] sm:$0xff] %vm475_vm1, %v14971_v2  ;;  %493 = vst.msk [vmem:[#allocation2 + $0x80] sm:$0xff] %vm475_vm1, %v14971_v2  ;;  %v566_v14 = vld [vmem:[#allocation2 + $0x10] sm:$0x3]  ;;  %v684_v15 = vrot.slane %v12434_v12, 1  ;;  %v685_v16 = vrot.slane %v12436_v13, 1 }
  0xde   : > { %495 = vst.msk [vmem:[#allocation2 + $0x90] sm:$0xff] %vm475_vm1, %v14971_v2  ;;  %496 = vst.msk [vmem:[#allocation2 + $0x98] sm:$0xff] %vm475_vm1, %v14971_v2  ;;  %v687_v17 = vrot.slane %v566_v14, 1  ;;  %v1243_v20 = vrot.slane %v12434_v12, 2  ;;  %v1244_v21 = vrot.slane %v12436_v13, 2  ;;  %v1246_v22 = vrot.slane %v566_v14, 2 }
  0xdf   : > { %497 = vst.msk [vmem:[#allocation2 + $0xa0] sm:$0x3] %vm478_vm2, %v14971_v2  ;;  %500 = vst.msk [vmem:[#allocation2 + $0xb8] sm:$0x3] %vm478_vm2, %v14971_v2  ;;  %v451_v25 = vld [vmem:[%s12423_s15 + $0x40] sm:$0xff]  ;;  %v686_v27 = vsel %vm683_vm4, %v684_v15, %v685_v16  ;;  %v452_v29 = vld [vmem:[%s12423_s15 + $0x48] sm:$0xff] }
  0xe0   : > { %498 = vst.msk [vmem:[#allocation2 + $0xa8] sm:$0xff] %vm475_vm1, %v14971_v2  ;;  %499 = vst.msk [vmem:[#allocation2 + $0xb0] sm:$0xff] %vm475_vm1, %v14971_v2  ;;  %v688_v28 = vsel %vm683_vm4, %v685_v16, %v687_v17  ;;  %v453_v30 = vld [vmem:[%s12423_s15 + $0x50] sm:$0xff]  ;;  %v454_v31 = vld [vmem:[%s12423_s15 + $0x58] sm:$0xff]  ;;  %v12484_v42 = vsel %vm1242_vm5, %v1243_v20, %v1244_v21  ;;  %v12487_v43 = vsel %vm1242_vm5, %v1244_v21, %v1246_v22  ;;  %vm6435_vm12 = vcmask 1045509  }
  0xe1   : > { %501 = vst.msk [vmem:[#allocation2 + $0xc0] sm:$0xff] %vm475_vm1, %v14971_v2  ;;  %502 = vst.msk [vmem:[#allocation2 + $0xc8] sm:$0xff] %vm475_vm1, %v14971_v2  ;;  %v796_v32 = vpack.c.bf16 %v688_v28, %v686_v27  ;;  %v455_v33 = vld [vmem:[%s12423_s15 + $0x60] sm:$0xff]  ;;  %v456_v34 = vld [vmem:[%s12423_s15 + $0x68] sm:$0xff]  ;;  %vm6437_vm13 = vcmask 1046534   ;;  %vm6439_vm14 = vcmask 1047559  }
  0xe2   : > { %503 = vst.msk [vmem:[#allocation2 + $0xd0] sm:$0x3] %vm478_vm2, %v14971_v2  ;;  %506 = vst.msk [vmem:[#allocation2 + $0xe8] sm:$0x3] %vm478_vm2, %v14971_v2  ;;  %v457_v35 = vld [vmem:[%s12423_s15 + $0x70] sm:$0xff]  ;;  %v458_v36 = vld [vmem:[%s12423_s15 + $0x78] sm:$0xff] }
  0xe3   : > { %504 = vst.msk [vmem:[#allocation2 + $0xd8] sm:$0xff] %vm475_vm1, %v14971_v2  ;;  %505 = vst.msk [vmem:[#allocation2 + $0xe0] sm:$0xff] %vm475_vm1, %v14971_v2  ;;  %v459_v37 = vld [vmem:[%s12423_s15 + $0x80] sm:$0xff]  ;;  %v460_v38 = vld [vmem:[%s12423_s15 + $0x88] sm:$0xff]  ;;  %10052 = vmatprep.mubr.msk.bf16.mxu0 %vm475_vm1, %v796_v32  ;;  %vm7551_vm15 = vcmask 523264   ;;  %vm7553_vm0 = vcmask 517120  }
  0xe4   : > { %507 = vst.msk [vmem:[#allocation2 + $0xf0] sm:$0xff] %vm475_vm1, %v14971_v2  ;;  %508 = vst.msk [vmem:[#allocation2 + $0xf8] sm:$0xff] %vm475_vm1, %v14971_v2  ;;  %v461_v40 = vld [vmem:[%s12423_s15 + $0x90] sm:$0xff]  ;;  %v462_v41 = vld [vmem:[%s12423_s15 + $0x98] sm:$0xff] }
  0xe5   : > { %509 = vst.msk [vmem:[#allocation2 + $0x100] sm:$0x3] %vm478_vm2, %v14971_v2  ;;  %512 = vst.msk [vmem:[#allocation2 + $0x118] sm:$0x3] %vm478_vm2, %v14971_v2  ;;  %v463_v52 = vld [vmem:[%s12423_s15 + $0xa0] sm:$0xff] }
  0xe6   : > { %510 = vst.msk [vmem:[#allocation2 + $0x108] sm:$0xff] %vm475_vm1, %v14971_v2  ;;  %511 = vst.msk [vmem:[#allocation2 + $0x110] sm:$0xff] %vm475_vm1, %v14971_v2 }
  0xe7   : > { %513 = vst.msk [vmem:[#allocation2 + $0x120] sm:$0xff] %vm475_vm1, %v14971_v2  ;;  %514 = vst.msk [vmem:[#allocation2 + $0x128] sm:$0xff] %vm475_vm1, %v14971_v2 }
  0xe8   : > { %515 = vst.msk [vmem:[#allocation2 + $0x130] sm:$0x3] %vm478_vm2, %v14971_v2  ;;  %518 = vst.msk [vmem:[#allocation2 + $0x148] sm:$0x3] %vm478_vm2, %v14971_v2 }
  0xe9   : > { %516 = vst.msk [vmem:[#allocation2 + $0x138] sm:$0xff] %vm475_vm1, %v14971_v2  ;;  %517 = vst.msk [vmem:[#allocation2 + $0x140] sm:$0xff] %vm475_vm1, %v14971_v2 }
  0xea   : > { %519 = vst.msk [vmem:[#allocation2 + $0x150] sm:$0xff] %vm475_vm1, %v14971_v2  ;;  %520 = vst.msk [vmem:[#allocation2 + $0x158] sm:$0xff] %vm475_vm1, %v14971_v2 }
  0xeb   : > { %521 = vst.msk [vmem:[#allocation2 + $0x160] sm:$0x3] %vm478_vm2, %v14971_v2  ;;  %524 = vst.msk [vmem:[#allocation2 + $0x178] sm:$0x3] %vm478_vm2, %v14971_v2 }
  0xec   : > { %522 = vst.msk [vmem:[#allocation2 + $0x168] sm:$0xff] %vm475_vm1, %v14971_v2  ;;  %523 = vst.msk [vmem:[#allocation2 + $0x170] sm:$0xff] %vm475_vm1, %v14971_v2 }
  0xed   : > { %525 = vst.msk [vmem:[#allocation2 + $0x180] sm:$0xff] %vm475_vm1, %v14971_v2  ;;  %526 = vst.msk [vmem:[#allocation2 + $0x188] sm:$0xff] %vm475_vm1, %v14971_v2 }
  0xee   : > { %527 = vst.msk [vmem:[#allocation2 + $0x190] sm:$0x3] %vm478_vm2, %v14971_v2  ;;  %530 = vst.msk [vmem:[#allocation2 + $0x1a8] sm:$0x3] %vm478_vm2, %v14971_v2 }
  0xef   : > { %528 = vst.msk [vmem:[#allocation2 + $0x198] sm:$0xff] %vm475_vm1, %v14971_v2  ;;  %529 = vst.msk [vmem:[#allocation2 + $0x1a0] sm:$0xff] %vm475_vm1, %v14971_v2 }
  0xf0   : > { %15030 = vst [vmem:[#allocation24_spill] sm:$0xff] %v12417_v3  ;;  %532 = vst.msk [vmem:[#allocation2 + $0x19] sm:$0xff] %vm475_vm1, %v443_v6 }
  0xf1   : > { %15031 = vst [vmem:[#allocation25_spill] sm:$0xff] %v12434_v12  ;;  %15032 = vst [vmem:[#allocation26_spill] sm:$0xff] %v12436_v13 }
  0xf2   : > { %533 = vst.msk [vmem:[#allocation2 + $0x21] sm:$0xff] %vm475_vm1, %v444_v9  ;;  %534 = vst.msk [vmem:[#allocation2 + $0x31] sm:$0xff] %vm475_vm1, %v445_v10 }
  0xf3   : > { %535 = vst.msk [vmem:[#allocation2 + $0x39] sm:$0xff] %vm475_vm1, %v446_v11  ;;  %536 = vst.msk [vmem:[#allocation2 + $0x49] sm:$0xff] %vm475_vm1, %v447_v18 }
  0xf4   : > { %537 = vst.msk [vmem:[#allocation2 + $0x51] sm:$0xff] %vm475_vm1, %v448_v19  ;;  %538 = vst.msk [vmem:[#allocation2 + $0x61] sm:$0xff] %vm475_vm1, %v449_v23 }
  0xf5   : > { %539 = vst.msk [vmem:[#allocation2 + $0x69] sm:$0xff] %vm475_vm1, %v450_v24  ;;  %540 = vst.msk [vmem:[#allocation2 + $0x79] sm:$0xff] %vm475_vm1, %v451_v25 }
  0xf6   : > { %541 = vst.msk [vmem:[#allocation2 + $0x81] sm:$0xff] %vm475_vm1, %v452_v29  ;;  %542 = vst.msk [vmem:[#allocation2 + $0x91] sm:$0xff] %vm475_vm1, %v453_v30 }
  0xf7   : > { %543 = vst.msk [vmem:[#allocation2 + $0x99] sm:$0xff] %vm475_vm1, %v454_v31  ;;  %544 = vst.msk [vmem:[#allocation2 + $0xa9] sm:$0xff] %vm475_vm1, %v455_v33  ;;  %v12476_v39 = vld [vmem:[#allocation2 + $0x18] sm:$0xff] }
  0xf8   : > { %545 = vst.msk [vmem:[#allocation2 + $0xb1] sm:$0xff] %vm475_vm1, %v456_v34  ;;  %546 = vst.msk [vmem:[#allocation2 + $0xc1] sm:$0xff] %vm475_vm1, %v457_v35  ;;  %v689_v46 = vrot.slane %v12476_v39, 1 }
  0xf9   : > { %547 = vst.msk [vmem:[#allocation2 + $0xc9] sm:$0xff] %vm475_vm1, %v458_v36  ;;  %548 = vst.msk [vmem:[#allocation2 + $0xd9] sm:$0xff] %vm475_vm1, %v459_v37  ;;  %v12489_v44 = vld [vmem:[#allocation2 + $0x20] sm:$0xff]  ;;  %v12491_v45 = vld [vmem:[#allocation2 + $0x28] sm:$0x3] }
  0xfa   : > { %549 = vst.msk [vmem:[#allocation2 + $0xe1] sm:$0xff] %vm475_vm1, %v460_v38  ;;  %15033 = vst [vmem:[#allocation27_spill] sm:$0xff] %v12484_v42  ;;  %v12494_v47 = vld [vmem:[#allocation2 + $0x30] sm:$0xff]  ;;  %v690_v49 = vrot.slane %v12489_v44, 1  ;;  %v692_v50 = vrot.slane %v12491_v45, 1  ;;  %v12502_v51 = vld [vmem:[#allocation2 + $0x38] sm:$0xff]  ;;  %v12516_v58 = vpack.c.bf16 %v12489_v44, %v12476_v39 }
  0xfb   : > { %15034 = vst [vmem:[#allocation28_spill] sm:$0xff] %v12487_v43  ;;  %550 = vst.msk [vmem:[#allocation2 + $0xf1] sm:$0xff] %vm475_vm1, %v461_v40  ;;  %v12505_v53 = vld [vmem:[#allocation2 + $0x40] sm:$0x3]  ;;  %v694_v54 = vrot.slane %v12494_v47, 1  ;;  %v695_v55 = vrot.slane %v12502_v51, 1  ;;  %v12520_v59 = vpack.c.bf16 %v12502_v51, %v12494_v47 }
  0xfc   : > { %551 = vst.msk [vmem:[#allocation2 + $0xf9] sm:$0xff] %vm475_vm1, %v462_v41  ;;  %v12509_v56 = vld [vmem:[#allocation2 + $0x48] sm:$0xff]  ;;  %v12511_v57 = vld [vmem:[#allocation2 + $0x50] sm:$0xff]  ;;  %552 = vst.msk [vmem:[#allocation2 + $0x109] sm:$0xff] %vm475_vm1, %v463_v52  ;;  %v691_v60 = vsel %vm683_vm4, %v689_v46, %v690_v49  ;;  %v693_v61 = vsel %vm683_vm4, %v690_v49, %v692_v50  ;;  %v697_v62 = vrot.slane %v12505_v53, 1 }
  0xfd   : > { %15035 = vst [vmem:[#allocation29_spill] sm:$0xff] %v12516_v58  ;;  %15036 = vst [vmem:[#allocation30_spill] sm:$0xff] %v12520_v59  ;;  %v12525_v63 = vld [vmem:[#allocation2 + $0x58] sm:$0x3]  ;;  %v699_v0 = vrot.slane %v12509_v56, 1  ;;  %v12528_v1 = vld [vmem:[#allocation2 + $0x60] sm:$0xff]  ;;  %v12532_v5 = vpack.c.bf16 %v693_v61, %v691_v60  ;;  %v696_v6 = vsel %vm683_vm4, %v694_v54, %v695_v55 }
  0xfe   : > { %v12530_v4 = vld [vmem:[#allocation2 + $0x68] sm:$0xff]  ;;  %v700_v7 = vrot.slane %v12511_v57, 1  ;;  %v702_v9 = vrot.slane %v12525_v63, 1  ;;  %v12537_v10 = vld [vmem:[#allocation2 + $0x70] sm:$0x3]  ;;  %v12539_v11 = vld [vmem:[#allocation2 + $0x78] sm:$0xff]  ;;  %v698_v14 = vsel %vm683_vm4, %v695_v55, %v697_v62 }
  0xff   : > { %15037 = vst [vmem:[#allocation31_spill] sm:$0xff] %v12532_v5  ;;  %v704_v15 = vrot.slane %v12528_v1, 1  ;;  %v705_v16 = vrot.slane %v12530_v4, 1  ;;  %v707_v17 = vrot.slane %v12537_v10, 1  ;;  %v12545_v18 = vld [vmem:[#allocation2 + $0x80] sm:$0xff]  ;;  %10053 = vmatmul.mubr.msk.bf16.vlgmr.msra.gmra.mrb[0].mxu0 %vm475_vm1, %v12532_v5  ;;  %v12551_v20 = vpack.c.bf16 %v698_v14, %v696_v6  ;;  %v12553_v21 = vld [vmem:[#allocation2 + $0x90] sm:$0xff] }
 0x100   : > { %v12547_v19 = vld [vmem:[#allocation2 + $0x88] sm:$0x3]  ;;  %v12555_v22 = vld [vmem:[#allocation2 + $0x98] sm:$0xff]  ;;  %10085 = vmatpush3.bf16.msra.mxu0 %v12428_v8  ;;  %v701_v23 = vsel %vm683_vm4, %v699_v0, %v700_v7  ;;  %v703_v24 = vsel %vm683_vm4, %v700_v7, %v702_v9  ;;  %v709_v25 = vrot.slane %v12539_v11, 1  ;;  %v12561_v27 = vld [vmem:[#allocation2 + $0xa0] sm:$0x3] }
 0x101   : > { %15038 = vst [vmem:[#allocation32_spill] sm:$0xff] %v12551_v20  ;;  %v12563_v28 = vld [vmem:[#allocation2 + $0xa8] sm:$0xff]  ;;  %v12565_v29 = vld [vmem:[#allocation2 + $0xb0] sm:$0xff]  ;;  %10056 = vmatprep.mubr.msk.bf16.mxu0 %vm475_vm1, %v12551_v20  ;;  %v706_v30 = vsel %vm683_vm4, %v704_v15, %v705_v16  ;;  %v708_v31 = vsel %vm683_vm4, %v705_v16, %v707_v17  ;;  %v710_v8 = vrot.slane %v12545_v18, 1  ;;  %v712_v32 = vrot.slane %v12547_v19, 1  ;;  %v12575_v34 = vld [vmem:[#allocation2 + $0xc0] sm:$0xff] }
 0x102   : > { %v12573_v33 = vld [vmem:[#allocation2 + $0xb8] sm:$0x3]  ;;  %v12577_v35 = vld [vmem:[#allocation2 + $0xc8] sm:$0xff]  ;;  %v714_v36 = vrot.slane %v12553_v21, 1  ;;  %v715_v37 = vrot.slane %v12555_v22, 1  ;;  %v12585_v41 = vld [vmem:[#allocation2 + $0xe0] sm:$0xff]  ;;  %v12588_v49 = vpack.c.bf16 %v703_v24, %v701_v23  ;;  %v12598_v62 = vpack.c.bf16 %v708_v31, %v706_v30 }
 0x103   : > { %v12581_v38 = vld [vmem:[#allocation2 + $0xd0] sm:$0x3]  ;;  %v12583_v40 = vld [vmem:[#allocation2 + $0xd8] sm:$0xff]  ;;  %v717_v50 = vrot.slane %v12561_v27, 1  ;;  %v12591_v52 = vld [vmem:[#allocation2 + $0xe8] sm:$0x3]  ;;  %v711_v9 = vsel %vm683_vm4, %v709_v25, %v710_v8  ;;  %v713_v14 = vsel %vm683_vm4, %v710_v8, %v712_v32 }
 0x104   : > { %15039 = vst [vmem:[#allocation33_spill] sm:$0xff] %v12588_v49  ;;  %v12593_v54 = vld [vmem:[#allocation2 + $0xf0] sm:$0xff]  ;;  %v464_v55 = vld [vmem:[%s12423_s15 + $0xa8] sm:$0xff]  ;;  %15040 = vst [vmem:[#allocation34_spill] sm:$0xff] %v12598_v62  ;;  %v719_v15 = vrot.slane %v12563_v28, 1  ;;  %v720_v16 = vrot.slane %v12565_v29, 1  ;;  %v716_v30 = vsel %vm683_vm4, %v714_v36, %v715_v37 }
 0x105   : > { %v12600_v0 = vld [vmem:[#allocation2 + $0xf8] sm:$0xff]  ;;  %v12602_v6 = vld [vmem:[#allocation2 + $0x100] sm:$0x3]  ;;  %553 = vst.msk [vmem:[#allocation2 + $0x111] sm:$0xff] %vm475_vm1, %v464_v55  ;;  %v465_v7 = vld [vmem:[%s12423_s15 + $0xb0] sm:$0xff]  ;;  %v722_v31 = vrot.slane %v12573_v33, 1  ;;  %v718_v36 = vsel %vm683_vm4, %v715_v37, %v717_v50 }
 0x106   : > { %v466_v17 = vld [vmem:[%s12423_s15 + $0xb8] sm:$0xff]  ;;  %554 = vst.msk [vmem:[#allocation2 + $0x121] sm:$0xff] %vm475_vm1, %v465_v7  ;;  %v467_v23 = vld [vmem:[%s12423_s15 + $0xc0] sm:$0xff]  ;;  %v468_v24 = vld [vmem:[%s12423_s15 + $0xc8] sm:$0xff]  ;;  %v724_v55 = vrot.slane %v12575_v34, 1  ;;  %v725_v25 = vrot.slane %v12577_v35, 1  ;;  %v12649_v60 = vpack.c.bf16 %v718_v36, %v716_v30  ;;  %v12674_v30 = vpack.c.bf16 %v12565_v29, %v12563_v28 }
 0x107   : > { %555 = vst.msk [vmem:[#allocation2 + $0x129] sm:$0xff] %vm475_vm1, %v466_v17  ;;  %556 = vst.msk [vmem:[#allocation2 + $0x139] sm:$0xff] %vm475_vm1, %v467_v23  ;;  %v469_v8 = vld [vmem:[%s12423_s15 + $0xd0] sm:$0xff]  ;;  %v470_v32 = vld [vmem:[%s12423_s15 + $0xd8] sm:$0xff]  ;;  %10057 = vmatmul.mubr.msk.bf16.gmra.mrb[4].mxu0 %vm475_vm1, %v12588_v49  ;;  %v727_v2 = vrot.slane %v12581_v38, 1  ;;  %v729_v48 = vrot.slane %v12583_v40, 1  ;;  %v12657_v49 = vpack.c.bf16 %v12530_v4, %v12528_v1  ;;  %v12678_v36 = vpack.c.bf16 %v12577_v35, %v12575_v34 }
 0x108   : > { %557 = vst.msk [vmem:[#allocation2 + $0x141] sm:$0xff] %vm475_vm1, %v468_v24  ;;  %v471_v7 = vld [vmem:[%s12423_s15 + $0xe0] sm:$0xff]  ;;  %v730_v26 = vrot.slane %v12585_v41, 1  ;;  %v12630_v61 = vld [vmem:[#allocation2 + $0x108] sm:$0xff]  ;;  %558 = vst.msk [vmem:[#allocation2 + $0x151] sm:$0xff] %vm475_vm1, %v469_v8  ;;  %10060 = vmatprep.mubr.msk.bf16.mxu0 %vm475_vm1, %v12598_v62  ;;  %v732_v37 = vrot.slane %v12591_v52, 1  ;;  %v12643_v8 = vpack.c.bf16 %v713_v14, %v711_v9  ;;  %v12653_v62 = vpack.c.bf16 %v12511_v57, %v12509_v56 }
 0x109   : > { %559 = vst.msk [vmem:[#allocation2 + $0x159] sm:$0xff] %vm475_vm1, %v470_v32  ;;  %v472_v17 = vld [vmem:[%s12423_s15 + $0xe8] sm:$0xff]  ;;  %560 = vst.msk [vmem:[#allocation2 + $0x169] sm:$0xff] %vm475_vm1, %v471_v7  ;;  %v1372_v23 = vld [vmem:[#allocation6 + $0x4] sm:$0x3]  ;;  %v734_v50 = vrot.slane %v12593_v54, 1  ;;  %v721_v32 = vsel %vm683_vm4, %v719_v15, %v720_v16  ;;  %v12670_v15 = vpack.c.bf16 %v12555_v22, %v12553_v21  ;;  %v723_v20 = vsel %vm683_vm4, %v720_v16, %v722_v31 }
 0x10a   : > { %v735_v24 = vrot.slane %v12600_v0, 1  ;;  %v737_v46 = vrot.slane %v12602_v6, 1  ;;  %561 = vst.msk [vmem:[#allocation2 + $0x171] sm:$0xff] %vm475_vm1, %v472_v17  ;;  %15041 = vst [vmem:[#allocation35_spill] sm:$0xff] %v12643_v8  ;;  %v12647_v7 = vand.u32 %v1372_v23, %v12417_v3  ;;  %v12661_v17 = vpack.c.bf16 %v12545_v18, %v12539_v11 }
 0x10b   : > { %15043 = vst [vmem:[#allocation37_spill] sm:$0xff] %v12649_v60  ;;  %15044 = vst [vmem:[#allocation38_spill] sm:$0xff] %v12653_v62  ;;  %v12682_v23 = vpack.c.bf16 %v12585_v41, %v12583_v40  ;;  %v739_v5 = vrot.slane %v12630_v61, 1  ;;  %v12690_v43 = vpack.c.bf16 %v12600_v0, %v12593_v54  ;;  %v15054_v31 = vrot.slane %v12489_v44, 2 }
 0x10c   : > { %15042 = vst [vmem:[#allocation36_spill] sm:$0xff] %v12647_v7  ;;  %15045 = vst [vmem:[#allocation39_spill] sm:$0xff] %v12657_v49  ;;  %v12663_v9 = vld [vmem:[#allocation2 + $0x110] sm:$0xff]  ;;  %v12665_v14 = vld [vmem:[#allocation2 + $0x118] sm:$0x3]  ;;  %10118 = vmatprep.subr.bf16.mxu0 %v12647_v7  ;;  %v15055_v49 = vrot.slane %v12476_v39, 2  ;;  %v726_v7 = vsel %vm683_vm4, %v724_v55, %v725_v25  ;;  %v728_v58 = vsel %vm683_vm4, %v725_v25, %v727_v2 }
 0x10d   : > { %15046 = vst [vmem:[#allocation40_spill] sm:$0xff] %v12661_v17  ;;  %15047 = vst [vmem:[#allocation41_spill] sm:$0xff] %v12665_v14  ;;  %v12686_v42 = vld [vmem:[#allocation2 + $0x120] sm:$0xff]  ;;  %v15056_v62 = vrot.slane %v12491_v45, 2  ;;  %v731_v3 = vsel %vm683_vm4, %v729_v48, %v730_v26  ;;  %v733_v12 = vsel %vm683_vm4, %v730_v26, %v732_v37  ;;  %v736_v39 = vsel %vm683_vm4, %v734_v50, %v735_v24 }
 0x10e   : > { %15048 = vst [vmem:[#allocation42_spill] sm:$0xff] %v12670_v15  ;;  %15049 = vst [vmem:[#allocation43_spill] sm:$0xff] %v12674_v30  ;;  %v12694_v30 = vpack.c.bf16 %v12663_v9, %v12630_v61  ;;  %v742_v15 = vrot.slane %v12665_v14, 1  ;;  %v12698_v17 = vld [vmem:[#allocation2 + $0x128] sm:$0xff]  ;;  %v12702_v16 = vld [vmem:[#allocation2 + $0x138] sm:$0xff]  ;;  %v738_v44 = vsel %vm683_vm4, %v735_v24, %v737_v46  ;;  %v744_v45 = vrot.slane %v12686_v42, 1 }
 0x10f   : > { %15050 = vst [vmem:[#allocation44_spill] sm:$0xff] %v12678_v36  ;;  %15051 = vst [vmem:[#allocation45_spill] sm:$0xff] %v12682_v23  ;;  %v740_v36 = vrot.slane %v12663_v9, 1  ;;  %v12700_v23 = vld [vmem:[#allocation2 + $0x130] sm:$0x3]  ;;  %v12718_v13 = vld [vmem:[#allocation2 + $0x140] sm:$0xff]  ;;  %10061 = vmatmul.mubr.msk.bf16.gmra.mrb[8].mxu0 %vm475_vm1, %v12643_v8  ;;  %v12742_v24 = vpack.c.bf16 %v723_v20, %v721_v32 }
 0x110   : > { %15052 = vst [vmem:[#allocation46_spill] sm:$0xff] %v12690_v43  ;;  %15053 = vst [vmem:[#allocation47_spill] sm:$0xff] %v12694_v30  ;;  %v1250_v43 = vsel %vm1242_vm5, %v15055_v49, %v15054_v31  ;;  %v15057_v30 = vmov %v15054_v31  ;;  %v12720_v14 = vld [vmem:[#allocation2 + $0x148] sm:$0x3]  ;;  %v745_v49 = vrot.slane %v12698_v17, 1  ;;  %v12728_v2 = vld [vmem:[#allocation2 + $0x150] sm:$0xff]  ;;  %10064 = vmatprep.mubr.msk.bf16.mxu0 %vm475_vm1, %v12649_v60  ;;  %v12746_v31 = vpack.c.bf16 %v733_v12, %v731_v3 }
 0x111   : > { %v1252_v59 = vsel %vm1242_vm5, %v15057_v30, %v15056_v62  ;;  %v747_v26 = vrot.slane %v12700_v23, 1  ;;  %v12736_v25 = vld [vmem:[#allocation2 + $0x158] sm:$0xff]  ;;  %v741_v46 = vsel %vm683_vm4, %v739_v5, %v740_v36  ;;  %v743_v37 = vsel %vm683_vm4, %v740_v36, %v742_v15  ;;  %v12740_v50 = vld [vmem:[#allocation2 + $0x160] sm:$0x3]  ;;  %v12749_v60 = vld [vmem:[#allocation2 + $0x168] sm:$0xff] }
 0x112   : > { %v12744_v30 = vpack.c.bf16 %v728_v58, %v726_v7  ;;  %v754_v48 = vrot.slane %v12728_v2, 1  ;;  %v12751_v62 = vpack.c.bf16 %v738_v44, %v736_v39  ;;  %v755_v55 = vrot.slane %v12736_v25, 1  ;;  %v12754_v8 = vld [vmem:[#allocation2 + $0x170] sm:$0xff] }
 0x113   : > { %v12758_v5 = vpack.c.bf16 %v12698_v17, %v12686_v42  ;;  %v12762_v58 = vpack.c.bf16 %v12718_v13, %v12702_v16  ;;  %v12764_v3 = vpack.c.bf16 %v743_v37, %v741_v46  ;;  %v12767_v12 = vsel %vm683_vm4, %v744_v45, %v745_v49 }
 0x114   : > { %v12771_v20 = vpack.c.bf16 %v12736_v25, %v12728_v2  ;;  %v12775_v32 = vpack.c.bf16 %v12754_v8, %v12749_v60  ;;  %v12778_v7 = vsel %vm683_vm4, %v745_v49, %v747_v26  ;;  %v12780_v15 = vpack.c.bf16 %v1252_v59, %v1250_v43 }
 0x115   : > { %v1253_v36 = vrot.slane %v12494_v47, 2  ;;  %v1254_v39 = vrot.slane %v12502_v51, 2  ;;  %v1256_v45 = vrot.slane %v12505_v53, 2  ;;  %v1258_v46 = vrot.slane %v12509_v56, 2 }
 0x116   : > { %v1259_v37 = vrot.slane %v12511_v57, 2  ;;  %v1261_v43 = vrot.slane %v12525_v63, 2  ;;  %v1263_v59 = vrot.slane %v12528_v1, 2  ;;  %v1264_v47 = vrot.slane %v12530_v4, 2 }
 0x117   : > { %10065 = vmatmul.mubr.msk.bf16.gmra.mrb[12].mxu0 %vm475_vm1, %v12742_v24  ;;  %v1255_v49 = vsel %vm1242_vm5, %v1253_v36, %v1254_v39  ;;  %v1257_v51 = vsel %vm1242_vm5, %v1254_v39, %v1256_v45  ;;  %v1266_v56 = vrot.slane %v12537_v10, 2  ;;  %v1268_v57 = vrot.slane %v12539_v11, 2 }
 0x118   : > { %10068 = vmatprep.mubr.msk.bf16.mxu0 %vm475_vm1, %v12744_v30  ;;  %v1260_v53 = vsel %vm1242_vm5, %v1258_v46, %v1259_v37  ;;  %v12800_v26 = vpack.c.bf16 %v1257_v51, %v1255_v49  ;;  %v1262_v36 = vsel %vm1242_vm5, %v1259_v37, %v1261_v43  ;;  %v1265_v63 = vsel %vm1242_vm5, %v1263_v59, %v1264_v47 }
 0x119   : > { %v1269_v1 = vrot.slane %v12545_v18, 2  ;;  %v12805_v4 = vpack.c.bf16 %v1262_v36, %v1260_v53  ;;  %v1267_v44 = vsel %vm1242_vm5, %v1264_v47, %v1266_v56  ;;  %v1271_v39 = vrot.slane %v12547_v19, 2 }
 0x11a   : > { %v1273_v45 = vrot.slane %v12553_v21, 2  ;;  %v12810_v46 = vpack.c.bf16 %v1267_v44, %v1265_v63  ;;  %v1274_v11 = vrot.slane %v12555_v22, 2  ;;  %v1276_v37 = vrot.slane %v12561_v27, 2 }
 0x11b   : > { %v1270_v10 = vsel %vm1242_vm5, %v1268_v57, %v1269_v1  ;;  %v1272_v49 = vsel %vm1242_vm5, %v1269_v1, %v1271_v39  ;;  %v1278_v18 = vrot.slane %v12563_v28, 2  ;;  %v1279_v43 = vrot.slane %v12565_v29, 2 }
 0x11c   : > { %v1281_v59 = vrot.slane %v12573_v33, 2  ;;  %v12819_v47 = vpack.c.bf16 %v1272_v49, %v1270_v10  ;;  %v1275_v19 = vsel %vm1242_vm5, %v1273_v45, %v1274_v11  ;;  %v1277_v21 = vsel %vm1242_vm5, %v1274_v11, %v1276_v37  ;;  %v611_v10 = vld [vmem:[#allocation2 + $0x178] sm:$0x3]  ;;  %v15058_v37 = vld [vmem:[#allocation41_spill] sm:$0xff] }
 0x11d   : > { %v1283_v44 = vrot.slane %v12575_v34, 2  ;;  %v12824_v51 = vpack.c.bf16 %v1277_v21, %v1275_v19  ;;  %v1280_v22 = vsel %vm1242_vm5, %v1278_v18, %v1279_v43  ;;  %v1284_v28 = vrot.slane %v12577_v35, 2 }
 0x11e   : > { %v1282_v27 = vsel %vm1242_vm5, %v1279_v43, %v1281_v59  ;;  %v1286_v33 = vrot.slane %v12581_v38, 2  ;;  %v1288_v53 = vrot.slane %v12583_v40, 2  ;;  %v1289_v56 = vrot.slane %v12585_v41, 2 }
 0x11f   : > { %10069 = vmatmul.mubr.msk.bf16.gmra.mrb[16].mxu0 %vm475_vm1, %v12746_v31  ;;  %v12831_v29 = vpack.c.bf16 %v1282_v27, %v1280_v22  ;;  %v1285_v34 = vsel %vm1242_vm5, %v1283_v44, %v1284_v28  ;;  %v1291_v57 = vrot.slane %v12591_v52, 2  ;;  %v1293_v35 = vrot.slane %v12593_v54, 2 }
 0x120   : > { %10072 = vmatprep.mubr.msk.bf16.mxu0 %vm475_vm1, %v12751_v62  ;;  %v1294_v36 = vrot.slane %v12600_v0, 2  ;;  %v1287_v63 = vsel %vm1242_vm5, %v1284_v28, %v1286_v33  ;;  %v1290_v1 = vsel %vm1242_vm5, %v1288_v53, %v1289_v56  ;;  %v1296_v38 = vrot.slane %v12602_v6, 2 }
 0x121   : > { %v1298_v40 = vrot.slane %v12630_v61, 2  ;;  %v12846_v41 = vpack.c.bf16 %v1287_v63, %v1285_v34  ;;  %v1292_v39 = vsel %vm1242_vm5, %v1289_v56, %v1291_v57  ;;  %v1299_v52 = vrot.slane %v12663_v9, 2 }
 0x122   : > { %v1295_v45 = vsel %vm1242_vm5, %v1293_v35, %v1294_v36  ;;  %v759_v54 = vrot.slane %v12749_v60, 1  ;;  %v12852_v0 = vpack.c.bf16 %v1292_v39, %v1290_v1  ;;  %v1297_v11 = vsel %vm1242_vm5, %v1294_v36, %v1296_v38 }
 0x123   : > { %v1301_v49 = vrot.slane %v15058_v37, 2  ;;  %v12858_v61 = vpack.c.bf16 %v12778_v7, %v12767_v12  ;;  %v12860_v6 = vpack.c.bf16 %v1297_v11, %v1295_v45  ;;  %v1300_v18 = vsel %vm1242_vm5, %v1298_v40, %v1299_v52 }
 0x124   : > { %v15059_v9 = vrot.slane %v12718_v13, 1  ;;  %v15060_v59 = vrot.slane %v12702_v16, 1  ;;  %v15061_v21 = vrot.slane %v12720_v14, 1  ;;  %v760_v7 = vrot.slane %v12754_v8, 1 }
 0x125   : > { %v1302_v43 = vsel %vm1242_vm5, %v1299_v52, %v1301_v49  ;;  %v1303_v27 = vrot.slane %v12686_v42, 2  ;;  %v1304_v28 = vrot.slane %v12698_v17, 2  ;;  %v1306_v33 = vrot.slane %v12700_v23, 2 }
 0x126   : > { %v751_v19 = vsel %vm683_vm4, %v15060_v59, %v15059_v9  ;;  %v15062_v44 = vmov %v15059_v9  ;;  %v12874_v12 = vpack.c.bf16 %v1302_v43, %v1300_v18  ;;  %v762_v53 = vrot.slane %v611_v10, 1  ;;  %v1619_v9 = vld [vmem:[#allocation6 + $0x6] sm:$0x3]  ;;  %v15067_v59 = vld [vmem:[#allocation24_spill] sm:$0xff] }
 0x127   : > { %v753_v22 = vsel %vm683_vm4, %v15062_v44, %v15061_v21  ;;  %10073 = vmatmul.mubr.msk.bf16.gmra.mrb[20].mxu0 %vm475_vm1, %v12764_v3  ;;  %v1308_v56 = vrot.slane %v12702_v16, 2  ;;  %v1309_v34 = vrot.slane %v12718_v13, 2  ;;  %v1311_v57 = vrot.slane %v12720_v14, 2  ;;  %v15068_v21 = vld [vmem:[#allocation29_spill] sm:$0xff]  ;;  %v15069_v44 = vld [vmem:[#allocation36_spill] sm:$0xff] }
 0x128   : > { %10076 = vmatprep.mubr.msk.bf16.mxu0 %vm475_vm1, %v12858_v61  ;;  %v756_v42 = vsel %vm683_vm4, %v754_v48, %v755_v55  ;;  %v15063_v17 = vrot.slane %v12740_v50, 1  ;;  %v1305_v35 = vsel %vm1242_vm5, %v1303_v27, %v1304_v28  ;;  %v1307_v16 = vsel %vm1242_vm5, %v1304_v28, %v1306_v33  ;;  %v15072_v27 = vld [vmem:[#allocation39_spill] sm:$0xff]  ;;  %v15073_v28 = vld [vmem:[#allocation40_spill] sm:$0xff]  ;;  %v15074_v33 = vld [vmem:[#allocation42_spill] sm:$0xff] }
 0x129   : > { %v12899_v36 = vpack.c.bf16 %v1307_v16, %v1305_v35  ;;  %v1310_v13 = vsel %vm1242_vm5, %v1308_v56, %v1309_v34  ;;  %v1312_v14 = vsel %vm1242_vm5, %v1309_v34, %v1311_v57  ;;  %v12903_v63 = vpack.c.bf16 %v753_v22, %v751_v19  ;;  %v15070_v22 = vld [vmem:[#allocation30_spill] sm:$0xff]  ;;  %v15076_v56 = vld [vmem:[#allocation44_spill] sm:$0xff]  ;;  %v15077_v34 = vld [vmem:[#allocation45_spill] sm:$0xff] }
 0x12a   : > { %v758_v23 = vsel %vm683_vm4, %v755_v55, %v15063_v17  ;;  %v12905_v1 = vpack.c.bf16 %v1312_v14, %v1310_v13  ;;  %v761_v55 = vsel %vm683_vm4, %v759_v54, %v760_v7  ;;  %v1313_v38 = vrot.slane %v12728_v2, 2  ;;  %v15078_v57 = vld [vmem:[#allocation46_spill] sm:$0xff]  ;;  %v15080_v35 = vld [vmem:[#allocation28_spill] sm:$0xff]  ;;  %v15081_v16 = vld [vmem:[#allocation27_spill] sm:$0xff] }
 0x12b   : > { %v12907_v48 = vpack.c.bf16 %v758_v23, %v756_v42  ;;  %v1314_v40 = vrot.slane %v12736_v25, 2  ;;  %v1316_v39 = vrot.slane %v12740_v50, 2  ;;  %v763_v45 = vsel %vm683_vm4, %v760_v7, %v762_v53  ;;  %v15071_v7 = vld [vmem:[#allocation38_spill] sm:$0xff]  ;;  %v15075_v53 = vld [vmem:[#allocation43_spill] sm:$0xff]  ;;  %v1831_v14 = vld [vmem:[#allocation6 + $0x8] sm:$0x3] }
 0x12c   : > { %v1318_v52 = vrot.slane %v12749_v60, 2  ;;  %v1319_v11 = vrot.slane %v12754_v8, 2  ;;  %v1321_v37 = vrot.slane %v611_v10, 2  ;;  %v12926_v50 = vpack.c.bf16 %v763_v45, %v761_v55  ;;  %v15064_v60 = vld [vmem:[#allocation26_spill] sm:$0xff]  ;;  %v15065_v8 = vld [vmem:[#allocation25_spill] sm:$0xff]  ;;  %v15079_v42 = vld [vmem:[#allocation47_spill] sm:$0xff] }
 0x12d   : > { %v1315_v49 = vsel %vm1242_vm5, %v1313_v38, %v1314_v40  ;;  %v1317_v54 = vsel %vm1242_vm5, %v1314_v40, %v1316_v39  ;;  %v15066_v10 = vpack.c.bf16 %v15064_v60, %v15065_v8  ;;  %v1624_v19 = vand.u32 %v1619_v9, %v15067_v59  ;;  %v473_v17 = vld [vmem:[%s12423_s15 + $0xf0] sm:$0xff]  ;;  %v474_v23 = vld [vmem:[%s12423_s15 + $0xf8] sm:$0xff]  ;;  %v2040_v38 = vld [vmem:[#allocation6 + $0xa] sm:$0x3] }
 0x12e   : > { %v12922_v18 = vpack.c.bf16 %v1317_v54, %v1315_v49  ;;  %v1320_v2 = vsel %vm1242_vm5, %v1318_v52, %v1319_v11  ;;  %v1322_v25 = vsel %vm1242_vm5, %v1319_v11, %v1321_v37  ;;  %562 = vst.msk [vmem:[#allocation2 + $0x181] sm:$0xff] %vm475_vm1, %v473_v17  ;;  %563 = vst.msk [vmem:[#allocation2 + $0x189] sm:$0xff] %vm475_vm1, %v474_v23  ;;  %v15083_v8 = vld [vmem:[#allocation31_spill] sm:$0xff]  ;;  %v15088_v23 = vld [vmem:[#allocation37_spill] sm:$0xff] }
 0x12f   : > { %10077 = vmatmul.mubr.msk.bf16.gmra.mrb[24].mxu0 %vm475_vm1, %v12903_v63  ;;  %v12928_v43 = vpack.c.bf16 %v1322_v25, %v1320_v2  ;;  %v15082_v13 = vpack.c.bf16 %v15080_v35, %v15081_v16  ;;  %v1836_v55 = vand.u32 %v1831_v14, %v15067_v59  ;;  %v2045_v40 = vand.u32 %v2040_v38, %v15067_v59  ;;  %v15087_v17 = vld [vmem:[#allocation35_spill] sm:$0xff] }
 0x130   : > { %10080 = vmatprep.mubr.msk.bf16.mxu0 %vm475_vm1, %v12907_v48 }
 0x135   : > { %v612_v39 = vld [vmem:[#allocation2 + $0x180] sm:$0xff]  ;;  %v613_v45 = vld [vmem:[#allocation2 + $0x188] sm:$0xff]  ;;  %v614_v37 = vld [vmem:[#allocation2 + $0x190] sm:$0x3] }
 0x136   : > { %v2031_v52 = vrot.slane %v612_v39, 2  ;;  %v2032_v11 = vrot.slane %v613_v45, 2  ;;  %v2034_v54 = vrot.slane %v614_v37, 2  ;;  %v13040_v25 = vpack.c.bf16 %v613_v45, %v612_v39 }
 0x137   : > { %10081 = vmatmul.mubr.msk.bf16.gmra.mrb[28].mxu0 %vm475_vm1, %v12926_v50  ;;  %v1822_v35 = vrot.slane %v612_v39, 1  ;;  %v1823_v16 = vrot.slane %v613_v45, 1 }
 0x138   : > { %10086 = vmatprep.mubr.msk.bf16.mxu0 %vm475_vm1, %v15066_v10  ;;  %v2033_v49 = vsel %vm1242_vm5, %v2031_v52, %v2032_v11  ;;  %v2035_v2 = vsel %vm1242_vm5, %v2032_v11, %v2034_v54  ;;  %v2242_v10 = vld [vmem:[#allocation6 + $0xc] sm:$0x3] }
 0x139   : > { %v13042_v60 = vpack.c.bf16 %v2035_v2, %v2033_v49  ;;  %v2247_v9 = vand.u32 %v2242_v10, %v15067_v59  ;;  %v1824_v14 = vsel %vm683_vm4, %v1822_v35, %v1823_v16 }
 0x13f   : > { %10087 = vmatmul.mubr.msk.bf16.vlgmr.msra.gmra.mrb[0].mxu0 %vm475_vm1, %v15068_v21 }
 0x140   : > { %10119 = vmatpush3.bf16.msra.mxu0 %v15069_v44  ;;  %10090 = vmatprep.mubr.msk.bf16.mxu0 %vm475_vm1, %v15070_v22  ;;  %v15086_v44 = vld [vmem:[#allocation34_spill] sm:$0xff] }
 0x141   : > { %10152 = vmatprep.subr.bf16.mxu0 %v1624_v19 }
 0x147   : > { %10091 = vmatmul.mubr.msk.bf16.gmra.mrb[4].mxu0 %vm475_vm1, %v15071_v7 }
 0x148   : > { %10094 = vmatprep.mubr.msk.bf16.mxu0 %vm475_vm1, %v15072_v27 }
 0x14f   : > { %10095 = vmatmul.mubr.msk.bf16.gmra.mrb[8].mxu0 %vm475_vm1, %v15073_v28 }
 0x150   : > { %10098 = vmatprep.mubr.msk.bf16.mxu0 %vm475_vm1, %v15074_v33 }
 0x157   : > { %10099 = vmatmul.mubr.msk.bf16.gmra.mrb[12].mxu0 %vm475_vm1, %v15075_v53 }
 0x158   : > { %10102 = vmatprep.mubr.msk.bf16.mxu0 %vm475_vm1, %v15076_v56 }
 0x15f   : > { %10103 = vmatmul.mubr.msk.bf16.gmra.mrb[16].mxu0 %vm475_vm1, %v15077_v34 }
 0x160   : > { %10106 = vmatprep.mubr.msk.bf16.mxu0 %vm475_vm1, %v15078_v57 }
 0x167   : > { %10107 = vmatmul.mubr.msk.bf16.gmra.mrb[20].mxu0 %vm475_vm1, %v15079_v42 }
 0x168   : > { %10110 = vmatprep.mubr.msk.bf16.mxu0 %vm475_vm1, %v12758_v5 }
 0x16f   : > { %10111 = vmatmul.mubr.msk.bf16.gmra.mrb[24].mxu0 %vm475_vm1, %v12762_v58 }
 0x170   : > { %10114 = vmatprep.mubr.msk.bf16.mxu0 %vm475_vm1, %v12771_v20 }
 0x177   : > { %10115 = vmatmul.mubr.msk.bf16.gmra.mrb[28].mxu0 %vm475_vm1, %v12775_v32 }
 0x178   : > { %10120 = vmatprep.mubr.msk.bf16.mxu0 %vm475_vm1, %v15082_v13  ;;  %v1825_v13 = vrot.slane %v614_v37, 1 }
 0x17f   : > { %10121 = vmatmul.mubr.msk.bf16.vlgmr.msra.gmra.mrb[0].mxu0 %vm475_vm1, %v12780_v15 }
 0x180   : > { %10153 = vmatpush3.bf16.msra.mxu0 %v1624_v19  ;;  %10124 = vmatprep.mubr.msk.bf16.mxu0 %vm475_vm1, %v12800_v26  ;;  %v15084_v19 = vld [vmem:[#allocation32_spill] sm:$0xff] }
 0x181   : > { %10186 = vmatprep.subr.bf16.mxu0 %v1836_v55 }
 0x187   : > { %10125 = vmatmul.mubr.msk.bf16.gmra.mrb[4].mxu0 %vm475_vm1, %v12805_v4 }
 0x188   : > { %10128 = vmatprep.mubr.msk.bf16.mxu0 %vm475_vm1, %v12810_v46 }
 0x18f   : > { %10129 = vmatmul.mubr.msk.bf16.gmra.mrb[8].mxu0 %vm475_vm1, %v12819_v47 }
 0x190   : > { %10132 = vmatprep.mubr.msk.bf16.mxu0 %vm475_vm1, %v12824_v51 }
 0x197   : > { %10133 = vmatmul.mubr.msk.bf16.gmra.mrb[12].mxu0 %vm475_vm1, %v12831_v29 }
 0x198   : > { %10136 = vmatprep.mubr.msk.bf16.mxu0 %vm475_vm1, %v12846_v41 }
 0x19f   : > { %10137 = vmatmul.mubr.msk.bf16.gmra.mrb[16].mxu0 %vm475_vm1, %v12852_v0 }
 0x1a0   : > { %10140 = vmatprep.mubr.msk.bf16.mxu0 %vm475_vm1, %v12860_v6 }
 0x1a7   : > { %10141 = vmatmul.mubr.msk.bf16.gmra.mrb[20].mxu0 %vm475_vm1, %v12874_v12 }
 0x1a8   : > { %10144 = vmatprep.mubr.msk.bf16.mxu0 %vm475_vm1, %v12899_v36 }
 0x1af   : > { %10145 = vmatmul.mubr.msk.bf16.gmra.mrb[24].mxu0 %vm475_vm1, %v12905_v1 }
 0x1b0   : > { %10148 = vmatprep.mubr.msk.bf16.mxu0 %vm475_vm1, %v12922_v18 }
 0x1b7   : > { %10149 = vmatmul.mubr.msk.bf16.gmra.mrb[28].mxu0 %vm475_vm1, %v12928_v43 }
 0x1b8   : > { %10154 = vmatprep.mubr.msk.bf16.mxu0 %vm475_vm1, %v15068_v21  ;;  %v15085_v21 = vld [vmem:[#allocation33_spill] sm:$0xff] }
 0x1bf   : > { %10155 = vmatmul.mubr.msk.bf16.vlgmr.msra.gmra.mrb[0].mxu0 %vm475_vm1, %v15070_v22 }
 0x1c0   : > { %10187 = vmatpush3.bf16.msra.mxu0 %v1836_v55  ;;  %10158 = vmatprep.mubr.msk.bf16.mxu0 %vm475_vm1, %v15071_v7  ;;  %v1826_v55 = vsel %vm683_vm4, %v1823_v16, %v1825_v13 }
 0x1c1   : > { %10220 = vmatprep.subr.bf16.mxu0 %v2045_v40  ;;  %v13079_v38 = vpack.c.bf16 %v1826_v55, %v1824_v14 }
 0x1c7   : > { %10159 = vmatmul.mubr.msk.bf16.gmra.mrb[4].mxu0 %vm475_vm1, %v15072_v27 }
 0x1c8   : > { %10162 = vmatprep.mubr.msk.bf16.mxu0 %vm475_vm1, %v15073_v28 }
 0x1cf   : > { %10163 = vmatmul.mubr.msk.bf16.gmra.mrb[8].mxu0 %vm475_vm1, %v15074_v33 }
 0x1d0   : > { %10166 = vmatprep.mubr.msk.bf16.mxu0 %vm475_vm1, %v15075_v53 }
 0x1d7   : > { %10167 = vmatmul.mubr.msk.bf16.gmra.mrb[12].mxu0 %vm475_vm1, %v15076_v56 }
 0x1d8   : > { %10170 = vmatprep.mubr.msk.bf16.mxu0 %vm475_vm1, %v15077_v34 }
 0x1df   : > { %10171 = vmatmul.mubr.msk.bf16.gmra.mrb[16].mxu0 %vm475_vm1, %v15078_v57 }
 0x1e0   : > { %10174 = vmatprep.mubr.msk.bf16.mxu0 %vm475_vm1, %v15079_v42 }
 0x1e7   : > { %10175 = vmatmul.mubr.msk.bf16.gmra.mrb[20].mxu0 %vm475_vm1, %v12758_v5 }
 0x1e8   : > { %10178 = vmatprep.mubr.msk.bf16.mxu0 %vm475_vm1, %v12762_v58 }
 0x1ef   : > { %10179 = vmatmul.mubr.msk.bf16.gmra.mrb[24].mxu0 %vm475_vm1, %v12771_v20 }
 0x1f0   : > { %10182 = vmatprep.mubr.msk.bf16.mxu0 %vm475_vm1, %v12775_v32 }
 0x1f7   : > { %10183 = vmatmul.mubr.msk.bf16.gmra.mrb[28].mxu0 %vm475_vm1, %v13040_v25 }
 0x1f8   : > { %10188 = vmatprep.mubr.msk.bf16.mxu0 %vm475_vm1, %v15083_v8 }
 0x1ff   : > { %10189 = vmatmul.mubr.msk.bf16.vlgmr.msra.gmra.mrb[0].mxu0 %vm475_vm1, %v15084_v19 }
 0x200   : > { %10221 = vmatpush3.bf16.msra.mxu0 %v2045_v40  ;;  %10192 = vmatprep.mubr.msk.bf16.mxu0 %vm475_vm1, %v15085_v21  ;;  %v2454_v40 = vld [vmem:[#allocation6 + $0xe] sm:$0x3] }
 0x201   : > { %10254 = vmatprep.subr.bf16.mxu0 %v2247_v9  ;;  %v2459_v39 = vand.u32 %v2454_v40, %v15067_v59 }
 0x207   : > { %10193 = vmatmul.mubr.msk.bf16.gmra.mrb[4].mxu0 %vm475_vm1, %v15086_v44 }
 0x208   : > { %10196 = vmatprep.mubr.msk.bf16.mxu0 %vm475_vm1, %v15087_v17 }
 0x20f   : > { %10197 = vmatmul.mubr.msk.bf16.gmra.mrb[8].mxu0 %vm475_vm1, %v15088_v23 }
 0x210   : > { %10200 = vmatprep.mubr.msk.bf16.mxu0 %vm475_vm1, %v12742_v24 }
 0x217   : > { %10201 = vmatmul.mubr.msk.bf16.gmra.mrb[12].mxu0 %vm475_vm1, %v12744_v30 }
 0x218   : > { %10204 = vmatprep.mubr.msk.bf16.mxu0 %vm475_vm1, %v12746_v31 }
 0x21f   : > { %10205 = vmatmul.mubr.msk.bf16.gmra.mrb[16].mxu0 %vm475_vm1, %v12751_v62 }
 0x220   : > { %10208 = vmatprep.mubr.msk.bf16.mxu0 %vm475_vm1, %v12764_v3 }
 0x227   : > { %10209 = vmatmul.mubr.msk.bf16.gmra.mrb[20].mxu0 %vm475_vm1, %v12858_v61 }
 0x228   : > { %10212 = vmatprep.mubr.msk.bf16.mxu0 %vm475_vm1, %v12903_v63 }
 0x22f   : > { %10213 = vmatmul.mubr.msk.bf16.gmra.mrb[24].mxu0 %vm475_vm1, %v12907_v48 }
 0x230   : > { %10216 = vmatprep.mubr.msk.bf16.mxu0 %vm475_vm1, %v12926_v50 }
 0x237   : > { %10217 = vmatmul.mubr.msk.bf16.gmra.mrb[28].mxu0 %vm475_vm1, %v13079_v38 }
 0x238   : > { %10222 = vmatprep.mubr.msk.bf16.mxu0 %vm475_vm1, %v12780_v15  ;;  %v2663_v15 = vld [vmem:[#allocation6 + $0x10] sm:$0x3] }
 0x239   : > { %v2668_v45 = vand.u32 %v2663_v15, %v15067_v59  ;;  %v615_v59 = vld [vmem:[#allocation2 + $0x198] sm:$0xff] }
 0x23f   : > { %10223 = vmatmul.mubr.msk.bf16.vlgmr.msra.gmra.mrb[0].mxu0 %vm475_vm1, %v12800_v26 }
 0x240   : > { %10255 = vmatpush3.bf16.msra.mxu0 %v2247_v9  ;;  %10226 = vmatprep.mubr.msk.bf16.mxu0 %vm475_vm1, %v12805_v4 }
 0x241   : > { %10288 = vmatprep.subr.bf16.mxu0 %v2459_v39 }
 0x247   : > { %10227 = vmatmul.mubr.msk.bf16.gmra.mrb[4].mxu0 %vm475_vm1, %v12810_v46 }
 0x248   : > { %10230 = vmatprep.mubr.msk.bf16.mxu0 %vm475_vm1, %v12819_v47 }
 0x24f   : > { %10231 = vmatmul.mubr.msk.bf16.gmra.mrb[8].mxu0 %vm475_vm1, %v12824_v51 }
 0x250   : > { %10234 = vmatprep.mubr.msk.bf16.mxu0 %vm475_vm1, %v12831_v29 }
 0x257   : > { %10235 = vmatmul.mubr.msk.bf16.gmra.mrb[12].mxu0 %vm475_vm1, %v12846_v41 }
 0x258   : > { %10238 = vmatprep.mubr.msk.bf16.mxu0 %vm475_vm1, %v12852_v0 }
 0x25f   : > { %10239 = vmatmul.mubr.msk.bf16.gmra.mrb[16].mxu0 %vm475_vm1, %v12860_v6 }
 0x260   : > { %10242 = vmatprep.mubr.msk.bf16.mxu0 %vm475_vm1, %v12874_v12 }
 0x267   : > { %10243 = vmatmul.mubr.msk.bf16.gmra.mrb[20].mxu0 %vm475_vm1, %v12899_v36 }
 0x268   : > { %10246 = vmatprep.mubr.msk.bf16.mxu0 %vm475_vm1, %v12905_v1 }
 0x26f   : > { %10247 = vmatmul.mubr.msk.bf16.gmra.mrb[24].mxu0 %vm475_vm1, %v12922_v18 }
 0x270   : > { %10250 = vmatprep.mubr.msk.bf16.mxu0 %vm475_vm1, %v12928_v43 }
 0x277   : > { %10251 = vmatmul.mubr.msk.bf16.gmra.mrb[28].mxu0 %vm475_vm1, %v13042_v60 }
 0x278   : > { %10256 = vmatprep.mubr.msk.bf16.mxu0 %vm475_vm1, %v15070_v22  ;;  %v616_v22 = vld [vmem:[#allocation2 + $0x1a0] sm:$0xff] }
 0x27f   : > { %10257 = vmatmul.mubr.msk.bf16.vlgmr.msra.gmra.mrb[0].mxu0 %vm475_vm1, %v15071_v7  ;;  %v2654_v7 = vrot.slane %v615_v59, 2 }
 0x280   : > { %10289 = vmatpush3.bf16.msra.mxu0 %v2459_v39  ;;  %10260 = vmatprep.mubr.msk.bf16.mxu0 %vm475_vm1, %v15072_v27  ;;  %v2655_v27 = vrot.slane %v616_v22, 2 }
 0x281   : > { %10322 = vmatprep.subr.bf16.mxu0 %v2668_v45 }
 0x287   : > { %10261 = vmatmul.mubr.msk.bf16.gmra.mrb[4].mxu0 %vm475_vm1, %v15073_v28  ;;  %v617_v28 = vld [vmem:[#allocation2 + $0x1a8] sm:$0x3] }
 0x288   : > { %10264 = vmatprep.mubr.msk.bf16.mxu0 %vm475_vm1, %v15074_v33  ;;  %v2656_v33 = vsel %vm1242_vm5, %v2654_v7, %v2655_v27 }
 0x28f   : > { %10265 = vmatmul.mubr.msk.bf16.gmra.mrb[8].mxu0 %vm475_vm1, %v15075_v53 }
 0x290   : > { %10268 = vmatprep.mubr.msk.bf16.mxu0 %vm475_vm1, %v15076_v56 }
 0x297   : > { %10269 = vmatmul.mubr.msk.bf16.gmra.mrb[12].mxu0 %vm475_vm1, %v15077_v34 }
 0x298   : > { %10272 = vmatprep.mubr.msk.bf16.mxu0 %vm475_vm1, %v15078_v57 }
 0x29f   : > { %10273 = vmatmul.mubr.msk.bf16.gmra.mrb[16].mxu0 %vm475_vm1, %v15079_v42 }
 0x2a0   : > { %10276 = vmatprep.mubr.msk.bf16.mxu0 %vm475_vm1, %v12758_v5  ;;  %v2657_v5 = vrot.slane %v617_v28, 2 }
 0x2a2   : > { %v2658_v53 = vsel %vm1242_vm5, %v2655_v27, %v2657_v5 }
 0x2a3   : > { %v2661_v56 = vpack.c.bf16 %v2658_v53, %v2656_v33 }
 0x2a7   : > { %10277 = vmatmul.mubr.msk.bf16.gmra.mrb[20].mxu0 %vm475_vm1, %v12762_v58  ;;  %v2240_v58 = vpack.c.bf16 %v616_v22, %v615_v59 }
 0x2a8   : > { %10280 = vmatprep.mubr.msk.bf16.mxu0 %vm475_vm1, %v12771_v20  ;;  %v2448_v20 = vrot.slane %v617_v28, 1 }
 0x2af   : > { %10281 = vmatmul.mubr.msk.bf16.gmra.mrb[24].mxu0 %vm475_vm1, %v12775_v32  ;;  %v15089_v32 = vmov 0.0  }
 0x2b0   : > { %10284 = vmatprep.mubr.msk.bf16.mxu0 %vm475_vm1, %v13040_v25  ;;  %2942 = vst.msk [vmem:[#allocation3 + $0x30] sm:$0xff] %vm2934_vm6, %v15089_v32  ;;  %2943 = vst.msk [vmem:[#allocation3 + $0x38] sm:$0xff] %vm2934_vm6, %v15089_v32 }
 0x2b1   : > { %2935 = vst.msk [vmem:[#allocation3] sm:$0xff] %vm2934_vm6, %v15089_v32  ;;  %2936 = vst.msk [vmem:[#allocation3 + $0x8] sm:$0xff] %vm2934_vm6, %v15089_v32 }
 0x2b2   : > { %2939 = vst.msk [vmem:[#allocation3 + $0x18] sm:$0xff] %vm2934_vm6, %v15089_v32  ;;  %2940 = vst.msk [vmem:[#allocation3 + $0x20] sm:$0xff] %vm2934_vm6, %v15089_v32 }
 0x2b3   : > { %2945 = vst.msk [vmem:[#allocation3 + $0x48] sm:$0xff] %vm2934_vm6, %v15089_v32  ;;  %2946 = vst.msk [vmem:[#allocation3 + $0x50] sm:$0xff] %vm2934_vm6, %v15089_v32 }
 0x2b4   : > { %2948 = vst.msk [vmem:[#allocation3 + $0x60] sm:$0xff] %vm2934_vm6, %v15089_v32  ;;  %2949 = vst.msk [vmem:[#allocation3 + $0x68] sm:$0xff] %vm2934_vm6, %v15089_v32 }
 0x2b5   : > { %2951 = vst.msk [vmem:[#allocation3 + $0x78] sm:$0xff] %vm2934_vm6, %v15089_v32  ;;  %2952 = vst.msk [vmem:[#allocation3 + $0x80] sm:$0xff] %vm2934_vm6, %v15089_v32 }
 0x2b6   : > { %2954 = vst.msk [vmem:[#allocation3 + $0x90] sm:$0xff] %vm2934_vm6, %v15089_v32  ;;  %2955 = vst.msk [vmem:[#allocation3 + $0x98] sm:$0xff] %vm2934_vm6, %v15089_v32 }
 0x2b7   : > { %10285 = vmatmul.mubr.msk.bf16.gmra.mrb[28].mxu0 %vm475_vm1, %v2240_v58  ;;  %2957 = vst.msk [vmem:[#allocation3 + $0xa8] sm:$0xff] %vm2934_vm6, %v15089_v32  ;;  %2958 = vst.msk [vmem:[#allocation3 + $0xb0] sm:$0xff] %vm2934_vm6, %v15089_v32 }
 0x2b8   : > { %10290 = vmatprep.mubr.msk.bf16.mxu0 %vm475_vm1, %v15084_v19  ;;  %2960 = vst.msk [vmem:[#allocation3 + $0xc0] sm:$0xff] %vm2934_vm6, %v15089_v32  ;;  %2961 = vst.msk [vmem:[#allocation3 + $0xc8] sm:$0xff] %vm2934_vm6, %v15089_v32 }
 0x2b9   : > { %2963 = vst.msk [vmem:[#allocation3 + $0xd8] sm:$0xff] %vm2934_vm6, %v15089_v32  ;;  %2964 = vst.msk [vmem:[#allocation3 + $0xe0] sm:$0xff] %vm2934_vm6, %v15089_v32 }
 0x2ba   : > { %2966 = vst.msk [vmem:[#allocation3 + $0xf0] sm:$0xff] %vm2934_vm6, %v15089_v32  ;;  %2967 = vst.msk [vmem:[#allocation3 + $0xf8] sm:$0xff] %vm2934_vm6, %v15089_v32 }
 0x2bb   : > { %2969 = vst.msk [vmem:[#allocation3 + $0x108] sm:$0xff] %vm2934_vm6, %v15089_v32  ;;  %2970 = vst.msk [vmem:[#allocation3 + $0x110] sm:$0xff] %vm2934_vm6, %v15089_v32 }
 0x2bc   : > { %2972 = vst.msk [vmem:[#allocation3 + $0x120] sm:$0xff] %vm2934_vm6, %v15089_v32  ;;  %2973 = vst.msk [vmem:[#allocation3 + $0x128] sm:$0xff] %vm2934_vm6, %v15089_v32 }
 0x2bd   : > { %2975 = vst.msk [vmem:[#allocation3 + $0x138] sm:$0xff] %vm2934_vm6, %v15089_v32  ;;  %2976 = vst.msk [vmem:[#allocation3 + $0x140] sm:$0xff] %vm2934_vm6, %v15089_v32 }
 0x2be   : > { %2978 = vst.msk [vmem:[#allocation3 + $0x150] sm:$0xff] %vm2934_vm6, %v15089_v32  ;;  %2979 = vst.msk [vmem:[#allocation3 + $0x158] sm:$0xff] %vm2934_vm6, %v15089_v32 }
 0x2bf   : > { %10291 = vmatmul.mubr.msk.bf16.vlgmr.msra.gmra.mrb[0].mxu0 %vm475_vm1, %v15085_v21  ;;  %2981 = vst.msk [vmem:[#allocation3 + $0x168] sm:$0xff] %vm2934_vm6, %v15089_v32  ;;  %2982 = vst.msk [vmem:[#allocation3 + $0x170] sm:$0xff] %vm2934_vm6, %v15089_v32 }
 0x2c0   : > { %10323 = vmatpush3.bf16.msra.mxu0 %v2668_v45  ;;  %10294 = vmatprep.mubr.msk.bf16.mxu0 %vm475_vm1, %v15086_v44  ;;  %2984 = vst.msk [vmem:[#allocation3 + $0x180] sm:$0xff] %vm2934_vm6, %v15089_v32  ;;  %2985 = vst.msk [vmem:[#allocation3 + $0x188] sm:$0xff] %vm2934_vm6, %v15089_v32 }
 0x2c1   : > { %2987 = vst.msk [vmem:[#allocation3 + $0x198] sm:$0xff] %vm2934_vm6, %v15089_v32  ;;  %2988 = vst.msk [vmem:[#allocation3 + $0x1a0] sm:$0xff] %vm2934_vm6, %v15089_v32 }
 0x2c2   : > { %6343 = vst.msk [vmem:[#allocation4] sm:$0xff] %vm2934_vm6, %v15089_v32  ;;  %6345 = vst.msk [vmem:[#allocation4 + $0x10] sm:$0xff] %vm2934_vm6, %v15089_v32 }
 0x2c3   : > { %6347 = vst.msk [vmem:[#allocation4 + $0x20] sm:$0xff] %vm2934_vm6, %v15089_v32  ;;  %6349 = vst.msk [vmem:[#allocation4 + $0x30] sm:$0xff] %vm2934_vm6, %v15089_v32 }
 0x2c4   : > { %6351 = vst.msk [vmem:[#allocation4 + $0x40] sm:$0xff] %vm2934_vm6, %v15089_v32  ;;  %6353 = vst.msk [vmem:[#allocation4 + $0x50] sm:$0xff] %vm2934_vm6, %v15089_v32 }
 0x2c5   : > { %6355 = vst.msk [vmem:[#allocation4 + $0x60] sm:$0xff] %vm2934_vm6, %v15089_v32  ;;  %6357 = vst.msk [vmem:[#allocation4 + $0x70] sm:$0xff] %vm2934_vm6, %v15089_v32 }
 0x2c6   : > { %6359 = vst.msk [vmem:[#allocation4 + $0x80] sm:$0xff] %vm2934_vm6, %v15089_v32  ;;  %6361 = vst.msk [vmem:[#allocation4 + $0x90] sm:$0xff] %vm2934_vm6, %v15089_v32 }
 0x2c7   : > { %10295 = vmatmul.mubr.msk.bf16.gmra.mrb[4].mxu0 %vm475_vm1, %v15087_v17  ;;  %2944 = vst.msk [vmem:[#allocation3 + $0x40] sm:$0x3] %vm2937_vm7, %v15089_v32  ;;  %2938 = vst.msk [vmem:[#allocation3 + $0x10] sm:$0x3] %vm2937_vm7, %v15089_v32 }
 0x2c8   : > { %10298 = vmatprep.mubr.msk.bf16.mxu0 %vm475_vm1, %v15088_v23  ;;  %2941 = vst.msk [vmem:[#allocation3 + $0x28] sm:$0x3] %vm2937_vm7, %v15089_v32  ;;  %2947 = vst.msk [vmem:[#allocation3 + $0x58] sm:$0x3] %vm2937_vm7, %v15089_v32 }
 0x2c9   : > { %2950 = vst.msk [vmem:[#allocation3 + $0x70] sm:$0x3] %vm2937_vm7, %v15089_v32  ;;  %2953 = vst.msk [vmem:[#allocation3 + $0x88] sm:$0x3] %vm2937_vm7, %v15089_v32 }
 0x2ca   : > { %2956 = vst.msk [vmem:[#allocation3 + $0xa0] sm:$0x3] %vm2937_vm7, %v15089_v32  ;;  %2959 = vst.msk [vmem:[#allocation3 + $0xb8] sm:$0x3] %vm2937_vm7, %v15089_v32 }
 0x2cb   : > { %2962 = vst.msk [vmem:[#allocation3 + $0xd0] sm:$0x3] %vm2937_vm7, %v15089_v32  ;;  %2965 = vst.msk [vmem:[#allocation3 + $0xe8] sm:$0x3] %vm2937_vm7, %v15089_v32 }
 0x2cc   : > { %2968 = vst.msk [vmem:[#allocation3 + $0x100] sm:$0x3] %vm2937_vm7, %v15089_v32  ;;  %2971 = vst.msk [vmem:[#allocation3 + $0x118] sm:$0x3] %vm2937_vm7, %v15089_v32 }
 0x2cd   : > { %2974 = vst.msk [vmem:[#allocation3 + $0x130] sm:$0x3] %vm2937_vm7, %v15089_v32  ;;  %2977 = vst.msk [vmem:[#allocation3 + $0x148] sm:$0x3] %vm2937_vm7, %v15089_v32 }
 0x2ce   : > { %2980 = vst.msk [vmem:[#allocation3 + $0x160] sm:$0x3] %vm2937_vm7, %v15089_v32  ;;  %2983 = vst.msk [vmem:[#allocation3 + $0x178] sm:$0x3] %vm2937_vm7, %v15089_v32 }
 0x2cf   : > { %10299 = vmatmul.mubr.msk.bf16.gmra.mrb[8].mxu0 %vm475_vm1, %v12742_v24  ;;  %v2445_v24 = vrot.slane %v615_v59, 1  ;;  %2986 = vst.msk [vmem:[#allocation3 + $0x190] sm:$0x3] %vm2937_vm7, %v15089_v32  ;;  %2989 = vst.msk [vmem:[#allocation3 + $0x1a8] sm:$0x3] %vm2937_vm7, %v15089_v32 }
 0x2d0   : > { %10302 = vmatprep.mubr.msk.bf16.mxu0 %vm475_vm1, %v12744_v30  ;;  %v2446_v30 = vrot.slane %v616_v22, 1  ;;  %6344 = vst.msk [vmem:[#allocation4 + $0x8] sm:$0x3] %vm2937_vm7, %v15089_v32  ;;  %6346 = vst.msk [vmem:[#allocation4 + $0x18] sm:$0x3] %vm2937_vm7, %v15089_v32 }
 0x2d1   : > { %6348 = vst.msk [vmem:[#allocation4 + $0x28] sm:$0x3] %vm2937_vm7, %v15089_v32  ;;  %6350 = vst.msk [vmem:[#allocation4 + $0x38] sm:$0x3] %vm2937_vm7, %v15089_v32 }
 0x2d2   : > { %6352 = vst.msk [vmem:[#allocation4 + $0x48] sm:$0x3] %vm2937_vm7, %v15089_v32  ;;  %6354 = vst.msk [vmem:[#allocation4 + $0x58] sm:$0x3] %vm2937_vm7, %v15089_v32 }
 0x2d3   : > { %6356 = vst.msk [vmem:[#allocation4 + $0x68] sm:$0x3] %vm2937_vm7, %v15089_v32  ;;  %6358 = vst.msk [vmem:[#allocation4 + $0x78] sm:$0x3] %vm2937_vm7, %v15089_v32 }
 0x2d4   : > { %6360 = vst.msk [vmem:[#allocation4 + $0x88] sm:$0x3] %vm2937_vm7, %v15089_v32  ;;  %6362 = vst.msk [vmem:[#allocation4 + $0x98] sm:$0x3] %vm2937_vm7, %v15089_v32 }
 0x2d7   : > { %10303 = vmatmul.mubr.msk.bf16.gmra.mrb[12].mxu0 %vm475_vm1, %v12746_v31  ;;  %v2449_v31 = vsel %vm683_vm4, %v2446_v30, %v2448_v20 }
 0x2d8   : > { %10306 = vmatprep.mubr.msk.bf16.mxu0 %vm475_vm1, %v12751_v62  ;;  %v2447_v62 = vsel %vm683_vm4, %v2445_v24, %v2446_v30 }
 0x2df   : > { %10307 = vmatmul.mubr.msk.bf16.gmra.mrb[16].mxu0 %vm475_vm1, %v12764_v3  ;;  %v2452_v3 = vpack.c.bf16 %v2449_v31, %v2447_v62 }
 0x2e0   : > { %10310 = vmatprep.mubr.msk.bf16.mxu0 %vm475_vm1, %v12858_v61 }
 0x2e7   : > { %10311 = vmatmul.mubr.msk.bf16.gmra.mrb[20].mxu0 %vm475_vm1, %v12903_v63 }
 0x2e8   : > { %10314 = vmatprep.mubr.msk.bf16.mxu0 %vm475_vm1, %v12907_v48 }
 0x2ef   : > { %10315 = vmatmul.mubr.msk.bf16.gmra.mrb[24].mxu0 %vm475_vm1, %v12926_v50 }
 0x2f0   : > { %10318 = vmatprep.mubr.msk.bf16.mxu0 %vm475_vm1, %v13079_v38 }
 0x2f7   : > { %10319 = vmatmul.mubr.msk.bf16.gmra.mrb[28].mxu0 %vm475_vm1, %v2452_v3 }
 0x2f8   : > { %10324 = vmatprep.mubr.msk.bf16.mxu0 %vm475_vm1, %v12800_v26  ;;  %v11668_v26 = vld [vmem:[#allocation10 + $0x10] sm:$0xff]  }
 0x2f9   : > { %10356 = vmatprep.subr.bf16.mxu1 %v11668_v26 }
 0x2fa   : > { %10357 = vmatpush3.bf16.msra.mxu1 %v11668_v26 }
 0x2ff   : > { %10325 = vmatmul.mubr.msk.bf16.vlgmr.msra.gmra.mrb[0].mxu0 %vm475_vm1, %v12805_v4  ;;  %v13362_v4 = vld [vmem:[#allocation3] sm:$0xff] }
 0x300   : > { %10328 = vmatprep.mubr.msk.bf16.mxu0 %vm475_vm1, %v12810_v46  ;;  %v13364_v46 = vld [vmem:[#allocation3 + $0x8] sm:$0xff]  ;;  %v3720_v8 = vrot.slane %v13362_v4, 2 }
 0x301   : > { %v3721_v10 = vrot.slane %v13364_v46, 2 }
 0x303   : > { %v13396_v38 = vsel %vm1242_vm5, %v3720_v8, %v3721_v10 }
 0x307   : > { %10329 = vmatmul.mubr.msk.bf16.gmra.mrb[4].mxu0 %vm475_vm1, %v12819_v47  ;;  %v3025_v47 = vld [vmem:[#allocation3 + $0x10] sm:$0x3] }
 0x308   : > { %10332 = vmatprep.mubr.msk.bf16.mxu0 %vm475_vm1, %v12824_v51  ;;  %v11669_v51 = vld [vmem:[#allocation10 + $0x18] sm:$0xff]   ;;  %v3723_v9 = vrot.slane %v3025_v47, 2 }
 0x309   : > { %10358 = vmatprep.subr.bf16.mxu1 %v11669_v51 }
 0x30a   : > { %10359 = vmatpush3.bf16.msra.mxu1 %v11669_v51  ;;  %v13399_v40 = vsel %vm1242_vm5, %v3721_v10, %v3723_v9 }
 0x30f   : > { %10333 = vmatmul.mubr.msk.bf16.gmra.mrb[8].mxu0 %vm475_vm1, %v12831_v29  ;;  %v3145_v29 = vrot.slane %v13362_v4, 1 }
 0x310   : > { %10336 = vmatprep.mubr.msk.bf16.mxu0 %vm475_vm1, %v12846_v41  ;;  %v3146_v41 = vrot.slane %v13364_v46, 1 }
 0x312   : > { %v3147_v61 = vsel %vm683_vm4, %v3145_v29, %v3146_v41 }
 0x317   : > { %10337 = vmatmul.mubr.msk.bf16.gmra.mrb[12].mxu0 %vm475_vm1, %v12852_v0  ;;  %v3148_v0 = vrot.slane %v3025_v47, 1 }
 0x318   : > { %10340 = vmatprep.mubr.msk.bf16.mxu0 %vm475_vm1, %v12860_v6 }
 0x319   : > { %v3149_v6 = vsel %vm683_vm4, %v3146_v41, %v3148_v0 }
 0x31f   : > { %10341 = vmatmul.mubr.msk.bf16.gmra.mrb[16].mxu0 %vm475_vm1, %v12874_v12  ;;  %v3257_v12 = vpack.c.bf16 %v3149_v6, %v3147_v61 }
 0x320   : > { %10344 = vmatprep.mubr.msk.bf16.mxu0 %vm475_vm1, %v12899_v36  ;;  %v13371_v36 = vld [vmem:[#allocation10] sm:$0xff]  }
 0x321   : > { %10360 = vmatprep.mubr.msk.bf16.mxu1 %vm2934_vm6, %v3257_v12  ;;  %10392 = vmatprep.subr.bf16.mxu1 %v13371_v36 }
 0x327   : > { %10345 = vmatmul.mubr.msk.bf16.gmra.mrb[20].mxu0 %vm475_vm1, %v12905_v1  ;;  %v13376_v1 = vld [vmem:[#allocation8] ss:$0 sm:$0xff] }
 0x328   : > { %10348 = vmatprep.mubr.msk.bf16.mxu0 %vm475_vm1, %v12922_v18 }
 0x32f   : > { %10349 = vmatmul.mubr.msk.bf16.gmra.mrb[24].mxu0 %vm475_vm1, %v12928_v43 }
 0x330   : > { %10352 = vmatprep.mubr.msk.bf16.mxu0 %vm475_vm1, %v13042_v60 }
 0x337   : > { %10353 = vmatmul.mubr.msk.bf16.gmra.mrb[28].mxu0 %vm475_vm1, %v2661_v56 }
 0x3d2   : > { %v10326_v48 = vpop.f32.mrb[0].mxu0 }
 0x3d3   : > { %v2872_v18 = vadd.f32 %v10326_v48, %v13376_v1  ;;  %v2704_v50 = vpop.f32.mrb[1].mxu0 }
 0x3d4   : > { %v2870_v43 = vadd.f32 %v13376_v1, %v2704_v50  ;;  %v10327_v34 = vpop.f32.mrb[2].mxu0 }
 0x3d5   : > { %v2904_v57 = vmax.f32 %v2872_v18, 0.0  ;;  %v2873_v42 = vadd.f32 %v10327_v34, %v13376_v1  ;;  %v2707_v52 = vpop.f32.mrb[3].mxu0 }
 0x3d6   : > { %v2902_v11 = vmax.f32 %v2870_v43, 0.0  ;;  %v2871_v37 = vadd.f32 %v13376_v1, %v2707_v52  ;;  %v11671_v43 = vld [vmem:[#allocation10 + $0x8] sm:$0xff]  }
 0x3d7   : > { %2993 = vst.msk [vmem:[#allocation3 + $0x31] sm:$0xff] %vm2934_vm6, %v2904_v57  ;;  %v2905_v49 = vmax.f32 %v2873_v42, 0.0 }
 0x3d8   : > { %2991 = vst.msk [vmem:[#allocation3 + $0x19] sm:$0xff] %vm2934_vm6, %v2902_v11  ;;  %v2903_v54 = vmax.f32 %v2871_v37, 0.0 }
 0x3d9   : > { %2994 = vst.msk [vmem:[#allocation3 + $0x39] sm:$0xff] %vm2934_vm6, %v2905_v49 }
 0x3da   : > { %2992 = vst.msk [vmem:[#allocation3 + $0x21] sm:$0xff] %vm2934_vm6, %v2903_v54  ;;  %v10330_v2 = vpop.f32.mrb[4].mxu0 }
 0x3db   : > { %v2876_v25 = vadd.f32 %v10330_v2, %v13376_v1  ;;  %v2720_v60 = vpop.f32.mrb[5].mxu0 }
 0x3dc   : > { %v2874_v19 = vadd.f32 %v13376_v1, %v2720_v60  ;;  %v10331_v21 = vpop.f32.mrb[6].mxu0 }
 0x3dd   : > { %v2908_v44 = vmax.f32 %v2876_v25, 0.0  ;;  %v2877_v17 = vadd.f32 %v10331_v21, %v13376_v1  ;;  %v2723_v23 = vpop.f32.mrb[7].mxu0 }
 0x3de   : > { %v2906_v35 = vmax.f32 %v2874_v19, 0.0  ;;  %v2875_v16 = vadd.f32 %v13376_v1, %v2723_v23  ;;  %v13392_v13 = vld [vmem:[#allocation3 + $0x30] sm:$0xff] }
 0x3df   : > { %2997 = vst.msk [vmem:[#allocation3 + $0x61] sm:$0xff] %vm2934_vm6, %v2908_v44  ;;  %v2909_v14 = vmax.f32 %v2877_v17, 0.0  ;;  %v3026_v55 = vld [vmem:[#allocation3 + $0x18] sm:$0xff]  ;;  %v3155_v22 = vrot.slane %v13392_v13, 1  ;;  %v3730_v37 = vrot.slane %v13392_v13, 2 }
 0x3e0   : > { %2995 = vst.msk [vmem:[#allocation3 + $0x49] sm:$0xff] %vm2934_vm6, %v2906_v35  ;;  %v2907_v39 = vmax.f32 %v2875_v16, 0.0  ;;  %v3150_v15 = vrot.slane %v3026_v55, 1  ;;  %v13402_v45 = vld [vmem:[#allocation3 + $0x38] sm:$0xff]  ;;  %v13404_v59 = vld [vmem:[#allocation3 + $0x40] sm:$0x3] }
 0x3e1   : > { %2998 = vst.msk [vmem:[#allocation3 + $0x69] sm:$0xff] %vm2934_vm6, %v2909_v14  ;;  %v3027_v27 = vld [vmem:[#allocation3 + $0x20] sm:$0xff]  ;;  %v3028_v28 = vld [vmem:[#allocation3 + $0x28] sm:$0x3]  ;;  %v3725_v33 = vrot.slane %v3026_v55, 2  ;;  %v3156_v5 = vrot.slane %v13402_v45, 1  ;;  %v13414_v58 = vpack.c.bf16 %v13402_v45, %v13392_v13 }
 0x3e2   : > { %v3158_v53 = vrot.slane %v13404_v59, 1  ;;  %2996 = vst.msk [vmem:[#allocation3 + $0x51] sm:$0xff] %vm2934_vm6, %v2907_v39  ;;  %v10334_v56 = vpop.f32.mrb[8].mxu0  ;;  %v3151_v24 = vrot.slane %v3027_v27, 1  ;;  %v3153_v30 = vrot.slane %v3028_v28, 1  ;;  %v3726_v20 = vrot.slane %v3027_v27, 2 }
 0x3e3   : > { %v3728_v62 = vrot.slane %v3028_v28, 2  ;;  %v2880_v31 = vadd.f32 %v10334_v56, %v13376_v1  ;;  %v2736_v3 = vpop.f32.mrb[9].mxu0  ;;  %v3157_v26 = vsel %vm683_vm4, %v3155_v22, %v3156_v5  ;;  %v13420_v51 = vpack.c.bf16 %v3027_v27, %v3026_v55 }
 0x3e4   : > { %v3159_v47 = vsel %vm683_vm4, %v3156_v5, %v3158_v53  ;;  %v2878_v29 = vadd.f32 %v13376_v1, %v2736_v3  ;;  %v10335_v41 = vpop.f32.mrb[10].mxu0  ;;  %v3152_v0 = vsel %vm683_vm4, %v3150_v15, %v3151_v24  ;;  %v3154_v61 = vsel %vm683_vm4, %v3151_v24, %v3153_v30 }
 0x3e5   : > { %v13425_v6 = vpack.c.bf16 %v3159_v47, %v3157_v26  ;;  %v2912_v12 = vmax.f32 %v2880_v31, 0.0  ;;  %v2881_v48 = vadd.f32 %v10335_v41, %v13376_v1  ;;  %v2739_v18 = vpop.f32.mrb[11].mxu0  ;;  %v13428_v50 = vpack.c.bf16 %v3154_v61, %v3152_v0 }
 0x3e6   : > { %v3727_v34 = vsel %vm1242_vm5, %v3725_v33, %v3726_v20  ;;  %v2910_v57 = vmax.f32 %v2878_v29, 0.0  ;;  %v2879_v42 = vadd.f32 %v13376_v1, %v2739_v18  ;;  %v13432_v52 = vld [vmem:[#allocation3 + $0x60] sm:$0xff]  ;;  %v3729_v11 = vsel %vm1242_vm5, %v3726_v20, %v3728_v62 }
 0x3e7   : > { %3001 = vst.msk [vmem:[#allocation3 + $0x91] sm:$0xff] %vm2934_vm6, %v2912_v12  ;;  %v2913_v49 = vmax.f32 %v2881_v48, 0.0  ;;  %10361 = vmatmul.mubr.msk.bf16.vlgmr.msra.gmra.mrb[0].mxu1 %vm2934_vm6, %v13428_v50  ;;  %v13439_v54 = vld [vmem:[#allocation3 + $0x48] sm:$0xff]  ;;  %v3165_v2 = vrot.slane %v13432_v52, 1  ;;  %v13442_v25 = vpack.c.bf16 %v3729_v11, %v3727_v34  ;;  %v3731_v60 = vrot.slane %v13402_v45, 2 }
 0x3e8   : > { %2999 = vst.msk [vmem:[#allocation3 + $0x79] sm:$0xff] %vm2934_vm6, %v2910_v57  ;;  %v2911_v8 = vmax.f32 %v2879_v42, 0.0  ;;  %10393 = vmatpush3.bf16.msra.mxu1 %v13371_v36  ;;  %10364 = vmatprep.mubr.msk.bf16.mxu1 %vm2934_vm6, %v13425_v6  ;;  %v3160_v10 = vrot.slane %v13439_v54, 1  ;;  %v13450_v9 = vld [vmem:[#allocation3 + $0x68] sm:$0xff]  ;;  %v13452_v19 = vld [vmem:[#allocation3 + $0x70] sm:$0x3] }
 0x3e9   : > { %v3733_v21 = vrot.slane %v13404_v59, 2  ;;  %3002 = vst.msk [vmem:[#allocation3 + $0x99] sm:$0xff] %vm2934_vm6, %v2913_v49  ;;  %v3033_v44 = vld [vmem:[#allocation3 + $0x50] sm:$0xff]  ;;  %v3034_v17 = vld [vmem:[#allocation3 + $0x58] sm:$0x3]  ;;  %v3166_v23 = vrot.slane %v13450_v9, 1  ;;  %10394 = vmatprep.subr.bf16.mxu1 %v11671_v43  ;;  %v13462_v16 = vpack.c.bf16 %v13450_v9, %v13432_v52  ;;  %v3732_v13 = vsel %vm1242_vm5, %v3730_v37, %v3731_v60 }
 0x3ea   : > { %v3168_v35 = vrot.slane %v13452_v19, 1  ;;  %v13458_v36 = vld [vmem:[#allocation10 + $0x20] sm:$0xff]   ;;  %3000 = vst.msk [vmem:[#allocation3 + $0x81] sm:$0xff] %vm2934_vm6, %v2911_v8  ;;  %v10338_v14 = vpop.f32.mrb[12].mxu0  ;;  %v3161_v55 = vrot.slane %v3033_v44, 1  ;;  %v3163_v39 = vrot.slane %v3034_v17, 1  ;;  %v13467_v15 = vpack.c.bf16 %v3033_v44, %v13439_v54 }
 0x3eb   : > { %v3734_v45 = vsel %vm1242_vm5, %v3731_v60, %v3733_v21  ;;  %v2884_v59 = vadd.f32 %v10338_v14, %v13376_v1  ;;  %v2752_v22 = vpop.f32.mrb[13].mxu0  ;;  %v3167_v27 = vsel %vm683_vm4, %v3165_v2, %v3166_v23  ;;  %v3735_v26 = vrot.slane %v13439_v54, 2 }
 0x3ec   : > { %v3169_v28 = vsel %vm683_vm4, %v3166_v23, %v3168_v35  ;;  %v13473_v33 = vpack.c.bf16 %v3734_v45, %v3732_v13  ;;  %v2882_v5 = vadd.f32 %v13376_v1, %v2752_v22  ;;  %v10339_v53 = vpop.f32.mrb[14].mxu0  ;;  %v3162_v56 = vsel %vm683_vm4, %v3160_v10, %v3161_v55  ;;  %10395 = vmatpush3.bf16.msra.mxu1 %v11671_v43 }
 0x3ed   : > { %v3164_v24 = vsel %vm683_vm4, %v3161_v55, %v3163_v39  ;;  %v13478_v30 = vpack.c.bf16 %v3169_v28, %v3167_v27  ;;  %v2916_v20 = vmax.f32 %v2884_v59, 0.0  ;;  %v2885_v62 = vadd.f32 %v10339_v53, %v13376_v1  ;;  %v2755_v31 = vpop.f32.mrb[15].mxu0  ;;  %10428 = vmatprep.subr.bf16.mxu1 %v13458_v36 }
 0x3ee   : > { %v13481_v3 = vpack.c.bf16 %v3164_v24, %v3162_v56  ;;  %v2914_v47 = vmax.f32 %v2882_v5, 0.0  ;;  %v2883_v29 = vadd.f32 %v13376_v1, %v2755_v31  ;;  %v13486_v41 = vld [vmem:[#allocation3 + $0x90] sm:$0xff]  ;;  %v3736_v0 = vrot.slane %v3033_v44, 2 }
 0x3ef   : > { %v3738_v61 = vrot.slane %v3034_v17, 2  ;;  %3005 = vst.msk [vmem:[#allocation3 + $0xc1] sm:$0xff] %vm2934_vm6, %v2916_v20  ;;  %v2917_v12 = vmax.f32 %v2885_v62, 0.0  ;;  %v13491_v48 = vld [vmem:[#allocation3 + $0x78] sm:$0xff]  ;;  %v3175_v18 = vrot.slane %v13486_v41, 1  ;;  %v3740_v43 = vrot.slane %v13432_v52, 2 }
 0x3f0   : > { %10365 = vmatmul.mubr.msk.bf16.gmra.mrb[4].mxu1 %vm2934_vm6, %v13481_v3  ;;  %v3741_v34 = vrot.slane %v13450_v9, 2  ;;  %3003 = vst.msk [vmem:[#allocation3 + $0xa9] sm:$0xff] %vm2934_vm6, %v2914_v47  ;;  %v2915_v57 = vmax.f32 %v2883_v29, 0.0  ;;  %v3170_v42 = vrot.slane %v13491_v48, 1  ;;  %v13500_v11 = vld [vmem:[#allocation3 + $0x98] sm:$0xff]  ;;  %v3737_v49 = vsel %vm1242_vm5, %v3735_v26, %v3736_v0 }
 0x3f1   : > { %10368 = vmatprep.mubr.msk.bf16.mxu1 %vm2934_vm6, %v13478_v30  ;;  %v13502_v37 = vld [vmem:[#allocation3 + $0xa0] sm:$0x3]  ;;  %v3739_v54 = vsel %vm1242_vm5, %v3736_v0, %v3738_v61  ;;  %3006 = vst.msk [vmem:[#allocation3 + $0xc9] sm:$0xff] %vm2934_vm6, %v2917_v12  ;;  %v3040_v2 = vld [vmem:[#allocation3 + $0x88] sm:$0x3]  ;;  %v3176_v60 = vrot.slane %v13500_v11, 1  ;;  %v13511_v10 = vpack.c.bf16 %v13500_v11, %v13486_v41 }
 0x3f2   : > { %v3039_v52 = vld [vmem:[#allocation3 + $0x80] sm:$0xff]  ;;  %v3178_v8 = vrot.slane %v13502_v37, 1  ;;  %v13513_v9 = vpack.c.bf16 %v3739_v54, %v3737_v49  ;;  %3004 = vst.msk [vmem:[#allocation3 + $0xb1] sm:$0xff] %vm2934_vm6, %v2915_v57  ;;  %v10342_v21 = vpop.f32.mrb[16].mxu0  ;;  %v3173_v17 = vrot.slane %v3040_v2, 1  ;;  %v3742_v35 = vsel %vm1242_vm5, %v3740_v43, %v3741_v34 }
 0x3f3   : > { %v3171_v44 = vrot.slane %v3039_v52, 1  ;;  %v13517_v23 = vpack.c.bf16 %v3039_v52, %v13491_v48  ;;  %v2888_v13 = vadd.f32 %v10342_v21, %v13376_v1  ;;  %v2768_v14 = vpop.f32.mrb[17].mxu0  ;;  %v3177_v55 = vsel %vm683_vm4, %v3175_v18, %v3176_v60 }
 0x3f4   : > { %v3179_v39 = vsel %vm683_vm4, %v3176_v60, %v3178_v8  ;;  %v3743_v45 = vrot.slane %v13452_v19, 2  ;;  %v2886_v59 = vadd.f32 %v13376_v1, %v2768_v14  ;;  %v10343_v22 = vpop.f32.mrb[18].mxu0  ;;  %v3745_v29 = vrot.slane %v13491_v48, 2 }
 0x3f5   : > { %v3172_v27 = vsel %vm683_vm4, %v3170_v42, %v3171_v44  ;;  %v3174_v28 = vsel %vm683_vm4, %v3171_v44, %v3173_v17  ;;  %v13527_v5 = vpack.c.bf16 %v3179_v39, %v3177_v55  ;;  %v2920_v53 = vmax.f32 %v2888_v13, 0.0  ;;  %v2771_v24 = vpop.f32.mrb[19].mxu0 }
 0x3f6   : > { %v2889_v56 = vadd.f32 %v10343_v22, %v13376_v1  ;;  %v13530_v20 = vpack.c.bf16 %v3174_v28, %v3172_v27  ;;  %v3744_v62 = vsel %vm1242_vm5, %v3741_v34, %v3743_v45  ;;  %v2918_v31 = vmax.f32 %v2886_v59, 0.0  ;;  %v13534_v26 = vld [vmem:[#allocation3 + $0xc0] sm:$0xff] }
 0x3f7   : > { %v2887_v19 = vadd.f32 %v13376_v1, %v2771_v24  ;;  %v13536_v47 = vpack.c.bf16 %v3744_v62, %v3742_v35  ;;  %3009 = vst.msk [vmem:[#allocation3 + $0xf1] sm:$0xff] %vm2934_vm6, %v2920_v53  ;;  %v13542_v61 = vld [vmem:[#allocation3 + $0xa8] sm:$0xff]  ;;  %v3185_v12 = vrot.slane %v13534_v26, 1  ;;  %v3746_v18 = vrot.slane %v3039_v52, 2 }
 0x3f8   : > { %v2921_v0 = vmax.f32 %v2889_v56, 0.0  ;;  %10369 = vmatmul.mubr.msk.bf16.gmra.mrb[8].mxu1 %vm2934_vm6, %v13530_v20  ;;  %v3748_v43 = vrot.slane %v3040_v2, 2  ;;  %3007 = vst.msk [vmem:[#allocation3 + $0xd9] sm:$0xff] %vm2934_vm6, %v2918_v31  ;;  %v3180_v48 = vrot.slane %v13542_v61, 1  ;;  %v13549_v57 = vld [vmem:[#allocation3 + $0xc8] sm:$0xff]  ;;  %v3750_v49 = vrot.slane %v13486_v41, 2 }
 0x3f9   : > { %v2919_v34 = vmax.f32 %v2887_v19, 0.0  ;;  %10372 = vmatprep.mubr.msk.bf16.mxu1 %vm2934_vm6, %v13527_v5  ;;  %v13551_v42 = vld [vmem:[#allocation3 + $0xd0] sm:$0x3]  ;;  %v13557_v52 = vld [vmem:[#allocation3 + $0xb8] sm:$0x3]  ;;  %v3186_v2 = vrot.slane %v13549_v57, 1  ;;  %v13563_v8 = vpack.c.bf16 %v13549_v57, %v13534_v26  ;;  %v3747_v21 = vsel %vm1242_vm5, %v3745_v29, %v3746_v18 }
 0x3fa   : > { %3010 = vst.msk [vmem:[#allocation3 + $0xf9] sm:$0xff] %vm2934_vm6, %v2921_v0  ;;  %v13555_v54 = vld [vmem:[#allocation3 + $0xb0] sm:$0xff]  ;;  %v3188_v60 = vrot.slane %v13551_v42, 1  ;;  %v10346_v44 = vpop.f32.mrb[20].mxu0  ;;  %v3183_v17 = vrot.slane %v13557_v52, 1  ;;  %v3749_v13 = vsel %vm1242_vm5, %v3746_v18, %v3748_v43  ;;  %v3751_v29 = vrot.slane %v13500_v11, 2 }
 0x3fb   : > { %3008 = vst.msk [vmem:[#allocation3 + $0xe1] sm:$0xff] %vm2934_vm6, %v2919_v34  ;;  %v3181_v41 = vrot.slane %v13555_v54, 1  ;;  %v13571_v35 = vpack.c.bf16 %v13555_v54, %v13542_v61  ;;  %v2892_v14 = vadd.f32 %v10346_v44, %v13376_v1  ;;  %v2784_v55 = vpop.f32.mrb[21].mxu0  ;;  %v3187_v39 = vsel %vm683_vm4, %v3185_v12, %v3186_v2 }
 0x3fc   : > { %v3189_v45 = vsel %vm683_vm4, %v3186_v2, %v3188_v60  ;;  %v13577_v59 = vpack.c.bf16 %v3749_v13, %v3747_v21  ;;  %v2890_v22 = vadd.f32 %v13376_v1, %v2784_v55  ;;  %v10347_v27 = vpop.f32.mrb[22].mxu0  ;;  %v3753_v43 = vrot.slane %v13502_v37, 2 }
 0x3fd   : > { %v3182_v28 = vsel %vm683_vm4, %v3180_v48, %v3181_v41  ;;  %v3184_v53 = vsel %vm683_vm4, %v3181_v41, %v3183_v17  ;;  %v13582_v56 = vpack.c.bf16 %v3189_v45, %v3187_v39  ;;  %v2924_v24 = vmax.f32 %v2892_v14, 0.0  ;;  %v2787_v31 = vpop.f32.mrb[23].mxu0 }
 0x3fe   : > { %v2893_v62 = vadd.f32 %v10347_v27, %v13376_v1  ;;  %v13585_v19 = vpack.c.bf16 %v3184_v53, %v3182_v28  ;;  %v2922_v0 = vmax.f32 %v2890_v22, 0.0  ;;  %v2891_v12 = vadd.f32 %v13376_v1, %v2787_v31  ;;  %v13589_v18 = vld [vmem:[#allocation3 + $0xf0] sm:$0xff] }
 0x3ff   : > { %15090 = vst [vmem:[#allocation41_spill] sm:$0xff] %v13582_v56  ;;  %v3755_v34 = vrot.slane %v13542_v61, 2  ;;  %3013 = vst.msk [vmem:[#allocation3 + $0x121] sm:$0xff] %vm2934_vm6, %v2924_v24  ;;  %v13596_v2 = vld [vmem:[#allocation3 + $0xd8] sm:$0xff]  ;;  %v3195_v60 = vrot.slane %v13589_v18, 1  ;;  %v3752_v11 = vsel %vm1242_vm5, %v3750_v49, %v3751_v29  ;;  %v3756_v21 = vrot.slane %v13555_v54, 2 }
 0x400   : > { %15091 = vst [vmem:[#allocation26_spill] sm:$0xff] %v13585_v19  ;;  %v2925_v48 = vmax.f32 %v2893_v62, 0.0  ;;  %10373 = vmatmul.mubr.msk.bf16.gmra.mrb[12].mxu1 %vm2934_vm6, %v13585_v19  ;;  %3011 = vst.msk [vmem:[#allocation3 + $0x109] sm:$0xff] %vm2934_vm6, %v2922_v0  ;;  %v2923_v44 = vmax.f32 %v2891_v12, 0.0  ;;  %v3190_v37 = vrot.slane %v13596_v2, 1  ;;  %v3754_v17 = vsel %vm1242_vm5, %v3751_v29, %v3753_v43 }
 0x401   : > { %10376 = vmatprep.mubr.msk.bf16.mxu1 %vm2934_vm6, %v13582_v56  ;;  %v13605_v61 = vld [vmem:[#allocation3 + $0xf8] sm:$0xff]  ;;  %v13607_v41 = vld [vmem:[#allocation3 + $0x100] sm:$0x3]  ;;  %v3758_v13 = vrot.slane %v13557_v52, 2  ;;  %v13622_v45 = vpack.c.bf16 %v3754_v17, %v3752_v11  ;;  %v3757_v53 = vsel %vm1242_vm5, %v3755_v34, %v3756_v21 }
 0x402   : > { %3014 = vst.msk [vmem:[#allocation3 + $0x129] sm:$0xff] %vm2934_vm6, %v2925_v48  ;;  %v13612_v49 = vld [vmem:[#allocation3 + $0xe0] sm:$0xff]  ;;  %v13614_v54 = vld [vmem:[#allocation3 + $0xe8] sm:$0x3]  ;;  %v3196_v14 = vrot.slane %v13605_v61, 1  ;;  %v3198_v55 = vrot.slane %v13607_v41, 1  ;;  %v13620_v39 = vpack.c.bf16 %v13605_v61, %v13589_v18 }
 0x403   : > { %3012 = vst.msk [vmem:[#allocation3 + $0x111] sm:$0xff] %vm2934_vm6, %v2923_v44  ;;  %v10350_v22 = vpop.f32.mrb[24].mxu0  ;;  %v3191_v52 = vrot.slane %v13612_v49, 1  ;;  %v3193_v27 = vrot.slane %v13614_v54, 1  ;;  %v13629_v28 = vpack.c.bf16 %v13612_v49, %v13596_v2  ;;  %v3759_v0 = vsel %vm1242_vm5, %v3756_v21, %v3758_v13 }
 0x404   : > { %v2896_v24 = vadd.f32 %v10350_v22, %v13376_v1  ;;  %v2800_v62 = vpop.f32.mrb[25].mxu0  ;;  %v3197_v31 = vsel %vm683_vm4, %v3195_v60, %v3196_v14  ;;  %v3199_v29 = vsel %vm683_vm4, %v3196_v14, %v3198_v55  ;;  %v13644_v60 = vpack.c.bf16 %v3759_v0, %v3757_v53 }
 0x405   : > { %v2894_v12 = vadd.f32 %v13376_v1, %v2800_v62  ;;  %v10351_v43 = vpop.f32.mrb[26].mxu0  ;;  %v3192_v48 = vsel %vm683_vm4, %v3190_v37, %v3191_v52  ;;  %v3194_v11 = vsel %vm683_vm4, %v3191_v52, %v3193_v27  ;;  %v13639_v44 = vpack.c.bf16 %v3199_v29, %v3197_v31 }
 0x406   : > { %v2928_v17 = vmax.f32 %v2896_v24, 0.0  ;;  %v2897_v34 = vadd.f32 %v10351_v43, %v13376_v1  ;;  %v2803_v22 = vpop.f32.mrb[27].mxu0  ;;  %v13642_v7 = vpack.c.bf16 %v3194_v11, %v3192_v48  ;;  %v13647_v13 = vld [vmem:[#allocation3 + $0x120] sm:$0xff]  ;;  %v3760_v55 = vrot.slane %v13534_v26, 2 }
 0x407   : > { %15092 = vst [vmem:[#allocation25_spill] sm:$0xff] %v13639_v44  ;;  %v2926_v14 = vmax.f32 %v2894_v12, 0.0  ;;  %v2895_v21 = vadd.f32 %v13376_v1, %v2803_v22  ;;  %v3761_v37 = vrot.slane %v13549_v57, 2  ;;  %v13654_v27 = vld [vmem:[#allocation3 + $0x108] sm:$0xff]  ;;  %v3205_v53 = vrot.slane %v13647_v13, 1 }
 0x408   : > { %15093 = vst [vmem:[#allocation24_spill] sm:$0xff] %v13642_v7  ;;  %3017 = vst.msk [vmem:[#allocation3 + $0x151] sm:$0xff] %vm2934_vm6, %v2928_v17  ;;  %v2929_v52 = vmax.f32 %v2897_v34, 0.0  ;;  %10377 = vmatmul.mubr.msk.bf16.gmra.mrb[16].mxu1 %vm2934_vm6, %v13642_v7  ;;  %v3763_v24 = vrot.slane %v13551_v42, 2  ;;  %v3765_v62 = vrot.slane %v13596_v2, 2  ;;  %v3200_v26 = vrot.slane %v13654_v27, 1 }
 0x409   : > { %3015 = vst.msk [vmem:[#allocation3 + $0x139] sm:$0xff] %vm2934_vm6, %v2926_v14  ;;  %v2927_v31 = vmax.f32 %v2895_v21, 0.0  ;;  %10380 = vmatprep.mubr.msk.bf16.mxu1 %vm2934_vm6, %v13639_v44  ;;  %v13663_v57 = vld [vmem:[#allocation3 + $0x128] sm:$0xff]  ;;  %v13665_v29 = vld [vmem:[#allocation3 + $0x130] sm:$0x3]  ;;  %v3762_v0 = vsel %vm1242_vm5, %v3760_v55, %v3761_v37  ;;  %v3766_v12 = vrot.slane %v13612_v49, 2 }
 0x40a   : > { %3018 = vst.msk [vmem:[#allocation3 + $0x159] sm:$0xff] %vm2934_vm6, %v2929_v52  ;;  %v13670_v42 = vld [vmem:[#allocation3 + $0x110] sm:$0xff]  ;;  %v13672_v2 = vld [vmem:[#allocation3 + $0x118] sm:$0x3]  ;;  %v3206_v43 = vrot.slane %v13663_v57, 1  ;;  %v3208_v48 = vrot.slane %v13665_v29, 1  ;;  %v13678_v11 = vpack.c.bf16 %v13663_v57, %v13647_v13  ;;  %v3764_v17 = vsel %vm1242_vm5, %v3761_v37, %v3763_v24 }
 0x40b   : > { %3016 = vst.msk [vmem:[#allocation3 + $0x141] sm:$0xff] %vm2934_vm6, %v2927_v31  ;;  %v10354_v34 = vpop.f32.mrb[28].mxu0  ;;  %v3201_v49 = vrot.slane %v13670_v42, 1  ;;  %v3203_v22 = vrot.slane %v13672_v2, 1  ;;  %v13686_v14 = vpack.c.bf16 %v13670_v42, %v13654_v27  ;;  %v13688_v21 = vpack.c.bf16 %v3764_v17, %v3762_v0 }
 0x40c   : > { %v2900_v55 = vadd.f32 %v10354_v34, %v13376_v1  ;;  %v2816_v52 = vpop.f32.mrb[29].mxu0  ;;  %v3207_v63 = vsel %vm683_vm4, %v3205_v53, %v3206_v43  ;;  %v3209_v37 = vsel %vm683_vm4, %v3206_v43, %v3208_v48  ;;  %v3767_v24 = vsel %vm1242_vm5, %v3765_v62, %v3766_v12 }
 0x40d   : > { %v2898_v31 = vadd.f32 %v13376_v1, %v2816_v52  ;;  %v10355_v32 = vpop.f32.mrb[30].mxu0  ;;  %v3202_v44 = vsel %vm683_vm4, %v3200_v26, %v3201_v49  ;;  %v3204_v7 = vsel %vm683_vm4, %v3201_v49, %v3203_v22  ;;  %v13697_v56 = vpack.c.bf16 %v3209_v37, %v3207_v63 }
 0x40e   : > { %v2932_v0 = vmax.f32 %v2900_v55, 0.0  ;;  %v2901_v17 = vadd.f32 %v10355_v32, %v13376_v1  ;;  %v2819_v34 = vpop.f32.mrb[31].mxu0  ;;  %v13700_v19 = vpack.c.bf16 %v3204_v7, %v3202_v44  ;;  %v3768_v53 = vrot.slane %v13614_v54, 2 }
 0x40f   : > { %15094 = vst [vmem:[#allocation29_spill] sm:$0xff] %v13697_v56  ;;  %v2930_v43 = vmax.f32 %v2898_v31, 0.0  ;;  %v2899_v62 = vadd.f32 %v13376_v1, %v2819_v34  ;;  %v13704_v48 = vld [vmem:[#allocation3 + $0x150] sm:$0xff]  ;;  %v3770_v52 = vrot.slane %v13589_v18, 2  ;;  %v3771_v26 = vrot.slane %v13605_v61, 2 }
 0x410   : > { %15095 = vst [vmem:[#allocation36_spill] sm:$0xff] %v13700_v19  ;;  %3021 = vst.msk [vmem:[#allocation3 + $0x181] sm:$0xff] %vm2934_vm6, %v2932_v0  ;;  %v2933_v63 = vmax.f32 %v2901_v17, 0.0  ;;  %10381 = vmatmul.mubr.msk.bf16.gmra.mrb[20].mxu1 %vm2934_vm6, %v13700_v19  ;;  %v3062_v32 = vld [vmem:[#allocation3 + $0x138] sm:$0xff]  ;;  %v3215_v7 = vrot.slane %v13704_v48, 1  ;;  %v3769_v54 = vsel %vm1242_vm5, %v3766_v12, %v3768_v53  ;;  %v3773_v44 = vrot.slane %v13607_v41, 2 }
 0x411   : > { %3019 = vst.msk [vmem:[#allocation3 + $0x169] sm:$0xff] %vm2934_vm6, %v2930_v43  ;;  %v2931_v1 = vmax.f32 %v2899_v62, 0.0  ;;  %10384 = vmatprep.mubr.msk.bf16.mxu1 %vm2934_vm6, %v13697_v56  ;;  %v3210_v18 = vrot.slane %v3062_v32, 1  ;;  %v3066_v61 = vld [vmem:[#allocation3 + $0x158] sm:$0xff]  ;;  %v3067_v49 = vld [vmem:[#allocation3 + $0x160] sm:$0x3]  ;;  %v13717_v22 = vpack.c.bf16 %v3769_v54, %v3767_v24  ;;  %v3772_v55 = vsel %vm1242_vm5, %v3770_v52, %v3771_v26 }
 0x412   : > { %3022 = vst.msk [vmem:[#allocation3 + $0x189] sm:$0xff] %vm2934_vm6, %v2933_v63  ;;  %v3063_v37 = vld [vmem:[#allocation3 + $0x140] sm:$0xff]  ;;  %v3064_v31 = vld [vmem:[#allocation3 + $0x148] sm:$0x3]  ;;  %v3216_v12 = vrot.slane %v3066_v61, 1  ;;  %v3218_v0 = vrot.slane %v3067_v49, 1  ;;  %v13722_v41 = vpack.c.bf16 %v3066_v61, %v13704_v48  ;;  %v3774_v17 = vsel %vm1242_vm5, %v3771_v26, %v3773_v44 }
 0x413   : > { %3020 = vst.msk [vmem:[#allocation3 + $0x171] sm:$0xff] %vm2934_vm6, %v2931_v1  ;;  %v3211_v34 = vrot.slane %v3063_v37, 1  ;;  %v3213_v53 = vrot.slane %v3064_v31, 1  ;;  %v13726_v43 = vpack.c.bf16 %v3063_v37, %v3062_v32  ;;  %v13728_v24 = vpack.c.bf16 %v3774_v17, %v3772_v55 }
 0x414   : > { %v3217_v62 = vsel %vm683_vm4, %v3215_v7, %v3216_v12  ;;  %v3219_v52 = vsel %vm683_vm4, %v3216_v12, %v3218_v0  ;;  %v3775_v63 = vrot.slane %v13654_v27, 2  ;;  %v3776_v54 = vrot.slane %v13670_v42, 2 }
 0x415   : > { %v3212_v56 = vsel %vm683_vm4, %v3210_v18, %v3211_v34  ;;  %v3214_v26 = vsel %vm683_vm4, %v3211_v34, %v3213_v53  ;;  %v13736_v44 = vpack.c.bf16 %v3219_v52, %v3217_v62  ;;  %v3778_v1 = vrot.slane %v13672_v2, 2 }
 0x416   : > { %v13739_v19 = vpack.c.bf16 %v3214_v26, %v3212_v56  ;;  %v3777_v55 = vsel %vm1242_vm5, %v3775_v63, %v3776_v54  ;;  %v3780_v7 = vrot.slane %v13647_v13, 2  ;;  %v3781_v12 = vrot.slane %v13663_v57, 2 }
 0x417   : > { %v3779_v27 = vsel %vm1242_vm5, %v3776_v54, %v3778_v1  ;;  %v3783_v42 = vrot.slane %v13665_v29, 2  ;;  %v3785_v0 = vrot.slane %v3062_v32, 2  ;;  %v3786_v18 = vrot.slane %v3063_v37, 2 }
 0x418   : > { %10385 = vmatmul.mubr.msk.bf16.gmra.mrb[24].mxu1 %vm2934_vm6, %v13739_v19  ;;  %v3068_v17 = vld [vmem:[#allocation3 + $0x168] sm:$0xff]  ;;  %v13748_v34 = vpack.c.bf16 %v3779_v27, %v3777_v55  ;;  %v3782_v56 = vsel %vm1242_vm5, %v3780_v7, %v3781_v12  ;;  %v3788_v2 = vrot.slane %v3064_v31, 2  ;;  %v3790_v53 = vrot.slane %v13704_v48, 2 }
 0x419   : > { %10388 = vmatprep.mubr.msk.bf16.mxu1 %vm2934_vm6, %v13736_v44  ;;  %v3220_v13 = vrot.slane %v3068_v17, 1  ;;  %v3784_v57 = vsel %vm1242_vm5, %v3781_v12, %v3783_v42  ;;  %v3787_v29 = vsel %vm1242_vm5, %v3785_v0, %v3786_v18  ;;  %v3791_v32 = vrot.slane %v3066_v61, 2  ;;  %v13765_v42 = vld [vmem:[#allocation3 + $0x180] sm:$0xff]  ;;  %v13767_v0 = vld [vmem:[#allocation3 + $0x188] sm:$0xff] }
 0x41a   : > { %v3069_v37 = vld [vmem:[#allocation3 + $0x170] sm:$0xff]  ;;  %v3070_v62 = vld [vmem:[#allocation3 + $0x178] sm:$0x3]  ;;  %v13756_v52 = vpack.c.bf16 %v3784_v57, %v3782_v56  ;;  %v3789_v63 = vsel %vm1242_vm5, %v3786_v18, %v3788_v2  ;;  %v3793_v54 = vrot.slane %v3067_v49, 2  ;;  %v3795_v26 = vrot.slane %v3068_v17, 2 }
 0x41b   : > { %v3221_v31 = vrot.slane %v3069_v37, 1  ;;  %v3223_v1 = vrot.slane %v3070_v62, 1  ;;  %v13759_v48 = vpack.c.bf16 %v3069_v37, %v3068_v17  ;;  %v13761_v55 = vpack.c.bf16 %v3789_v63, %v3787_v29  ;;  %v13773_v17 = vld [vmem:[#allocation3 + $0x190] sm:$0x3] }
 0x41c   : > { %v3792_v7 = vsel %vm1242_vm5, %v3790_v53, %v3791_v32  ;;  %v3794_v12 = vsel %vm1242_vm5, %v3791_v32, %v3793_v54  ;;  %v3796_v27 = vrot.slane %v3069_v37, 2  ;;  %v3798_v61 = vrot.slane %v3070_v62, 2 }
 0x41d   : > { %v3222_v18 = vsel %vm683_vm4, %v3220_v13, %v3221_v31  ;;  %v3224_v49 = vsel %vm683_vm4, %v3221_v31, %v3223_v1  ;;  %v13771_v56 = vpack.c.bf16 %v3794_v12, %v3792_v7  ;;  %v4544_v32 = vrot.slane %v13765_v42, 2  ;;  %v11673_v31 = vld [vmem:[#allocation10 + $0x28] sm:$0xff]   ;;  %v11674_v1 = vld [vmem:[#allocation10 + $0x30] sm:$0xff]   ;;  %v11679_v7 = vld [vmem:[#allocation10 + $0x58] sm:$0xff]  }
 0x41e   : > { %v13775_v2 = vpack.c.bf16 %v3224_v49, %v3222_v18  ;;  %v3797_v53 = vsel %vm1242_vm5, %v3795_v26, %v3796_v27  ;;  %v3799_v57 = vsel %vm1242_vm5, %v3796_v27, %v3798_v61  ;;  %v4545_v37 = vrot.slane %v13767_v0, 2  ;;  %v11680_v12 = vld [vmem:[#allocation10 + $0x60] sm:$0xff]   ;;  %v15099_v27 = vld [vmem:[#allocation41_spill] sm:$0xff] }
 0x41f   : > { %v13779_v29 = vpack.c.bf16 %v3799_v57, %v3797_v53  ;;  %v4547_v13 = vrot.slane %v13773_v17, 2  ;;  %v15096_v62 = vpack.c.bf16 %v13364_v46, %v13362_v4  ;;  %v15097_v4 = vpack.c.bf16 %v13399_v40, %v13396_v38  ;;  %v11675_v46 = vld [vmem:[#allocation10 + $0x38] sm:$0xff]   ;;  %v11677_v38 = vld [vmem:[#allocation10 + $0x48] sm:$0xff]   ;;  %v11678_v40 = vld [vmem:[#allocation10 + $0x50] sm:$0xff]  }
 0x420   : > { %10389 = vmatmul.mubr.msk.bf16.gmra.mrb[28].mxu1 %vm2934_vm6, %v13775_v2  ;;  %v4546_v63 = vsel %vm1242_vm5, %v4544_v32, %v4545_v37  ;;  %v15100_v61 = vld [vmem:[#allocation24_spill] sm:$0xff]  ;;  %v15101_v18 = vld [vmem:[#allocation25_spill] sm:$0xff]  ;;  %v4324_v57 = vrot.slane %v13767_v0, 1  ;;  %v4326_v32 = vrot.slane %v13773_v17, 1 }
 0x421   : > { %10396 = vmatprep.mubr.msk.bf16.mxu1 %vm2934_vm6, %v15096_v62  ;;  %v4548_v54 = vsel %vm1242_vm5, %v4545_v37, %v4547_v13  ;;  %v15102_v49 = vld [vmem:[#allocation36_spill] sm:$0xff]  ;;  %v15103_v53 = vld [vmem:[#allocation29_spill] sm:$0xff]  ;;  %v4323_v37 = vrot.slane %v13765_v42, 1 }
 0x422   : > { %v13792_v26 = vpack.c.bf16 %v4548_v54, %v4546_v63  ;;  %v4327_v62 = vsel %vm683_vm4, %v4324_v57, %v4326_v32  ;;  %v11684_v17 = vld [vmem:[#allocation10 + $0x80] sm:$0xff]  }
 0x423   : > { %v4325_v13 = vsel %vm683_vm4, %v4323_v37, %v4324_v57 }
 0x424   : > { %v13930_v63 = vpack.c.bf16 %v4327_v62, %v4325_v13 }
 0x428   : > { %10397 = vmatmul.mubr.msk.bf16.vlgmr.msra.gmra.mrb[0].mxu1 %vm2934_vm6, %v13420_v51 }
 0x429   : > { %10429 = vmatpush3.bf16.msra.mxu1 %v13458_v36  ;;  %10400 = vmatprep.mubr.msk.bf16.mxu1 %vm2934_vm6, %v13414_v58  ;;  %v11676_v36 = vld [vmem:[#allocation10 + $0x40] sm:$0xff]  }
 0x42a   : > { %10430 = vmatprep.subr.bf16.mxu1 %v11673_v31 }
 0x42d   : > { %10431 = vmatpush3.bf16.msra.mxu1 %v11673_v31 }
 0x42e   : > { %10464 = vmatprep.subr.bf16.mxu1 %v11674_v1 }
 0x430   : > { %10401 = vmatmul.mubr.msk.bf16.gmra.mrb[4].mxu1 %vm2934_vm6, %v13467_v15 }
 0x431   : > { %10404 = vmatprep.mubr.msk.bf16.mxu1 %vm2934_vm6, %v13462_v16 }
 0x438   : > { %10405 = vmatmul.mubr.msk.bf16.gmra.mrb[8].mxu1 %vm2934_vm6, %v13517_v23 }
 0x439   : > { %10408 = vmatprep.mubr.msk.bf16.mxu1 %vm2934_vm6, %v13511_v10 }
 0x440   : > { %10409 = vmatmul.mubr.msk.bf16.gmra.mrb[12].mxu1 %vm2934_vm6, %v13571_v35 }
 0x441   : > { %10412 = vmatprep.mubr.msk.bf16.mxu1 %vm2934_vm6, %v13563_v8 }
 0x448   : > { %10413 = vmatmul.mubr.msk.bf16.gmra.mrb[16].mxu1 %vm2934_vm6, %v13629_v28 }
 0x449   : > { %10416 = vmatprep.mubr.msk.bf16.mxu1 %vm2934_vm6, %v13620_v39 }
 0x450   : > { %10417 = vmatmul.mubr.msk.bf16.gmra.mrb[20].mxu1 %vm2934_vm6, %v13686_v14 }
 0x451   : > { %10420 = vmatprep.mubr.msk.bf16.mxu1 %vm2934_vm6, %v13678_v11 }
 0x458   : > { %10421 = vmatmul.mubr.msk.bf16.gmra.mrb[24].mxu1 %vm2934_vm6, %v13726_v43 }
 0x459   : > { %10424 = vmatprep.mubr.msk.bf16.mxu1 %vm2934_vm6, %v13722_v41 }
 0x460   : > { %10425 = vmatmul.mubr.msk.bf16.gmra.mrb[28].mxu1 %vm2934_vm6, %v13759_v48 }
 0x461   : > { %10432 = vmatprep.mubr.msk.bf16.mxu1 %vm2934_vm6, %v15097_v4 }
 0x468   : > { %10433 = vmatmul.mubr.msk.bf16.vlgmr.msra.gmra.mrb[0].mxu1 %vm2934_vm6, %v13442_v25 }
 0x469   : > { %10465 = vmatpush3.bf16.msra.mxu1 %v11674_v1  ;;  %10436 = vmatprep.mubr.msk.bf16.mxu1 %vm2934_vm6, %v13473_v33 }
 0x46a   : > { %10466 = vmatprep.subr.bf16.mxu1 %v11675_v46 }
 0x46d   : > { %10467 = vmatpush3.bf16.msra.mxu1 %v11675_v46 }
 0x46e   : > { %10500 = vmatprep.subr.bf16.mxu1 %v11676_v36 }
 0x470   : > { %10437 = vmatmul.mubr.msk.bf16.gmra.mrb[4].mxu1 %vm2934_vm6, %v13513_v9 }
 0x471   : > { %10440 = vmatprep.mubr.msk.bf16.mxu1 %vm2934_vm6, %v13536_v47 }
 0x478   : > { %10441 = vmatmul.mubr.msk.bf16.gmra.mrb[8].mxu1 %vm2934_vm6, %v13577_v59 }
 0x479   : > { %10444 = vmatprep.mubr.msk.bf16.mxu1 %vm2934_vm6, %v13622_v45 }
 0x480   : > { %10445 = vmatmul.mubr.msk.bf16.gmra.mrb[12].mxu1 %vm2934_vm6, %v13644_v60 }
 0x481   : > { %10448 = vmatprep.mubr.msk.bf16.mxu1 %vm2934_vm6, %v13688_v21 }
 0x488   : > { %10449 = vmatmul.mubr.msk.bf16.gmra.mrb[16].mxu1 %vm2934_vm6, %v13717_v22 }
 0x489   : > { %10452 = vmatprep.mubr.msk.bf16.mxu1 %vm2934_vm6, %v13728_v24 }
 0x490   : > { %10453 = vmatmul.mubr.msk.bf16.gmra.mrb[20].mxu1 %vm2934_vm6, %v13748_v34 }
 0x491   : > { %10456 = vmatprep.mubr.msk.bf16.mxu1 %vm2934_vm6, %v13756_v52 }
 0x498   : > { %10457 = vmatmul.mubr.msk.bf16.gmra.mrb[24].mxu1 %vm2934_vm6, %v13761_v55 }
 0x499   : > { %10460 = vmatprep.mubr.msk.bf16.mxu1 %vm2934_vm6, %v13771_v56 }
 0x4a0   : > { %10461 = vmatmul.mubr.msk.bf16.gmra.mrb[28].mxu1 %vm2934_vm6, %v13779_v29 }
 0x4a1   : > { %10468 = vmatprep.mubr.msk.bf16.mxu1 %vm2934_vm6, %v13420_v51  ;;  %v13891_v51 = vpack.c.bf16 %v13767_v0, %v13765_v42  ;;  %v11681_v0 = vld [vmem:[#allocation10 + $0x68] sm:$0xff]   ;;  %v11682_v42 = vld [vmem:[#allocation10 + $0x70] sm:$0xff]  }
 0x4a8   : > { %10469 = vmatmul.mubr.msk.bf16.vlgmr.msra.gmra.mrb[0].mxu1 %vm2934_vm6, %v13414_v58 }
 0x4a9   : > { %10501 = vmatpush3.bf16.msra.mxu1 %v11676_v36  ;;  %10472 = vmatprep.mubr.msk.bf16.mxu1 %vm2934_vm6, %v13467_v15 }
 0x4aa   : > { %10502 = vmatprep.subr.bf16.mxu1 %v11677_v38 }
 0x4ad   : > { %10503 = vmatpush3.bf16.msra.mxu1 %v11677_v38 }
 0x4ae   : > { %10536 = vmatprep.subr.bf16.mxu1 %v11678_v40 }
 0x4b0   : > { %10473 = vmatmul.mubr.msk.bf16.gmra.mrb[4].mxu1 %vm2934_vm6, %v13462_v16 }
 0x4b1   : > { %10476 = vmatprep.mubr.msk.bf16.mxu1 %vm2934_vm6, %v13517_v23 }
 0x4b8   : > { %10477 = vmatmul.mubr.msk.bf16.gmra.mrb[8].mxu1 %vm2934_vm6, %v13511_v10 }
 0x4b9   : > { %10480 = vmatprep.mubr.msk.bf16.mxu1 %vm2934_vm6, %v13571_v35 }
 0x4c0   : > { %10481 = vmatmul.mubr.msk.bf16.gmra.mrb[12].mxu1 %vm2934_vm6, %v13563_v8 }
 0x4c1   : > { %10484 = vmatprep.mubr.msk.bf16.mxu1 %vm2934_vm6, %v13629_v28 }
 0x4c8   : > { %10485 = vmatmul.mubr.msk.bf16.gmra.mrb[16].mxu1 %vm2934_vm6, %v13620_v39 }
 0x4c9   : > { %10488 = vmatprep.mubr.msk.bf16.mxu1 %vm2934_vm6, %v13686_v14 }
 0x4d0   : > { %10489 = vmatmul.mubr.msk.bf16.gmra.mrb[20].mxu1 %vm2934_vm6, %v13678_v11 }
 0x4d1   : > { %10492 = vmatprep.mubr.msk.bf16.mxu1 %vm2934_vm6, %v13726_v43 }
 0x4d8   : > { %10493 = vmatmul.mubr.msk.bf16.gmra.mrb[24].mxu1 %vm2934_vm6, %v13722_v41 }
 0x4d9   : > { %10496 = vmatprep.mubr.msk.bf16.mxu1 %vm2934_vm6, %v13759_v48 }
 0x4e0   : > { %10497 = vmatmul.mubr.msk.bf16.gmra.mrb[28].mxu1 %vm2934_vm6, %v13891_v51 }
 0x4e1   : > { %10504 = vmatprep.mubr.msk.bf16.mxu1 %vm2934_vm6, %v13428_v50  ;;  %v15098_v50 = vld [vmem:[#allocation26_spill] sm:$0xff] }
 0x4e8   : > { %10505 = vmatmul.mubr.msk.bf16.vlgmr.msra.gmra.mrb[0].mxu1 %vm2934_vm6, %v13425_v6 }
 0x4e9   : > { %10537 = vmatpush3.bf16.msra.mxu1 %v11678_v40  ;;  %10508 = vmatprep.mubr.msk.bf16.mxu1 %vm2934_vm6, %v13481_v3 }
 0x4ea   : > { %10538 = vmatprep.subr.bf16.mxu1 %v11679_v7 }
 0x4ed   : > { %10539 = vmatpush3.bf16.msra.mxu1 %v11679_v7 }
 0x4ee   : > { %10572 = vmatprep.subr.bf16.mxu1 %v11680_v12 }
 0x4f0   : > { %10509 = vmatmul.mubr.msk.bf16.gmra.mrb[4].mxu1 %vm2934_vm6, %v13478_v30 }
 0x4f1   : > { %10512 = vmatprep.mubr.msk.bf16.mxu1 %vm2934_vm6, %v13530_v20 }
 0x4f8   : > { %10513 = vmatmul.mubr.msk.bf16.gmra.mrb[8].mxu1 %vm2934_vm6, %v13527_v5 }
 0x4f9   : > { %10516 = vmatprep.mubr.msk.bf16.mxu1 %vm2934_vm6, %v15098_v50 }
 0x500   : > { %10517 = vmatmul.mubr.msk.bf16.gmra.mrb[12].mxu1 %vm2934_vm6, %v15099_v27 }
 0x501   : > { %10520 = vmatprep.mubr.msk.bf16.mxu1 %vm2934_vm6, %v15100_v61 }
 0x508   : > { %10521 = vmatmul.mubr.msk.bf16.gmra.mrb[16].mxu1 %vm2934_vm6, %v15101_v18 }
 0x509   : > { %10524 = vmatprep.mubr.msk.bf16.mxu1 %vm2934_vm6, %v15102_v49 }
 0x510   : > { %10525 = vmatmul.mubr.msk.bf16.gmra.mrb[20].mxu1 %vm2934_vm6, %v15103_v53 }
 0x511   : > { %10528 = vmatprep.mubr.msk.bf16.mxu1 %vm2934_vm6, %v13739_v19 }
 0x518   : > { %10529 = vmatmul.mubr.msk.bf16.gmra.mrb[24].mxu1 %vm2934_vm6, %v13736_v44 }
 0x519   : > { %10532 = vmatprep.mubr.msk.bf16.mxu1 %vm2934_vm6, %v13775_v2 }
 0x520   : > { %10533 = vmatmul.mubr.msk.bf16.gmra.mrb[28].mxu1 %vm2934_vm6, %v13930_v63 }
 0x521   : > { %10540 = vmatprep.mubr.msk.bf16.mxu1 %vm2934_vm6, %v13442_v25  ;;  %v11683_v25 = vld [vmem:[#allocation10 + $0x78] sm:$0xff]  }
 0x528   : > { %10541 = vmatmul.mubr.msk.bf16.vlgmr.msra.gmra.mrb[0].mxu1 %vm2934_vm6, %v13473_v33 }
 0x529   : > { %10573 = vmatpush3.bf16.msra.mxu1 %v11680_v12  ;;  %10544 = vmatprep.mubr.msk.bf16.mxu1 %vm2934_vm6, %v13513_v9 }
 0x52a   : > { %10574 = vmatprep.subr.bf16.mxu1 %v11681_v0 }
 0x52d   : > { %10575 = vmatpush3.bf16.msra.mxu1 %v11681_v0 }
 0x52e   : > { %10608 = vmatprep.subr.bf16.mxu1 %v11682_v42 }
 0x530   : > { %10545 = vmatmul.mubr.msk.bf16.gmra.mrb[4].mxu1 %vm2934_vm6, %v13536_v47 }
 0x531   : > { %10548 = vmatprep.mubr.msk.bf16.mxu1 %vm2934_vm6, %v13577_v59 }
 0x538   : > { %10549 = vmatmul.mubr.msk.bf16.gmra.mrb[8].mxu1 %vm2934_vm6, %v13622_v45 }
 0x539   : > { %10552 = vmatprep.mubr.msk.bf16.mxu1 %vm2934_vm6, %v13644_v60 }
 0x540   : > { %10553 = vmatmul.mubr.msk.bf16.gmra.mrb[12].mxu1 %vm2934_vm6, %v13688_v21 }
 0x541   : > { %10556 = vmatprep.mubr.msk.bf16.mxu1 %vm2934_vm6, %v13717_v22 }
 0x548   : > { %10557 = vmatmul.mubr.msk.bf16.gmra.mrb[16].mxu1 %vm2934_vm6, %v13728_v24 }
 0x549   : > { %10560 = vmatprep.mubr.msk.bf16.mxu1 %vm2934_vm6, %v13748_v34 }
 0x550   : > { %10561 = vmatmul.mubr.msk.bf16.gmra.mrb[20].mxu1 %vm2934_vm6, %v13756_v52 }
 0x551   : > { %10564 = vmatprep.mubr.msk.bf16.mxu1 %vm2934_vm6, %v13761_v55 }
 0x558   : > { %10565 = vmatmul.mubr.msk.bf16.gmra.mrb[24].mxu1 %vm2934_vm6, %v13771_v56 }
 0x559   : > { %10568 = vmatprep.mubr.msk.bf16.mxu1 %vm2934_vm6, %v13779_v29 }
 0x560   : > { %10569 = vmatmul.mubr.msk.bf16.gmra.mrb[28].mxu1 %vm2934_vm6, %v13792_v26 }
 0x561   : > { %10576 = vmatprep.mubr.msk.bf16.mxu1 %vm2934_vm6, %v13414_v58  ;;  %v3074_v58 = vld [vmem:[#allocation3 + $0x198] sm:$0xff] }
 0x568   : > { %10577 = vmatmul.mubr.msk.bf16.vlgmr.msra.gmra.mrb[0].mxu1 %vm2934_vm6, %v13467_v15  ;;  %v5203_v15 = vrot.slane %v3074_v58, 2 }
 0x569   : > { %10609 = vmatpush3.bf16.msra.mxu1 %v11682_v42  ;;  %10580 = vmatprep.mubr.msk.bf16.mxu1 %vm2934_vm6, %v13462_v16  ;;  %v3075_v16 = vld [vmem:[#allocation3 + $0x1a0] sm:$0xff] }
 0x56a   : > { %10610 = vmatprep.subr.bf16.mxu1 %v11683_v25 }
 0x56d   : > { %10611 = vmatpush3.bf16.msra.mxu1 %v11683_v25 }
 0x56e   : > { %10644 = vmatprep.subr.bf16.mxu1 %v11684_v17 }
 0x570   : > { %10581 = vmatmul.mubr.msk.bf16.gmra.mrb[4].mxu1 %vm2934_vm6, %v13517_v23  ;;  %v3076_v23 = vld [vmem:[#allocation3 + $0x1a8] sm:$0x3] }
 0x571   : > { %10584 = vmatprep.mubr.msk.bf16.mxu1 %vm2934_vm6, %v13511_v10  ;;  %v5204_v10 = vrot.slane %v3075_v16, 2 }
 0x578   : > { %10585 = vmatmul.mubr.msk.bf16.gmra.mrb[8].mxu1 %vm2934_vm6, %v13571_v35  ;;  %v5206_v35 = vrot.slane %v3076_v23, 2 }
 0x579   : > { %10588 = vmatprep.mubr.msk.bf16.mxu1 %vm2934_vm6, %v13563_v8  ;;  %v5205_v8 = vsel %vm1242_vm5, %v5203_v15, %v5204_v10 }
 0x580   : > { %10589 = vmatmul.mubr.msk.bf16.gmra.mrb[12].mxu1 %vm2934_vm6, %v13629_v28  ;;  %v4765_v28 = vpack.c.bf16 %v3075_v16, %v3074_v58 }
 0x581   : > { %10592 = vmatprep.mubr.msk.bf16.mxu1 %vm2934_vm6, %v13620_v39  ;;  %v5207_v39 = vsel %vm1242_vm5, %v5204_v10, %v5206_v35 }
 0x588   : > { %10593 = vmatmul.mubr.msk.bf16.gmra.mrb[16].mxu1 %vm2934_vm6, %v13686_v14  ;;  %v11685_v14 = vld [vmem:[#allocation10 + $0x88] sm:$0xff]  }
 0x589   : > { %10596 = vmatprep.mubr.msk.bf16.mxu1 %vm2934_vm6, %v13678_v11  ;;  %v5210_v11 = vpack.c.bf16 %v5207_v39, %v5205_v8 }
 0x590   : > { %10597 = vmatmul.mubr.msk.bf16.gmra.mrb[20].mxu1 %vm2934_vm6, %v13726_v43 }
 0x591   : > { %10600 = vmatprep.mubr.msk.bf16.mxu1 %vm2934_vm6, %v13722_v41 }
 0x598   : > { %10601 = vmatmul.mubr.msk.bf16.gmra.mrb[24].mxu1 %vm2934_vm6, %v13759_v48 }
 0x599   : > { %10604 = vmatprep.mubr.msk.bf16.mxu1 %vm2934_vm6, %v13891_v51 }
 0x5a0   : > { %10605 = vmatmul.mubr.msk.bf16.gmra.mrb[28].mxu1 %vm2934_vm6, %v4765_v28 }
 0x5a1   : > { %10612 = vmatprep.mubr.msk.bf16.mxu1 %vm2934_vm6, %v13425_v6  ;;  %v4982_v6 = vrot.slane %v3074_v58, 1 }
 0x5a8   : > { %10613 = vmatmul.mubr.msk.bf16.vlgmr.msra.gmra.mrb[0].mxu1 %vm2934_vm6, %v13481_v3  ;;  %v4985_v3 = vrot.slane %v3076_v23, 1 }
 0x5a9   : > { %10645 = vmatpush3.bf16.msra.mxu1 %v11684_v17  ;;  %10616 = vmatprep.mubr.msk.bf16.mxu1 %vm2934_vm6, %v13478_v30  ;;  %v4983_v30 = vrot.slane %v3075_v16, 1 }
 0x5aa   : > { %10646 = vmatprep.subr.bf16.mxu1 %v11685_v14 }
 0x5ad   : > { %10647 = vmatpush3.bf16.msra.mxu1 %v11685_v14 }
 0x5b0   : > { %10617 = vmatmul.mubr.msk.bf16.gmra.mrb[4].mxu1 %vm2934_vm6, %v13530_v20  ;;  %v4986_v20 = vsel %vm683_vm4, %v4983_v30, %v4985_v3 }
 0x5b1   : > { %10620 = vmatprep.mubr.msk.bf16.mxu1 %vm2934_vm6, %v13527_v5  ;;  %v4984_v5 = vsel %vm683_vm4, %v4982_v6, %v4983_v30 }
 0x5b2   : > { %v4989_v41 = vpack.c.bf16 %v4986_v20, %v4984_v5 }
 0x5b8   : > { %10621 = vmatmul.mubr.msk.bf16.gmra.mrb[8].mxu1 %vm2934_vm6, %v15098_v50 }
 0x5b9   : > { %10624 = vmatprep.mubr.msk.bf16.mxu1 %vm2934_vm6, %v15099_v27 }
 0x5c0   : > { %10625 = vmatmul.mubr.msk.bf16.gmra.mrb[12].mxu1 %vm2934_vm6, %v15100_v61 }
 0x5c1   : > { %10628 = vmatprep.mubr.msk.bf16.mxu1 %vm2934_vm6, %v15101_v18 }
 0x5c8   : > { %10629 = vmatmul.mubr.msk.bf16.gmra.mrb[16].mxu1 %vm2934_vm6, %v15102_v49 }
 0x5c9   : > { %10632 = vmatprep.mubr.msk.bf16.mxu1 %vm2934_vm6, %v15103_v53 }
 0x5d0   : > { %10633 = vmatmul.mubr.msk.bf16.gmra.mrb[20].mxu1 %vm2934_vm6, %v13739_v19  ;;  %v14063_v19 = vld [vmem:[#allocation11] ss:$0 sm:$0xff] }
 0x5d1   : > { %10636 = vmatprep.mubr.msk.bf16.mxu1 %vm2934_vm6, %v13736_v44 }
 0x5d8   : > { %10637 = vmatmul.mubr.msk.bf16.gmra.mrb[24].mxu1 %vm2934_vm6, %v13775_v2 }
 0x5d9   : > { %10640 = vmatprep.mubr.msk.bf16.mxu1 %vm2934_vm6, %v13930_v63 }
 0x5e0   : > { %10641 = vmatmul.mubr.msk.bf16.gmra.mrb[28].mxu1 %vm2934_vm6, %v4989_v41 }
 0x5e1   : > { %10648 = vmatprep.mubr.msk.bf16.mxu1 %vm2934_vm6, %v13473_v33  ;;  %v11686_v33 = vld [vmem:[#allocation13 + $0x10] sm:$0xff]  }
 0x5e2   : > { %10680 = vmatprep.subr.bf16.mxu0 %v11686_v33 }
 0x5e3   : > { %10681 = vmatpush3.bf16.msra.mxu0 %v11686_v33 }
 0x5e8   : > { %10649 = vmatmul.mubr.msk.bf16.vlgmr.msra.gmra.mrb[0].mxu1 %vm2934_vm6, %v13513_v9  ;;  %v12009_v9 = vmov 1983009808  }
 0x5e9   : > { %10652 = vmatprep.mubr.msk.bf16.mxu1 %vm2934_vm6, %v13536_v47  ;;  %v5561_v47 = vunpack.c.l.s4 %v12009_v9 }
 0x5f0   : > { %10653 = vmatmul.mubr.msk.bf16.gmra.mrb[4].mxu1 %vm2934_vm6, %v13577_v59  ;;  %v5563_v59 = vlaneseq }
 0x5f1   : > { %10656 = vmatprep.mubr.msk.bf16.mxu1 %vm2934_vm6, %v13622_v45 }
 0x5f2   : > { %v5564_v43 = vshrl.u32 %v5563_v59, 7 }
 0x5f8   : > { %10657 = vmatmul.mubr.msk.bf16.gmra.mrb[8].mxu1 %vm2934_vm6, %v13644_v60 }
 0x5f9   : > { %10660 = vmatprep.mubr.msk.bf16.mxu1 %vm2934_vm6, %v13688_v21 }
 0x600   : > { %10661 = vmatmul.mubr.msk.bf16.gmra.mrb[12].mxu1 %vm2934_vm6, %v13717_v22  ;;  %v5562_v22 = vunpack.c.0.s8 %v5561_v47 }
 0x601   : > { %10664 = vmatprep.mubr.msk.bf16.mxu1 %vm2934_vm6, %v13728_v24 }
 0x608   : > { %10665 = vmatmul.mubr.msk.bf16.gmra.mrb[16].mxu1 %vm2934_vm6, %v13748_v34 }
 0x609   : > { %10668 = vmatprep.mubr.msk.bf16.mxu1 %vm2934_vm6, %v13756_v52 }
 0x610   : > { %10669 = vmatmul.mubr.msk.bf16.gmra.mrb[20].mxu1 %vm2934_vm6, %v13761_v55  ;;  %v6507_v55 = vld [vmem:[#allocation4] sm:$0xff] }
 0x611   : > { %10672 = vmatprep.mubr.msk.bf16.mxu1 %vm2934_vm6, %v13771_v56  ;;  %v6508_v56 = vld [vmem:[#allocation4 + $0x8] sm:$0x3]  ;;  %v6551_v46 = vrot.slane %v6507_v55, 1 }
 0x612   : > { %v6552_v36 = vrot.slane %v6508_v56, 1 }
 0x614   : > { %v14085_v57 = vsel %vm683_vm4, %v6551_v46, %v6552_v36 }
 0x618   : > { %10673 = vmatmul.mubr.msk.bf16.gmra.mrb[24].mxu1 %vm2934_vm6, %v13779_v29 }
 0x619   : > { %10676 = vmatprep.mubr.msk.bf16.mxu1 %vm2934_vm6, %v13792_v26  ;;  %v14070_v26 = vsub.s32 %v5562_v22, %v5564_v43 }
 0x620   : > { %10677 = vmatmul.mubr.msk.bf16.gmra.mrb[28].mxu1 %vm2934_vm6, %v5210_v11 }
 0x6bb   : > { %v10650_v45 = vpop.f32.mrb[0].mxu1 }
 0x6bc   : > { %v5433_v60 = vadd.f32 %v10650_v45, %v14063_v19  ;;  %v5265_v21 = vpop.f32.mrb[1].mxu1 }
 0x6bd   : > { %v5431_v24 = vadd.f32 %v14063_v19, %v5265_v21  ;;  %v10651_v44 = vpop.f32.mrb[2].mxu1 }
 0x6be   : > { %v5465_v34 = vmax.f32 %v5433_v60, 0.0  ;;  %v5434_v52 = vadd.f32 %v10651_v44, %v14063_v19  ;;  %v5268_v48 = vpop.f32.mrb[3].mxu1  ;;  %v11687_v60 = vld [vmem:[#allocation13 + $0x18] sm:$0xff]  }
 0x6bf   : > { %v5463_v2 = vmax.f32 %v5431_v24, 0.0  ;;  %v5432_v29 = vadd.f32 %v14063_v19, %v5268_v48  ;;  %10682 = vmatprep.subr.bf16.mxu0 %v11687_v60 }
 0x6c0   : > { %v5496_v54 = vsel %vm2934_vm6, %v5465_v34, -inf  ;;  %v5466_v31 = vmax.f32 %v5434_v52, 0.0  ;;  %10683 = vmatpush3.bf16.msra.mxu0 %v11687_v60 }
 0x6c1   : > { %v5495_v1 = vsel %vm2934_vm6, %v5463_v2, -inf  ;;  %v5464_v4 = vmax.f32 %v5432_v29, 0.0 }
 0x6c2   : > { %v5497_v38 = vmax.f32 %v5495_v1, %v5496_v54  ;;  %v5499_v40 = vsel %vm2934_vm6, %v5466_v31, -inf }
 0x6c3   : > { %v5498_v51 = vsel %vm2934_vm6, %v5464_v4, -inf  ;;  %v10654_v7 = vpop.f32.mrb[4].mxu1 }
 0x6c4   : > { %v5559_v12 = vcombine.high %v5497_v38, %v5497_v38  ;;  %v5566_v50 = vrot.slane %v5497_v38, %v14070_v26  ;;  %v5500_v27 = vmax.f32 %v5498_v51, %v5499_v40  ;;  %v14077_v61 = vadd.f32 %v10654_v7, %v14063_v19  ;;  %v5281_v18 = vpop.f32.mrb[5].mxu1 }
 0x6c5   : > { %v14080_v49 = vadd.f32 %v14063_v19, %v5281_v18  ;;  %v14082_v53 = vpop.f32.mrb[6].mxu1 }
 0x6c6   : > { %v5573_v32 = vrot.slane %v5559_v12, %v14070_v26  ;;  %v5574_v37 = vcombine.high %v5566_v50, %v5566_v50  ;;  %v5895_v13 = vsel %vm2937_vm7, %v5566_v50, -inf  ;;  %v5576_v62 = vcombine.high %v5500_v27, %v5500_v27  ;;  %v14089_v63 = vpop.f32.mrb[7].mxu1 }
 0x6c7   : > { %v5896_v0 = vrot.slane %v5895_v13, 4  ;;  %v5583_v42 = vrot.slane %v5500_v27, %v14070_v26  ;;  %v5469_v25 = vmax.f32 %v14077_v61, 0.0  ;;  %v5467_v17 = vmax.f32 %v14080_v49, 0.0 }
 0x6c8   : > { %v5575_v58 = vcombine.high %v5573_v32, %v5573_v32  ;;  %v5902_v16 = vsel %vm2937_vm7, %v5574_v37, -inf  ;;  %v5909_v15 = vsel %vm2937_vm7, %v5573_v32, -inf  ;;  %v5590_v10 = vrot.slane %v5576_v62, %v14070_v26 }
 0x6c9   : > { %v5897_v23 = vmax.f32 %v5895_v13, %v5896_v0  ;;  %v5903_v8 = vrot.slane %v5902_v16, 4  ;;  %v5910_v35 = vrot.slane %v5909_v15, 4  ;;  %v5591_v39 = vcombine.high %v5583_v42, %v5583_v42 }
 0x6ca   : > { %v5916_v28 = vsel %vm2937_vm7, %v5575_v58, -inf  ;;  %v5592_v11 = vcombine.high %v5590_v10, %v5590_v10  ;;  %v5923_v14 = vsel %vm2937_vm7, %v5583_v42, -inf  ;;  %v5937_v6 = vsel %vm2937_vm7, %v5590_v10, -inf }
 0x6cb   : > { %v5898_v30 = vrot.slane %v5897_v23, 2  ;;  %v5904_v3 = vmax.f32 %v5902_v16, %v5903_v8  ;;  %v5911_v5 = vmax.f32 %v5909_v15, %v5910_v35  ;;  %v5917_v20 = vrot.slane %v5916_v28, 4  ;;  %v14100_v41 = vpop.f32.mrb[8].mxu1 }
 0x6cc   : > { %v5924_v33 = vrot.slane %v5923_v14, 4  ;;  %v5930_v9 = vsel %vm2937_vm7, %v5591_v39, -inf  ;;  %v5938_v47 = vrot.slane %v5937_v6, 4  ;;  %v5944_v59 = vsel %vm2937_vm7, %v5592_v11, -inf  ;;  %v14104_v45 = vpop.f32.mrb[9].mxu1 }
 0x6cd   : > { %v5899_v21 = vmax.f32 %v5897_v23, %v5898_v30  ;;  %v5905_v22 = vrot.slane %v5904_v3, 2  ;;  %v5912_v43 = vrot.slane %v5911_v5, 2  ;;  %v5918_v24 = vmax.f32 %v5916_v28, %v5917_v20  ;;  %v14106_v44 = vpop.f32.mrb[10].mxu1 }
 0x6ce   : > { %v5925_v34 = vmax.f32 %v5923_v14, %v5924_v33  ;;  %v5931_v52 = vrot.slane %v5930_v9, 4  ;;  %v5939_v48 = vmax.f32 %v5937_v6, %v5938_v47  ;;  %v5945_v55 = vrot.slane %v5944_v59, 4  ;;  %v14108_v56 = vpop.f32.mrb[11].mxu1 }
 0x6cf   : > { %v5900_v2 = vrot.slane %v5899_v21, 1  ;;  %v5906_v29 = vmax.f32 %v5904_v3, %v5905_v22  ;;  %v5913_v54 = vmax.f32 %v5911_v5, %v5912_v43  ;;  %v5919_v31 = vrot.slane %v5918_v24, 2 }
 0x6d0   : > { %v5926_v1 = vrot.slane %v5925_v34, 2  ;;  %v5932_v4 = vmax.f32 %v5930_v9, %v5931_v52  ;;  %v5940_v46 = vrot.slane %v5939_v48, 2  ;;  %v5946_v36 = vmax.f32 %v5944_v59, %v5945_v55 }
 0x6d1   : > { %v5901_v38 = vmax.f32 %v5899_v21, %v5900_v2  ;;  %v5907_v40 = vrot.slane %v5906_v29, 1  ;;  %v5914_v51 = vrot.slane %v5913_v54, 1  ;;  %v5920_v7 = vmax.f32 %v5918_v24, %v5919_v31 }
 0x6d2   : > { %v5927_v12 = vmax.f32 %v5925_v34, %v5926_v1  ;;  %v5933_v50 = vrot.slane %v5932_v4, 2  ;;  %v5941_v27 = vmax.f32 %v5939_v48, %v5940_v46  ;;  %v5947_v18 = vrot.slane %v5946_v36, 2 }
 0x6d3   : > { %v5908_v32 = vmax.f32 %v5906_v29, %v5907_v40  ;;  %v5915_v37 = vmax.f32 %v5913_v54, %v5914_v51  ;;  %v5921_v13 = vrot.slane %v5920_v7, 1  ;;  %v5502_v62 = vsel %vm2934_vm6, %v5469_v25, -inf  ;;  %v14113_v0 = vpop.f32.mrb[12].mxu1 }
 0x6d4   : > { %v5928_v42 = vrot.slane %v5927_v12, 1  ;;  %v5934_v58 = vmax.f32 %v5932_v4, %v5933_v50  ;;  %v5942_v16 = vrot.slane %v5941_v27, 1  ;;  %v5948_v15 = vmax.f32 %v5946_v36, %v5947_v18  ;;  %v14115_v10 = vpop.f32.mrb[13].mxu1 }
 0x6d5   : > { %v5922_v23 = vmax.f32 %v5920_v7, %v5921_v13  ;;  %v6428_v8 = vsel %vm6427_vm8, %v5908_v32, %v5901_v38  ;;  %v5501_v35 = vsel %vm2934_vm6, %v5467_v17, -inf  ;;  %v5438_v61 = vadd.f32 %v14082_v53, %v14063_v19  ;;  %v14123_v39 = vpop.f32.mrb[14].mxu1 }
 0x6d6   : > { %v6430_v25 = vsel %vm6429_vm9, %v5915_v37, %v6428_v8  ;;  %v5929_v28 = vmax.f32 %v5927_v12, %v5928_v42  ;;  %v5935_v11 = vrot.slane %v5934_v58, 1  ;;  %v5943_v14 = vmax.f32 %v5941_v27, %v5942_v16  ;;  %v14126_v6 = vpop.f32.mrb[15].mxu1 }
 0x6d7   : > { %v5949_v30 = vrot.slane %v5948_v15, 1  ;;  %v6432_v3 = vsel %vm6431_vm10, %v5922_v23, %v6430_v25  ;;  %v5503_v5 = vmax.f32 %v5501_v35, %v5502_v62  ;;  %v5470_v20 = vmax.f32 %v5438_v61, 0.0 }
 0x6d8   : > { %v5936_v49 = vmax.f32 %v5934_v58, %v5935_v11  ;;  %v6434_v17 = vsel %vm6433_vm11, %v5929_v28, %v6432_v3  ;;  %v5436_v53 = vadd.f32 %v14063_v19, %v14089_v63  ;;  %v5441_v33 = vadd.f32 %v14100_v41, %v14063_v19 }
 0x6d9   : > { %v5950_v9 = vmax.f32 %v5948_v15, %v5949_v30  ;;  %v5593_v47 = vcombine.high %v5503_v5, %v5503_v5  ;;  %v5600_v59 = vrot.slane %v5503_v5, %v14070_v26  ;;  %v5505_v60 = vsel %vm2934_vm6, %v5470_v20, -inf }
 0x6da   : > { %v6436_v21 = vsel %vm6435_vm12, %v5936_v49, %v6434_v17  ;;  %v5468_v22 = vmax.f32 %v5436_v53, 0.0  ;;  %v5473_v43 = vmax.f32 %v5441_v33, 0.0  ;;  %v5439_v24 = vadd.f32 %v14063_v19, %v14104_v45 }
 0x6db   : > { %v6438_v34 = vsel %vm6437_vm13, %v5943_v14, %v6436_v21  ;;  %v5607_v63 = vrot.slane %v5593_v47, %v14070_v26  ;;  %v5608_v52 = vcombine.high %v5600_v59, %v5600_v59  ;;  %v5951_v41 = vsel %vm2937_vm7, %v5600_v59, -inf  ;;  %v14142_v48 = vpop.f32.mrb[16].mxu1 }
 0x6dc   : > { %v6440_v55 = vsel %vm6439_vm14, %v5950_v9, %v6438_v34  ;;  %v5952_v2 = vrot.slane %v5951_v41, 4  ;;  %v5504_v29 = vsel %vm2934_vm6, %v5468_v22, -inf  ;;  %v5508_v54 = vsel %vm2934_vm6, %v5473_v43, -inf  ;;  %v14147_v31 = vpop.f32.mrb[17].mxu1 }
 0x6dd   : > { %6499 = vst.msk [vmem:[#allocation4 + $0x11] sm:$0xff] %vm2934_vm6, %v6440_v55  ;;  %v5609_v45 = vcombine.high %v5607_v63, %v5607_v63  ;;  %v5958_v1 = vsel %vm2937_vm7, %v5608_v52, -inf  ;;  %v5965_v4 = vsel %vm2937_vm7, %v5607_v63, -inf  ;;  %v5506_v46 = vmax.f32 %v5504_v29, %v5505_v60  ;;  %v14152_v36 = vpop.f32.mrb[18].mxu1 }
 0x6de   : > { %v5953_v38 = vmax.f32 %v5951_v41, %v5952_v2  ;;  %v5959_v40 = vrot.slane %v5958_v1, 4  ;;  %v5966_v51 = vrot.slane %v5965_v4, 4  ;;  %v5471_v7 = vmax.f32 %v5439_v24, 0.0  ;;  %v14154_v12 = vpop.f32.mrb[19].mxu1 }
 0x6df   : > { %v5972_v50 = vsel %vm2937_vm7, %v5609_v45, -inf  ;;  %v5610_v27 = vcombine.high %v5506_v46, %v5506_v46  ;;  %v5617_v18 = vrot.slane %v5506_v46, %v14070_v26  ;;  %v14160_v32 = vadd.f32 %v14106_v44, %v14063_v19 }
 0x6e0   : > { %v5954_v37 = vrot.slane %v5953_v38, 2  ;;  %v5960_v13 = vmax.f32 %v5958_v1, %v5959_v40  ;;  %v5967_v62 = vmax.f32 %v5965_v4, %v5966_v51  ;;  %v5973_v42 = vrot.slane %v5972_v50, 4 }
 0x6e1   : > { %v5624_v58 = vrot.slane %v5610_v27, %v14070_v26  ;;  %v5625_v16 = vcombine.high %v5617_v18, %v5617_v18  ;;  %v5979_v15 = vsel %vm2937_vm7, %v5617_v18, -inf  ;;  %v5507_v23 = vsel %vm2934_vm6, %v5471_v7, -inf }
 0x6e2   : > { %v5955_v8 = vmax.f32 %v5953_v38, %v5954_v37  ;;  %v5961_v35 = vrot.slane %v5960_v13, 2  ;;  %v5968_v61 = vrot.slane %v5967_v62, 2  ;;  %v5974_v25 = vmax.f32 %v5972_v50, %v5973_v42 }
 0x6e3   : > { %v5626_v28 = vcombine.high %v5624_v58, %v5624_v58  ;;  %v5980_v11 = vrot.slane %v5979_v15, 4  ;;  %v5986_v44 = vsel %vm2937_vm7, %v5625_v16, -inf  ;;  %v5993_v14 = vsel %vm2937_vm7, %v5624_v58, -inf  ;;  %v14167_v30 = vpop.f32.mrb[20].mxu1 }
 0x6e4   : > { %v5956_v3 = vrot.slane %v5955_v8, 1  ;;  %v5962_v5 = vmax.f32 %v5960_v13, %v5961_v35  ;;  %v5969_v20 = vmax.f32 %v5967_v62, %v5968_v61  ;;  %v5975_v49 = vrot.slane %v5974_v25, 2  ;;  %v14169_v17 = vpop.f32.mrb[21].mxu1 }
 0x6e5   : > { %v5981_v53 = vmax.f32 %v5979_v15, %v5980_v11  ;;  %v5987_v33 = vrot.slane %v5986_v44, 4  ;;  %v5994_v9 = vrot.slane %v5993_v14, 4  ;;  %v6000_v47 = vsel %vm2937_vm7, %v5626_v28, -inf  ;;  %v14172_v59 = vpop.f32.mrb[22].mxu1 }
 0x6e6   : > { %v5957_v60 = vmax.f32 %v5955_v8, %v5956_v3  ;;  %v5963_v21 = vrot.slane %v5962_v5, 1  ;;  %v5970_v22 = vrot.slane %v5969_v20, 1  ;;  %v5976_v43 = vmax.f32 %v5974_v25, %v5975_v49  ;;  %v14174_v24 = vpop.f32.mrb[23].mxu1 }
 0x6e7   : > { %v5982_v34 = vrot.slane %v5981_v53, 2  ;;  %v5988_v63 = vmax.f32 %v5986_v44, %v5987_v33  ;;  %v5995_v52 = vmax.f32 %v5993_v14, %v5994_v9  ;;  %v6001_v41 = vrot.slane %v6000_v47, 4 }
 0x6e8   : > { %v5964_v55 = vmax.f32 %v5962_v5, %v5963_v21  ;;  %v5971_v2 = vmax.f32 %v5969_v20, %v5970_v22  ;;  %v5977_v29 = vrot.slane %v5976_v43, 1  ;;  %v5509_v45 = vmax.f32 %v5507_v23, %v5508_v54 }
 0x6e9   : > { %v5983_v1 = vmax.f32 %v5981_v53, %v5982_v34  ;;  %v5989_v4 = vrot.slane %v5988_v63, 2  ;;  %v5996_v46 = vrot.slane %v5995_v52, 2  ;;  %v6002_v38 = vmax.f32 %v6000_v47, %v6001_v41 }
 0x6ea   : > { %v5978_v40 = vmax.f32 %v5976_v43, %v5977_v29  ;;  %v6441_v51 = vsel %vm6427_vm8, %v5964_v55, %v5957_v60  ;;  %v5627_v7 = vcombine.high %v5509_v45, %v5509_v45  ;;  %v5634_v50 = vrot.slane %v5509_v45, %v14070_v26 }
 0x6eb   : > { %v6442_v27 = vsel %vm6429_vm9, %v5971_v2, %v6441_v51  ;;  %v5984_v18 = vrot.slane %v5983_v1, 1  ;;  %v5990_v37 = vmax.f32 %v5988_v63, %v5989_v4  ;;  %v5997_v13 = vmax.f32 %v5995_v52, %v5996_v46  ;;  %v14179_v62 = vpop.f32.mrb[24].mxu1 }
 0x6ec   : > { %v6003_v42 = vrot.slane %v6002_v38, 2  ;;  %v6443_v54 = vsel %vm6431_vm10, %v5978_v40, %v6442_v27  ;;  %v5641_v58 = vrot.slane %v5627_v7, %v14070_v26  ;;  %v5642_v16 = vcombine.high %v5634_v50, %v5634_v50  ;;  %v14183_v15 = vpop.f32.mrb[25].mxu1 }
 0x6ed   : > { %v5985_v23 = vmax.f32 %v5983_v1, %v5984_v18  ;;  %v5991_v8 = vrot.slane %v5990_v37, 1  ;;  %v5998_v35 = vrot.slane %v5997_v13, 1  ;;  %v6007_v61 = vsel %vm2937_vm7, %v5634_v50, -inf  ;;  %v14186_v25 = vpop.f32.mrb[26].mxu1 }
 0x6ee   : > { %v6004_v28 = vmax.f32 %v6002_v38, %v6003_v42  ;;  %v5643_v11 = vcombine.high %v5641_v58, %v5641_v58  ;;  %v6008_v44 = vrot.slane %v6007_v61, 4  ;;  %v6014_v14 = vsel %vm2937_vm7, %v5642_v16, -inf  ;;  %v14189_v3 = vpop.f32.mrb[27].mxu1 }
 0x6ef   : > { %v5992_v5 = vmax.f32 %v5990_v37, %v5991_v8  ;;  %v5999_v20 = vmax.f32 %v5997_v13, %v5998_v35  ;;  %v6444_v49 = vsel %vm6433_vm11, %v5985_v23, %v6443_v54  ;;  %v6015_v53 = vrot.slane %v6014_v14, 4 }
 0x6f0   : > { %v6005_v33 = vrot.slane %v6004_v28, 1  ;;  %v6009_v9 = vmax.f32 %v6007_v61, %v6008_v44  ;;  %v6021_v47 = vsel %vm2937_vm7, %v5641_v58, -inf  ;;  %v6028_v60 = vsel %vm2937_vm7, %v5643_v11, -inf }
 0x6f1   : > { %v6445_v21 = vsel %vm6435_vm12, %v5992_v5, %v6444_v49  ;;  %v6016_v22 = vmax.f32 %v6014_v14, %v6015_v53  ;;  %v6022_v43 = vrot.slane %v6021_v47, 4  ;;  %v6029_v34 = vrot.slane %v6028_v60, 4 }
 0x6f2   : > { %v6006_v63 = vmax.f32 %v6004_v28, %v6005_v33  ;;  %v6446_v52 = vsel %vm6437_vm13, %v5999_v20, %v6445_v21  ;;  %v6010_v41 = vrot.slane %v6009_v9, 2  ;;  %v5474_v55 = vmax.f32 %v14160_v32, 0.0  ;;  %v14224_v33 = vld [vmem:[#allocation13] sm:$0xff]  }
 0x6f3   : > { %v6017_v2 = vrot.slane %v6016_v22, 2  ;;  %v6023_v29 = vmax.f32 %v6021_v47, %v6022_v43  ;;  %v6030_v45 = vmax.f32 %v6028_v60, %v6029_v34  ;;  %v5440_v1 = vadd.f32 %v14063_v19, %v14108_v56  ;;  %v14199_v4 = vpop.f32.mrb[28].mxu1  ;;  %10692 = vmatprep.subr.bf16.mxu0 %v14224_v33 }
 0x6f4   : > { %v6447_v46 = vsel %vm6439_vm14, %v6006_v63, %v6446_v52  ;;  %v6011_v38 = vmax.f32 %v6009_v9, %v6010_v41  ;;  %v5511_v40 = vsel %vm2934_vm6, %v5474_v55, -inf  ;;  %v5445_v51 = vadd.f32 %v14113_v0, %v14063_v19  ;;  %v14205_v7 = vpop.f32.mrb[29].mxu1 }
 0x6f5   : > { %6500 = vst.msk [vmem:[#allocation4 + $0x21] sm:$0xff] %vm2934_vm6, %v6447_v46  ;;  %v6018_v32 = vmax.f32 %v6016_v22, %v6017_v2  ;;  %v6024_v50 = vrot.slane %v6023_v29, 2  ;;  %v6031_v27 = vrot.slane %v6030_v45, 2  ;;  %v5472_v18 = vmax.f32 %v5440_v1, 0.0  ;;  %v14208_v37 = vpop.f32.mrb[30].mxu1 }
 0x6f6   : > { %v6012_v56 = vrot.slane %v6011_v38, 1  ;;  %v5477_v13 = vmax.f32 %v5445_v51, 0.0  ;;  %v5443_v42 = vadd.f32 %v14063_v19, %v14115_v10  ;;  %v5446_v54 = vadd.f32 %v14123_v39, %v14063_v19  ;;  %v14214_v58 = vpop.f32.mrb[31].mxu1 }
 0x6f7   : > { %v6019_v0 = vrot.slane %v6018_v32, 1  ;;  %v6025_v16 = vmax.f32 %v6023_v29, %v6024_v50  ;;  %v6032_v23 = vmax.f32 %v6030_v45, %v6031_v27  ;;  %v5510_v8 = vsel %vm2934_vm6, %v5472_v18, -inf }
 0x6f8   : > { %v6013_v35 = vmax.f32 %v6011_v38, %v6012_v56  ;;  %v5512_v61 = vmax.f32 %v5510_v8, %v5511_v40  ;;  %v5514_v28 = vsel %vm2934_vm6, %v5477_v13, -inf  ;;  %v5475_v11 = vmax.f32 %v5443_v42, 0.0 }
 0x6f9   : > { %v6020_v44 = vmax.f32 %v6018_v32, %v6019_v0  ;;  %v6026_v14 = vrot.slane %v6025_v16, 1  ;;  %v6033_v5 = vrot.slane %v6032_v23, 1  ;;  %v5478_v20 = vmax.f32 %v5446_v54, 0.0 }
 0x6fa   : > { %v5644_v10 = vcombine.high %v5512_v61, %v5512_v61  ;;  %v5651_v49 = vrot.slane %v5512_v61, %v14070_v26  ;;  %v5513_v39 = vsel %vm2934_vm6, %v5475_v11, -inf  ;;  %v14222_v53 = vadd.f32 %v14063_v19, %v14126_v6 }
 0x6fb   : > { %v6027_v9 = vmax.f32 %v6025_v16, %v6026_v14  ;;  %v6034_v47 = vmax.f32 %v6032_v23, %v6033_v5  ;;  %v6448_v60 = vsel %vm6427_vm8, %v6020_v44, %v6013_v35  ;;  %v5515_v21 = vmax.f32 %v5513_v39, %v5514_v28 }
 0x6fc   : > { %v5658_v22 = vrot.slane %v5644_v10, %v14070_v26  ;;  %v5659_v43 = vcombine.high %v5651_v49, %v5651_v49  ;;  %v6035_v34 = vsel %vm2937_vm7, %v5651_v49, -inf  ;;  %v14230_v63 = vsel %vm2934_vm6, %v5478_v20, -inf }
 0x6fd   : > { %v6449_v6 = vsel %vm6429_vm9, %v6027_v9, %v6448_v60  ;;  %v6036_v52 = vrot.slane %v6035_v34, 4  ;;  %v5661_v41 = vcombine.high %v5515_v21, %v5515_v21  ;;  %v5668_v55 = vrot.slane %v5515_v21, %v14070_v26 }
 0x6fe   : > { %v5660_v2 = vcombine.high %v5658_v22, %v5658_v22  ;;  %v6042_v29 = vsel %vm2937_vm7, %v5659_v43, -inf  ;;  %v6049_v45 = vsel %vm2937_vm7, %v5658_v22, -inf  ;;  %v6450_v1 = vsel %vm6431_vm10, %v6034_v47, %v6449_v6 }
 0x6ff   : > { %v6037_v46 = vmax.f32 %v6035_v34, %v6036_v52  ;;  %v6043_v38 = vrot.slane %v6042_v29, 4  ;;  %v6050_v40 = vrot.slane %v6049_v45, 4  ;;  %v5675_v51 = vrot.slane %v5661_v41, %v14070_v26 }
 0x700   : > { %v6056_v32 = vsel %vm2937_vm7, %v5660_v2, -inf  ;;  %v5676_v50 = vcombine.high %v5668_v55, %v5668_v55  ;;  %v6063_v27 = vsel %vm2937_vm7, %v5668_v55, -inf  ;;  %v5476_v18 = vmax.f32 %v14222_v53, 0.0 }
 0x701   : > { %v6038_v56 = vrot.slane %v6037_v46, 2  ;;  %v6044_v13 = vmax.f32 %v6042_v29, %v6043_v38  ;;  %v6051_v42 = vmax.f32 %v6049_v45, %v6050_v40  ;;  %v6057_v54 = vrot.slane %v6056_v32, 4 }
 0x702   : > { %v5677_v0 = vcombine.high %v5675_v51, %v5675_v51  ;;  %v6064_v16 = vrot.slane %v6063_v27, 4  ;;  %v6070_v23 = vsel %vm2937_vm7, %v5676_v50, -inf  ;;  %v6077_v8 = vsel %vm2937_vm7, %v5675_v51, -inf }
 0x703   : > { %v6039_v35 = vmax.f32 %v6037_v46, %v6038_v56  ;;  %v6045_v61 = vrot.slane %v6044_v13, 2  ;;  %v6052_v28 = vrot.slane %v6051_v42, 2  ;;  %v6058_v11 = vmax.f32 %v6056_v32, %v6057_v54 }
 0x704   : > { %v6065_v44 = vmax.f32 %v6063_v27, %v6064_v16  ;;  %v6071_v14 = vrot.slane %v6070_v23, 4  ;;  %v6078_v5 = vrot.slane %v6077_v8, 4  ;;  %v6084_v20 = vsel %vm2937_vm7, %v5677_v0, -inf }
 0x705   : > { %v6040_v10 = vrot.slane %v6039_v35, 1  ;;  %v6046_v49 = vmax.f32 %v6044_v13, %v6045_v61  ;;  %v6053_v39 = vmax.f32 %v6051_v42, %v6052_v28  ;;  %v6059_v53 = vrot.slane %v6058_v11, 2 }
 0x706   : > { %v6066_v9 = vrot.slane %v6065_v44, 2  ;;  %v6072_v47 = vmax.f32 %v6070_v23, %v6071_v14  ;;  %v6079_v60 = vmax.f32 %v6077_v8, %v6078_v5  ;;  %v6085_v21 = vrot.slane %v6084_v20, 4 }
 0x707   : > { %v6041_v22 = vmax.f32 %v6039_v35, %v6040_v10  ;;  %v6047_v43 = vrot.slane %v6046_v49, 1  ;;  %v6054_v34 = vrot.slane %v6053_v39, 1  ;;  %v6060_v6 = vmax.f32 %v6058_v11, %v6059_v53 }
 0x708   : > { %v6067_v52 = vmax.f32 %v6065_v44, %v6066_v9  ;;  %v6073_v41 = vrot.slane %v6072_v47, 2  ;;  %v6080_v55 = vrot.slane %v6079_v60, 2  ;;  %v6086_v2 = vmax.f32 %v6084_v20, %v6085_v21 }
 0x709   : > { %v6048_v29 = vmax.f32 %v6046_v49, %v6047_v43  ;;  %v6055_v45 = vmax.f32 %v6053_v39, %v6054_v34  ;;  %v6061_v46 = vrot.slane %v6060_v6, 1  ;;  %v6451_v38 = vsel %vm6433_vm11, %v6041_v22, %v6450_v1 }
 0x70a   : > { %v6068_v40 = vrot.slane %v6067_v52, 1  ;;  %v6074_v51 = vmax.f32 %v6072_v47, %v6073_v41  ;;  %v6081_v32 = vmax.f32 %v6079_v60, %v6080_v55  ;;  %v6087_v50 = vrot.slane %v6086_v2, 2 }
 0x70b   : > { %v6062_v27 = vmax.f32 %v6060_v6, %v6061_v46  ;;  %v6452_v56 = vsel %vm6435_vm12, %v6048_v29, %v6451_v38  ;;  %v5516_v13 = vsel %vm2934_vm6, %v5476_v18, -inf  ;;  %v5449_v42 = vadd.f32 %v14142_v48, %v14063_v19 }
 0x70c   : > { %v6453_v54 = vsel %vm6437_vm13, %v6055_v45, %v6452_v56  ;;  %v6069_v0 = vmax.f32 %v6067_v52, %v6068_v40  ;;  %v6075_v16 = vrot.slane %v6074_v51, 1  ;;  %v6082_v23 = vrot.slane %v6081_v32, 1 }
 0x70d   : > { %v6454_v8 = vsel %vm6439_vm14, %v6062_v27, %v6453_v54  ;;  %v6088_v1 = vmax.f32 %v6086_v2, %v6087_v50  ;;  %v5518_v35 = vmax.f32 %v5516_v13, %v14230_v63  ;;  %v5481_v61 = vmax.f32 %v5449_v42, 0.0 }
 0x70e   : > { %6501 = vst.msk [vmem:[#allocation4 + $0x31] sm:$0xff] %vm2934_vm6, %v6454_v8  ;;  %v6076_v28 = vmax.f32 %v6074_v51, %v6075_v16  ;;  %v6083_v11 = vmax.f32 %v6081_v32, %v6082_v23  ;;  %v5447_v18 = vadd.f32 %v14063_v19, %v14147_v31  ;;  %v5450_v48 = vadd.f32 %v14152_v36, %v14063_v19 }
 0x70f   : > { %v6089_v44 = vrot.slane %v6088_v1, 1  ;;  %v5678_v14 = vcombine.high %v5518_v35, %v5518_v35  ;;  %v5685_v5 = vrot.slane %v5518_v35, %v14070_v26  ;;  %v5520_v20 = vsel %vm2934_vm6, %v5481_v61, -inf }
 0x710   : > { %v6455_v10 = vsel %vm6427_vm8, %v6076_v28, %v6069_v0  ;;  %v5479_v63 = vmax.f32 %v5447_v18, 0.0  ;;  %v5482_v49 = vmax.f32 %v5450_v48, 0.0  ;;  %v5448_v39 = vadd.f32 %v14063_v19, %v14154_v12 }
 0x711   : > { %v6090_v53 = vmax.f32 %v6088_v1, %v6089_v44  ;;  %v6456_v9 = vsel %vm6429_vm9, %v6083_v11, %v6455_v10  ;;  %v5692_v31 = vrot.slane %v5678_v14, %v14070_v26  ;;  %v5693_v47 = vcombine.high %v5685_v5, %v5685_v5 }
 0x712   : > { %v6091_v36 = vsel %vm2937_vm7, %v5685_v5, -inf  ;;  %v5519_v60 = vsel %vm2934_vm6, %v5479_v63, -inf  ;;  %v5523_v21 = vsel %vm2934_vm6, %v5482_v49, -inf  ;;  %v5480_v22 = vmax.f32 %v5448_v39, 0.0 }
 0x713   : > { %v5694_v43 = vcombine.high %v5692_v31, %v5692_v31  ;;  %v6092_v34 = vrot.slane %v6091_v36, 4  ;;  %v6098_v6 = vsel %vm2937_vm7, %v5693_v47, -inf  ;;  %v6105_v52 = vsel %vm2937_vm7, %v5692_v31, -inf }
 0x714   : > { %v6099_v12 = vrot.slane %v6098_v6, 4  ;;  %v6106_v41 = vrot.slane %v6105_v52, 4  ;;  %v6457_v55 = vsel %vm6431_vm10, %v6090_v53, %v6456_v9  ;;  %v5521_v2 = vmax.f32 %v5519_v60, %v5520_v20 }
 0x715   : > { %v6093_v29 = vmax.f32 %v6091_v36, %v6092_v34  ;;  %v6112_v45 = vsel %vm2937_vm7, %v5694_v43, -inf  ;;  %v5522_v46 = vsel %vm2934_vm6, %v5480_v22, -inf  ;;  %v14275_v38 = vadd.f32 %v14167_v30, %v14063_v19 }
 0x716   : > { %v6100_v40 = vmax.f32 %v6098_v6, %v6099_v12  ;;  %v6107_v51 = vmax.f32 %v6105_v52, %v6106_v41  ;;  %v6113_v32 = vrot.slane %v6112_v45, 4  ;;  %v5695_v50 = vcombine.high %v5521_v2, %v5521_v2 }
 0x717   : > { %v6094_v27 = vrot.slane %v6093_v29, 2  ;;  %v5702_v56 = vrot.slane %v5521_v2, %v14070_v26  ;;  %v5524_v13 = vmax.f32 %v5522_v46, %v5523_v21  ;;  %v5485_v42 = vmax.f32 %v14275_v38, 0.0 }
 0x718   : > { %v6101_v54 = vrot.slane %v6100_v40, 2  ;;  %v6108_v0 = vrot.slane %v6107_v51, 2  ;;  %v6114_v16 = vmax.f32 %v6112_v45, %v6113_v32  ;;  %v5709_v23 = vrot.slane %v5695_v50, %v14070_v26 }
 0x719   : > { %v6095_v8 = vmax.f32 %v6093_v29, %v6094_v27  ;;  %v5710_v1 = vcombine.high %v5702_v56, %v5702_v56  ;;  %v6119_v30 = vsel %vm2937_vm7, %v5702_v56, -inf  ;;  %v5712_v35 = vcombine.high %v5524_v13, %v5524_v13 }
 0x71a   : > { %v6102_v61 = vmax.f32 %v6100_v40, %v6101_v54  ;;  %v6109_v28 = vmax.f32 %v6107_v51, %v6108_v0  ;;  %v6115_v11 = vrot.slane %v6114_v16, 2  ;;  %v5711_v18 = vcombine.high %v5709_v23, %v5709_v23 }
 0x71b   : > { %v6096_v48 = vrot.slane %v6095_v8, 1  ;;  %v6120_v44 = vrot.slane %v6119_v30, 4  ;;  %v6126_v14 = vsel %vm2937_vm7, %v5710_v1, -inf  ;;  %v6133_v5 = vsel %vm2937_vm7, %v5709_v23, -inf }
 0x71c   : > { %v6103_v20 = vrot.slane %v6102_v61, 1  ;;  %v6110_v10 = vrot.slane %v6109_v28, 1  ;;  %v6116_v63 = vmax.f32 %v6114_v16, %v6115_v11  ;;  %v6127_v49 = vrot.slane %v6126_v14, 4 }
 0x71d   : > { %v6097_v39 = vmax.f32 %v6095_v8, %v6096_v48  ;;  %v6121_v53 = vmax.f32 %v6119_v30, %v6120_v44  ;;  %v6134_v9 = vrot.slane %v6133_v5, 4  ;;  %v6140_v31 = vsel %vm2937_vm7, %v5711_v18, -inf }
 0x71e   : > { %v6104_v47 = vmax.f32 %v6102_v61, %v6103_v20  ;;  %v6111_v36 = vmax.f32 %v6109_v28, %v6110_v10  ;;  %v6117_v60 = vrot.slane %v6116_v63, 1  ;;  %v6128_v21 = vmax.f32 %v6126_v14, %v6127_v49 }
 0x71f   : > { %v6458_v22 = vsel %vm6433_vm11, %v6097_v39, %v6457_v55  ;;  %v6122_v43 = vrot.slane %v6121_v53, 2  ;;  %v6135_v34 = vmax.f32 %v6133_v5, %v6134_v9  ;;  %v6141_v6 = vrot.slane %v6140_v31, 4 }
 0x720   : > { %v6118_v52 = vmax.f32 %v6116_v63, %v6117_v60  ;;  %v6459_v12 = vsel %vm6435_vm12, %v6104_v47, %v6458_v22  ;;  %v6129_v41 = vrot.slane %v6128_v21, 2  ;;  %v5719_v2 = vrot.slane %v5524_v13, %v14070_v26 }
 0x721   : > { %v6460_v29 = vsel %vm6437_vm13, %v6111_v36, %v6459_v12  ;;  %v6123_v45 = vmax.f32 %v6121_v53, %v6122_v43  ;;  %v6136_v46 = vrot.slane %v6135_v34, 2  ;;  %v6142_v40 = vmax.f32 %v6140_v31, %v6141_v6  ;;  %v14304_v43 = vld [vmem:[#allocation4 + $0x10] sm:$0xff] }
 0x722   : > { %v6461_v51 = vsel %vm6439_vm14, %v6118_v52, %v6460_v29  ;;  %v6130_v32 = vmax.f32 %v6128_v21, %v6129_v41  ;;  %v5726_v50 = vrot.slane %v5712_v35, %v14070_v26  ;;  %v5727_v55 = vcombine.high %v5719_v2, %v5719_v2 }
 0x723   : > { %6502 = vst.msk [vmem:[#allocation4 + $0x41] sm:$0xff] %vm2934_vm6, %v6461_v51  ;;  %v6124_v27 = vrot.slane %v6123_v45, 1  ;;  %v6137_v56 = vmax.f32 %v6135_v34, %v6136_v46  ;;  %v6143_v54 = vrot.slane %v6142_v40, 2  ;;  %v6147_v0 = vsel %vm2937_vm7, %v5719_v2, -inf }
 0x724   : > { %v6131_v16 = vrot.slane %v6130_v32, 1  ;;  %v5728_v13 = vcombine.high %v5726_v50, %v5726_v50  ;;  %v6148_v23 = vrot.slane %v6147_v0, 4  ;;  %v6154_v8 = vsel %vm2937_vm7, %v5727_v55, -inf }
 0x725   : > { %v6125_v1 = vmax.f32 %v6123_v45, %v6124_v27  ;;  %v6138_v30 = vrot.slane %v6137_v56, 1  ;;  %v6144_v61 = vmax.f32 %v6142_v40, %v6143_v54  ;;  %v6155_v28 = vrot.slane %v6154_v8, 4 }
 0x726   : > { %v6132_v11 = vmax.f32 %v6130_v32, %v6131_v16  ;;  %v6149_v18 = vmax.f32 %v6147_v0, %v6148_v23  ;;  %v6161_v35 = vsel %vm2937_vm7, %v5726_v50, -inf  ;;  %v6168_v48 = vsel %vm2937_vm7, %v5728_v13, -inf }
 0x727   : > { %v6139_v44 = vmax.f32 %v6137_v56, %v6138_v30  ;;  %v6145_v14 = vrot.slane %v6144_v61, 1  ;;  %v6156_v5 = vmax.f32 %v6154_v8, %v6155_v28  ;;  %v6162_v20 = vrot.slane %v6161_v35, 4 }
 0x728   : > { %v6462_v10 = vsel %vm6427_vm8, %v6132_v11, %v6125_v1  ;;  %v6150_v63 = vrot.slane %v6149_v18, 2  ;;  %v6169_v49 = vrot.slane %v6168_v48, 4  ;;  %v5526_v39 = vsel %vm2934_vm6, %v5485_v42, -inf }
 0x729   : > { %v6146_v53 = vmax.f32 %v6144_v61, %v6145_v14  ;;  %v6463_v9 = vsel %vm6429_vm9, %v6139_v44, %v6462_v10  ;;  %v6157_v31 = vrot.slane %v6156_v5, 2  ;;  %v6163_v47 = vmax.f32 %v6161_v35, %v6162_v20 }
 0x72a   : > { %v6151_v36 = vmax.f32 %v6149_v18, %v6150_v63  ;;  %v6170_v60 = vmax.f32 %v6168_v48, %v6169_v49  ;;  %v5451_v21 = vadd.f32 %v14063_v19, %v14169_v17  ;;  %v5454_v22 = vadd.f32 %v14172_v59, %v14063_v19  ;;  %v14309_v17 = vld [vmem:[#allocation4 + $0x18] sm:$0x3] }
 0x72b   : > { %v6158_v34 = vmax.f32 %v6156_v5, %v6157_v31  ;;  %v6164_v6 = vrot.slane %v6163_v47, 2  ;;  %v6464_v38 = vsel %vm6431_vm10, %v6146_v53, %v6463_v9  ;;  %v5452_v42 = vadd.f32 %v14063_v19, %v14174_v24 }
 0x72c   : > { %v6152_v52 = vrot.slane %v6151_v36, 1  ;;  %v6171_v12 = vrot.slane %v6170_v60, 2  ;;  %v5483_v41 = vmax.f32 %v5451_v21, 0.0  ;;  %v5486_v2 = vmax.f32 %v5454_v22, 0.0 }
 0x72d   : > { %v6159_v29 = vrot.slane %v6158_v34, 1  ;;  %v6165_v45 = vmax.f32 %v6163_v47, %v6164_v6  ;;  %v5484_v46 = vmax.f32 %v5452_v42, 0.0  ;;  %v6554_v59 = vrot.slane %v14304_v43, 1 }
 0x72e   : > { %v6153_v40 = vmax.f32 %v6151_v36, %v6152_v52  ;;  %v6172_v51 = vmax.f32 %v6170_v60, %v6171_v12  ;;  %v5525_v32 = vsel %vm2934_vm6, %v5483_v41, -inf  ;;  %v5529_v50 = vsel %vm2934_vm6, %v5486_v2, -inf }
 0x72f   : > { %v6160_v55 = vmax.f32 %v6158_v34, %v6159_v29  ;;  %v6166_v27 = vrot.slane %v6165_v45, 1  ;;  %v5527_v19 = vmax.f32 %v5525_v32, %v5526_v39  ;;  %v5528_v24 = vsel %vm2934_vm6, %v5484_v46, -inf }
 0x730   : > { %v6173_v56 = vrot.slane %v6172_v51, 1  ;;  %v6465_v54 = vsel %vm6433_vm11, %v6153_v40, %v6464_v38  ;;  %v5530_v0 = vmax.f32 %v5528_v24, %v5529_v50  ;;  %v6555_v16 = vrot.slane %v14309_v17, 1 }
 0x731   : > { %v6167_v13 = vmax.f32 %v6165_v45, %v6166_v27  ;;  %v6466_v23 = vsel %vm6435_vm12, %v6160_v55, %v6465_v54  ;;  %v5729_v8 = vcombine.high %v5527_v19, %v5527_v19  ;;  %v5736_v1 = vrot.slane %v5527_v19, %v14070_v26 }
 0x732   : > { %v6174_v30 = vmax.f32 %v6172_v51, %v6173_v56  ;;  %v5746_v61 = vcombine.high %v5530_v0, %v5530_v0  ;;  %v5753_v28 = vrot.slane %v5530_v0, %v14070_v26  ;;  %v14321_v11 = vsel %vm683_vm4, %v6554_v59, %v6555_v16 }
 0x733   : > { %v6467_v18 = vsel %vm6437_vm13, %v6167_v13, %v6466_v23  ;;  %v5743_v35 = vrot.slane %v5729_v8, %v14070_v26  ;;  %v5744_v48 = vcombine.high %v5736_v1, %v5736_v1  ;;  %v6175_v44 = vsel %vm2937_vm7, %v5736_v1, -inf }
 0x734   : > { %v6468_v14 = vsel %vm6439_vm14, %v6174_v30, %v6467_v18  ;;  %v6176_v5 = vrot.slane %v6175_v44, 4  ;;  %v5760_v20 = vrot.slane %v5746_v61, %v14070_v26  ;;  %v5761_v10 = vcombine.high %v5753_v28, %v5753_v28 }
 0x735   : > { %6503 = vst.msk [vmem:[#allocation4 + $0x51] sm:$0xff] %vm2934_vm6, %v6468_v14  ;;  %v5745_v63 = vcombine.high %v5743_v35, %v5743_v35  ;;  %v6182_v49 = vsel %vm2937_vm7, %v5744_v48, -inf  ;;  %v6189_v39 = vsel %vm2937_vm7, %v5743_v35, -inf  ;;  %v6203_v53 = vsel %vm2937_vm7, %v5753_v28, -inf }
 0x736   : > { %v6177_v9 = vmax.f32 %v6175_v44, %v6176_v5  ;;  %v6183_v31 = vrot.slane %v6182_v49, 4  ;;  %v6190_v47 = vrot.slane %v6189_v39, 4  ;;  %v5762_v36 = vcombine.high %v5760_v20, %v5760_v20 }
 0x737   : > { %v6196_v60 = vsel %vm2937_vm7, %v5745_v63, -inf  ;;  %v6204_v21 = vrot.slane %v6203_v53, 4  ;;  %v6210_v22 = vsel %vm2937_vm7, %v5761_v10, -inf  ;;  %v6217_v34 = vsel %vm2937_vm7, %v5760_v20, -inf }
 0x738   : > { %v6178_v6 = vrot.slane %v6177_v9, 2  ;;  %v6184_v38 = vmax.f32 %v6182_v49, %v6183_v31  ;;  %v6191_v42 = vmax.f32 %v6189_v39, %v6190_v47  ;;  %v6197_v52 = vrot.slane %v6196_v60, 4 }
 0x739   : > { %v6205_v12 = vmax.f32 %v6203_v53, %v6204_v21  ;;  %v6211_v41 = vrot.slane %v6210_v22, 4  ;;  %v6218_v2 = vrot.slane %v6217_v34, 4  ;;  %v6224_v29 = vsel %vm2937_vm7, %v5762_v36, -inf }
 0x73a   : > { %v6179_v45 = vmax.f32 %v6177_v9, %v6178_v6  ;;  %v6185_v46 = vrot.slane %v6184_v38, 2  ;;  %v6192_v59 = vrot.slane %v6191_v42, 2  ;;  %v6198_v40 = vmax.f32 %v6196_v60, %v6197_v52  ;;  %v11740_v9 = vld [vmem:[#allocation11] ss:$0 sm:$0xff] }
 0x73b   : > { %v6206_v51 = vrot.slane %v6205_v12, 2  ;;  %v6212_v32 = vmax.f32 %v6210_v22, %v6211_v41  ;;  %v6219_v50 = vmax.f32 %v6217_v34, %v6218_v2  ;;  %v6225_v55 = vrot.slane %v6224_v29, 4 }
 0x73c   : > { %v6180_v27 = vrot.slane %v6179_v45, 1  ;;  %v6186_v19 = vmax.f32 %v6184_v38, %v6185_v46  ;;  %v6193_v24 = vmax.f32 %v6191_v42, %v6192_v59  ;;  %v6199_v56 = vrot.slane %v6198_v40, 2 }
 0x73d   : > { %v6207_v54 = vmax.f32 %v6205_v12, %v6206_v51  ;;  %v6213_v0 = vrot.slane %v6212_v32, 2  ;;  %v6220_v16 = vrot.slane %v6219_v50, 2  ;;  %v6226_v13 = vmax.f32 %v6224_v29, %v6225_v55 }
 0x73e   : > { %v6181_v23 = vmax.f32 %v6179_v45, %v6180_v27  ;;  %v6187_v8 = vrot.slane %v6186_v19, 1  ;;  %v6194_v1 = vrot.slane %v6193_v24, 1  ;;  %v6200_v30 = vmax.f32 %v6198_v40, %v6199_v56 }
 0x73f   : > { %v6208_v61 = vrot.slane %v6207_v54, 1  ;;  %v6214_v28 = vmax.f32 %v6212_v32, %v6213_v0  ;;  %v6221_v18 = vmax.f32 %v6219_v50, %v6220_v16  ;;  %v6227_v35 = vrot.slane %v6226_v13, 2  ;;  %v14358_v32 = vld [vmem:[#allocation4 + $0x20] sm:$0xff] }
 0x740   : > { %v6188_v48 = vmax.f32 %v6186_v19, %v6187_v8  ;;  %v6195_v44 = vmax.f32 %v6193_v24, %v6194_v1  ;;  %v6201_v14 = vrot.slane %v6200_v30, 1  ;;  %v6583_v5 = vpack.c.bf16 %v14321_v11, %v14085_v57 }
 0x741   : > { %v6209_v20 = vmax.f32 %v6207_v54, %v6208_v61  ;;  %v6215_v10 = vrot.slane %v6214_v28, 1  ;;  %v6222_v63 = vrot.slane %v6221_v18, 1  ;;  %v6228_v49 = vmax.f32 %v6226_v13, %v6227_v35 }
 0x742   : > { %v6202_v39 = vmax.f32 %v6200_v30, %v6201_v14  ;;  %v6469_v53 = vsel %vm6427_vm8, %v6188_v48, %v6181_v23  ;;  %10684 = vmatprep.mubr.msk.bf16.mxu0 %vm2934_vm6, %v6583_v5  ;;  %v5457_v31 = vadd.f32 %v11740_v9, %v14179_v62  ;;  %v5455_v47 = vadd.f32 %v11740_v9, %v14183_v15 }
 0x743   : > { %v6470_v36 = vsel %vm6429_vm9, %v6195_v44, %v6469_v53  ;;  %v6216_v60 = vmax.f32 %v6214_v28, %v6215_v10  ;;  %v6223_v21 = vmax.f32 %v6221_v18, %v6222_v63  ;;  %v6229_v22 = vrot.slane %v6228_v49, 1 }
 0x744   : > { %v6471_v57 = vsel %vm6431_vm10, %v6202_v39, %v6470_v36  ;;  %v5489_v34 = vmax.f32 %v5457_v31, 0.0  ;;  %v5487_v6 = vmax.f32 %v5455_v47, 0.0  ;;  %v5458_v38 = vadd.f32 %v11740_v9, %v14186_v25 }
 0x745   : > { %v6230_v42 = vmax.f32 %v6228_v49, %v6229_v22  ;;  %v6472_v52 = vsel %vm6433_vm11, %v6209_v20, %v6471_v57  ;;  %v5456_v12 = vadd.f32 %v11740_v9, %v14189_v3  ;;  %v5461_v62 = vadd.f32 %v11740_v9, %v14199_v4 }
 0x746   : > { %v6473_v15 = vsel %vm6435_vm12, %v6216_v60, %v6472_v52  ;;  %v5532_v41 = vsel %vm2934_vm6, %v5489_v34, -inf  ;;  %v5531_v2 = vsel %vm2934_vm6, %v5487_v6, -inf  ;;  %v5490_v29 = vmax.f32 %v5458_v38, 0.0 }
 0x747   : > { %v6474_v45 = vsel %vm6437_vm13, %v6223_v21, %v6473_v15  ;;  %v5533_v46 = vmax.f32 %v5531_v2, %v5532_v41  ;;  %v5488_v59 = vmax.f32 %v5456_v12, 0.0  ;;  %v5493_v40 = vmax.f32 %v5461_v62, 0.0 }
 0x748   : > { %v6475_v25 = vsel %vm6439_vm14, %v6230_v42, %v6474_v45  ;;  %v5535_v51 = vsel %vm2934_vm6, %v5490_v29, -inf  ;;  %v5459_v3 = vadd.f32 %v11740_v9, %v14205_v7  ;;  %v14356_v4 = vadd.f32 %v11740_v9, %v14208_v37 }
 0x749   : > { %6504 = vst.msk [vmem:[#allocation4 + $0x61] sm:$0xff] %vm2934_vm6, %v6475_v25  ;;  %v5763_v50 = vcombine.high %v5533_v46, %v5533_v46  ;;  %v5770_v55 = vrot.slane %v5533_v46, %v14070_v26  ;;  %v5534_v27 = vsel %vm2934_vm6, %v5488_v59, -inf  ;;  %v5538_v19 = vsel %vm2934_vm6, %v5493_v40, -inf }
 0x74a   : > { %v5536_v24 = vmax.f32 %v5534_v27, %v5535_v51  ;;  %v5491_v56 = vmax.f32 %v5459_v3, 0.0  ;;  %v5494_v54 = vmax.f32 %v14356_v4, 0.0  ;;  %v14366_v7 = vadd.f32 %v11740_v9, %v14214_v58 }
 0x74b   : > { %v5777_v37 = vrot.slane %v5763_v50, %v14070_v26  ;;  %v5778_v0 = vcombine.high %v5770_v55, %v5770_v55  ;;  %v6231_v16 = vsel %vm2937_vm7, %v5770_v55, -inf  ;;  %v6557_v13 = vrot.slane %v14358_v32, 1 }
 0x74c   : > { %v6232_v23 = vrot.slane %v6231_v16, 4  ;;  %v5780_v8 = vcombine.high %v5536_v24, %v5536_v24  ;;  %v5787_v1 = vrot.slane %v5536_v24, %v14070_v26  ;;  %v5537_v30 = vsel %vm2934_vm6, %v5491_v56, -inf }
 0x74d   : > { %v5779_v61 = vcombine.high %v5777_v37, %v5777_v37  ;;  %v6238_v28 = vsel %vm2937_vm7, %v5778_v0, -inf  ;;  %v6245_v18 = vsel %vm2937_vm7, %v5777_v37, -inf  ;;  %v5539_v58 = vmax.f32 %v5537_v30, %v5538_v19 }
 0x74e   : > { %v6233_v35 = vmax.f32 %v6231_v16, %v6232_v23  ;;  %v6239_v48 = vrot.slane %v6238_v28, 4  ;;  %v6246_v44 = vrot.slane %v6245_v18, 4  ;;  %v5794_v14 = vrot.slane %v5780_v8, %v14070_v26 }
 0x74f   : > { %v6252_v5 = vsel %vm2937_vm7, %v5779_v61, -inf  ;;  %v5795_v20 = vcombine.high %v5787_v1, %v5787_v1  ;;  %v6259_v10 = vsel %vm2937_vm7, %v5787_v1, -inf  ;;  %v5797_v63 = vcombine.high %v5539_v58, %v5539_v58 }
 0x750   : > { %v6234_v49 = vrot.slane %v6233_v35, 2  ;;  %v6240_v39 = vmax.f32 %v6238_v28, %v6239_v48  ;;  %v6247_v53 = vmax.f32 %v6245_v18, %v6246_v44  ;;  %v6253_v9 = vrot.slane %v6252_v5, 4 }
 0x751   : > { %v5796_v31 = vcombine.high %v5794_v14, %v5794_v14  ;;  %v6260_v47 = vrot.slane %v6259_v10, 4  ;;  %v6266_v36 = vsel %vm2937_vm7, %v5795_v20, -inf  ;;  %v6273_v60 = vsel %vm2937_vm7, %v5794_v14, -inf }
 0x752   : > { %v6235_v21 = vmax.f32 %v6233_v35, %v6234_v49  ;;  %v6241_v22 = vrot.slane %v6240_v39, 2  ;;  %v6248_v57 = vrot.slane %v6247_v53, 2  ;;  %v6254_v34 = vmax.f32 %v6252_v5, %v6253_v9 }
 0x753   : > { %v6261_v6 = vmax.f32 %v6259_v10, %v6260_v47  ;;  %v6267_v38 = vrot.slane %v6266_v36, 4  ;;  %v6274_v42 = vrot.slane %v6273_v60, 4  ;;  %v6280_v52 = vsel %vm2937_vm7, %v5796_v31, -inf }
 0x754   : > { %v6236_v12 = vrot.slane %v6235_v21, 1  ;;  %v6242_v62 = vmax.f32 %v6240_v39, %v6241_v22  ;;  %v6249_v15 = vmax.f32 %v6247_v53, %v6248_v57  ;;  %v6255_v41 = vrot.slane %v6254_v34, 2  ;;  %v14392_v57 = vld [vmem:[#allocation4 + $0x28] sm:$0x3] }
 0x755   : > { %v6262_v2 = vrot.slane %v6261_v6, 2  ;;  %v6268_v29 = vmax.f32 %v6266_v36, %v6267_v38  ;;  %v6275_v45 = vmax.f32 %v6273_v60, %v6274_v42  ;;  %v6281_v46 = vrot.slane %v6280_v52, 4 }
 0x756   : > { %v6237_v59 = vmax.f32 %v6235_v21, %v6236_v12  ;;  %v6243_v40 = vrot.slane %v6242_v62, 1  ;;  %v6250_v25 = vrot.slane %v6249_v15, 1  ;;  %v6256_v51 = vmax.f32 %v6254_v34, %v6255_v41  ;;  %v14394_v34 = vld [vmem:[#allocation4 + $0x30] sm:$0xff] }
 0x757   : > { %v6263_v3 = vmax.f32 %v6261_v6, %v6262_v2  ;;  %v6269_v50 = vrot.slane %v6268_v29, 2  ;;  %v6276_v55 = vrot.slane %v6275_v45, 2  ;;  %v6282_v27 = vmax.f32 %v6280_v52, %v6281_v46  ;;  %v14401_v2 = vld [vmem:[#allocation4 + $0x38] sm:$0x3] }
 0x758   : > { %v6244_v19 = vmax.f32 %v6242_v62, %v6243_v40  ;;  %v6251_v24 = vmax.f32 %v6249_v15, %v6250_v25  ;;  %v6257_v56 = vrot.slane %v6256_v51, 1  ;;  %v5804_v37 = vrot.slane %v5539_v58, %v14070_v26 }
 0x759   : > { %v6264_v0 = vrot.slane %v6263_v3, 1  ;;  %v6270_v16 = vmax.f32 %v6268_v29, %v6269_v50  ;;  %v6277_v23 = vmax.f32 %v6275_v45, %v6276_v55  ;;  %v6283_v8 = vrot.slane %v6282_v27, 2  ;;  %v14409_v50 = vld [vmem:[#allocation4 + $0x40] sm:$0xff] }
 0x75a   : > { %v6258_v1 = vmax.f32 %v6256_v51, %v6257_v56  ;;  %v6476_v30 = vsel %vm6427_vm8, %v6244_v19, %v6237_v59  ;;  %v5811_v61 = vrot.slane %v5797_v63, %v14070_v26  ;;  %v5812_v28 = vcombine.high %v5804_v37, %v5804_v37 }
 0x75b   : > { %v6477_v18 = vsel %vm6429_vm9, %v6251_v24, %v6476_v30  ;;  %v6265_v35 = vmax.f32 %v6263_v3, %v6264_v0  ;;  %v6271_v48 = vrot.slane %v6270_v16, 1  ;;  %v6278_v44 = vrot.slane %v6277_v23, 1  ;;  %v14424_v30 = vld [vmem:[#allocation4 + $0x48] sm:$0x3] }
 0x75c   : > { %v6284_v14 = vmax.f32 %v6282_v27, %v6283_v8  ;;  %v6478_v5 = vsel %vm6431_vm10, %v6258_v1, %v6477_v18  ;;  %v5813_v20 = vcombine.high %v5811_v61, %v5811_v61  ;;  %v6287_v58 = vsel %vm2937_vm7, %v5804_v37, -inf }
 0x75d   : > { %v6272_v10 = vmax.f32 %v6270_v16, %v6271_v48  ;;  %v6279_v49 = vmax.f32 %v6277_v23, %v6278_v44  ;;  %v6479_v39 = vsel %vm6433_vm11, %v6265_v35, %v6478_v5  ;;  %v6288_v53 = vrot.slane %v6287_v58, 4 }
 0x75e   : > { %v6285_v9 = vrot.slane %v6284_v14, 1  ;;  %v6294_v63 = vsel %vm2937_vm7, %v5812_v28, -inf  ;;  %v6301_v31 = vsel %vm2937_vm7, %v5811_v61, -inf  ;;  %v6308_v47 = vsel %vm2937_vm7, %v5813_v20, -inf  ;;  %v11689_v28 = vld [vmem:[#allocation13 + $0x8] sm:$0xff]  }
 0x75f   : > { %v6480_v36 = vsel %vm6435_vm12, %v6272_v10, %v6479_v39  ;;  %v6289_v60 = vmax.f32 %v6287_v58, %v6288_v53  ;;  %v6295_v21 = vrot.slane %v6294_v63, 4  ;;  %v6302_v22 = vrot.slane %v6301_v31, 4  ;;  %v14431_v58 = vld [vmem:[#allocation4 + $0x50] sm:$0xff] }
 0x760   : > { %v6286_v6 = vmax.f32 %v6284_v14, %v6285_v9  ;;  %v6481_v38 = vsel %vm6437_vm13, %v6279_v49, %v6480_v36  ;;  %v6309_v42 = vrot.slane %v6308_v47, 4  ;;  %v5541_v52 = vsel %vm2934_vm6, %v5494_v54, -inf  ;;  %v14438_v36 = vld [vmem:[#allocation4 + $0x58] sm:$0x3] }
 0x761   : > { %v6290_v12 = vrot.slane %v6289_v60, 2  ;;  %v6296_v62 = vmax.f32 %v6294_v63, %v6295_v21  ;;  %v6303_v15 = vmax.f32 %v6301_v31, %v6302_v22  ;;  %v5492_v41 = vmax.f32 %v14366_v7, 0.0  ;;  %v14442_v21 = vld [vmem:[#allocation13 + $0x20] sm:$0xff]  }
 0x762   : > { %v6482_v29 = vsel %vm6439_vm14, %v6286_v6, %v6481_v38  ;;  %v6310_v45 = vmax.f32 %v6308_v47, %v6309_v42  ;;  %v6558_v46 = vrot.slane %v14392_v57, 1  ;;  %v6560_v59 = vrot.slane %v14394_v34, 1  ;;  %v14446_v42 = vld [vmem:[#allocation4 + $0x68] sm:$0x3] }
 0x763   : > { %6505 = vst.msk [vmem:[#allocation4 + $0x71] sm:$0xff] %vm2934_vm6, %v6482_v29  ;;  %v6291_v40 = vmax.f32 %v6289_v60, %v6290_v12  ;;  %v6297_v4 = vrot.slane %v6296_v62, 2  ;;  %v6304_v25 = vrot.slane %v6303_v15, 2  ;;  %v5540_v54 = vsel %vm2934_vm6, %v5492_v41, -inf  ;;  %v14440_v60 = vld [vmem:[#allocation4 + $0x60] sm:$0xff] }
 0x764   : > { %v6311_v51 = vrot.slane %v6310_v45, 2  ;;  %v5542_v3 = vmax.f32 %v5540_v54, %v5541_v52  ;;  %v6561_v7 = vrot.slane %v14401_v2, 1  ;;  %v14414_v24 = vsel %vm683_vm4, %v6557_v13, %v6558_v46 }
 0x765   : > { %v6292_v55 = vrot.slane %v6291_v40, 1  ;;  %v6298_v27 = vmax.f32 %v6296_v62, %v6297_v4  ;;  %v6305_v19 = vmax.f32 %v6303_v15, %v6304_v25  ;;  %v6563_v61 = vrot.slane %v14409_v50, 1 }
 0x766   : > { %v6312_v56 = vmax.f32 %v6310_v45, %v6311_v51  ;;  %v5814_v37 = vcombine.high %v5542_v3, %v5542_v3  ;;  %v5821_v0 = vrot.slane %v5542_v3, %v14070_v26  ;;  %v14418_v16 = vsel %vm683_vm4, %v6560_v59, %v6561_v7 }
 0x767   : > { %v6299_v23 = vrot.slane %v6298_v27, 1  ;;  %v6306_v8 = vrot.slane %v6305_v19, 1  ;;  %v14422_v1 = vpack.c.bf16 %v14418_v16, %v14414_v24  ;;  %v6293_v44 = vmax.f32 %v6291_v40, %v6292_v55 }
 0x768   : > { %v6313_v13 = vrot.slane %v6312_v56, 1  ;;  %v5828_v18 = vrot.slane %v5814_v37, %v14070_v26  ;;  %v5829_v35 = vcombine.high %v5821_v0, %v5821_v0  ;;  %v6315_v48 = vsel %vm2937_vm7, %v5821_v0, -inf }
 0x769   : > { %v6300_v14 = vmax.f32 %v6298_v27, %v6299_v23  ;;  %v6307_v5 = vmax.f32 %v6305_v19, %v6306_v8  ;;  %v6316_v20 = vrot.slane %v6315_v48, 4  ;;  %10685 = vmatmul.mubr.msk.bf16.vlgmr.msra.gmra.mrb[32].mxu0 %vm2934_vm6, %v14422_v1  ;;  %v6564_v53 = vrot.slane %v14424_v30, 1 }
 0x76a   : > { %v5830_v10 = vcombine.high %v5828_v18, %v5828_v18  ;;  %v6322_v49 = vsel %vm2937_vm7, %v5829_v35, -inf  ;;  %v6329_v39 = vsel %vm2937_vm7, %v5828_v18, -inf  ;;  %10693 = vmatpush3.bf16.msra.mxu0 %v14224_v33  ;;  %v6314_v22 = vmax.f32 %v6312_v56, %v6313_v13  ;;  %v14448_v15 = vld [vmem:[#allocation4 + $0x70] sm:$0xff]  ;;  %v14450_v41 = vld [vmem:[#allocation4 + $0x78] sm:$0x3] }
 0x76b   : > { %v6483_v9 = vsel %vm6427_vm8, %v6300_v14, %v6293_v44  ;;  %v6317_v63 = vmax.f32 %v6315_v48, %v6316_v20  ;;  %v6323_v31 = vrot.slane %v6322_v49, 4  ;;  %v6330_v47 = vrot.slane %v6329_v39, 4  ;;  %10694 = vmatprep.subr.bf16.mxu0 %v11689_v28  ;;  %v11741_v20 = vld [vmem:[#allocation4] sm:$0xff] }
 0x76c   : > { %v6336_v6 = vsel %vm2937_vm7, %v5830_v10, -inf  ;;  %v6566_v38 = vrot.slane %v14431_v58, 1  ;;  %v6484_v29 = vsel %vm6429_vm9, %v6307_v5, %v6483_v9  ;;  %v14454_v45 = vsel %vm683_vm4, %v6563_v61, %v6564_v53  ;;  %v11705_v53 = vld [vmem:[#allocation16 + $0x28] sm:$0xff]  }
 0x76d   : > { %v6318_v33 = vrot.slane %v6317_v63, 2  ;;  %v6324_v52 = vmax.f32 %v6322_v49, %v6323_v31  ;;  %v6331_v12 = vmax.f32 %v6329_v39, %v6330_v47  ;;  %v6337_v62 = vrot.slane %v6336_v6, 4  ;;  %v11704_v39 = vld [vmem:[#allocation16 + $0x20] sm:$0xff]  }
 0x76e   : > { %v6567_v46 = vrot.slane %v14438_v36, 1  ;;  %v6569_v59 = vrot.slane %v14440_v60, 1  ;;  %10695 = vmatpush3.bf16.msra.mxu0 %v11689_v28  ;;  %v6570_v3 = vrot.slane %v14446_v42, 1  ;;  %v6572_v7 = vrot.slane %v14448_v15, 1  ;;  %10788 = vmatprep.subr.bf16.mxu1 %v11704_v39 }
 0x76f   : > { %v6319_v40 = vmax.f32 %v6317_v63, %v6318_v33  ;;  %v6325_v4 = vrot.slane %v6324_v52, 2  ;;  %v6332_v25 = vrot.slane %v6331_v12, 2  ;;  %v6338_v54 = vmax.f32 %v6336_v6, %v6337_v62  ;;  %10704 = vmatprep.subr.bf16.mxu0 %v14442_v21  ;;  %10789 = vmatpush3.bf16.msra.mxu1 %v11704_v39  ;;  %v11691_v6 = vld [vmem:[#allocation13 + $0x28] sm:$0xff]  }
 0x770   : > { %v14460_v51 = vsel %vm683_vm4, %v6566_v38, %v6567_v46  ;;  %v6573_v55 = vrot.slane %v14450_v41, 1  ;;  %v6485_v0 = vsel %vm6431_vm10, %v6314_v22, %v6484_v29  ;;  %v14471_v8 = vsel %vm683_vm4, %v6569_v59, %v6570_v3  ;;  %10790 = vmatprep.subr.bf16.mxu1 %v11705_v53  ;;  %v11706_v38 = vld [vmem:[#allocation16 + $0x30] sm:$0xff]   ;;  %v11692_v59 = vld [vmem:[#allocation13 + $0x30] sm:$0xff]  }
 0x771   : > { %v6320_v27 = vrot.slane %v6319_v40, 1  ;;  %v6326_v19 = vmax.f32 %v6324_v52, %v6325_v4  ;;  %v6333_v56 = vmax.f32 %v6331_v12, %v6332_v25  ;;  %v6339_v37 = vrot.slane %v6338_v54, 2  ;;  %v11742_v12 = vld [vmem:[#allocation4 + $0x8] sm:$0x3] }
 0x772   : > { %v14468_v23 = vpack.c.bf16 %v14460_v51, %v14454_v45  ;;  %v14474_v61 = vsel %vm683_vm4, %v6572_v7, %v6573_v55  ;;  %v6527_v10 = vpack.c.bf16 %v14304_v43, %v11741_v20  ;;  %v14493_v22 = vpack.c.bf16 %v14394_v34, %v14358_v32 }
 0x773   : > { %v6321_v28 = vmax.f32 %v6319_v40, %v6320_v27  ;;  %v6327_v13 = vrot.slane %v6326_v19, 1  ;;  %v6334_v18 = vrot.slane %v6333_v56, 1  ;;  %v6340_v35 = vmax.f32 %v6338_v54, %v6339_v37  ;;  %10791 = vmatpush3.bf16.msra.mxu1 %v11705_v53  ;;  %v11696_v53 = vld [vmem:[#allocation13 + $0x50] sm:$0xff]  }
 0x774   : > { %10688 = vmatprep.mubr.msk.bf16.mxu0 %vm2934_vm6, %v14468_v23  ;;  %v14480_v48 = vpack.c.bf16 %v14474_v61, %v14471_v8  ;;  %v14497_v33 = vpack.c.bf16 %v14431_v58, %v14409_v50  ;;  %v6770_v52 = vrot.slane %v11741_v20, 2  ;;  %v6771_v62 = vrot.slane %v11742_v12, 2  ;;  %10792 = vmatprep.subr.bf16.mxu1 %v11706_v38  ;;  %v11701_v12 = vld [vmem:[#allocation13 + $0x78] sm:$0xff]  }
 0x775   : > { %v6328_v44 = vmax.f32 %v6326_v19, %v6327_v13  ;;  %v6341_v14 = vrot.slane %v6340_v35, 1  ;;  %v6486_v5 = vsel %vm6433_vm11, %v6321_v28, %v6485_v0  ;;  %v6335_v49 = vmax.f32 %v6333_v56, %v6334_v18  ;;  %v11693_v13 = vld [vmem:[#allocation13 + $0x38] sm:$0xff]  }
 0x776   : > { %10689 = vmatmul.mubr.msk.bf16.gmra.mrb[36].mxu0 %vm2934_vm6, %v14480_v48  ;;  %v6773_v29 = vrot.slane %v14304_v43, 2  ;;  %v6774_v46 = vrot.slane %v14309_v17, 2  ;;  %v6772_v40 = vsel %vm1242_vm5, %v6770_v52, %v6771_v62  ;;  %v14512_v25 = vpack.c.bf16 %v14448_v15, %v14440_v60  ;;  %v11702_v62 = vld [vmem:[#allocation13 + $0x80] sm:$0xff]  }
 0x777   : > { %v6342_v9 = vmax.f32 %v6340_v35, %v6341_v14  ;;  %v6487_v63 = vsel %vm6435_vm12, %v6328_v44, %v6486_v5  ;;  %10696 = vmatprep.mubr.msk.bf16.mxu0 %vm2934_vm6, %v6527_v10  ;;  %10793 = vmatpush3.bf16.msra.mxu1 %v11706_v38  ;;  %v6780_v54 = vrot.slane %v14401_v2, 2  ;;  %v6785_v3 = vrot.slane %v14431_v58, 2  ;;  %v11694_v14 = vld [vmem:[#allocation13 + $0x40] sm:$0xff]  }
 0x778   : > { %v6488_v31 = vsel %vm6437_vm13, %v6335_v49, %v6487_v63  ;;  %v14508_v4 = vsel %vm1242_vm5, %v6773_v29, %v6774_v46  ;;  %v6786_v7 = vrot.slane %v14438_v36, 2  ;;  %v6776_v55 = vrot.slane %v14358_v32, 2  ;;  %v11695_v49 = vld [vmem:[#allocation13 + $0x48] sm:$0xff]  }
 0x779   : > { %v6489_v47 = vsel %vm6439_vm14, %v6342_v9, %v6488_v31  ;;  %v6802_v17 = vpack.c.bf16 %v14508_v4, %v6772_v40  ;;  %v6777_v27 = vrot.slane %v14392_v57, 2  ;;  %v6782_v19 = vrot.slane %v14409_v50, 2  ;;  %v6525_v29 = vld [vmem:[#allocation4 + $0x90] sm:$0xff] }
 0x77a   : > { %6506 = vst.msk [vmem:[#allocation4 + $0x81] sm:$0xff] %vm2934_vm6, %v6489_v47  ;;  %v6783_v56 = vrot.slane %v14424_v30, 2  ;;  %v14530_v2 = vsel %vm1242_vm5, %v6785_v3, %v6786_v7  ;;  %v6791_v18 = vrot.slane %v14448_v15, 2  ;;  %v6792_v30 = vrot.slane %v14450_v41, 2  ;;  %v14648_v3 = vld [vmem:[#allocation16] sm:$0xff]  }
 0x77b   : > { %v6778_v0 = vsel %vm1242_vm5, %v6776_v55, %v6777_v27  ;;  %v6788_v35 = vrot.slane %v14440_v60, 2  ;;  %v6789_v44 = vrot.slane %v14446_v42, 2  ;;  %v6908_v41 = vpack.c.bf16 %v14358_v32, %v14304_v43  ;;  %v9531_v7 = vld [vmem:[#allocation14] ss:$0 sm:$0xff] }
 0x77c   : > { %v6784_v28 = vsel %vm1242_vm5, %v6782_v19, %v6783_v56  ;;  %v6793_v5 = vsel %vm1242_vm5, %v6791_v18, %v6792_v30  ;;  %v6909_v42 = vpack.c.bf16 %v14409_v50, %v14394_v34  ;;  %v6910_v39 = vpack.c.bf16 %v14440_v60, %v14431_v58  ;;  %v11697_v58 = vld [vmem:[#allocation13 + $0x58] sm:$0xff]  }
 0x77d   : > { %v14538_v57 = vpack.c.bf16 %v14530_v2, %v6784_v28  ;;  %v6790_v20 = vsel %vm1242_vm5, %v6788_v35, %v6789_v44  ;;  %v7020_v9 = vpack.c.bf16 %v14414_v24, %v14321_v11  ;;  %v7021_v50 = vpack.c.bf16 %v14454_v45, %v14418_v16  ;;  %v11698_v11 = vld [vmem:[#allocation13 + $0x60] sm:$0xff]  }
 0x77e   : > { %10697 = vmatmul.mubr.msk.bf16.vlgmr.msra.gmra.mrb[32].mxu0 %vm2934_vm6, %v14493_v22  ;;  %v14550_v10 = vpack.c.bf16 %v6793_v5, %v6790_v20  ;;  %v7022_v60 = vpack.c.bf16 %v14471_v8, %v14460_v51  ;;  %v7130_v16 = vpack.c.bf16 %v6778_v0, %v14508_v4  ;;  %v11699_v51 = vld [vmem:[#allocation13 + $0x68] sm:$0xff]   ;;  %v7132_v8 = vpack.c.bf16 %v6790_v20, %v14530_v2 }
 0x77f   : > { %10705 = vmatpush3.bf16.msra.mxu0 %v14442_v21  ;;  %10700 = vmatprep.mubr.msk.bf16.mxu0 %vm2934_vm6, %v14497_v33  ;;  %v6779_v21 = vrot.slane %v14394_v34, 2  ;;  %v7332_v40 = vrot.slane %v6525_v29, 1 }
 0x780   : > { %10706 = vmatprep.subr.bf16.mxu0 %v11691_v6 }
 0x781   : > { %v14527_v37 = vsel %vm1242_vm5, %v6779_v21, %v6780_v54  ;;  %v6523_v43 = vld [vmem:[#allocation4 + $0x80] sm:$0xff]  ;;  %v6524_v34 = vld [vmem:[#allocation4 + $0x88] sm:$0x3]  ;;  %v15104_v21 = vmov 0.0   ;;  %v11707_v54 = vld [vmem:[#allocation16 + $0x38] sm:$0xff]  }
 0x782   : > { %v14534_v36 = vpack.c.bf16 %v14527_v37, %v6778_v0  ;;  %v6911_v32 = vpack.c.bf16 %v6523_v43, %v14448_v15  ;;  %v7016_v63 = vrot.slane %v6523_v43, 1  ;;  %v7017_v31 = vrot.slane %v6524_v34, 1  ;;  %7559 = vst.msk [vmem:[#allocation5 + $0x30] sm:$0xff] %vm7551_vm15, %v15104_v21  ;;  %7552 = vst.msk [vmem:[#allocation5] sm:$0xff] %vm7551_vm15, %v15104_v21  ;;  %10794 = vmatprep.subr.bf16.mxu1 %v11707_v54 }
 0x783   : > { %10707 = vmatpush3.bf16.msra.mxu0 %v11691_v6  ;;  %v7131_v45 = vpack.c.bf16 %v6784_v28, %v14527_v37  ;;  %v7126_v47 = vrot.slane %v6523_v43, 2  ;;  %v7127_v6 = vrot.slane %v6524_v34, 2  ;;  %v7236_v46 = vpack.c.bf16 %v6525_v29, %v6523_v43  ;;  %7560 = vst.msk [vmem:[#allocation5 + $0x38] sm:$0x3] %vm7553_vm0, %v15104_v21  ;;  %7554 = vst.msk [vmem:[#allocation5 + $0x8] sm:$0x3] %vm7553_vm0, %v15104_v21 }
 0x784   : > { %10716 = vmatprep.subr.bf16.mxu0 %v11692_v59  ;;  %v7018_v24 = vsel %vm683_vm4, %v7016_v63, %v7017_v31  ;;  %7555 = vst.msk [vmem:[#allocation5 + $0x10] sm:$0xff] %vm7551_vm15, %v15104_v21  ;;  %7557 = vst.msk [vmem:[#allocation5 + $0x20] sm:$0xff] %vm7551_vm15, %v15104_v21  ;;  %10795 = vmatpush3.bf16.msra.mxu1 %v11707_v54 }
 0x785   : > { %v7023_v15 = vpack.c.bf16 %v7018_v24, %v14474_v61  ;;  %v11700_v61 = vld [vmem:[#allocation13 + $0x70] sm:$0xff]   ;;  %v7128_v38 = vsel %vm1242_vm5, %v7126_v47, %v7127_v6  ;;  %7556 = vst.msk [vmem:[#allocation5 + $0x18] sm:$0x3] %vm7553_vm0, %v15104_v21  ;;  %7558 = vst.msk [vmem:[#allocation5 + $0x28] sm:$0x3] %vm7553_vm0, %v15104_v21  ;;  %10804 = vmatprep.subr.bf16.mxu1 %v14648_v3 }
 0x786   : > { %10701 = vmatmul.mubr.msk.bf16.gmra.mrb[36].mxu0 %vm2934_vm6, %v14512_v25  ;;  %v7133_v52 = vpack.c.bf16 %v7128_v38, %v6793_v5  ;;  %7561 = vst.msk [vmem:[#allocation5 + $0x40] sm:$0xff] %vm7551_vm15, %v15104_v21  ;;  %7563 = vst.msk [vmem:[#allocation5 + $0x50] sm:$0xff] %vm7551_vm15, %v15104_v21 }
 0x787   : > { %10708 = vmatprep.mubr.msk.bf16.mxu0 %vm2934_vm6, %v6802_v17  ;;  %7562 = vst.msk [vmem:[#allocation5 + $0x48] sm:$0x3] %vm7553_vm0, %v15104_v21  ;;  %7564 = vst.msk [vmem:[#allocation5 + $0x58] sm:$0x3] %vm7553_vm0, %v15104_v21 }
 0x788   : > { %7565 = vst.msk [vmem:[#allocation5 + $0x60] sm:$0xff] %vm7551_vm15, %v15104_v21  ;;  %7567 = vst.msk [vmem:[#allocation5 + $0x70] sm:$0xff] %vm7551_vm15, %v15104_v21 }
 0x789   : > { %7566 = vst.msk [vmem:[#allocation5 + $0x68] sm:$0x3] %vm7553_vm0, %v15104_v21  ;;  %7568 = vst.msk [vmem:[#allocation5 + $0x78] sm:$0x3] %vm7553_vm0, %v15104_v21  ;;  %v14653_v30 = vld [vmem:[#allocation5] sm:$0xff] }
 0x78a   : > { %7569 = vst.msk [vmem:[#allocation5 + $0x80] sm:$0xff] %vm7551_vm15, %v15104_v21  ;;  %7571 = vst.msk [vmem:[#allocation5 + $0x90] sm:$0xff] %vm7551_vm15, %v15104_v21  ;;  %v14655_v35 = vld [vmem:[#allocation5 + $0x8] sm:$0x3]  ;;  %v7630_v20 = vrot.slane %v14653_v30, 1 }
 0x78b   : > { %7570 = vst.msk [vmem:[#allocation5 + $0x88] sm:$0x3] %vm7553_vm0, %v15104_v21  ;;  %7572 = vst.msk [vmem:[#allocation5 + $0x98] sm:$0x3] %vm7553_vm0, %v15104_v21  ;;  %v11710_v21 = vld [vmem:[#allocation16 + $0x10] sm:$0xff]  }
 0x78e   : > { %10709 = vmatmul.mubr.msk.bf16.vlgmr.msra.gmra.mrb[32].mxu0 %vm2934_vm6, %v14534_v36 }
 0x78f   : > { %10717 = vmatpush3.bf16.msra.mxu0 %v11692_v59  ;;  %10712 = vmatprep.mubr.msk.bf16.mxu0 %vm2934_vm6, %v14538_v57  ;;  %v11703_v59 = vld [vmem:[#allocation13 + $0x88] sm:$0xff]  }
 0x790   : > { %10718 = vmatprep.subr.bf16.mxu0 %v11693_v13 }
 0x793   : > { %10719 = vmatpush3.bf16.msra.mxu0 %v11693_v13 }
 0x794   : > { %10728 = vmatprep.subr.bf16.mxu0 %v11694_v14 }
 0x796   : > { %10713 = vmatmul.mubr.msk.bf16.gmra.mrb[36].mxu0 %vm2934_vm6, %v14550_v10 }
 0x797   : > { %10720 = vmatprep.mubr.msk.bf16.mxu0 %vm2934_vm6, %v6908_v41 }
 0x79e   : > { %10721 = vmatmul.mubr.msk.bf16.vlgmr.msra.gmra.mrb[32].mxu0 %vm2934_vm6, %v6909_v42 }
 0x79f   : > { %10729 = vmatpush3.bf16.msra.mxu0 %v11694_v14  ;;  %10724 = vmatprep.mubr.msk.bf16.mxu0 %vm2934_vm6, %v6910_v39 }
 0x7a0   : > { %10730 = vmatprep.subr.bf16.mxu0 %v11695_v49 }
 0x7a3   : > { %10731 = vmatpush3.bf16.msra.mxu0 %v11695_v49 }
 0x7a4   : > { %10740 = vmatprep.subr.bf16.mxu0 %v11696_v53 }
 0x7a6   : > { %10725 = vmatmul.mubr.msk.bf16.gmra.mrb[36].mxu0 %vm2934_vm6, %v6911_v32 }
 0x7a7   : > { %10732 = vmatprep.mubr.msk.bf16.mxu0 %vm2934_vm6, %v7020_v9 }
 0x7ae   : > { %10733 = vmatmul.mubr.msk.bf16.vlgmr.msra.gmra.mrb[32].mxu0 %vm2934_vm6, %v7021_v50 }
 0x7af   : > { %10741 = vmatpush3.bf16.msra.mxu0 %v11696_v53  ;;  %10736 = vmatprep.mubr.msk.bf16.mxu0 %vm2934_vm6, %v7022_v60 }
 0x7b0   : > { %10742 = vmatprep.subr.bf16.mxu0 %v11697_v58 }
 0x7b3   : > { %10743 = vmatpush3.bf16.msra.mxu0 %v11697_v58 }
 0x7b4   : > { %10752 = vmatprep.subr.bf16.mxu0 %v11698_v11 }
 0x7b6   : > { %10737 = vmatmul.mubr.msk.bf16.gmra.mrb[36].mxu0 %vm2934_vm6, %v7023_v15 }
 0x7b7   : > { %10744 = vmatprep.mubr.msk.bf16.mxu0 %vm2934_vm6, %v7130_v16 }
 0x7be   : > { %10745 = vmatmul.mubr.msk.bf16.vlgmr.msra.gmra.mrb[32].mxu0 %vm2934_vm6, %v7131_v45 }
 0x7bf   : > { %10753 = vmatpush3.bf16.msra.mxu0 %v11698_v11  ;;  %10748 = vmatprep.mubr.msk.bf16.mxu0 %vm2934_vm6, %v7132_v8 }
 0x7c0   : > { %10754 = vmatprep.subr.bf16.mxu0 %v11699_v51 }
 0x7c3   : > { %10755 = vmatpush3.bf16.msra.mxu0 %v11699_v51 }
 0x7c4   : > { %10764 = vmatprep.subr.bf16.mxu0 %v11700_v61 }
 0x7c6   : > { %10749 = vmatmul.mubr.msk.bf16.gmra.mrb[36].mxu0 %vm2934_vm6, %v7133_v52 }
 0x7c7   : > { %10756 = vmatprep.mubr.msk.bf16.mxu0 %vm2934_vm6, %v14493_v22  ;;  %v6526_v22 = vld [vmem:[#allocation4 + $0x98] sm:$0x3] }
 0x7c8   : > { %v7333_v4 = vrot.slane %v6526_v22, 1  ;;  %v7431_v17 = vrot.slane %v6526_v22, 2 }
 0x7ce   : > { %10757 = vmatmul.mubr.msk.bf16.vlgmr.msra.gmra.mrb[32].mxu0 %vm2934_vm6, %v14497_v33  ;;  %v7334_v33 = vsel %vm683_vm4, %v7332_v40, %v7333_v4 }
 0x7cf   : > { %10765 = vmatpush3.bf16.msra.mxu0 %v11700_v61  ;;  %10760 = vmatprep.mubr.msk.bf16.mxu0 %vm2934_vm6, %v14512_v25  ;;  %v7336_v25 = vpack.c.bf16 %v7334_v33, %v7018_v24 }
 0x7d0   : > { %10766 = vmatprep.subr.bf16.mxu0 %v11701_v12 }
 0x7d3   : > { %10767 = vmatpush3.bf16.msra.mxu0 %v11701_v12 }
 0x7d4   : > { %10776 = vmatprep.subr.bf16.mxu0 %v11702_v62 }
 0x7d6   : > { %10761 = vmatmul.mubr.msk.bf16.gmra.mrb[36].mxu0 %vm2934_vm6, %v7236_v46  ;;  %v11709_v46 = vld [vmem:[#allocation16 + $0x8] sm:$0xff]  }
 0x7d7   : > { %10768 = vmatprep.mubr.msk.bf16.mxu0 %vm2934_vm6, %v14422_v1  ;;  %v7430_v1 = vrot.slane %v6525_v29, 2 }
 0x7de   : > { %10769 = vmatmul.mubr.msk.bf16.vlgmr.msra.gmra.mrb[32].mxu0 %vm2934_vm6, %v14468_v23  ;;  %v7432_v23 = vsel %vm1242_vm5, %v7430_v1, %v7431_v17 }
 0x7df   : > { %10777 = vmatpush3.bf16.msra.mxu0 %v11702_v62  ;;  %10772 = vmatprep.mubr.msk.bf16.mxu0 %vm2934_vm6, %v14480_v48  ;;  %v7434_v48 = vpack.c.bf16 %v7432_v23, %v7128_v38 }
 0x7e0   : > { %10778 = vmatprep.subr.bf16.mxu0 %v11703_v59 }
 0x7e3   : > { %10779 = vmatpush3.bf16.msra.mxu0 %v11703_v59 }
 0x7e6   : > { %10773 = vmatmul.mubr.msk.bf16.gmra.mrb[36].mxu0 %vm2934_vm6, %v7336_v25 }
 0x7e7   : > { %10780 = vmatprep.mubr.msk.bf16.mxu0 %vm2934_vm6, %v14534_v36 }
 0x7ee   : > { %10781 = vmatmul.mubr.msk.bf16.vlgmr.msra.gmra.mrb[32].mxu0 %vm2934_vm6, %v14538_v57 }
 0x7ef   : > { %10784 = vmatprep.mubr.msk.bf16.mxu0 %vm2934_vm6, %v14550_v10  ;;  %v7631_v10 = vrot.slane %v14655_v35, 1 }
 0x7f1   : > { %v7632_v63 = vsel %vm683_vm4, %v7630_v20, %v7631_v10 }
 0x7f6   : > { %10785 = vmatmul.mubr.msk.bf16.gmra.mrb[36].mxu0 %vm2934_vm6, %v7434_v48 }
 0x8c1   : > { %v10782_v55 = vpop.f32.mrb[32].mxu0 }
 0x8c2   : > { %v7537_v27 = vadd.f32 %v10782_v55, %v9531_v7  ;;  %v7489_v19 = vpop.f32.mrb[33].mxu0 }
 0x8c3   : > { %v7535_v56 = vadd.f32 %v9531_v7, %v7489_v19  ;;  %v10783_v37 = vpop.f32.mrb[34].mxu0 }
 0x8c4   : > { %v7545_v2 = vmax.f32 %v7537_v27, 0.0  ;;  %v7538_v0 = vadd.f32 %v10783_v37, %v9531_v7  ;;  %v7492_v36 = vpop.f32.mrb[35].mxu0 }
 0x8c5   : > { %v7543_v28 = vmax.f32 %v7535_v56, 0.0  ;;  %v7536_v13 = vadd.f32 %v9531_v7, %v7492_v36  ;;  %v11711_v36 = vld [vmem:[#allocation16 + $0x18] sm:$0xff]  }
 0x8c6   : > { %7576 = vst.msk [vmem:[#allocation5 + $0x31] sm:$0xff] %vm7551_vm15, %v7545_v2  ;;  %v7546_v57 = vmax.f32 %v7538_v0, 0.0 }
 0x8c7   : > { %7574 = vst.msk [vmem:[#allocation5 + $0x11] sm:$0xff] %vm7551_vm15, %v7543_v28  ;;  %v7544_v18 = vmax.f32 %v7536_v13, 0.0  ;;  %v11712_v13 = vld [vmem:[#allocation16 + $0x40] sm:$0xff]  }
 0x8c8   : > { %7577 = vst.msk [vmem:[#allocation5 + $0x41] sm:$0xff] %vm7551_vm15, %v7546_v57 }
 0x8c9   : > { %7575 = vst.msk [vmem:[#allocation5 + $0x21] sm:$0xff] %vm7551_vm15, %v7544_v18  ;;  %v10786_v44 = vpop.f32.mrb[36].mxu0  ;;  %v11713_v18 = vld [vmem:[#allocation16 + $0x48] sm:$0xff]  }
 0x8ca   : > { %v7541_v14 = vadd.f32 %v10786_v44, %v9531_v7  ;;  %v7505_v5 = vpop.f32.mrb[37].mxu0 }
 0x8cb   : > { %v7539_v41 = vadd.f32 %v9531_v7, %v7505_v5  ;;  %v10787_v42 = vpop.f32.mrb[38].mxu0  ;;  %v7878_v5 = vrot.slane %v14655_v35, 2  ;;  %v11715_v35 = vld [vmem:[#allocation16 + $0x58] sm:$0xff]  }
 0x8cc   : > { %v7549_v49 = vmax.f32 %v7541_v14, 0.0  ;;  %v7542_v39 = vadd.f32 %v10787_v42, %v9531_v7  ;;  %v7508_v53 = vpop.f32.mrb[39].mxu0  ;;  %v7877_v14 = vrot.slane %v14653_v30, 2 }
 0x8cd   : > { %v7547_v43 = vmax.f32 %v7539_v41, 0.0  ;;  %v7540_v32 = vadd.f32 %v9531_v7, %v7508_v53  ;;  %v14661_v9 = vld [vmem:[#allocation5 + $0x30] sm:$0xff]  ;;  %v14663_v34 = vld [vmem:[#allocation5 + $0x38] sm:$0x3]  ;;  %v11714_v41 = vld [vmem:[#allocation16 + $0x50] sm:$0xff]  }
 0x8ce   : > { %7580 = vst.msk [vmem:[#allocation5 + $0x71] sm:$0xff] %vm7551_vm15, %v7549_v49  ;;  %v7550_v50 = vmax.f32 %v7542_v39, 0.0  ;;  %v14666_v58 = vld [vmem:[#allocation5 + $0x10] sm:$0xff]  ;;  %v14668_v60 = vld [vmem:[#allocation5 + $0x18] sm:$0x3]  ;;  %v7639_v31 = vrot.slane %v14661_v9, 1  ;;  %v7879_v42 = vsel %vm1242_vm5, %v7877_v14, %v7878_v5 }
 0x8cf   : > { %7578 = vst.msk [vmem:[#allocation5 + $0x51] sm:$0xff] %vm7551_vm15, %v7547_v43  ;;  %v7548_v11 = vmax.f32 %v7540_v32, 0.0  ;;  %v7633_v24 = vrot.slane %v14666_v58, 1  ;;  %v7634_v15 = vrot.slane %v14668_v60, 1  ;;  %v7640_v16 = vrot.slane %v14663_v34, 1  ;;  %v14688_v38 = vld [vmem:[#allocation5 + $0x40] sm:$0xff] }
 0x8d0   : > { %7581 = vst.msk [vmem:[#allocation5 + $0x81] sm:$0xff] %vm7551_vm15, %v7550_v50  ;;  %v14677_v45 = vld [vmem:[#allocation5 + $0x20] sm:$0xff]  ;;  %v14679_v51 = vld [vmem:[#allocation5 + $0x28] sm:$0x3]  ;;  %v7642_v22 = vrot.slane %v14688_v38, 1  ;;  %v7602_v28 = vpack.c.bf16 %v14666_v58, %v14653_v30  ;;  %v7880_v20 = vrot.slane %v14666_v58, 2 }
 0x8d1   : > { %7579 = vst.msk [vmem:[#allocation5 + $0x61] sm:$0xff] %vm7551_vm15, %v7548_v11  ;;  %v14683_v8 = vsel %vm683_vm4, %v7633_v24, %v7634_v15  ;;  %v7636_v47 = vrot.slane %v14677_v45, 1  ;;  %v7637_v6 = vrot.slane %v14679_v51, 1  ;;  %v14690_v52 = vld [vmem:[#allocation5 + $0x48] sm:$0x3]  ;;  %v14696_v62 = vsel %vm683_vm4, %v7639_v31, %v7640_v16  ;;  %v11716_v31 = vld [vmem:[#allocation16 + $0x60] sm:$0xff]  }
 0x8d2   : > { %v7662_v61 = vpack.c.bf16 %v14683_v8, %v7632_v63  ;;  %v7643_v59 = vrot.slane %v14690_v52, 1  ;;  %v14755_v57 = vpack.c.bf16 %v14661_v9, %v14677_v45  ;;  %v7881_v10 = vrot.slane %v14668_v60, 2 }
 0x8d3   : > { %v14693_v12 = vsel %vm683_vm4, %v7636_v47, %v7637_v6  ;;  %v7883_v53 = vrot.slane %v14677_v45, 2  ;;  %v7884_v43 = vrot.slane %v14679_v51, 2  ;;  %v7886_v60 = vrot.slane %v14661_v9, 2  ;;  %v11717_v6 = vld [vmem:[#allocation16 + $0x68] sm:$0xff]  }
 0x8d4   : > { %10796 = vmatprep.mubr.msk.bf16.mxu1 %vm7551_vm15, %v7662_v61  ;;  %v14701_v29 = vpack.c.bf16 %v14696_v62, %v14693_v12  ;;  %v14725_v55 = vsel %vm683_vm4, %v7642_v22, %v7643_v59  ;;  %v14771_v49 = vsel %vm1242_vm5, %v7880_v20, %v7881_v10  ;;  %v7887_v63 = vrot.slane %v14663_v34, 2  ;;  %v11729_v20 = vld [vmem:[#allocation16 + $0xc8] sm:$0xff]  }
 0x8d5   : > { %v14705_v40 = vld [vmem:[#allocation5 + $0x70] sm:$0xff]  ;;  %v14707_v4 = vld [vmem:[#allocation5 + $0x78] sm:$0x3]  ;;  %v7909_v39 = vpack.c.bf16 %v14771_v49, %v7879_v42  ;;  %v7889_v11 = vrot.slane %v14688_v38, 2  ;;  %v7890_v24 = vrot.slane %v14690_v52, 2  ;;  %v14790_v15 = vsel %vm1242_vm5, %v7883_v53, %v7884_v43  ;;  %v11730_v42 = vld [vmem:[#allocation16 + $0xd0] sm:$0xff]  }
 0x8d6   : > { %10797 = vmatmul.mubr.msk.bf16.vlgmr.msra.gmra.mrb[32].mxu1 %vm7551_vm15, %v14701_v29  ;;  %v14711_v33 = vld [vmem:[#allocation5 + $0x50] sm:$0xff]  ;;  %v14713_v25 = vld [vmem:[#allocation5 + $0x58] sm:$0x3]  ;;  %v7651_v23 = vrot.slane %v14705_v40, 1  ;;  %v7652_v48 = vrot.slane %v14707_v4, 1  ;;  %v14796_v51 = vsel %vm1242_vm5, %v7886_v60, %v7887_v63  ;;  %v7898_v22 = vrot.slane %v14705_v40, 2 }
 0x8d7   : > { %10805 = vmatpush3.bf16.msra.mxu1 %v14648_v3  ;;  %v7645_v1 = vrot.slane %v14711_v33, 1  ;;  %v7646_v17 = vrot.slane %v14713_v25, 1  ;;  %v14759_v44 = vpack.c.bf16 %v14711_v33, %v14688_v38  ;;  %v7892_v32 = vrot.slane %v14711_v33, 2  ;;  %v11732_v53 = vld [vmem:[#allocation16 + $0xe0] sm:$0xff]   ;;  %v11733_v43 = vld [vmem:[#allocation16 + $0xe8] sm:$0xff]  }
 0x8d8   : > { %10806 = vmatprep.subr.bf16.mxu1 %v11709_v46  ;;  %v14720_v54 = vld [vmem:[#allocation5 + $0x60] sm:$0xff]  ;;  %v14722_v7 = vld [vmem:[#allocation5 + $0x68] sm:$0x3]  ;;  %v14740_v2 = vsel %vm683_vm4, %v7651_v23, %v7652_v48  ;;  %v7893_v50 = vrot.slane %v14713_v25, 2  ;;  %v14800_v34 = vpack.c.bf16 %v14796_v51, %v14790_v15  ;;  %v14803_v47 = vsel %vm1242_vm5, %v7889_v11, %v7890_v24  ;;  %v11719_v48 = vld [vmem:[#allocation16 + $0x78] sm:$0xff]  }
 0x8d9   : > { %v14728_v27 = vsel %vm683_vm4, %v7645_v1, %v7646_v17  ;;  %v7648_v3 = vrot.slane %v14720_v54, 1  ;;  %v7649_v19 = vrot.slane %v14722_v7, 1  ;;  %v14775_v30 = vpack.c.bf16 %v14705_v40, %v14720_v54  ;;  %v11718_v25 = vld [vmem:[#allocation16 + $0x70] sm:$0xff]   ;;  %v7601_v63 = vld [vmem:[#allocation5 + $0x98] sm:$0x3] }
 0x8da   : > { %v14734_v56 = vpack.c.bf16 %v14728_v27, %v14725_v55  ;;  %v14793_v16 = vsel %vm1242_vm5, %v7892_v32, %v7893_v50  ;;  %v7895_v52 = vrot.slane %v14720_v54, 2  ;;  %v7899_v59 = vrot.slane %v14707_v4, 2  ;;  %v11720_v4 = vld [vmem:[#allocation16 + $0x80] sm:$0xff]   ;;  %v11734_v32 = vld [vmem:[#allocation16 + $0xf0] sm:$0xff]   ;;  %v7600_v50 = vld [vmem:[#allocation5 + $0x90] sm:$0xff] }
 0x8db   : > { %10807 = vmatpush3.bf16.msra.mxu1 %v11709_v46  ;;  %v14737_v37 = vsel %vm683_vm4, %v7648_v3, %v7649_v19  ;;  %v14807_v61 = vpack.c.bf16 %v14793_v16, %v14803_v47  ;;  %v7896_v46 = vrot.slane %v14722_v7, 2  ;;  %v8032_v7 = vpack.c.bf16 %v14688_v38, %v14661_v9  ;;  %v11721_v3 = vld [vmem:[#allocation16 + $0x88] sm:$0xff]   ;;  %v11724_v38 = vld [vmem:[#allocation16 + $0xa0] sm:$0xff]   ;;  %v11738_v24 = vld [vmem:[#allocation16 + $0x110] sm:$0xff]  }
 0x8dc   : > { %10800 = vmatprep.mubr.msk.bf16.mxu1 %vm7551_vm15, %v14734_v56  ;;  %10808 = vmatprep.subr.bf16.mxu1 %v11710_v21  ;;  %v14746_v0 = vpack.c.bf16 %v14740_v2, %v14737_v37  ;;  %v14821_v17 = vsel %vm1242_vm5, %v7898_v22, %v7899_v59  ;;  %v8033_v19 = vpack.c.bf16 %v14720_v54, %v14711_v33  ;;  %v7599_v33 = vld [vmem:[#allocation5 + $0x88] sm:$0x3]  ;;  %v8520_v11 = vrot.slane %v7601_v63, 1 }
 0x8dd   : > { %v14818_v1 = vsel %vm1242_vm5, %v7895_v52, %v7896_v46  ;;  %v8159_v9 = vpack.c.bf16 %v14693_v12, %v14683_v8  ;;  %v8160_v54 = vpack.c.bf16 %v14725_v55, %v14696_v62  ;;  %v8156_v8 = vrot.slane %v7599_v33, 1  ;;  %v11726_v12 = vld [vmem:[#allocation16 + $0xb0] sm:$0xff]   ;;  %v11727_v55 = vld [vmem:[#allocation16 + $0xb8] sm:$0xff]  }
 0x8de   : > { %10801 = vmatmul.mubr.msk.bf16.gmra.mrb[36].mxu1 %vm7551_vm15, %v14746_v0  ;;  %v14825_v23 = vpack.c.bf16 %v14821_v17, %v14818_v1  ;;  %v8286_v5 = vpack.c.bf16 %v14803_v47, %v14796_v51  ;;  %v8634_v51 = vrot.slane %v7601_v63, 2 }
 0x8df   : > { %10809 = vmatpush3.bf16.msra.mxu1 %v11710_v21  ;;  %10812 = vmatprep.mubr.msk.bf16.mxu1 %vm7551_vm15, %v7602_v28  ;;  %v8031_v21 = vpack.c.bf16 %v14677_v45, %v14666_v58  ;;  %v11722_v58 = vld [vmem:[#allocation16 + $0x90] sm:$0xff]   ;;  %v14838_v45 = vld [vmem:[#allocation5 + $0x80] sm:$0xff]  ;;  %v11723_v28 = vld [vmem:[#allocation16 + $0x98] sm:$0xff]  }
 0x8e0   : > { %10810 = vmatprep.subr.bf16.mxu1 %v11711_v36  ;;  %v8281_v10 = vrot.slane %v14838_v45, 2  ;;  %v8407_v60 = vpack.c.bf16 %v7600_v50, %v14838_v45 }
 0x8e3   : > { %10811 = vmatpush3.bf16.msra.mxu1 %v11711_v36  ;;  %v8034_v36 = vpack.c.bf16 %v14838_v45, %v14705_v40  ;;  %v8161_v40 = vpack.c.bf16 %v14737_v37, %v14728_v27  ;;  %v8285_v27 = vpack.c.bf16 %v14790_v15, %v14771_v49  ;;  %v11728_v37 = vld [vmem:[#allocation16 + $0xc0] sm:$0xff]  }
 0x8e4   : > { %10820 = vmatprep.subr.bf16.mxu1 %v11712_v13 }
 0x8e6   : > { %10813 = vmatmul.mubr.msk.bf16.vlgmr.msra.gmra.mrb[32].mxu1 %vm7551_vm15, %v14755_v57 }
 0x8e7   : > { %10821 = vmatpush3.bf16.msra.mxu1 %v11712_v13  ;;  %10816 = vmatprep.mubr.msk.bf16.mxu1 %vm7551_vm15, %v14759_v44  ;;  %v11725_v13 = vld [vmem:[#allocation16 + $0xa8] sm:$0xff]  }
 0x8e8   : > { %10822 = vmatprep.subr.bf16.mxu1 %v11713_v18 }
 0x8eb   : > { %10823 = vmatpush3.bf16.msra.mxu1 %v11713_v18  ;;  %v8155_v18 = vrot.slane %v14838_v45, 1 }
 0x8ec   : > { %10824 = vmatprep.subr.bf16.mxu1 %v11714_v41 }
 0x8ed   : > { %v14854_v14 = vsel %vm683_vm4, %v8155_v18, %v8156_v8 }
 0x8ee   : > { %10817 = vmatmul.mubr.msk.bf16.gmra.mrb[36].mxu1 %vm7551_vm15, %v14775_v30  ;;  %v8162_v62 = vpack.c.bf16 %v14854_v14, %v14740_v2  ;;  %v8287_v2 = vpack.c.bf16 %v14818_v1, %v14793_v16  ;;  %v11739_v16 = vld [vmem:[#allocation16 + $0x118] sm:$0xff]  }
 0x8ef   : > { %10825 = vmatpush3.bf16.msra.mxu1 %v11714_v41  ;;  %10828 = vmatprep.mubr.msk.bf16.mxu1 %vm7551_vm15, %v7909_v39  ;;  %v8282_v41 = vrot.slane %v7599_v33, 2  ;;  %v11731_v39 = vld [vmem:[#allocation16 + $0xd8] sm:$0xff]  }
 0x8f0   : > { %10826 = vmatprep.subr.bf16.mxu1 %v11715_v35 }
 0x8f1   : > { %v8283_v49 = vsel %vm1242_vm5, %v8281_v10, %v8282_v41 }
 0x8f3   : > { %10827 = vmatpush3.bf16.msra.mxu1 %v11715_v35  ;;  %v8288_v35 = vpack.c.bf16 %v8283_v49, %v14821_v17 }
 0x8f4   : > { %10836 = vmatprep.subr.bf16.mxu1 %v11716_v31 }
 0x8f6   : > { %10829 = vmatmul.mubr.msk.bf16.vlgmr.msra.gmra.mrb[32].mxu1 %vm7551_vm15, %v14800_v34 }
 0x8f7   : > { %10837 = vmatpush3.bf16.msra.mxu1 %v11716_v31  ;;  %10832 = vmatprep.mubr.msk.bf16.mxu1 %vm7551_vm15, %v14807_v61  ;;  %v8519_v31 = vrot.slane %v7600_v50, 1 }
 0x8f8   : > { %10838 = vmatprep.subr.bf16.mxu1 %v11717_v6 }
 0x8f9   : > { %v8521_v15 = vsel %vm683_vm4, %v8519_v31, %v8520_v11 }
 0x8fb   : > { %10839 = vmatpush3.bf16.msra.mxu1 %v11717_v6  ;;  %v14897_v6 = vld [vmem:[#allocation17] ss:$0 sm:$0xff] }
 0x8fc   : > { %10840 = vmatprep.subr.bf16.mxu1 %v11718_v25 }
 0x8fe   : > { %10833 = vmatmul.mubr.msk.bf16.gmra.mrb[36].mxu1 %vm7551_vm15, %v14825_v23 }
 0x8ff   : > { %10841 = vmatpush3.bf16.msra.mxu1 %v11718_v25  ;;  %10844 = vmatprep.mubr.msk.bf16.mxu1 %vm7551_vm15, %v8031_v21 }
 0x900   : > { %10842 = vmatprep.subr.bf16.mxu1 %v11719_v48 }
 0x903   : > { %10843 = vmatpush3.bf16.msra.mxu1 %v11719_v48 }
 0x904   : > { %10852 = vmatprep.subr.bf16.mxu1 %v11720_v4 }
 0x906   : > { %10845 = vmatmul.mubr.msk.bf16.vlgmr.msra.gmra.mrb[32].mxu1 %vm7551_vm15, %v8032_v7 }
 0x907   : > { %10853 = vmatpush3.bf16.msra.mxu1 %v11720_v4  ;;  %10848 = vmatprep.mubr.msk.bf16.mxu1 %vm7551_vm15, %v8033_v19 }
 0x908   : > { %10854 = vmatprep.subr.bf16.mxu1 %v11721_v3 }
 0x90b   : > { %10855 = vmatpush3.bf16.msra.mxu1 %v11721_v3 }
 0x90c   : > { %10856 = vmatprep.subr.bf16.mxu1 %v11722_v58 }
 0x90e   : > { %10849 = vmatmul.mubr.msk.bf16.gmra.mrb[36].mxu1 %vm7551_vm15, %v8034_v36 }
 0x90f   : > { %10857 = vmatpush3.bf16.msra.mxu1 %v11722_v58  ;;  %10860 = vmatprep.mubr.msk.bf16.mxu1 %vm7551_vm15, %v8159_v9 }
 0x910   : > { %10858 = vmatprep.subr.bf16.mxu1 %v11723_v28 }
 0x913   : > { %10859 = vmatpush3.bf16.msra.mxu1 %v11723_v28 }
 0x914   : > { %10868 = vmatprep.subr.bf16.mxu1 %v11724_v38 }
 0x916   : > { %10861 = vmatmul.mubr.msk.bf16.vlgmr.msra.gmra.mrb[32].mxu1 %vm7551_vm15, %v8160_v54 }
 0x917   : > { %10869 = vmatpush3.bf16.msra.mxu1 %v11724_v38  ;;  %10864 = vmatprep.mubr.msk.bf16.mxu1 %vm7551_vm15, %v8161_v40 }
 0x918   : > { %10870 = vmatprep.subr.bf16.mxu1 %v11725_v13 }
 0x91b   : > { %10871 = vmatpush3.bf16.msra.mxu1 %v11725_v13 }
 0x91c   : > { %10872 = vmatprep.subr.bf16.mxu1 %v11726_v12 }
 0x91e   : > { %10865 = vmatmul.mubr.msk.bf16.gmra.mrb[36].mxu1 %vm7551_vm15, %v8162_v62 }
 0x91f   : > { %10873 = vmatpush3.bf16.msra.mxu1 %v11726_v12  ;;  %10876 = vmatprep.mubr.msk.bf16.mxu1 %vm7551_vm15, %v8285_v27 }
 0x920   : > { %10874 = vmatprep.subr.bf16.mxu1 %v11727_v55 }
 0x923   : > { %10875 = vmatpush3.bf16.msra.mxu1 %v11727_v55 }
 0x924   : > { %10884 = vmatprep.subr.bf16.mxu1 %v11728_v37 }
 0x926   : > { %10877 = vmatmul.mubr.msk.bf16.vlgmr.msra.gmra.mrb[32].mxu1 %vm7551_vm15, %v8286_v5 }
 0x927   : > { %10885 = vmatpush3.bf16.msra.mxu1 %v11728_v37  ;;  %10880 = vmatprep.mubr.msk.bf16.mxu1 %vm7551_vm15, %v8287_v2 }
 0x928   : > { %10886 = vmatprep.subr.bf16.mxu1 %v11729_v20 }
 0x92b   : > { %10887 = vmatpush3.bf16.msra.mxu1 %v11729_v20 }
 0x92c   : > { %10888 = vmatprep.subr.bf16.mxu1 %v11730_v42 }
 0x92e   : > { %10881 = vmatmul.mubr.msk.bf16.gmra.mrb[36].mxu1 %vm7551_vm15, %v8288_v35 }
 0x92f   : > { %10889 = vmatpush3.bf16.msra.mxu1 %v11730_v42  ;;  %10892 = vmatprep.mubr.msk.bf16.mxu1 %vm7551_vm15, %v14755_v57  ;;  %v11735_v57 = vld [vmem:[#allocation16 + $0xf8] sm:$0xff]  }
 0x930   : > { %10890 = vmatprep.subr.bf16.mxu1 %v11731_v39 }
 0x933   : > { %10891 = vmatpush3.bf16.msra.mxu1 %v11731_v39 }
 0x934   : > { %10900 = vmatprep.subr.bf16.mxu1 %v11732_v53 }
 0x936   : > { %10893 = vmatmul.mubr.msk.bf16.vlgmr.msra.gmra.mrb[32].mxu1 %vm7551_vm15, %v14759_v44  ;;  %v11736_v44 = vld [vmem:[#allocation16 + $0x100] sm:$0xff]  }
 0x937   : > { %10901 = vmatpush3.bf16.msra.mxu1 %v11732_v53  ;;  %10896 = vmatprep.mubr.msk.bf16.mxu1 %vm7551_vm15, %v14775_v30  ;;  %v11737_v30 = vld [vmem:[#allocation16 + $0x108] sm:$0xff]  }
 0x938   : > { %10902 = vmatprep.subr.bf16.mxu1 %v11733_v43 }
 0x93b   : > { %10903 = vmatpush3.bf16.msra.mxu1 %v11733_v43 }
 0x93c   : > { %10904 = vmatprep.subr.bf16.mxu1 %v11734_v32 }
 0x93e   : > { %10897 = vmatmul.mubr.msk.bf16.gmra.mrb[36].mxu1 %vm7551_vm15, %v8407_v60 }
 0x93f   : > { %10905 = vmatpush3.bf16.msra.mxu1 %v11734_v32  ;;  %10908 = vmatprep.mubr.msk.bf16.mxu1 %vm7551_vm15, %v14701_v29  ;;  %v8523_v29 = vpack.c.bf16 %v8521_v15, %v14854_v14 }
 0x940   : > { %10906 = vmatprep.subr.bf16.mxu1 %v11735_v57 }
 0x943   : > { %10907 = vmatpush3.bf16.msra.mxu1 %v11735_v57 }
 0x944   : > { %10916 = vmatprep.subr.bf16.mxu1 %v11736_v44 }
 0x946   : > { %10909 = vmatmul.mubr.msk.bf16.vlgmr.msra.gmra.mrb[32].mxu1 %vm7551_vm15, %v14734_v56  ;;  %v8633_v56 = vrot.slane %v7600_v50, 2 }
 0x947   : > { %10917 = vmatpush3.bf16.msra.mxu1 %v11736_v44  ;;  %10912 = vmatprep.mubr.msk.bf16.mxu1 %vm7551_vm15, %v14746_v0 }
 0x948   : > { %10918 = vmatprep.subr.bf16.mxu1 %v11737_v30  ;;  %v8635_v0 = vsel %vm1242_vm5, %v8633_v56, %v8634_v51 }
 0x949   : > { %v8637_v47 = vpack.c.bf16 %v8635_v0, %v8283_v49 }
 0x94b   : > { %10919 = vmatpush3.bf16.msra.mxu1 %v11737_v30 }
 0x94c   : > { %10920 = vmatprep.subr.bf16.mxu1 %v11738_v24 }
 0x94e   : > { %10913 = vmatmul.mubr.msk.bf16.gmra.mrb[36].mxu1 %vm7551_vm15, %v8523_v29 }
 0x94f   : > { %10921 = vmatpush3.bf16.msra.mxu1 %v11738_v24  ;;  %10924 = vmatprep.mubr.msk.bf16.mxu1 %vm7551_vm15, %v14800_v34 }
 0x950   : > { %10922 = vmatprep.subr.bf16.mxu1 %v11739_v16 }
 0x953   : > { %10923 = vmatpush3.bf16.msra.mxu1 %v11739_v16 }
 0x956   : > { %10925 = vmatmul.mubr.msk.bf16.vlgmr.msra.gmra.mrb[32].mxu1 %vm7551_vm15, %v14807_v61 }
 0x957   : > { %10928 = vmatprep.mubr.msk.bf16.mxu1 %vm7551_vm15, %v14825_v23 }
 0x95e   : > { %10929 = vmatmul.mubr.msk.bf16.gmra.mrb[36].mxu1 %vm7551_vm15, %v8637_v47 }
 0xa29   : > { %v10926_v52 = vpop.f32.mrb[32].mxu1 }
 0xa2a   : > { %v8756_v34 = vadd.f32 %v10926_v52, %v14897_v6  ;;  %v8708_v46 = vpop.f32.mrb[33].mxu1 }
 0xa2b   : > { %v8754_v22 = vadd.f32 %v14897_v6, %v8708_v46  ;;  %v10927_v59 = vpop.f32.mrb[34].mxu1 }
 0xa2c   : > { %v8757_v25 = vadd.f32 %v10927_v59, %v14897_v6  ;;  %v8711_v61 = vpop.f32.mrb[35].mxu1  ;;  %v8764_v17 = vmax.f32 %v8756_v34, 0.0 }
 0xa2d   : > { %v8755_v1 = vadd.f32 %v14897_v6, %v8711_v61  ;;  %v8762_v48 = vmax.f32 %v8754_v22, 0.0 }
 0xa2e   : > { %v8765_v23 = vmax.f32 %v8757_v25, 0.0 }
 0xa2f   : > { %v8763_v21 = vmax.f32 %v8755_v1, 0.0 }
 0xa30   : > { %v8771_v4 = vmax.f32 %v8764_v17, %v8765_v23 }
 0xa31   : > { %v8770_v7 = vmax.f32 %v8762_v48, %v8763_v21  ;;  %v10930_v3 = vpop.f32.mrb[36].mxu1 }
 0xa32   : > { %v8795_v19 = vcombine.high %v8771_v4, %v8771_v4  ;;  %v8802_v58 = vrot.slane %v8771_v4, %v14070_v26  ;;  %v8724_v45 = vpop.f32.mrb[37].mxu1  ;;  %v14908_v13 = vadd.f32 %v10930_v3, %v14897_v6 }
 0xa33   : > { %v8778_v36 = vcombine.high %v8770_v7, %v8770_v7  ;;  %v8785_v28 = vrot.slane %v8770_v7, %v14070_v26  ;;  %v10931_v9 = vpop.f32.mrb[38].mxu1  ;;  %v8758_v22 = vadd.f32 %v14897_v6, %v8724_v45 }
 0xa34   : > { %v8809_v38 = vrot.slane %v8795_v19, %v14070_v26  ;;  %v8810_v33 = vcombine.high %v8802_v58, %v8802_v58  ;;  %v8890_v54 = vsel %vm863_vm3, %v8802_v58, -inf  ;;  %v8727_v40 = vpop.f32.mrb[39].mxu1  ;;  %v8768_v21 = vmax.f32 %v14908_v13, 0.0 }
 0xa35   : > { %v8891_v18 = vrot.slane %v8890_v54, 4  ;;  %v8792_v8 = vrot.slane %v8778_v36, %v14070_v26  ;;  %v8793_v12 = vcombine.high %v8785_v28, %v8785_v28  ;;  %v8862_v14 = vsel %vm863_vm3, %v8785_v28, -inf }
 0xa36   : > { %v8811_v62 = vcombine.high %v8809_v38, %v8809_v38  ;;  %v8897_v55 = vsel %vm863_vm3, %v8810_v33, -inf  ;;  %v8904_v27 = vsel %vm863_vm3, %v8809_v38, -inf  ;;  %v8863_v37 = vrot.slane %v8862_v14, 4 }
 0xa37   : > { %v8892_v5 = vmax.f32 %v8890_v54, %v8891_v18  ;;  %v8898_v20 = vrot.slane %v8897_v55, 4  ;;  %v8905_v2 = vrot.slane %v8904_v27, 4  ;;  %v8794_v10 = vcombine.high %v8792_v8, %v8792_v8 }
 0xa38   : > { %v8911_v41 = vsel %vm863_vm3, %v8811_v62, -inf  ;;  %v8864_v42 = vmax.f32 %v8862_v14, %v8863_v37  ;;  %v8869_v49 = vsel %vm863_vm3, %v8793_v12, -inf  ;;  %v8876_v35 = vsel %vm863_vm3, %v8792_v8, -inf }
 0xa39   : > { %v8893_v39 = vrot.slane %v8892_v5, 2  ;;  %v8899_v53 = vmax.f32 %v8897_v55, %v8898_v20  ;;  %v8906_v43 = vmax.f32 %v8904_v27, %v8905_v2  ;;  %v8912_v32 = vrot.slane %v8911_v41, 4 }
 0xa3a   : > { %v8865_v50 = vrot.slane %v8864_v42, 2  ;;  %v8870_v60 = vrot.slane %v8869_v49, 4  ;;  %v8877_v57 = vrot.slane %v8876_v35, 4  ;;  %v8883_v44 = vsel %vm863_vm3, %v8794_v10, -inf }
 0xa3b   : > { %v8894_v63 = vmax.f32 %v8892_v5, %v8893_v39  ;;  %v8900_v30 = vrot.slane %v8899_v53, 2  ;;  %v8907_v31 = vrot.slane %v8906_v43, 2  ;;  %v8913_v11 = vmax.f32 %v8911_v41, %v8912_v32 }
 0xa3c   : > { %v8866_v24 = vmax.f32 %v8864_v42, %v8865_v50  ;;  %v8871_v15 = vmax.f32 %v8869_v49, %v8870_v60  ;;  %v8878_v29 = vmax.f32 %v8876_v35, %v8877_v57  ;;  %v8884_v16 = vrot.slane %v8883_v44, 4 }
 0xa3d   : > { %v8895_v56 = vrot.slane %v8894_v63, 1  ;;  %v8901_v51 = vmax.f32 %v8899_v53, %v8900_v30  ;;  %v8908_v0 = vmax.f32 %v8906_v43, %v8907_v31  ;;  %v8914_v47 = vrot.slane %v8913_v11, 2 }
 0xa3e   : > { %v8872_v52 = vrot.slane %v8871_v15, 2  ;;  %v8879_v34 = vrot.slane %v8878_v29, 2  ;;  %v8885_v46 = vmax.f32 %v8883_v44, %v8884_v16  ;;  %v8867_v1 = vrot.slane %v8866_v24, 1 }
 0xa3f   : > { %v8902_v59 = vrot.slane %v8901_v51, 1  ;;  %v8909_v25 = vrot.slane %v8908_v0, 1  ;;  %v8915_v61 = vmax.f32 %v8913_v11, %v8914_v47  ;;  %v8896_v4 = vmax.f32 %v8894_v63, %v8895_v56 }
 0xa40   : > { %v8873_v17 = vmax.f32 %v8871_v15, %v8872_v52  ;;  %v8880_v23 = vmax.f32 %v8878_v29, %v8879_v34  ;;  %v8886_v48 = vrot.slane %v8885_v46, 2  ;;  %v8761_v38 = vadd.f32 %v10931_v9, %v14897_v6 }
 0xa41   : > { %v8903_v7 = vmax.f32 %v8901_v51, %v8902_v59  ;;  %v8910_v3 = vmax.f32 %v8908_v0, %v8909_v25  ;;  %v8916_v19 = vrot.slane %v8915_v61, 1  ;;  %v8868_v54 = vmax.f32 %v8866_v24, %v8867_v1 }
 0xa42   : > { %v8874_v58 = vrot.slane %v8873_v17, 1  ;;  %v8881_v36 = vrot.slane %v8880_v23, 1  ;;  %v8887_v28 = vmax.f32 %v8885_v46, %v8886_v48  ;;  %v8759_v13 = vadd.f32 %v14897_v6, %v8727_v40 }
 0xa43   : > { %v8917_v45 = vmax.f32 %v8915_v61, %v8916_v19  ;;  %v8993_v33 = vsel %vm6427_vm8, %v8903_v7, %v8896_v4  ;;  %v8766_v62 = vmax.f32 %v8758_v22, 0.0  ;;  %v8769_v55 = vmax.f32 %v8761_v38, 0.0 }
 0xa44   : > { %v8994_v18 = vsel %vm6429_vm9, %v8910_v3, %v8993_v33  ;;  %v8875_v8 = vmax.f32 %v8873_v17, %v8874_v58  ;;  %v8882_v12 = vmax.f32 %v8880_v23, %v8881_v36  ;;  %v8888_v14 = vrot.slane %v8887_v28, 1 }
 0xa45   : > { %v8995_v9 = vsel %vm6431_vm10, %v8917_v45, %v8994_v18  ;;  %v8767_v27 = vmax.f32 %v8759_v13, 0.0  ;;  %v8773_v2 = vmax.f32 %v8768_v21, %v8769_v55 }
 0xa46   : > { %9007 = vst [vmem:[%s14925_s22 + $0x4] sm:$0xf] %v8995_v9  ;;  %v8889_v37 = vmax.f32 %v8887_v28, %v8888_v14  ;;  %v8990_v5 = vsel %vm6427_vm8, %v8875_v8, %v8868_v54 }
 0xa47   : > { %v8991_v20 = vsel %vm6429_vm9, %v8882_v12, %v8990_v5  ;;  %v8772_v10 = vmax.f32 %v8766_v62, %v8767_v27  ;;  %v8829_v40 = vcombine.high %v8773_v2, %v8773_v2  ;;  %v8836_v41 = vrot.slane %v8773_v2, %v14070_v26 }
 0xa48   : > { %v8992_v6 = vsel %vm6431_vm10, %v8889_v37, %v8991_v20 }
 0xa49   : > { %9006 = vst [vmem:[%s14925_s22] sm:$0xf] %v8992_v6  ;;  %v8812_v42 = vcombine.high %v8772_v10, %v8772_v10  ;;  %v8819_v49 = vrot.slane %v8772_v10, %v14070_v26  ;;  %v8843_v35 = vrot.slane %v8829_v40, %v14070_v26  ;;  %v8844_v39 = vcombine.high %v8836_v41, %v8836_v41 }
 0xa4a   : > { %v8946_v53 = vsel %vm863_vm3, %v8836_v41, -inf }
 0xa4b   : > { %v8826_v43 = vrot.slane %v8812_v42, %v14070_v26  ;;  %v8947_v32 = vrot.slane %v8946_v53, 4  ;;  %v8827_v50 = vcombine.high %v8819_v49, %v8819_v49  ;;  %v8918_v60 = vsel %vm863_vm3, %v8819_v49, -inf }
 0xa4c   : > { %v8845_v57 = vcombine.high %v8843_v35, %v8843_v35  ;;  %v8953_v44 = vsel %vm863_vm3, %v8844_v39, -inf  ;;  %v8960_v63 = vsel %vm863_vm3, %v8843_v35, -inf  ;;  %v8919_v15 = vrot.slane %v8918_v60, 4 }
 0xa4d   : > { %v8828_v30 = vcombine.high %v8826_v43, %v8826_v43  ;;  %v8948_v31 = vmax.f32 %v8946_v53, %v8947_v32  ;;  %v8954_v11 = vrot.slane %v8953_v44, 4  ;;  %v8961_v24 = vrot.slane %v8960_v63, 4 }
 0xa4e   : > { %v8967_v29 = vsel %vm863_vm3, %v8845_v57, -inf  ;;  %v8925_v16 = vsel %vm863_vm3, %v8827_v50, -inf  ;;  %v8932_v26 = vsel %vm863_vm3, %v8826_v43, -inf  ;;  %v8920_v34 = vmax.f32 %v8918_v60, %v8919_v15 }
 0xa4f   : > { %v8939_v56 = vsel %vm863_vm3, %v8828_v30, -inf  ;;  %v8949_v51 = vrot.slane %v8948_v31, 2  ;;  %v8955_v0 = vmax.f32 %v8953_v44, %v8954_v11  ;;  %v8962_v47 = vmax.f32 %v8960_v63, %v8961_v24 }
 0xa50   : > { %v8968_v52 = vrot.slane %v8967_v29, 4  ;;  %v8926_v46 = vrot.slane %v8925_v16, 4  ;;  %v8933_v22 = vrot.slane %v8932_v26, 4  ;;  %v8940_v59 = vrot.slane %v8939_v56, 4 }
 0xa51   : > { %v8950_v25 = vmax.f32 %v8948_v31, %v8949_v51  ;;  %v8956_v61 = vrot.slane %v8955_v0, 2  ;;  %v8963_v1 = vrot.slane %v8962_v47, 2  ;;  %v8921_v23 = vrot.slane %v8920_v34, 2 }
 0xa52   : > { %v8969_v17 = vmax.f32 %v8967_v29, %v8968_v52  ;;  %v8927_v48 = vmax.f32 %v8925_v16, %v8926_v46  ;;  %v8934_v21 = vmax.f32 %v8932_v26, %v8933_v22  ;;  %v8941_v4 = vmax.f32 %v8939_v56, %v8940_v59 }
 0xa53   : > { %v8951_v7 = vrot.slane %v8950_v25, 1  ;;  %v8957_v3 = vmax.f32 %v8955_v0, %v8956_v61  ;;  %v8964_v19 = vmax.f32 %v8962_v47, %v8963_v1  ;;  %v8922_v36 = vmax.f32 %v8920_v34, %v8921_v23 }
 0xa54   : > { %v8970_v58 = vrot.slane %v8969_v17, 2  ;;  %v8928_v28 = vrot.slane %v8927_v48, 2  ;;  %v8935_v38 = vrot.slane %v8934_v21, 2  ;;  %v8942_v45 = vrot.slane %v8941_v4, 2 }
 0xa55   : > { %v8958_v33 = vrot.slane %v8957_v3, 1  ;;  %v8965_v54 = vrot.slane %v8964_v19, 1  ;;  %v8923_v18 = vrot.slane %v8922_v36, 1  ;;  %v8952_v9 = vmax.f32 %v8950_v25, %v8951_v7 }
 0xa56   : > { %v8971_v13 = vmax.f32 %v8969_v17, %v8970_v58  ;;  %v8929_v8 = vmax.f32 %v8927_v48, %v8928_v28  ;;  %v8936_v12 = vmax.f32 %v8934_v21, %v8935_v38  ;;  %v8943_v14 = vmax.f32 %v8941_v4, %v8942_v45 }
 0xa57   : > { %v8959_v62 = vmax.f32 %v8957_v3, %v8958_v33  ;;  %v8966_v55 = vmax.f32 %v8964_v19, %v8965_v54  ;;  %v8924_v6 = vmax.f32 %v8922_v36, %v8923_v18 }
 0xa58   : > { %v8972_v27 = vrot.slane %v8971_v13, 1  ;;  %v8930_v37 = vrot.slane %v8929_v8, 1  ;;  %v8937_v5 = vrot.slane %v8936_v12, 1  ;;  %v8944_v20 = vrot.slane %v8943_v14, 1 }
 0xa59   : > { %v8999_v10 = vsel %vm6427_vm8, %v8959_v62, %v8952_v9 }
 0xa5a   : > { %v8973_v2 = vmax.f32 %v8971_v13, %v8972_v27  ;;  %v9000_v40 = vsel %vm6429_vm9, %v8966_v55, %v8999_v10  ;;  %v8931_v41 = vmax.f32 %v8929_v8, %v8930_v37  ;;  %v8938_v42 = vmax.f32 %v8936_v12, %v8937_v5 }
 0xa5b   : > { %v8945_v49 = vmax.f32 %v8943_v14, %v8944_v20 }
 0xa5c   : > { %v9001_v35 = vsel %vm6431_vm10, %v8973_v2, %v9000_v40  ;;  %v8996_v39 = vsel %vm6427_vm8, %v8931_v41, %v8924_v6 }
 0xa5d   : > { %9009 = vst [vmem:[%s14925_s22 + $0xc] sm:$0xf] %v9001_v35  ;;  %v8997_v53 = vsel %vm6429_vm9, %v8938_v42, %v8996_v39 }
 0xa5e   : > { %v8998_v43 = vsel %vm6431_vm10, %v8945_v49, %v8997_v53 }
 0xa5f   : > { %9008 = vst [vmem:[%s14925_s22 + $0x8] sm:$0xf] %v8998_v43 }
 0xa60 PF: > { %s24_s30 = sadd.s32 1, %s11993_s30  }
 0xa61   : > { %p21_p13 = scmp.ge.s32.totalorder %s24_s30, 4  }
 0xa63   :  { %23 = sbr.rel (!%p21_p13) target bundleno = 5 (0x5), region = 155 }
 0xa6a   :  { %9031 = vsyncpa [#allocation7], 1 }
 0xa6b   :  { %9033 = vsyncpa [#allocation7 + $0x1], 1 }
 0xa6c   :  { %9034 = vsyncpa [#allocation9], 1 }
 0xa6d   :  { %9035 = vsyncpa [#allocation12], 1 }
 0xa6e   :  { %9036 = vsyncpa [#allocation15], 1 }
 0xa6f   :  { %9037 = vsyncpa [#allocation18], 1 }

</bundles_post_ra>
